<compile_context>
chip_gen: v7x
topology: tpu7x:2x2x1
jax: 0.10.0
libtpu: 0.0.40
codegen_flags: <defaults>
</compile_context>

<pallas_src>
import jax
import jax.numpy as jnp
from jax.experimental import pallas as pl
from jax.experimental.pallas import tpu as pltpu

WIDTH = 64        # hidden width (my_FFNN default)
N_IN = 1          # n_input_dims
N_OUT = 1         # n_output_dims
SIGMA = 20.0

# Explicit pin: guaranteed-supported by the Mosaic dot lowering and identical
# to the reference's precision, so the tolerance check is like-for-like.
_MATMUL_PRECISION = jax.lax.Precision.HIGHEST


def _round_up(a, b):
    return ((a + b - 1) // b) * b


def _round_down(a, b):
    return (a // b) * b


def ffnn_kernel(x_ref, cols_ref, w1_ref, w2_ref, o_ref):
    # Feature-major layout: x tile is (1, T); activations are (WIDTH, T).
    x = x_ref[...]                        # (1, T)

    # Packed small operands, all resident: (WIDTH, 8)
    cols = cols_ref[...]
    bfull = cols[:, 0:1]                  # [B; B]          (WIDTH, 1)
    phase = cols[:, 1:2]                  # [0; pi/2]       (WIDTH, 1)
    b1 = cols[:, 2:3]                     # bias 1          (WIDTH, 1)
    b2 = cols[:, 3:4]                     # bias 2          (WIDTH, 1)
    w3 = cols[:, 4:5]                     # final weights   (WIDTH, 1)
    b3 = cols[0:1, 5:6]                   # final bias      (1, 1)

    # Fused Fourier features: rows 0..31 -> sin(B_i x), rows 32..63 -> cos via
    # sin(B_i x + pi/2).  One EUP pass, no lane/sublane concatenate.
    # (Margin vs the reference's cos() is ~5e-5 at |B.x| ~ few hundred; fine
    # for the 1e-4 tolerance.)
    feat = jnp.sin(bfull * x + phase)     # (WIDTH, T)

    # Two real MXU GEMMs (weights stored PyTorch-style (out, in)).
    h = jnp.dot(w1_ref[...], feat, preferred_element_type=jnp.float32,
                precision=_MATMUL_PRECISION) + b1
    h = jnp.maximum(h, 0.0)
    h = jnp.dot(w2_ref[...], h, preferred_element_type=jnp.float32,
                precision=_MATMUL_PRECISION) + b2
    h = jnp.maximum(h, 0.0)

    # Final 64 -> 1 projection: VPU multiply + sublane reduce.  Output tile
    # (1, T) stays lane-dense (unmasked vst).
    o_ref[...] = jnp.sum(w3 * h, axis=0, keepdims=True) + b3


def ffnn_forward(x, params, *, tile_n=8192):
    """x: (N, 1) float32 -> (N,) float32 (matches PyTorch .squeeze())."""
    B, w1, b1, w2, b2, w3, b3 = params
    N, d_in = x.shape
    assert d_in == N_IN

    # Tile choice:
    #   * multiple of 128 lanes,
    #   * grid >= 4 whenever N allows (>= 2 steps per v7x TensorCore so the
    #     "parallel" megacore split still pipelines DMAs within each core),
    #   * capped at tile_n (default 8192 rows; live f32 intermediates are only
    #     a few MiB, well inside the 32 MiB scoped-VMEM on v5e/v6e/v7x — sweep
    #     higher on v5e/v6e if desired).
    n_pad128 = _round_up(N, 128)
    tile = min(tile_n, max(128, _round_down(n_pad128 // 4, 128)))
    tile = max(128, _round_down(tile, 128))
    n_pad = _round_up(N, tile)
    grid = n_pad // tile

    # Lane-dense input: flatten + zero-pad to (1, n_pad).  Padded rows compute
    # garbage that is sliced off below.
    x_row = jnp.pad(x.reshape(-1), (0, n_pad - N)).reshape(1, n_pad)

    # Wrapper-side weight re-layouts (tiny, done by XLA outside the kernel).
    bfull = jnp.concatenate([B, B], axis=1).T                     # (WIDTH, 1)
    phase = jnp.concatenate(
        [jnp.zeros((WIDTH // 2, 1), jnp.float32),
         jnp.full((WIDTH // 2, 1), jnp.pi / 2, jnp.float32)], axis=0)
    b3_col = jnp.zeros((WIDTH, 1), jnp.float32).at[0, 0].set(b3.reshape(()))
    # Pack all five (WIDTH,1) column operands + scalar b3 into one resident
    # (WIDTH, 8) array -> 4 input windows instead of 9.
    cols = jnp.concatenate(
        [bfull, phase, b1.T, b2.T, w3, b3_col,
         jnp.zeros((WIDTH, 2), jnp.float32)], axis=1)             # (WIDTH, 8)
    w1_t, w2_t = w1.T, w2.T                                       # (out, in)

    full = lambda i: (0, 0)   # weights resident (same block every grid step)

    cost = pl.CostEstimate(
        flops=int(n_pad * (2 * 2 * WIDTH * WIDTH + 6 * WIDTH)),
        transcendentals=int(n_pad * WIDTH),
        bytes_accessed=int(4 * (2 * n_pad + 2 * WIDTH * WIDTH + 8 * WIDTH)),
    )

    out = pl.pallas_call(
        ffnn_kernel,
        out_shape=jax.ShapeDtypeStruct((1, n_pad), jnp.float32),
        grid_spec=pltpu.PrefetchScalarGridSpec(
            num_scalar_prefetch=0,
            grid=(grid,),
            in_specs=[
                pl.BlockSpec((1, tile), lambda i: (0, i)),        # x (lane-dense)
                pl.BlockSpec(cols.shape, full),                   # packed columns
                pl.BlockSpec(w1_t.shape, full),
                pl.BlockSpec(w2_t.shape, full),
            ],
            out_specs=pl.BlockSpec((1, tile), lambda i: (0, i)),  # lane-dense out
        ),
        compiler_params=pltpu.CompilerParams(
            dimension_semantics=("parallel",),
            # Covers the v5e 16 MiB scoped default at large tiles; safe headroom
            # on v6e/v7x as well.
            vmem_limit_bytes=32 * 1024 * 1024,
        ),
        cost_estimate=cost,
    )(x_row, cols, w1_t, w2_t)
    return out[0, :N]   # equivalent of torch .squeeze() on (N, 1)


def init_params(key):
    """Deterministic parameter init mirroring the module's __init__ shapes."""
    k = jax.random.split(key, 7)
    B = jax.random.normal(k[0], (N_IN, WIDTH // 2), jnp.float32) * SIGMA * 2.0 * jnp.pi
    # nn.Linear-style weights, stored as (in, out) so y = x @ W + b in the reference.
    def lin(kw, kb, fan_in, fan_out):
        bound = 1.0 / jnp.sqrt(fan_in)
        w = jax.random.uniform(kw, (fan_in, fan_out), jnp.float32, -bound, bound)
        b = jax.random.uniform(kb, (1, fan_out), jnp.float32, -bound, bound)
        return w, b
    w1, b1 = lin(k[1], k[2], WIDTH, WIDTH)
    w2, b2 = lin(k[3], k[4], WIDTH, WIDTH)
    w3, b3 = lin(k[5], k[6], WIDTH, N_OUT)
    return (B, w1, b1, w2, b2, w3, b3)


def ffnn_reference(x, params):
    """Pure-JAX reference (same math as the PyTorch module), f32 precision."""
    B, w1, b1, w2, b2, w3, b3 = params
    p = jax.lax.Precision.HIGHEST
    xb = jnp.dot(x, B, precision=p)
    feat = jnp.concatenate([jnp.sin(xb), jnp.cos(xb)], axis=1)
    h = jnp.maximum(jnp.dot(feat, w1, precision=p) + b1, 0.0)
    h = jnp.maximum(jnp.dot(h, w2, precision=p) + b2, 0.0)
    return (jnp.dot(h, w3, precision=p) + b3).squeeze()


if __name__ == "__main__":
    key = jax.random.PRNGKey(0)
    kx, kx2, kp = jax.random.split(key, 3)
    params = init_params(kp)

    # Main case: tile clamp gives tile=512, grid=4 (>= 2 steps per v7x core).
    N = 2048
    x = jax.random.normal(kx, (N, N_IN), jnp.float32)
    y = jax.block_until_ready(ffnn_forward(x, params))
    y_ref = ffnn_reference(x, params)
    assert y.shape == (N,)
    assert jnp.allclose(y, y_ref, atol=1e-4, rtol=1e-4)

    # Non-multiple N exercises the padding path (tile=128, grid=3).
    N2 = 300
    x2 = jax.random.normal(kx2, (N2, N_IN), jnp.float32)
    y2 = jax.block_until_ready(ffnn_forward(x2, params))
    y2_ref = ffnn_reference(x2, params)
    assert y2.shape == (N2,)
    assert jnp.allclose(y2, y2_ref, atol=1e-4, rtol=1e-4)

    print("KERNEL_OK")
</pallas_src>

<mosaic_0001>
module attributes {stable_mosaic.version = 11 : i64} {
  func.func @ffnn_kernel(%arg0: i32, %arg1: memref<1x512xf32, #tpu.memory_space<vmem>>, %arg2: memref<64x8xf32, #tpu.memory_space<vmem>>, %arg3: memref<64x64xf32, #tpu.memory_space<vmem>>, %arg4: memref<64x64xf32, #tpu.memory_space<vmem>>, %arg5: memref<1x512xf32, #tpu.memory_space<vmem>>) attributes {dimension_semantics = [#tpu.dimension_semantics<parallel>], iteration_bounds = array<i64: 4>, scalar_prefetch = 0 : i64, scratch_operands = 0 : i64, tpu.core_type = #tpu.core_type<tc>, window_params = [{transform_indices = @transform_0, window_bounds = array<i64: 1, 512>}, {pipeline_mode = #tpu.pipeline_mode<synchronous>, transform_indices = @transform_1, window_bounds = array<i64: 64, 8>}, {pipeline_mode = #tpu.pipeline_mode<synchronous>, transform_indices = @transform_2, window_bounds = array<i64: 64, 64>}, {pipeline_mode = #tpu.pipeline_mode<synchronous>, transform_indices = @transform_3, window_bounds = array<i64: 64, 64>}, {transform_indices = @transform_4, window_bounds = array<i64: 1, 512>}]} {
    %c0 = arith.constant 0 : index
    %c0_0 = arith.constant 0 : index
    %0 = vector.load %arg1[%c0, %c0_0] : memref<1x512xf32, #tpu.memory_space<vmem>>, vector<1x512xf32>
    %c0_1 = arith.constant 0 : index
    %c0_2 = arith.constant 0 : index
    %1 = vector.load %arg2[%c0_1, %c0_2] : memref<64x8xf32, #tpu.memory_space<vmem>>, vector<64x8xf32>
    %2 = vector.extract_strided_slice %1 {offsets = [0, 0], sizes = [64, 1], strides = [1, 1]} : vector<64x8xf32> to vector<64x1xf32>
    %3 = vector.extract_strided_slice %1 {offsets = [0, 1], sizes = [64, 1], strides = [1, 1]} : vector<64x8xf32> to vector<64x1xf32>
    %4 = vector.extract_strided_slice %1 {offsets = [0, 2], sizes = [64, 1], strides = [1, 1]} : vector<64x8xf32> to vector<64x1xf32>
    %5 = vector.extract_strided_slice %1 {offsets = [0, 3], sizes = [64, 1], strides = [1, 1]} : vector<64x8xf32> to vector<64x1xf32>
    %6 = vector.extract_strided_slice %1 {offsets = [0, 4], sizes = [64, 1], strides = [1, 1]} : vector<64x8xf32> to vector<64x1xf32>
    %7 = vector.extract_strided_slice %1 {offsets = [0, 5], sizes = [1, 1], strides = [1, 1]} : vector<64x8xf32> to vector<1x1xf32>
    %8 = vector.broadcast %2 : vector<64x1xf32> to vector<64x512xf32>
    %9 = vector.broadcast %0 : vector<1x512xf32> to vector<64x512xf32>
    %10 = arith.mulf %8, %9 : vector<64x512xf32>
    %11 = vector.broadcast %3 : vector<64x1xf32> to vector<64x512xf32>
    %12 = arith.addf %10, %11 : vector<64x512xf32>
    %13 = math.sin %12 : vector<64x512xf32>
    %c0_3 = arith.constant 0 : index
    %c0_4 = arith.constant 0 : index
    %14 = vector.load %arg3[%c0_3, %c0_4] : memref<64x64xf32, #tpu.memory_space<vmem>>, vector<64x64xf32>
    %cst = arith.constant dense<0.000000e+00> : vector<64x512xf32>
    %15 = tpu.matmul %14, %13, %cst {dimension_numbers = #tpu.dot_dimension_numbers<[1], [0], [0], [1], [0, 0, 1, 1], [], []>, precision = #tpu.contract_precision<fp32>} : vector<64x64xf32>, vector<64x512xf32>, vector<64x512xf32> -> vector<64x512xf32>
    %16 = vector.broadcast %4 : vector<64x1xf32> to vector<64x512xf32>
    %17 = arith.addf %15, %16 : vector<64x512xf32>
    %cst_5 = arith.constant 0.000000e+00 : f32
    %18 = vector.broadcast %cst_5 : f32 to vector<64x512xf32>
    %19 = arith.maximumf %17, %18 : vector<64x512xf32>
    %c0_6 = arith.constant 0 : index
    %c0_7 = arith.constant 0 : index
    %20 = vector.load %arg4[%c0_6, %c0_7] : memref<64x64xf32, #tpu.memory_space<vmem>>, vector<64x64xf32>
    %cst_8 = arith.constant dense<0.000000e+00> : vector<64x512xf32>
    %21 = tpu.matmul %20, %19, %cst_8 {dimension_numbers = #tpu.dot_dimension_numbers<[1], [0], [0], [1], [0, 0, 1, 1], [], []>, precision = #tpu.contract_precision<fp32>} : vector<64x64xf32>, vector<64x512xf32>, vector<64x512xf32> -> vector<64x512xf32>
    %22 = vector.broadcast %5 : vector<64x1xf32> to vector<64x512xf32>
    %23 = arith.addf %21, %22 : vector<64x512xf32>
    %cst_9 = arith.constant 0.000000e+00 : f32
    %24 = vector.broadcast %cst_9 : f32 to vector<64x512xf32>
    %25 = arith.maximumf %23, %24 : vector<64x512xf32>
    %26 = vector.broadcast %6 : vector<64x1xf32> to vector<64x512xf32>
    %27 = arith.mulf %26, %25 : vector<64x512xf32>
    %cst_10 = arith.constant dense<0.000000e+00> : vector<512xf32>
    %28 = vector.multi_reduction <add>, %27, %cst_10 [0] : vector<64x512xf32> to vector<512xf32>
    %29 = vector.shape_cast %28 : vector<512xf32> to vector<1x512xf32>
    %30 = vector.broadcast %7 : vector<1x1xf32> to vector<1x512xf32>
    %31 = arith.addf %29, %30 : vector<1x512xf32>
    %c0_11 = arith.constant 0 : index
    %c0_12 = arith.constant 0 : index
    %32 = vector.load %arg5[%c0_11, %c0_12] : memref<1x512xf32, #tpu.memory_space<vmem>>, vector<1x512xf32>
    tpu.vector_store %arg5[%c0_11, %c0_12], %31 {strides = array<i32>} : memref<1x512xf32, #tpu.memory_space<vmem>>, vector<1x512xf32>,
    return
  }
  func.func @transform_0(%arg0: i32) -> (i32, i32) {
    %c0_i32 = arith.constant 0 : i32
    %c0_i32_0 = arith.constant 0 : i32
    return %c0_i32, %arg0 : i32, i32
  }
  func.func @transform_1(%arg0: i32) -> (i32, i32) {
    %c0_i32 = arith.constant 0 : i32
    %c0_i32_0 = arith.constant 0 : i32
    %c0_i32_1 = arith.constant 0 : i32
    return %c0_i32, %c0_i32_0 : i32, i32
  }
  func.func @transform_2(%arg0: i32) -> (i32, i32) {
    %c0_i32 = arith.constant 0 : i32
    %c0_i32_0 = arith.constant 0 : i32
    %c0_i32_1 = arith.constant 0 : i32
    return %c0_i32, %c0_i32_0 : i32, i32
  }
  func.func @transform_3(%arg0: i32) -> (i32, i32) {
    %c0_i32 = arith.constant 0 : i32
    %c0_i32_0 = arith.constant 0 : i32
    %c0_i32_1 = arith.constant 0 : i32
    return %c0_i32, %c0_i32_0 : i32, i32
  }
  func.func @transform_4(%arg0: i32) -> (i32, i32) {
    %c0_i32 = arith.constant 0 : i32
    %c0_i32_0 = arith.constant 0 : i32
    return %c0_i32, %arg0 : i32, i32
  }
}

</mosaic_0001>

<bundles_post_ra>
// kernel: tpu_custom_call.1
= control target key start
LH: loop header
LB: loop body
LE: loop exit
PB: predicated region body
PF: predicated region fallthrough
CT: control target
= control target key end

     0   :  { %9 = vsyncpa [#allocation3], 0  ;;  %s15322_s0 = inlined_call_operand.hbm [shape: f32[1,2048], index: 0, kind: input, shape index: {}]   ;;  %s15323_s1 = inlined_call_operand.vmem [shape: f32[64,8], index: 1, kind: input, shape index: {}]   ;;  %s15324_s2 = inlined_call_operand.vmem [shape: f32[64,64], index: 2, kind: input, shape index: {}]   ;;  %s15325_s3 = inlined_call_operand.hbm [shape: f32[64,64], index: 3, kind: input, shape index: {}]   ;;  %s15326_s4 = inlined_call_operand.hbm [shape: f32[1,2048], index: 4, kind: output, shape index: {}]  }
   0x1   :  { %11 = vsyncpa [#allocation3 + $0x1], 0 }
   0x2   :  { %12 = vsyncpa [#allocation6], 0 }
   0x3   :  { %13 = vsyncpa [#allocation4], 0 }
   0x4   :  { %15 = vsyncpa [#allocation4 + $0x1], 0  ;;  %s9587_s15 = smov 0   ;;  %s9589_s16 = smov 0  }
   0x5   :  { %s9591_s17 = smov 0   ;;  %s9593_s18 = smov 0  }
   0x6 LB: > { %s9608_s19 = sadd.s32 4294967295, %s9541_s18   ;;  %s8131_s20 = sadd.s32 4294967294, %s9541_s18   ;;  %s9541_s18 = sphi %s9593_s18, %s16493_s18   ;;  %s9537_s17 = sphi %s9591_s17, %s16492_s17   ;;  %s9533_s16 = sphi %s9589_s16, %s16491_s16   ;;  %s9529_s15 = sphi %s9587_s15, %s16490_s15  }
   0x7   : > { %p41_p0 = scmp.ne.s32.totalorder %s9533_s16, %s9529_s15  ;;  %p15327_p1 = scmp.eq.s32.totalorder %s9608_s19, 0 }
   0x8   : > { %p134_p3 = scmp.eq.s32.totalorder %s8131_s20, 3  ;;  %p8132_p5 = scmp.ge.s32.totalorder %s9541_s18, 1 }
   0x9   : > { %p9617_p4 = por %p15327_p1, %p41_p0  ;;  %p141_p7 = scmp.lt.s32.totalorder %s9541_s18, 5 }
   0xa   : > { %p9622_p6 = por %p134_p3, %p41_p0  ;;  %s9543_s24 = smov [#allocation5]  }
   0xb   : > { %s15770_s21 = scalar_select %p9617_p4, 1, 0 }
   0xc   : > { %s15771_s22 = scalar_select %p9622_p6, 1, 0 }
   0xd   : > { %p9627_p8 = pnand %p8132_p5, %p141_p7  ;;  %s159_s25 = sshll.u32 %s9543_s24, 4  ;;  %s160_s25 = int_to_ptr.vmem [resolvable:$true] %s159_s25 }
   0xe   : > { %s9640_s27 = sadd.s32 1, %s9541_s18   ;;  %s28_s28 = sadd.s32 1, %s9537_s17 }
   0xf   : > { %s15772_s23 = scalar_select %p9627_p8, 1, 0 }
  0x10   : > { %p9181_p9 = pneg %p9627_p8  ;;  %s25_s29 = ssub.s32 %s9541_s18, %s9640_s27 }
  0x11   : > { %s9413_s6 = scalar_lea.hbm %s15325_s3, 1024 }
  0x12   : > { %p9635_p10 = pnand %p9181_p9, %p15327_p1  ;;  %p9414_p11 = scmp.ne.s32.totalorder %s15325_s3, %s9413_s6 }
  0x13   : > { %p9420_p3 = scmp.lt.u32.totalorder %s9413_s6, %s15325_s3 }
  0x14   : > { %p9415_p12 = pneg %p9635_p10 }
  0x16   : > { %p9416_p13 = pnand %p9415_p12, %p9414_p11 }
  0x18   : > { %p9417_p0 = pneg %p9416_p13 }
  0x1a   : > { %p9422_p5 = pnand %p9420_p3, %p9417_p0 }
  0x1c   : > { %9425 = shalt.err (!%p9422_p5)
}
  0x1d   : > { %s9426_s11 = scalar_lea.vmem %s160_s25, 1024  ;;  %p9434_p2 = scmp.lt.s32.totalorder %s160_s25, %s160_s25 }
  0x1e   : > { %p9427_p7 = scmp.ne.s32.totalorder %s160_s25, %s9426_s11  ;;  %p9435_p6 = scmp.lt.s32.totalorder %s9426_s11, %s9426_s11 }
  0x20   : > { %p9429_p9 = pnand %p9427_p7, %p9415_p12  ;;  %p9436_p4 = por %p9435_p6, %p9434_p2 }
  0x22   : > { %p9430_p1 = pneg %p9429_p9 }
  0x24   : > { %p9437_p8 = pnand %p9436_p4, %p9430_p1 }
  0x26   : > { %9440 = shalt.err (!%p9437_p8)
}
  0x27   : > { %s9544_s12 = smov 128   ;;  %s9545_s13 = smov 8  }
  0x28   : > { %9184 = dma.hbm_to_vmem [thread:$0]  (!%p9635_p10), %s15325_s3, 1024, %s160_s25, [#allocation6], %s9544_s12, %s9544_s12, %s9545_s13  }
  0x29   : > { %p26_p11 = scmp.eq.s32.totalorder %s25_s29, 0  ;;  %p35_p2 = scmp.ne.s32.totalorder %s9537_s17, %s9533_s16 }
  0x2a   : > { %p36_p1 = scmp.eq.s32.totalorder %s9541_s18, 0  ;;  %p9194_p4 = scmp.lt.s32.totalorder %s9541_s18, 4 }
  0x2b   : > { %s9666_s24 = scalar_select %p26_p11, %s9537_s17, %s28_s28  }
  0x2c   : > { %p37_p6 = por %p36_p1, %p35_p2  ;;  %p15774_p8 = scmp.eq.s32.totalorder %s9608_s19, 3 }
  0x2d   : > { %s173_s5 = sand.u32 1, %s9537_s17   ;;  %s8275_s6 = sshll.u32 %s9541_s18, 6 }
  0x2e   : > { %p9670_p12 = por %p15774_p8, %p35_p2  ;;  %s8135_s7 = sshll.u32 %s173_s5, 2 }
  0x2f   : > { %s9679_s9 = scalar_lea.hbm %s15322_s0, %s8275_s6  ;;  %s177_s25 = scalar_lea.vmem [#allocation2], %s8135_s7 }
  0x30   : > { %s185_s28 = sshll.u32 %s177_s25, 4  ;;  %p9681_p10 = pnand %p9194_p4, %p37_p6  ;;  %s9685_s28 = int_to_ptr.vmem [resolvable:$true] %s185_s28 }
  0x31   : > { %s174_s10 = scalar_lea.sflag [#allocation3], %s173_s5  ;;  %s9441_s11 = scalar_lea.hbm %s9679_s9, 64 }
  0x32   : > { %p9442_p13 = scmp.ne.s32.totalorder %s9679_s9, %s9441_s11  ;;  %p9443_p0 = pneg %p9681_p10 }
  0x33   : > { %s9446_s14 = scalar_lea.hbm %s15322_s0, 256  ;;  %p9447_p7 = scmp.lt.u32.totalorder %s9679_s9, %s15322_s0 }
  0x34   : > { %p9444_p3 = pnand %p9443_p0, %p9442_p13  ;;  %p9448_p9 = scmp.lt.u32.totalorder %s9446_s14, %s9441_s11 }
  0x35   : > { %p9450_p2 = scmp.lt.u32.totalorder %s9441_s11, %s9679_s9 }
  0x36   : > { %p9445_p5 = pneg %p9444_p3  ;;  %p9449_p11 = por %p9448_p9, %p9447_p7 }
  0x38   : > { %p9451_p1 = por %p9450_p2, %p9449_p11 }
  0x3a   : > { %p9452_p4 = pnand %p9451_p1, %p9445_p5 }
  0x3c   : > { %9455 = shalt.err (!%p9452_p4)
}
  0x3d   : > { %s9456_s5 = scalar_lea.vmem %s9685_s28, 64  ;;  %s9546_s7 = smov [#allocation2]  }
  0x3e   : > { %p9457_p6 = scmp.ne.s32.totalorder %s9685_s28, %s9456_s5  ;;  %s9461_s26 = sshll.u32 %s9546_s7, 4  ;;  %s9462_s26 = int_to_ptr.vmem [resolvable:$false] %s9461_s26 }
  0x3f   : > { %s9463_s8 = scalar_lea.vmem %s9462_s26, 128  ;;  %p9464_p3 = scmp.lt.s32.totalorder %s9685_s28, %s9462_s26 }
  0x40   : > { %p9459_p8 = pnand %p9457_p6, %p9443_p0  ;;  %p9465_p7 = scmp.lt.s32.totalorder %s9463_s8, %s9456_s5 }
  0x42   : > { %p9460_p13 = pneg %p9459_p8  ;;  %p9466_p9 = por %p9465_p7, %p9464_p3 }
  0x44   : > { %p9467_p11 = pnand %p9466_p9, %p9460_p13 }
  0x46   : > { %9470 = shalt.err (!%p9467_p11)
}
  0x47   : > { %9188 = dma.hbm_to_vmem [thread:$0]  (!%p9681_p10), %s9679_s9, 64, %s9685_s28, %s174_s10  }
  0x48   : > { %p15777_p5 = scmp.ne.s32.totalorder %s15772_s23, 0 }
  0x4a   : > { %194 = sbr.rel (%p15777_p5) target bundleno = 1971 (0x7b3), region = 36 }
  0x51   : > { %s9715_s25 = sand.u32 1, %s9533_s16   ;;  %p15778_p0 = scmp.ne.s32.totalorder %s15770_s21, 0 }
  0x52   : > { %s8139_s11 = sshll.u32 %s9715_s25, 2  ;;  %s197_s12 = scalar_lea.sflag [#allocation3], %s9715_s25 }
  0x53   : > { %s9721_s13 = scalar_lea.vmem [#allocation2], %s8139_s11 }
  0x54   : > { %9516 = dma.done.wait (%p15778_p0), %s197_s12, 64  }
  0x55   : > { %9518 = vsyncadd (%p15778_p0), %s197_s12, 4294967232  ;;  %p15779_p10 = scmp.eq.s32.totalorder %s9608_s19, 0 }
  0x57   : > { %9520 = dma.done.wait (%p15779_p10), [#allocation6], 1024   ;;  %p15780_p2 = pmov %p15779_p10 }
  0x58   : > { %v9547_v0 = vmov 1   ;;  %v9548_v1 = vmov 0   ;;  %v232_v2 = vld [vmem:[%s15323_s1] sm:$0xff]  ;;  %v233_v3 = vld [vmem:[%s15323_s1 + $0x8] sm:$0xff]  ;;  %v234_v4 = vld [vmem:[%s15323_s1 + $0x10] sm:$0xff]  ;;  %v15330_v10 = vlaneseq  ;;  %s8276_s21 = sshll.u32 %s9608_s19, 6 }
  0x59   : > { %9522 = vsyncadd (%p15780_p2), [#allocation6], 4294966272  ;;  %9247 = vset.pattern.permute.xlu1 %v9547_v0  ;;  %9246 = vset.pattern.permute.xlu0 %v9548_v1  ;;  %v235_v5 = vld [vmem:[%s15323_s1 + $0x18] sm:$0xff]  ;;  %v237_v6 = vld [vmem:[%s15323_s1 + $0x28] sm:$0xff]  ;;  %s228_s10 = scalar_lea.vmem [#allocation7], %s8139_s11  ;;  %s15279_s5 = scalar_lea.hbm %s15326_s4, %s8276_s21 }
  0x5a   : > { %334 = vperm.xlu1 %9247, %v232_v2   ;;  %242 = vperm.xlu0 %9246, %v232_v2   ;;  %v236_v7 = vld [vmem:[%s15323_s1 + $0x20] sm:$0xff]  ;;  %v238_v8 = vld [vmem:[%s15323_s1 + $0x30] sm:$0xff]  ;;  %v239_v9 = vld [vmem:[%s15323_s1 + $0x38] sm:$0xff]  ;;  %v9756_v11 = vshrl.u32 %v15330_v10, 7  ;;  %s8051_s14 = sshll.u32 %s228_s10, 4  ;;  %s8037_s7 = scalar_lea.sflag [#allocation4], %s9715_s25  ;;  %s15281_s14 = int_to_ptr.vmem [resolvable:$true] %s8051_s14 }
  0x5b   : > { %v231_v14 = vld [vmem:[%s9721_s13] sm:$0xf]  ;;  %s9471_s19 = scalar_lea.vmem %s15281_s14, 64  ;;  %s9561_s11 = smov [#allocation7]  }
  0x5c   : > { %15781 = vst [vmem:[#allocation11_spill] sm:$0xff] %v9756_v11  ;;  %v283_v12 = vsub.s32 0, %v9756_v11  ;;  %v291_v13 = vsub.s32 2, %v9756_v11  ;;  %v287_v15 = vsub.s32 1, %v9756_v11  ;;  %v295_v20 = vsub.s32 3, %v9756_v11  ;;  %p9472_p1 = scmp.ne.s32.totalorder %s15281_s14, %s9471_s19  ;;  %s9475_s26 = sshll.u32 %s9561_s11, 4  ;;  %s9476_s26 = int_to_ptr.vmem [resolvable:$false] %s9475_s26 }
  0x5d   : > { %s9477_s8 = scalar_lea.vmem %s9476_s26, 128  ;;  %p9478_p8 = scmp.lt.s32.totalorder %s15281_s14, %s9476_s26 }
  0x5e   : > { %338 = vperm.xlu1 %9247, %v233_v3   ;;  %9249 = vset.pattern.permute.xlu0 %v9547_v0  ;;  %v9762_v16 = vrot.slane %v231_v14, %v283_v12  ;;  %v9764_v17 = vrot.slane %v231_v14, %v291_v13  ;;  %v9766_v18 = vrot.slane %v231_v14, %v287_v15  ;;  %v15335_v13 = vmov 920167782   ;;  %p9473_p4 = pnand %p9472_p1, %p9670_p12  ;;  %p9479_p13 = scmp.lt.s32.totalorder %s9477_s8, %s9471_s19 }
  0x5f   : > { %342 = vperm.xlu0 %9249, %v234_v4   ;;  %v9776_v27 = vrot.slane %v231_v14, %v295_v20 }
  0x60   : > { %15782 = vst [vmem:[#allocation12_spill] sm:$0xff] %v9764_v17  ;;  %p9474_p6 = pneg %p9473_p4  ;;  %p9480_p3 = por %p9479_p13, %p9478_p8 }
  0x61   : > { %15785 = vst [vmem:[#allocation15_spill] sm:$0xff] %v9776_v27 }
  0x62   : > { %9248 = vset.pattern.permute.xlu1 %v9548_v1  ;;  %p9481_p7 = pnand %p9480_p3, %p9474_p6 }
  0x63   : > { %257 = vperm.xlu1 %9248, %v235_v5   ;;  %9250 = vset.pattern.permute.xlu0 %v9548_v1 }
  0x64   : > { %247 = vperm.xlu0 %9250, %v233_v3  }
  0x67   : > { %9251 = vset.pattern.permute.xlu1 %v9547_v0 }
  0x68   : > { %346 = vperm.xlu1 %9251, %v235_v5   ;;  %252 = vperm.xlu0 %9250, %v234_v4  }
  0x6c   : > { %9252 = vset.pattern.permute.xlu1 %v9548_v1  ;;  %267 = vperm.xlu0 %9250, %v237_v6  }
  0x6d   : > { %262 = vperm.xlu1 %9252, %v236_v7  }
  0x70   : > { %272 = vperm.xlu0 %9250, %v238_v8  }
  0x71   : > { %9253 = vset.pattern.permute.xlu1 %v9547_v0 }
  0x72   : > { %350 = vperm.xlu1 %9253, %v236_v7  }
  0x74   : > { %9255 = vset.pattern.permute.xlu0 %v9547_v0 }
  0x75   : > { %358 = vperm.xlu0 %9255, %v238_v8  }
  0x76   : > { %354 = vperm.xlu1 %9253, %v237_v6  }
  0x7a   : > { %9254 = vset.pattern.permute.xlu1 %v9548_v1 }
  0x7b   : > { %277 = vperm.xlu1 %9254, %v239_v9  }
  0x7f   : > { %9256 = vset.pattern.permute.xlu1 %v9547_v0 }
  0x80   : > { %362 = vperm.xlu1 %9256, %v239_v9  }
  0xd9   : > { %v243_v19 = vpop.permute.xlu0 %242  ;;  %v335_v23 = vpop.permute.xlu1 %334 }
  0xda   : > { %v301_v21 = vmul.f32 %v9762_v16, %v243_v19  ;;  %v303_v22 = vmul.f32 %v9764_v17, %v243_v19  ;;  %v302_v24 = vmul.f32 %v9766_v18, %v243_v19  ;;  %v304_v30 = vmul.f32 %v9776_v27, %v243_v19 }
  0xdc   : > { %v9772_v25 = vadd.f32 %v335_v23, %v301_v21  ;;  %v9774_v26 = vadd.f32 %v335_v23, %v303_v22  ;;  %v9778_v28 = vadd.f32 %v335_v23, %v302_v24  ;;  %v9783_v33 = vadd.f32 %v335_v23, %v304_v30 }
  0xdd   : > { %v9788_v36 = vpop.permute.xlu1 %338  ;;  %v15333_v21 = vmov 1326507024   ;;  %v15337_v30 = vmov 2102212464  }
  0xde   : > { %15783 = vst [vmem:[#allocation13_spill] sm:$0xff] %v9772_v25  ;;  %15784 = vst [vmem:[#allocation14_spill] sm:$0xff] %v9774_v26  ;;  %v400_v29 = vand.u32 2139095040, %v9772_v25  ;;  %v504_v31 = vand.u32 2139095040, %v9778_v28  ;;  %v608_v34 = vand.u32 2139095040, %v9774_v26  ;;  %v9786_v35 = vpop.permute.xlu0 %342  ;;  %v712_v40 = vand.u32 2139095040, %v9783_v33 }
  0xdf   : > { %15786 = vst [vmem:[#allocation16_spill] sm:$0xff] %v9778_v28  ;;  %15787 = vst [vmem:[#allocation17_spill] sm:$0xff] %v9783_v33 }
  0xe0   : > { %v401_v32 = vshrl.u32 %v400_v29, 23  ;;  %v505_v37 = vshrl.u32 %v504_v31, 23  ;;  %v609_v39 = vshrl.u32 %v608_v34, 23  ;;  %v713_v46 = vshrl.u32 %v712_v40, 23 }
  0xe2   : > { %v8142_v38 = vadd.s32 4294967169, %v401_v32  ;;  %v8146_v41 = vadd.s32 4294967169, %v505_v37  ;;  %v258_v44 = vpop.permute.xlu1 %257  ;;  %v8150_v45 = vadd.s32 4294967169, %v609_v39  ;;  %v8154_v51 = vadd.s32 4294967169, %v713_v46 }
  0xe3   : > { %v248_v42 = vpop.permute.xlu0 %247  ;;  %v313_v56 = vmul.f32 %v9762_v16, %v258_v44  ;;  %v315_v57 = vmul.f32 %v9764_v17, %v258_v44  ;;  %v314_v4 = vmul.f32 %v9766_v18, %v258_v44  ;;  %v9826_v8 = vmul.f32 %v9776_v27, %v258_v44 }
  0xe4   : > { %v407_v43 = vadd.s32 1, %v8142_v38  ;;  %v305_v47 = vmul.f32 %v9762_v16, %v248_v42  ;;  %v307_v48 = vmul.f32 %v9764_v17, %v248_v42  ;;  %v511_v49 = vadd.s32 1, %v8146_v41 }
  0xe5   : > { %v615_v50 = vadd.s32 1, %v8150_v45  ;;  %v719_v58 = vadd.s32 1, %v8154_v51  ;;  %v306_v19 = vmul.f32 %v9766_v18, %v248_v42  ;;  %v308_v20 = vmul.f32 %v9776_v27, %v248_v42 }
  0xe6   : > { %vm408_vm0 = vcmp.gt.s32.totalorder %v407_v43, 0  ;;  %v9794_v52 = vadd.f32 %v9788_v36, %v305_v47  ;;  %v9797_v53 = vadd.f32 %v9788_v36, %v307_v48  ;;  %vm512_vm1 = vcmp.gt.s32.totalorder %v511_v49, 0 }
  0xe7   : > { %v9799_v54 = vpop.permute.xlu1 %346  ;;  %v409_v55 = vsel %vm408_vm0, %v407_v43, 0  ;;  %vm616_vm2 = vcmp.gt.s32.totalorder %v615_v50, 0  ;;  %v513_v62 = vsel %vm512_vm1, %v511_v49, 0  ;;  %vm720_vm3 = vcmp.gt.s32.totalorder %v719_v58, 0 }
  0xe8   : > { %15788 = vst [vmem:[#allocation18_spill] sm:$0xff] %v9794_v52  ;;  %15789 = vst [vmem:[#allocation19_spill] sm:$0xff] %v9797_v53  ;;  %v9804_v59 = vadd.f32 %v9799_v54, %v313_v56  ;;  %v9807_v60 = vadd.f32 %v9799_v54, %v315_v57  ;;  %v9809_v61 = vand.u32 31, %v409_v55  ;;  %v617_v63 = vsel %vm616_vm2, %v615_v50, 0 }
  0xe9   : > { %v9811_v0 = vand.u32 31, %v513_v62  ;;  %v9817_v3 = vand.u32 31, %v617_v63  ;;  %v9820_v5 = vshrl.u32 %v409_v55, 5  ;;  %v721_v6 = vsel %vm720_vm3, %v719_v58, 0 }
  0xea   : > { %15790 = vst [vmem:[#allocation20_spill] sm:$0xff] %v9804_v59  ;;  %15791 = vst [vmem:[#allocation21_spill] sm:$0xff] %v9807_v60  ;;  %v1648_v1 = vand.u32 2139095040, %v9804_v59  ;;  %v9815_v2 = vsub.s32 32, %v9809_v61  ;;  %v9829_v9 = vadd.f32 %v9799_v54, %v314_v4  ;;  %v9833_v15 = vshrl.u32 %v513_v62, 5 }
  0xeb   : > { %15792 = vst [vmem:[#allocation22_spill] sm:$0xff] %v9809_v61  ;;  %15793 = vst [vmem:[#allocation23_spill] sm:$0xff] %v9811_v0  ;;  %v9823_v7 = vsub.s32 32, %v9811_v0  ;;  %v9839_v23 = vshrl.u32 %v617_v63, 5  ;;  %v9842_v24 = vsub.s32 32, %v9817_v3  ;;  %v9844_v29 = vshrl.u32 %v721_v6, 5 }
  0xec   : > { %15794 = vst [vmem:[#allocation24_spill] sm:$0xff] %v9815_v2  ;;  %15795 = vst [vmem:[#allocation25_spill] sm:$0xff] %v9817_v3  ;;  %v1649_v12 = vshrl.u32 %v1648_v1, 23  ;;  %v424_v14 = vshrl.u32 %v15335_v13, %v9815_v2  ;;  %v427_v22 = vshrl.u32 %v15333_v21, %v9815_v2  ;;  %v423_v31 = vshll.u32 %v15337_v30, %v9809_v61 }
  0xed   : > { %15796 = vst [vmem:[#allocation26_spill] sm:$0xff] %v9820_v5  ;;  %15797 = vst [vmem:[#allocation27_spill] sm:$0xff] %v9823_v7  ;;  %v426_v32 = vshll.u32 %v15335_v13, %v9809_v61  ;;  %vm432_vm4 = vcmp.lt.s32.totalorder %v9820_v5, 4  ;;  %v9851_v34 = vand.u32 31, %v721_v6  ;;  %v527_v37 = vshll.u32 %v15337_v30, %v9811_v0 }
  0xee   : > { %15798 = vst [vmem:[#allocation28_spill] sm:$0xff] %v9829_v9  ;;  %15799 = vst [vmem:[#allocation29_spill] sm:$0xff] %v9833_v15  ;;  %v528_v38 = vshrl.u32 %v15335_v13, %v9823_v7  ;;  %v8190_v39 = vadd.s32 4294967169, %v1649_v12  ;;  %v1752_v40 = vand.u32 2139095040, %v9829_v9  ;;  %v9858_v41 = vor.u32 %v424_v14, %v423_v31 }
  0xef   : > { %15800 = vst [vmem:[#allocation30_spill] sm:$0xff] %v9839_v23  ;;  %15801 = vst [vmem:[#allocation31_spill] sm:$0xff] %v9842_v24  ;;  %v530_v42 = vshll.u32 %v15335_v13, %v9811_v0  ;;  %v531_v43 = vshrl.u32 %v15333_v21, %v9823_v7  ;;  %vm536_vm5 = vcmp.lt.s32.totalorder %v9833_v15, 4  ;;  %v428_v44 = vor.u32 %v427_v22, %v426_v32 }
  0xf0   : > { %15802 = vst [vmem:[#allocation32_spill] sm:$0xff] %v9844_v29  ;;  %15803 = vst [vmem:[#allocation33_spill] sm:$0xff] %v9851_v34  ;;  %v631_v45 = vshll.u32 %v15337_v30, %v9817_v3  ;;  %v632_v46 = vshrl.u32 %v15335_v13, %v9842_v24  ;;  %v9871_v47 = vshll.u32 %v15335_v13, %v9817_v3  ;;  %vm640_vm6 = vcmp.lt.s32.totalorder %v9839_v23, 4 }
  0xf1   : > { %15804 = vst [vmem:[#allocation34_spill] sm:$0xff] %v9858_v41  ;;  %v9875_v48 = vshrl.u32 %v15333_v21, %v9842_v24  ;;  %v9879_v49 = vadd.f32 %v9788_v36, %v306_v19  ;;  %v15331_v50 = vand.u32 2147483647, %v9804_v59  ;;  %v9882_v51 = vor.u32 %v528_v38, %v527_v37 }
  0xf2   : > { %v1655_v55 = vadd.s32 1, %v8190_v39  ;;  %v15332_v56 = vand.u32 2147483647, %v9829_v9  ;;  %v1753_v57 = vshrl.u32 %v1752_v40, 23  ;;  %v9888_v58 = vsel %vm432_vm4, %v9858_v41, 920167782 }
  0xf3   : > { %15805 = vst [vmem:[#allocation35_spill] sm:$0xff] %v9879_v49  ;;  %15806 = vst [vmem:[#allocation36_spill] sm:$0xff] %v9882_v51  ;;  %v532_v62 = vor.u32 %v531_v43, %v530_v42  ;;  %v9891_v63 = vsub.s32 32, %v9851_v34  ;;  %v9895_v1 = vshll.u32 %v15337_v30, %v9851_v34  ;;  %v9899_v4 = vsel %vm432_vm4, %v428_v44, 1326507024 }
  0xf4   : > { %15807 = vst [vmem:[#allocation37_spill] sm:$0xff] %v9888_v58  ;;  %15809 = vst [vmem:[#allocation39_spill] sm:$0xff] %v9899_v4  ;;  %v9901_v6 = vor.u32 %v632_v46, %v631_v45  ;;  %v9904_v12 = vadd.f32 %v9788_v36, %v308_v20  ;;  %v816_v14 = vand.u32 2139095040, %v9794_v52  ;;  %v920_v22 = vand.u32 2139095040, %v9879_v49 }
  0xf5   : > { %15808 = vst [vmem:[#allocation38_spill] sm:$0xff] %v9891_v63  ;;  %v1024_v31 = vand.u32 2139095040, %v9797_v53  ;;  %v1652_v32 = vand.u32 8388607, %v15331_v50  ;;  %v9916_v37 = vsel %vm536_vm5, %v9882_v51, 920167782  ;;  %v9926_v39 = vshrl.u32 %v15335_v13, %v9891_v63 }
  0xf6   : > { %15810 = vst [vmem:[#allocation40_spill] sm:$0xff] %v9901_v6  ;;  %15811 = vst [vmem:[#allocation41_spill] sm:$0xff] %v9904_v12  ;;  %vm1656_vm7 = vcmp.gt.s32.totalorder %v1655_v55, 0  ;;  %v8194_v36 = vadd.s32 4294967169, %v1753_v57  ;;  %v1756_v20 = vand.u32 8388607, %v15332_v56  ;;  %v9930_v40 = vshll.u32 %v15335_v13, %v9851_v34 }
  0xf7   : > { %15812 = vst [vmem:[#allocation42_spill] sm:$0xff] %v9916_v37  ;;  %v9922_v38 = vsel %vm536_vm5, %v532_v62, 1326507024  ;;  %v1657_v42 = vsel %vm1656_vm7, %v1655_v55, 0  ;;  %v9935_v43 = vsel %vm640_vm6, %v9901_v6, 920167782 }
  0xf8   : > { %15813 = vst [vmem:[#allocation43_spill] sm:$0xff] %v9922_v38  ;;  %15814 = vst [vmem:[#allocation44_spill] sm:$0xff] %v9935_v43  ;;  %v9937_v44 = vshrl.u32 %v816_v14, 23  ;;  %v1659_v46 = vand.u32 31, %v1657_v42  ;;  %v9940_v57 = vshrl.u32 %v920_v22, 23  ;;  %v9942_v62 = vshrl.u32 %v1024_v31, 23 }
  0xf9   : > { %v1653_v10 = vor.u32 8388608, %v1652_v32  ;;  %v1658_v50 = vshrl.u32 %v1657_v42, 5  ;;  %v15352_v19 = vmov 683565275   ;;  %v1757_v21 = vor.u32 8388608, %v1756_v20 }
  0xfa   : > { %v1660_v56 = vsub.s32 32, %v1659_v46  ;;  %v1662_v55 = vshll.u32 %v15352_v19, %v1659_v46  ;;  %v1759_v13 = vadd.s32 1, %v8194_v36  ;;  %v15354_v30 = vmov 2475754826  }
  0xfb   : > { %v1665_v11 = vshll.u32 %v15354_v30, %v1659_v46  ;;  %v15356_v14 = vmov 2131351028   ;;  %v15815_v45 = vmov 2102212464   ;;  %v15816_v22 = vmov 920167782  }
  0xfc   : > { %v1668_v53 = vshll.u32 %v15356_v14, %v1659_v46  ;;  %v1671_v43 = vshll.u32 %v15815_v45, %v1659_v46  ;;  %v1674_v6 = vshll.u32 %v15816_v22, %v1659_v46  ;;  %v1661_v31 = vshrl.u32 %v15352_v19, %v1660_v56 }
  0xfd   : > { %v1663_v32 = vshrl.u32 %v15354_v30, %v1660_v56  ;;  %v1666_v42 = vshrl.u32 %v15356_v14, %v1660_v56  ;;  %v1669_v3 = vshrl.u32 %v15815_v45, %v1660_v56  ;;  %v1672_v36 = vshrl.u32 %v15816_v22, %v1660_v56 }
  0xfe   : > { %v15817_v20 = vmov 1326507024   ;;  %vm1677_vm8 = vcmp.lt.s32.totalorder %v1658_v50, 1  ;;  %vm1678_vm9 = vcmp.lt.s32.totalorder %v1658_v50, 2  ;;  %vm1679_vm10 = vcmp.lt.s32.totalorder %v1658_v50, 3 }
  0xff   : > { %v1675_v24 = vshrl.u32 %v15817_v20, %v1660_v56  ;;  %v1664_v26 = vor.u32 %v1663_v32, %v1662_v55  ;;  %v1667_v52 = vor.u32 %v1666_v42, %v1665_v11  ;;  %v1670_v58 = vor.u32 %v1669_v3, %v1668_v53 }
 0x100   : > { %v1673_v41 = vor.u32 %v1672_v36, %v1671_v43  ;;  %vm1680_vm11 = vcmp.lt.s32.totalorder %v1658_v50, 4  ;;  %vm1760_vm12 = vcmp.gt.s32.totalorder %v1759_v13, 0  ;;  %v1693_v55 = vshll.u32 %v1653_v10, 8 }
 0x101   : > { %v1676_v46 = vor.u32 %v1675_v24, %v1674_v6  ;;  %v1681_v19 = vsel %vm1677_vm8, %v1661_v31, %v1664_v26  ;;  %v1682_v30 = vsel %vm1680_vm11, %v1670_v58, 2102212464  ;;  %v1685_v4 = vsel %vm1677_vm8, %v1664_v26, %v1667_v52 }
 0x102   : > { %v1689_v14 = vsel %vm1677_vm8, %v1667_v52, %v1670_v58  ;;  %v1683_v5 = vsel %vm1679_vm10, %v1667_v52, %v1682_v30  ;;  %v1686_v61 = vsel %vm1680_vm11, %v1673_v41, 920167782  ;;  %v1761_v25 = vsel %vm1760_vm12, %v1759_v13, 0 }
 0x103   : > { %v1690_v2 = vsel %vm1680_vm11, %v1676_v46, 1326507024  ;;  %v1684_v56 = vsel %vm1678_vm9, %v1681_v19, %v1683_v5  ;;  %v1687_v34 = vsel %vm1679_vm10, %v1670_v58, %v1686_v61  ;;  %v1762_v3 = vshrl.u32 %v1761_v25, 5 }
 0x104   : > { %v1691_v33 = vsel %vm1679_vm10, %v1673_v41, %v1690_v2  ;;  %v1688_v11 = vsel %vm1678_vm9, %v1685_v4, %v1687_v34  ;;  %v1763_v24 = vand.u32 31, %v1761_v25  ;;  %v1700_v52 = vmul.u32 %v1693_v55, %v1684_v56 }
 0x105   : > { %v1692_v53 = vsel %vm1678_vm9, %v1689_v14, %v1691_v33  ;;  %v9961_v26 = vmul.u32.u64.low %v1693_v55, %v1688_v11  ;;  %v9962_v31 = vmul.u32.u64.high %v1693_v55, %v1688_v11, %v9961_v26  ;;  %v9965_v30 = vshll.u32 %v1757_v21, 8 }
 0x106   : > { %v9958_v6 = vmul.u32.u64.low %v1693_v55, %v1692_v53  ;;  %v9959_v43 = vmul.u32.u64.high %v1693_v55, %v1692_v53, %v9958_v6  ;;  %v1764_v13 = vsub.s32 32, %v1763_v24  ;;  %v1856_v61 = vand.u32 2139095040, %v9807_v60 }
 0x107   : > { %v15818_v10 = vmov 683565275   ;;  %v15819_v5 = vmov 2475754826   ;;  %v15820_v33 = vmov 2131351028   ;;  %v1775_v25 = vshll.u32 %v15815_v45, %v1763_v24 }
 0x108   : > { %v1766_v2 = vshll.u32 %v15818_v10, %v1763_v24  ;;  %v1769_v34 = vshll.u32 %v15819_v5, %v1763_v24  ;;  %v1772_v41 = vshll.u32 %v15820_v33, %v1763_v24  ;;  %v1767_v50 = vshrl.u32 %v15819_v5, %v1764_v13 }
 0x109   : > { %v1770_v58 = vshrl.u32 %v15820_v33, %v1764_v13  ;;  %v1773_v4 = vshrl.u32 %v15815_v45, %v1764_v13  ;;  %v1778_v19 = vshll.u32 %v15816_v22, %v1763_v24  ;;  %vm1702_vm13 = vc.u32 %v9959_v43, %v9961_v26 }
 0x10a   : > { %v1703_v21 = vadd.s32 1, %v9962_v31  ;;  %v1776_v14 = vshrl.u32 %v15816_v22, %v1764_v13  ;;  %vm1781_vm14 = vcmp.lt.s32.totalorder %v1762_v3, 1  ;;  %v1768_v32 = vor.u32 %v1767_v50, %v1766_v2 }
 0x10b   : > { %v1771_v42 = vor.u32 %v1770_v58, %v1769_v34  ;;  %v1774_v36 = vor.u32 %v1773_v4, %v1772_v41  ;;  %v1779_v46 = vshrl.u32 %v15817_v20, %v1764_v13  ;;  %vm1782_vm15 = vcmp.lt.s32.totalorder %v1762_v3, 2 }
 0x10c   : > { %v1704_v56 = vsel %vm1702_vm13, %v1703_v21, %v9962_v31  ;;  %v1777_v55 = vor.u32 %v1776_v14, %v1775_v25  ;;  %vm1784_vm0 = vcmp.lt.s32.totalorder %v1762_v3, 4  ;;  %v1765_v53 = vshrl.u32 %v15818_v10, %v1764_v13 }
 0x10d   : > { %v1705_v11 = vadd.s32 %v1704_v56, %v1700_v52  ;;  %v1780_v24 = vor.u32 %v1779_v46, %v1778_v19  ;;  %v1786_v6 = vsel %vm1784_vm0, %v1774_v36, 2102212464  ;;  %vm1783_vm1 = vcmp.lt.s32.totalorder %v1762_v3, 3 }
 0x10e   : > { %v1789_v49 = vsel %vm1781_vm14, %v1768_v32, %v1771_v42  ;;  %v1790_v51 = vsel %vm1784_vm0, %v1777_v55, 920167782  ;;  %v1793_v2 = vsel %vm1781_vm14, %v1771_v42, %v1774_v36  ;;  %v1785_v41 = vsel %vm1781_vm14, %v1765_v53, %v1768_v32 }
 0x10f   : > { %v1706_v34 = vadd.s32 536870912, %v1705_v11  ;;  %v1791_v50 = vsel %vm1783_vm1, %v1774_v36, %v1790_v51  ;;  %v1794_v58 = vsel %vm1784_vm0, %v1780_v24, 1326507024  ;;  %v1787_v31 = vsel %vm1783_vm1, %v1771_v42, %v1786_v6 }
 0x110   : > { %v1792_v25 = vsel %vm1782_vm15, %v1789_v49, %v1791_v50  ;;  %v1795_v4 = vsel %vm1783_vm1, %v1777_v55, %v1794_v58  ;;  %v1857_v52 = vshrl.u32 %v1856_v61, 23  ;;  %v15373_v51 = vand.u32 2147483647, %v9807_v60 }
 0x111   : > { %v9987_v21 = vshrl.u32 %v1706_v34, 30  ;;  %v1796_v13 = vsel %vm1782_vm15, %v1793_v2, %v1795_v4  ;;  %v9991_v19 = vmul.u32.u64.low %v9965_v30, %v1792_v25  ;;  %v9992_v14 = vmul.u32.u64.high %v9965_v30, %v1792_v25, %v9991_v19 }
 0x112   : > { %v9996_v46 = vmul.u32.u64.low %v9965_v30, %v1796_v13  ;;  %v9997_v56 = vmul.u32.u64.high %v9965_v30, %v1796_v13, %v9996_v46  ;;  %v8198_v32 = vadd.s32 4294967169, %v1857_v52  ;;  %v15822_v49 = vor.u32 %v9875_v48, %v9871_v47 }
 0x113   : > { %15821 = vst [vmem:[#allocation45_spill] sm:$0xff] %v9987_v21  ;;  %v10009_v42 = vadd.f32 %v9799_v54, %v9826_v8  ;;  %v1708_v36 = vshll.u32 %v9987_v21, 30  ;;  %v1788_v55 = vsel %vm1782_vm15, %v1785_v41, %v1787_v31  ;;  %v10015_v53 = vor.u32 %v9926_v39, %v9895_v1 }
 0x114   : > { %v10005_v61 = vsel %vm640_vm6, %v15822_v49, 1326507024  ;;  %v10019_v24 = vshrl.u32 %v15817_v20, %v9891_v63  ;;  %v15826_v47 = vand.u32 2139095040, %v9904_v12  ;;  %v1863_v6 = vadd.s32 1, %v8198_v32 }
 0x115   : > { %15823 = vst [vmem:[#allocation46_spill] sm:$0xff] %v10005_v61  ;;  %15824 = vst [vmem:[#allocation47_spill] sm:$0xff] %v10009_v42  ;;  %v8158_v2 = vadd.s32 4294967169, %v9937_v44  ;;  %v8162_v54 = vadd.s32 4294967169, %v9940_v57  ;;  %v8166_v8 = vadd.s32 4294967169, %v9942_v62  ;;  %v1807_v3 = vadd.s32 1, %v9992_v14 }
 0x116   : > { %15825 = vst [vmem:[#allocation48_spill] sm:$0xff] %v10015_v53  ;;  %v1129_v48 = vshrl.u32 %v15826_v47, 23  ;;  %v1804_v34 = vmul.u32 %v9965_v30, %v1788_v55  ;;  %vm1806_vm2 = vc.u32 %v9997_v56, %v9991_v19  ;;  %v1860_v1 = vand.u32 8388607, %v15373_v51 }
 0x117   : > { %vm1864_vm3 = vcmp.gt.s32.totalorder %v1863_v6, 0  ;;  %v10032_v39 = vsub.s32 %v1705_v11, %v1708_v36  ;;  %v1808_v41 = vsel %vm1806_vm2, %v1807_v3, %v9992_v14  ;;  %v1960_v57 = vand.u32 2139095040, %v10009_v42 }
 0x118   : > { %v1865_v44 = vsel %vm1864_vm3, %v1863_v6, 0  ;;  %vm744_vm7 = vcmp.lt.s32.totalorder %v9844_v29, 4  ;;  %v1809_v30 = vadd.s32 %v1808_v41, %v1804_v34  ;;  %v823_v31 = vadd.s32 1, %v8158_v2 }
 0x119   : > { %v1867_v50 = vand.u32 31, %v1865_v44  ;;  %v10042_v58 = vsel %vm744_vm7, %v10015_v53, 920167782  ;;  %v927_v11 = vadd.s32 1, %v8162_v54  ;;  %v8170_v25 = vadd.s32 4294967169, %v1129_v48 }
 0x11a   : > { %15827 = vst [vmem:[#allocation49_spill] sm:$0xff] %v10042_v58  ;;  %v1031_v4 = vadd.s32 1, %v8166_v8  ;;  %v1810_v52 = vadd.s32 536870912, %v1809_v30  ;;  %v1861_v13 = vor.u32 8388608, %v1860_v1  ;;  %v1711_v46 = vsub.s32 0, %v10032_v39 }
 0x11b   : > { %v1868_v14 = vsub.s32 32, %v1867_v50  ;;  %v1866_v32 = vshrl.u32 %v1865_v44, 5  ;;  %v1870_v49 = vshll.u32 %v15818_v10, %v1867_v50  ;;  %v1961_v36 = vshrl.u32 %v1960_v57, 23 }
 0x11c   : > { %v10046_v55 = vshrl.u32 %v1810_v52, 30  ;;  %v1873_v6 = vshll.u32 %v15819_v5, %v1867_v50  ;;  %v1879_v54 = vshll.u32 %v15815_v45, %v1867_v50  ;;  %v1876_v44 = vshll.u32 %v15820_v33, %v1867_v50 }
 0x11d   : > { %v1871_v47 = vshrl.u32 %v15819_v5, %v1868_v14  ;;  %v1874_v2 = vshrl.u32 %v15820_v33, %v1868_v14  ;;  %v1877_v48 = vshrl.u32 %v15815_v45, %v1868_v14  ;;  %v1880_v8 = vshrl.u32 %v15816_v22, %v1868_v14 }
 0x11e   : > { %15828 = vst [vmem:[#allocation50_spill] sm:$0xff] %v10046_v55  ;;  %v1883_v3 = vshrl.u32 %v15817_v20, %v1868_v14  ;;  %v1812_v34 = vshll.u32 %v10046_v55, 30  ;;  %v1135_v57 = vadd.s32 1, %v8170_v25  ;;  %v1882_v51 = vshll.u32 %v15816_v22, %v1867_v50 }
 0x11f   : > { %v1872_v1 = vor.u32 %v1871_v47, %v1870_v49  ;;  %v1875_v41 = vor.u32 %v1874_v2, %v1873_v6  ;;  %v1881_v52 = vor.u32 %v1880_v8, %v1879_v54  ;;  %v8202_v62 = vadd.s32 4294967169, %v1961_v36 }
 0x120   : > { %vm824_vm8 = vcmp.gt.s32.totalorder %v823_v31, 0  ;;  %vm928_vm9 = vcmp.gt.s32.totalorder %v927_v11, 0  ;;  %v10058_v21 = vsub.s32 %v1809_v30, %v1812_v34  ;;  %v1878_v61 = vor.u32 %v1877_v48, %v1876_v44 }
 0x121   : > { %vm1032_vm10 = vcmp.gt.s32.totalorder %v1031_v4, 0  ;;  %v1884_v23 = vor.u32 %v1883_v3, %v1882_v51  ;;  %vm1885_vm11 = vcmp.lt.s32.totalorder %v1866_v32, 1  ;;  %v1901_v12 = vshll.u32 %v1861_v13, 8 }
 0x122   : > { %v8191_v55 = vmin.u32 %v1711_v46, %v10032_v39  ;;  %v1815_v49 = vsub.s32 0, %v10058_v21  ;;  %vm1888_vm12 = vcmp.lt.s32.totalorder %v1866_v32, 4  ;;  %v1893_v25 = vsel %vm1885_vm11, %v1872_v1, %v1875_v41 }
 0x123   : > { %vm1886_vm13 = vcmp.lt.s32.totalorder %v1866_v32, 2  ;;  %vm1887_vm14 = vcmp.lt.s32.totalorder %v1866_v32, 3  ;;  %v1894_v50 = vsel %vm1888_vm12, %v1881_v52, 920167782  ;;  %v1967_v36 = vadd.s32 1, %v8202_v62 }
 0x124   : > { %v8195_v47 = vmin.u32 %v1815_v49, %v10058_v21  ;;  %v1890_v30 = vsel %vm1888_vm12, %v1878_v61, 2102212464  ;;  %v1895_v6 = vsel %vm1887_vm14, %v1878_v61, %v1894_v50  ;;  %v1897_v51 = vsel %vm1885_vm11, %v1875_v41, %v1878_v61 }
 0x125   : > { %v825_v13 = vsel %vm824_vm8, %v823_v31, 0  ;;  %v1869_v46 = vshrl.u32 %v15818_v10, %v1868_v14  ;;  %v1896_v2 = vsel %vm1886_vm13, %v1893_v25, %v1895_v6  ;;  %v1898_v48 = vsel %vm1888_vm12, %v1884_v23, 1326507024 }
 0x126   : > { %v929_v54 = vsel %vm928_vm9, %v927_v11, 0  ;;  %v1899_v8 = vsel %vm1887_vm14, %v1881_v52, %v1898_v48  ;;  %v10071_v3 = vmul.u32.u64.low %v1901_v12, %v1896_v2  ;;  %v10072_v62 = vmul.u32.u64.high %v1901_v12, %v1896_v2, %v10071_v3 }
 0x127   : > { %v1713_v34 = vclz %v8191_v55  ;;  %v1889_v44 = vsel %vm1885_vm11, %v1869_v46, %v1872_v1  ;;  %v1891_v61 = vsel %vm1887_vm14, %v1875_v41, %v1890_v30  ;;  %v1900_v31 = vsel %vm1886_vm13, %v1897_v51, %v1899_v8 }
 0x128   : > { %v1817_v49 = vclz %v8195_v47  ;;  %v10078_v14 = vmul.u32.u64.low %v1901_v12, %v1900_v31  ;;  %v10079_v50 = vmul.u32.u64.high %v1901_v12, %v1900_v31, %v10078_v14  ;;  %vm1968_vm15 = vcmp.gt.s32.totalorder %v1967_v36, 0 }
 0x129   : > { %v15829_v23 = vor.u32 %v10019_v24, %v9930_v40  ;;  %v1033_v55 = vsel %vm1032_vm10, %v1031_v4, 0  ;;  %vm1136_vm0 = vcmp.gt.s32.totalorder %v1135_v57, 0  ;;  %v1969_v1 = vsel %vm1968_vm15, %v1967_v36, 0 }
 0x12a   : > { %v10089_v52 = vand.u32 31, %v825_v13  ;;  %v1892_v41 = vsel %vm1886_vm13, %v1889_v44, %v1891_v61  ;;  %v1911_v25 = vadd.s32 1, %v10072_v62  ;;  %v1971_v47 = vand.u32 31, %v1969_v1 }
 0x12b   : > { %v10086_v11 = vsel %vm744_vm7, %v15829_v23, 1326507024  ;;  %v10093_v30 = vshrl.u32 %v825_v13, 5  ;;  %v10095_v6 = vshrl.u32 %v929_v54, 5  ;;  %v8192_v40 = vadd.s32 4294967294, %v1713_v34 }
 0x12c   : > { %15830 = vst [vmem:[#allocation51_spill] sm:$0xff] %v10086_v11  ;;  %15831 = vst [vmem:[#allocation52_spill] sm:$0xff] %v10089_v52  ;;  %v15382_v24 = vand.u32 2147483647, %v10009_v42  ;;  %v10098_v51 = vand.u32 31, %v929_v54  ;;  %v10100_v46 = vshrl.u32 %v1033_v55, 5  ;;  %v1908_v32 = vmul.u32 %v1901_v12, %v1892_v41 }
 0x12d   : > { %15832 = vst [vmem:[#allocation53_spill] sm:$0xff] %v10093_v30  ;;  %15833 = vst [vmem:[#allocation54_spill] sm:$0xff] %v10095_v6  ;;  %v10102_v4 = vand.u32 31, %v1033_v55  ;;  %v8196_v36 = vadd.s32 4294967294, %v1817_v49  ;;  %v10104_v2 = vsel %vm1136_vm0, %v1135_v57, 0  ;;  %vm1910_vm1 = vc.u32 %v10079_v50, %v10071_v3 }
 0x12e   : > { %15834 = vst [vmem:[#allocation55_spill] sm:$0xff] %v10098_v51  ;;  %15835 = vst [vmem:[#allocation56_spill] sm:$0xff] %v10100_v46  ;;  %v1972_v13 = vsub.s32 32, %v1971_v47  ;;  %v10109_v48 = vsub.s32 32, %v10089_v52  ;;  %v10113_v8 = vshll.u32 %v15815_v45, %v10089_v52  ;;  %v10117_v54 = vshll.u32 %v15816_v22, %v10089_v52 }
 0x12f   : > { %15836 = vst [vmem:[#allocation57_spill] sm:$0xff] %v10102_v4  ;;  %v1912_v34 = vsel %vm1910_vm1, %v1911_v25, %v10072_v62  ;;  %vm8193_vm2 = vcmp.lt.s32.totalorder %v8192_v40, 0  ;;  %v1964_v12 = vand.u32 8388607, %v15382_v24  ;;  %vm8197_vm3 = vcmp.lt.s32.totalorder %v8196_v36, 0  ;;  %v10132_v24 = vpop.permute.xlu0 %252 }
 0x130   : > { %15837 = vst [vmem:[#allocation58_spill] sm:$0xff] %v10109_v48  ;;  %v1913_v57 = vadd.s32 %v1912_v34, %v1908_v32  ;;  %v1975_v44 = vshrl.u32 %v15819_v5, %v1972_v13  ;;  %v1974_v61 = vshll.u32 %v15818_v10, %v1971_v47  ;;  %v1977_v31 = vshll.u32 %v15819_v5, %v1971_v47 }
 0x131   : > { %v1978_v49 = vshrl.u32 %v15820_v33, %v1972_v13  ;;  %v10126_v23 = vshrl.u32 %v1969_v1, 5  ;;  %v1980_v55 = vshll.u32 %v15820_v33, %v1971_v47  ;;  %v1981_v62 = vshrl.u32 %v15815_v45, %v1972_v13 }
 0x132   : > { %v1914_v14 = vadd.s32 536870912, %v1913_v57  ;;  %v1976_v41 = vor.u32 %v1975_v44, %v1974_v61  ;;  %v1983_v32 = vshll.u32 %v15815_v45, %v1971_v47  ;;  %v1984_v34 = vshrl.u32 %v15816_v22, %v1972_v13 }
 0x133   : > { %v1979_v25 = vor.u32 %v1978_v49, %v1977_v31  ;;  %v1982_v53 = vor.u32 %v1981_v62, %v1980_v55  ;;  %v1986_v11 = vshll.u32 %v15816_v22, %v1971_v47  ;;  %v1987_v1 = vshrl.u32 %v15817_v20, %v1972_v13 }
 0x134   : > { %v10134_v52 = vshrl.u32 %v1914_v14, 30  ;;  %v10139_v58 = vsub.s32 32, %v10098_v51  ;;  %v10143_v44 = vshll.u32 %v15815_v45, %v10098_v51  ;;  %v1965_v61 = vor.u32 8388608, %v1964_v12 }
 0x135   : > { %v1985_v31 = vor.u32 %v1984_v34, %v1983_v32  ;;  %v1988_v29 = vor.u32 %v1987_v1, %v1986_v11  ;;  %vm1989_vm8 = vcmp.lt.s32.totalorder %v10126_v23, 1  ;;  %v309_v14 = vmul.f32 %v9762_v16, %v10132_v24 }
 0x136   : > { %15838 = vst [vmem:[#allocation59_spill] sm:$0xff] %v10134_v52  ;;  %15839 = vst [vmem:[#allocation60_spill] sm:$0xff] %v10139_v58  ;;  %v1916_v49 = vshll.u32 %v10134_v52, 30  ;;  %v10150_v47 = vsel %vm8193_vm2, 0, %v8192_v40  ;;  %v10153_v55 = vsel %vm8197_vm3, 0, %v8196_v36  ;;  %vm1992_vm9 = vcmp.lt.s32.totalorder %v10126_v23, 4 }
 0x137   : > { %v1997_v12 = vsel %vm1989_vm8, %v1976_v41, %v1979_v25  ;;  %vm1991_vm10 = vcmp.lt.s32.totalorder %v10126_v23, 3  ;;  %v1998_v11 = vsel %vm1992_vm9, %v1985_v31, 920167782  ;;  %v2001_v32 = vsel %vm1989_vm8, %v1979_v25, %v1982_v53 }
 0x138   : > { %v10158_v62 = vsub.s32 %v1913_v57, %v1916_v49  ;;  %vm1990_vm11 = vcmp.lt.s32.totalorder %v10126_v23, 2  ;;  %v1999_v40 = vsel %vm1991_vm10, %v1982_v53, %v1998_v11  ;;  %v2002_v36 = vsel %vm1992_vm9, %v1988_v29, 1326507024 }
 0x139   : > { %v2005_v34 = vshll.u32 %v1965_v61, 8  ;;  %v1721_v57 = vsub.s32 4294967266, %v10150_v47  ;;  %v1825_v1 = vsub.s32 4294967266, %v10153_v55  ;;  %v2000_v49 = vsel %vm1990_vm11, %v1997_v12, %v1999_v40 }
 0x13a   : > { %v2003_v52 = vsel %vm1991_vm10, %v1985_v31, %v2002_v36  ;;  %v10178_v63 = vshll.u32 %v15816_v22, %v10098_v51  ;;  %v1919_v61 = vsub.s32 0, %v10158_v62  ;;  %v1994_v37 = vsel %vm1992_vm9, %v1982_v53, 2102212464 }
 0x13b   : > { %v2004_v11 = vsel %vm1990_vm11, %v2001_v32, %v2003_v52  ;;  %v10182_v38 = vmul.u32.u64.low %v2005_v34, %v2000_v49  ;;  %v10183_v29 = vmul.u32.u64.high %v2005_v34, %v2000_v49, %v10182_v38  ;;  %v840_v31 = vshrl.u32 %v15816_v22, %v10109_v48 }
 0x13c   : > { %v10189_v12 = vmul.u32.u64.low %v2005_v34, %v2004_v11  ;;  %v10190_v40 = vmul.u32.u64.high %v2005_v34, %v2004_v11, %v10189_v12  ;;  %v10196_v36 = vshrl.u32 %v15817_v20, %v10109_v48  ;;  %v1973_v52 = vshrl.u32 %v15818_v10, %v1972_v13 }
 0x13d   : > { %v10200_v32 = vadd.f32 %v9786_v35, %v309_v14  ;;  %v10203_v49 = vsub.s32 32, %v10102_v4  ;;  %v10207_v53 = vshll.u32 %v15815_v45, %v10102_v4  ;;  %v1722_v11 = vadd.s32 127, %v1721_v57 }
 0x13e   : > { %v1826_v12 = vadd.s32 127, %v1825_v1  ;;  %v944_v51 = vshrl.u32 %v15816_v22, %v10139_v58  ;;  %v1993_v48 = vsel %vm1989_vm8, %v1973_v52, %v1976_v41  ;;  %v1995_v13 = vsel %vm1991_vm10, %v1979_v25, %v1994_v37 }
 0x13f   : > { %15840 = vst [vmem:[#allocation61_spill] sm:$0xff] %v10200_v32  ;;  %15841 = vst [vmem:[#allocation62_spill] sm:$0xff] %v10203_v49  ;;  %v310_v14 = vmul.f32 %v9766_v18, %v10132_v24  ;;  %v1717_v15 = vsub.s32 32, %v10150_v47  ;;  %v1821_v0 = vsub.s32 32, %v10153_v55  ;;  %v8199_v7 = vmin.u32 %v1919_v61, %v10158_v62 }
 0x140   : > { %v2015_v57 = vadd.s32 1, %v10183_v29  ;;  %v1701_v1 = vadd.s32 %v9961_v26, %v9959_v43  ;;  %vm2014_vm12 = vc.u32 %v10190_v40, %v10182_v38  ;;  %v311_v37 = vmul.f32 %v9764_v17, %v10132_v24 }
 0x141   : > { %v1232_v41 = vand.u32 2139095040, %v10200_v32  ;;  %v1723_v25 = vshll.u32 %v1722_v11, 23  ;;  %v1805_v52 = vadd.s32 %v9991_v19, %v9997_v56  ;;  %v1827_v28 = vshll.u32 %v1826_v12, 23 }
 0x142   : > { %v1996_v61 = vsel %vm1990_vm11, %v1993_v48, %v1995_v13  ;;  %v10234_v42 = vshrl.u32 %v15817_v20, %v10139_v58  ;;  %v10238_v43 = vshll.u32 %v15816_v22, %v10102_v4  ;;  %v10241_v26 = vand.u32 31, %v10104_v2 }
 0x143   : > { %v10244_v11 = vadd.f32 %v9786_v35, %v310_v14  ;;  %vm848_vm13 = vcmp.lt.s32.totalorder %v10093_v30, 4  ;;  %v1719_v19 = vshrl.u32 %v1701_v1, %v1717_v15  ;;  %v1823_v56 = vshrl.u32 %v1805_v52, %v1821_v0 }
 0x144   : > { %15842 = vst [vmem:[#allocation63_spill] sm:$0xff] %v10241_v26  ;;  %v1921_v23 = vclz %v8199_v7  ;;  %v2016_v48 = vsel %vm2014_vm12, %v2015_v57, %v10183_v29  ;;  %v10249_v12 = vor.u32 %v840_v31, %v10113_v8  ;;  %v2012_v13 = vmul.u32 %v2005_v34, %v1996_v61 }
 0x145   : > { %15843 = vst [vmem:[#allocation64_spill] sm:$0xff] %v10244_v11  ;;  %v10252_v32 = vadd.f32 %v9786_v35, %v311_v37  ;;  %v1233_v4 = vshrl.u32 %v1232_v41, 23  ;;  %v1718_v58 = vshll.u32 %v10032_v39, %v10150_v47  ;;  %v1724_v14 = vor.u32 4788187, %v1723_v25 }
 0x146   : > { %15844 = vst [vmem:[#allocation65_spill] sm:$0xff] %v10249_v12  ;;  %v1822_v60 = vshll.u32 %v10058_v21, %v10153_v55  ;;  %v1828_v15 = vor.u32 4788187, %v1827_v28  ;;  %v844_v0 = vor.u32 %v10196_v36, %v10117_v54  ;;  %v10261_v7 = vsub.s32 32, %v10241_v26 }
 0x147   : > { %15845 = vst [vmem:[#allocation66_spill] sm:$0xff] %v10252_v32  ;;  %v10263_v8 = vadd.s32 %v2016_v48, %v2012_v13  ;;  %v1336_v34 = vand.u32 2139095040, %v10244_v11  ;;  %vm952_vm14 = vcmp.lt.s32.totalorder %v10095_v6, 4  ;;  %v1720_v29 = vor.u32 %v1719_v19, %v1718_v58 }
 0x148   : > { %15846 = vst [vmem:[#allocation67_spill] sm:$0xff] %v10261_v7  ;;  %v1824_v31 = vor.u32 %v1823_v56, %v1822_v60  ;;  %v8200_v39 = vadd.s32 4294967294, %v1921_v23  ;;  %v312_v47 = vmul.f32 %v9776_v27, %v10132_v24  ;;  %v1048_v28 = vshrl.u32 %v15816_v22, %v10203_v49 }
 0x149   : > { %v1051_v21 = vshrl.u32 %v15817_v20, %v10203_v49  ;;  %v8174_v54 = vadd.s32 4294967169, %v1233_v4  ;;  %v1440_v55 = vand.u32 2139095040, %v10252_v32  ;;  %v10275_v36 = vor.u32 %v944_v51, %v10143_v44 }
 0x14a   : > { %v948_v58 = vor.u32 %v10234_v42, %v10178_v63  ;;  %vm15459_vm15 = vcmp.lt.s32.totalorder %v10100_v46, 4  ;;  %v1725_v60 = vand.u32 2147483647, %v1724_v14  ;;  %v1829_v57 = vand.u32 2147483647, %v1828_v15 }
 0x14b   : > { %15847 = vst [vmem:[#allocation68_spill] sm:$0xff] %v10275_v36  ;;  %v10281_v24 = vshrl.u32 %v10104_v2, 5  ;;  %v1152_v1 = vshrl.u32 %v15816_v22, %v10261_v7  ;;  %v2018_v4 = vadd.s32 536870912, %v10263_v8  ;;  %v1337_v37 = vshrl.u32 %v1336_v34, 23 }
 0x14c   : > { %v1727_v41 = vcvt.s32.f32 %v1720_v29  ;;  %v1831_v25 = vcvt.s32.f32 %v1824_v31  ;;  %vm8201_vm0 = vcmp.lt.s32.totalorder %v8200_v39, 0  ;;  %v10287_v51 = vadd.f32 %v9786_v35, %v312_v47 }
 0x14d   : > { %15848 = vst [vmem:[#allocation69_spill] sm:$0xff] %v10281_v24  ;;  %v10292_v63 = vsel %vm848_vm13, %v10249_v12, 920167782  ;;  %v1155_v42 = vshrl.u32 %v15817_v20, %v10261_v7  ;;  %vm15451_vm1 = vcmp.lt.s32.totalorder %v9804_v59, 0  ;;  %vm15458_vm2 = vcmp.lt.s32.totalorder %v9829_v9, 0 }
 0x14e   : > { %15849 = vst [vmem:[#allocation70_spill] sm:$0xff] %v10287_v51  ;;  %15850 = vst [vmem:[#allocation71_spill] sm:$0xff] %v10292_v63  ;;  %v1239_v2 = vadd.s32 1, %v8174_v54  ;;  %v1441_v44 = vshrl.u32 %v1440_v55, 23  ;;  %v10299_v52 = vor.u32 %v1048_v28, %v10207_v53  ;;  %v1151_v35 = vshll.u32 %v15815_v45, %v10241_v26 }
 0x14f   : > { %v1728_v61 = vmul.f32 %v1727_v41, %v1725_v60  ;;  %v1832_v19 = vmul.f32 %v1831_v25, %v1829_v57  ;;  %v1154_v56 = vshll.u32 %v15816_v22, %v10241_v26  ;;  %v1924_v23 = vsel %vm8201_vm0, 0, %v8200_v39 }
 0x150   : > { %15851 = vst [vmem:[#allocation72_spill] sm:$0xff] %v10299_v52  ;;  %v10305_v48 = vshrl.u32 %v2018_v4, 30  ;;  %v8178_v13 = vadd.s32 4294967169, %v1337_v37  ;;  %v10309_v14 = vsel %vm848_vm13, %v844_v0, 1326507024  ;;  %v1052_v15 = vor.u32 %v1051_v21, %v10238_v43  ;;  %v10324_v43 = vpop.permute.xlu1 %262 }
 0x151   : > { %15853 = vst [vmem:[#allocation74_spill] sm:$0xff] %v10309_v14  ;;  %v10312_v53 = vor.u32 %v1152_v1, %v1151_v35  ;;  %v1544_v34 = vand.u32 2139095040, %v10287_v51  ;;  %v10318_v29 = vsel %vm952_vm14, %v10275_v36, 920167782  ;;  %v1156_v31 = vor.u32 %v1155_v42, %v1154_v56 }
 0x152   : > { %15852 = vst [vmem:[#allocation73_spill] sm:$0xff] %v10305_v48  ;;  %15855 = vst [vmem:[#allocation76_spill] sm:$0xff] %v10318_v29  ;;  %vm1240_vm3 = vcmp.gt.s32.totalorder %v1239_v2, 0  ;;  %v8182_v39 = vadd.s32 4294967169, %v1441_v44  ;;  %v10322_v47 = vsel %vm952_vm14, %v948_v58, 1326507024  ;;  %v1909_v41 = vadd.s32 %v10071_v3, %v10079_v50  ;;  %v268_v44 = vpop.permute.xlu0 %267 }
 0x153   : > { %15854 = vst [vmem:[#allocation75_spill] sm:$0xff] %v10312_v53  ;;  %15856 = vst [vmem:[#allocation77_spill] sm:$0xff] %v10322_v47  ;;  %v1729_v0 = vxor.u32 2147483648, %v1728_v61  ;;  %v1833_v28 = vxor.u32 2147483648, %v1832_v19  ;;  %v1929_v54 = vsub.s32 4294967266, %v1924_v23  ;;  %vm1160_vm8 = vcmp.lt.s32.totalorder %v10281_v24, 4 }
 0x154   : > { %v10329_v21 = vsel %vm15459_vm15, %v10299_v52, 920167782  ;;  %v2020_v55 = vshll.u32 %v10305_v48, 30  ;;  %v1343_v60 = vadd.s32 1, %v8178_v13  ;;  %v10335_v57 = vsel %vm15459_vm15, %v1052_v15, 1326507024 }
 0x155   : > { %15857 = vst [vmem:[#allocation78_spill] sm:$0xff] %v10329_v21  ;;  %15858 = vst [vmem:[#allocation79_spill] sm:$0xff] %v10335_v57  ;;  %v10340_v58 = vsel %vm1160_vm8, %v10312_v53, 920167782  ;;  %v1241_v1 = vsel %vm1240_vm3, %v1239_v2, 0  ;;  %v1545_v4 = vshrl.u32 %v1544_v34, 23  ;;  %v10350_v35 = vsel %vm15451_vm1, %v1729_v0, %v1728_v61 }
 0x156   : > { %15859 = vst [vmem:[#allocation80_spill] sm:$0xff] %v10340_v58  ;;  %v10344_v37 = vsel %vm1160_vm8, %v1156_v31, 1326507024  ;;  %v1925_v25 = vsub.s32 32, %v1924_v23  ;;  %v1447_v42 = vadd.s32 1, %v8182_v39  ;;  %15861 = vst [vmem:[#allocation82_spill] sm:$0xff] %v10350_v35  ;;  %v10354_v56 = vsel %vm15458_vm2, %v1833_v28, %v1832_v19  ;;  %v351_v39 = vpop.permute.xlu1 %350 }
 0x157   : > { %15860 = vst [vmem:[#allocation81_spill] sm:$0xff] %v10344_v37  ;;  %15862 = vst [vmem:[#allocation83_spill] sm:$0xff] %v10354_v56  ;;  %v1930_v2 = vadd.s32 127, %v1929_v54  ;;  %v10357_v13 = vmul.f32 %v9762_v16, %v268_v44  ;;  %v10360_v15 = vsub.s32 %v10263_v8, %v2020_v55  ;;  %v10362_v34 = vand.u32 31, %v1241_v1 }
 0x158   : > { %vm1344_vm9 = vcmp.gt.s32.totalorder %v1343_v60, 0  ;;  %v10365_v3 = vmul.f32 %v9766_v18, %v268_v44  ;;  %v10369_v50 = vadd.s32 %v10182_v38, %v10190_v40  ;;  %v8186_v61 = vadd.s32 4294967169, %v1545_v4 }
 0x159   : > { %15863 = vst [vmem:[#allocation84_spill] sm:$0xff] %v10362_v34  ;;  %v10372_v19 = vmul.f32 %v9764_v17, %v268_v44  ;;  %v10375_v31 = vmul.f32 %v9776_v27, %v268_v44  ;;  %v1927_v8 = vshrl.u32 %v1909_v41, %v1925_v25  ;;  %vm1448_vm10 = vcmp.gt.s32.totalorder %v1447_v42, 0 }
 0x15a   : > { %v317_v0 = vmul.f32 %v9762_v16, %v10324_v43  ;;  %v318_v28 = vmul.f32 %v9766_v18, %v10324_v43  ;;  %v1926_v54 = vshll.u32 %v10158_v62, %v1924_v23  ;;  %v1931_v38 = vshll.u32 %v1930_v2, 23 }
 0x15b   : > { %v1345_v40 = vsel %vm1344_vm9, %v1343_v60, 0  ;;  %v319_v55 = vmul.f32 %v9764_v17, %v10324_v43  ;;  %v2023_v4 = vsub.s32 0, %v10360_v15  ;;  %v10386_v44 = vsub.s32 32, %v10362_v34 }
 0x15c   : > { %v10388_v41 = vadd.f32 %v351_v39, %v317_v0  ;;  %v10390_v25 = vadd.f32 %v351_v39, %v318_v28  ;;  %v10392_v32 = vshrl.u32 %v1241_v1, 5  ;;  %v1449_v35 = vsel %vm1448_vm10, %v1447_v42, 0 }
 0x15d   : > { %15864 = vst [vmem:[#allocation85_spill] sm:$0xff] %v10386_v44  ;;  %v10394_v59 = vadd.s32 1, %v8186_v61  ;;  %v10396_v62 = vadd.f32 %v351_v39, %v319_v55  ;;  %v1928_v23 = vor.u32 %v1927_v8, %v1926_v54  ;;  %v10398_v60 = vshrl.u32 %v1345_v40, 5 }
 0x15e   : > { %15865 = vst [vmem:[#allocation86_spill] sm:$0xff] %v10388_v41  ;;  %15866 = vst [vmem:[#allocation87_spill] sm:$0xff] %v10390_v25  ;;  %v15429_v2 = vand.u32 2147483647, %v10388_v41  ;;  %v2064_v48 = vand.u32 2139095040, %v10388_v41  ;;  %v1255_v0 = vshll.u32 %v15815_v45, %v10362_v34  ;;  %v10404_v28 = vand.u32 31, %v1345_v40 }
 0x15f   : > { %15867 = vst [vmem:[#allocation88_spill] sm:$0xff] %v10392_v32  ;;  %15868 = vst [vmem:[#allocation89_spill] sm:$0xff] %v10396_v62  ;;  %v1932_v51 = vor.u32 4788187, %v1931_v38  ;;  %v2168_v1 = vand.u32 2139095040, %v10390_v25  ;;  %v8203_v42 = vmin.u32 %v2023_v4, %v10360_v15  ;;  %v1256_v61 = vshrl.u32 %v15816_v22, %v10386_v44 }
 0x160   : > { %15869 = vst [vmem:[#allocation90_spill] sm:$0xff] %v10398_v60  ;;  %15870 = vst [vmem:[#allocation91_spill] sm:$0xff] %v10404_v28  ;;  %v10412_v8 = vshrl.u32 %v15817_v20, %v10386_v44  ;;  %v2065_v54 = vshrl.u32 %v2064_v48, 23  ;;  %v2068_v38 = vand.u32 8388607, %v15429_v2  ;;  %v2272_v40 = vand.u32 2139095040, %v10396_v62 }
 0x161   : > { %v2169_v56 = vshrl.u32 %v2168_v1, 23  ;;  %v1935_v9 = vcvt.s32.f32 %v1928_v23  ;;  %v10420_v4 = vshll.u32 %v15816_v22, %v10362_v34  ;;  %v10422_v11 = vshrl.u32 %v1449_v35, 5 }
 0x162   : > { %v8206_v21 = vadd.s32 4294967169, %v2065_v54  ;;  %v1933_v52 = vand.u32 2147483647, %v1932_v51  ;;  %v10425_v44 = vsub.s32 32, %v10404_v28  ;;  %v2273_v57 = vshrl.u32 %v2272_v40, 23 }
 0x163   : > { %15871 = vst [vmem:[#allocation92_spill] sm:$0xff] %v10422_v11  ;;  %v8210_v48 = vadd.s32 4294967169, %v2169_v56  ;;  %v2025_v2 = vclz %v8203_v42  ;;  %v10427_v46 = vor.u32 %v1256_v61, %v1255_v0  ;;  %v10431_v1 = vshll.u32 %v15815_v45, %v10404_v28 }
 0x164   : > { %15872 = vst [vmem:[#allocation93_spill] sm:$0xff] %v10425_v44  ;;  %v2071_v23 = vadd.s32 1, %v8206_v21  ;;  %v2069_v34 = vor.u32 8388608, %v2068_v38  ;;  %v15874_v54 = vand.u32 2147483647, %v10390_v25  ;;  %v10441_v56 = vshll.u32 %v15816_v22, %v10404_v28 }
 0x165   : > { %15873 = vst [vmem:[#allocation94_spill] sm:$0xff] %v10427_v46  ;;  %v2175_v49 = vadd.s32 1, %v8210_v48  ;;  %v320_v0 = vmul.f32 %v9776_v27, %v10324_v43  ;;  %v8214_v42 = vadd.s32 4294967169, %v2273_v57  ;;  %v10445_v61 = vmul.f32 %v1935_v9, %v1933_v52 }
 0x166   : > { %v10437_v51 = vand.u32 8388607, %v15874_v54  ;;  %vm2072_vm11 = vcmp.gt.s32.totalorder %v2071_v23, 0  ;;  %v10447_v21 = vand.u32 31, %v1449_v35  ;;  %v10449_v38 = vadd.s32 4294967294, %v2025_v2 }
 0x167   : > { %v2073_v40 = vsel %vm2072_vm11, %v2071_v23, 0  ;;  %vm2176_vm12 = vcmp.gt.s32.totalorder %v2175_v49, 0  ;;  %v10451_v54 = vadd.f32 %v351_v39, %v320_v0  ;;  %v10453_v28 = vshll.u32 %v2069_v34, 8 }
 0x168   : > { %15875 = vst [vmem:[#allocation95_spill] sm:$0xff] %v10447_v21  ;;  %v2075_v48 = vand.u32 31, %v2073_v40  ;;  %v2177_v55 = vsel %vm2176_vm12, %v2175_v49, 0  ;;  %v2074_v63 = vshrl.u32 %v2073_v40, 5  ;;  %v2173_v12 = vor.u32 8388608, %v10437_v51 }
 0x169   : > { %v10457_v9 = vshrl.u32 %v2177_v55, 5  ;;  %v2179_v52 = vand.u32 31, %v2177_v55  ;;  %v10459_v35 = vadd.s32 1, %v8214_v42  ;;  %vm15457_vm11 = vcmp.lt.s32.totalorder %v10392_v32, 4 }
 0x16a   : > { %v2076_v57 = vsub.s32 32, %v2075_v48  ;;  %v2078_v2 = vshll.u32 %v15818_v10, %v2075_v48  ;;  %v2081_v39 = vshll.u32 %v15819_v5, %v2075_v48  ;;  %v2084_v23 = vshll.u32 %v15820_v33, %v2075_v48 }
 0x16b   : > { %v2087_v49 = vshll.u32 %v15815_v45, %v2075_v48  ;;  %v2090_v40 = vshll.u32 %v15816_v22, %v2075_v48  ;;  %vm2093_vm0 = vcmp.lt.s32.totalorder %v2074_v63, 1  ;;  %vm2094_vm3 = vcmp.lt.s32.totalorder %v2074_v63, 2 }
 0x16c   : > { %v2079_v34 = vshrl.u32 %v15819_v5, %v2076_v57  ;;  %v2082_v51 = vshrl.u32 %v15820_v33, %v2076_v57  ;;  %v2085_v0 = vshrl.u32 %v15815_v45, %v2076_v57  ;;  %v2088_v55 = vshrl.u32 %v15816_v22, %v2076_v57 }
 0x16d   : > { %v2091_v42 = vshrl.u32 %v15817_v20, %v2076_v57  ;;  %v2180_v58 = vsub.s32 32, %v2179_v52  ;;  %v2077_v53 = vshrl.u32 %v15818_v10, %v2076_v57  ;;  %vm2096_vm9 = vcmp.lt.s32.totalorder %v2074_v63, 4 }
 0x16e   : > { %v2080_v43 = vor.u32 %v2079_v34, %v2078_v2  ;;  %v2083_v14 = vor.u32 %v2082_v51, %v2081_v39  ;;  %v2086_v30 = vor.u32 %v2085_v0, %v2084_v23  ;;  %v2089_v37 = vor.u32 %v2088_v55, %v2087_v49 }
 0x16f   : > { %v2092_v24 = vor.u32 %v2091_v42, %v2090_v40  ;;  %vm2095_vm10 = vcmp.lt.s32.totalorder %v2074_v63, 3  ;;  %v2182_v47 = vshll.u32 %v15818_v10, %v2179_v52  ;;  %v2185_v2 = vshll.u32 %v15819_v5, %v2179_v52 }
 0x170   : > { %v2098_v7 = vsel %vm2096_vm9, %v2086_v30, 2102212464  ;;  %v2101_v26 = vsel %vm2093_vm0, %v2080_v43, %v2083_v14  ;;  %v2105_v48 = vsel %vm2093_vm0, %v2083_v14, %v2086_v30  ;;  %v2102_v29 = vsel %vm2096_vm9, %v2089_v37, 920167782 }
 0x171   : > { %v2106_v36 = vsel %vm2096_vm9, %v2092_v24, 1326507024  ;;  %v2097_v39 = vsel %vm2093_vm0, %v2077_v53, %v2080_v43  ;;  %v2103_v23 = vsel %vm2095_vm10, %v2086_v30, %v2102_v29  ;;  %v2183_v57 = vshrl.u32 %v15819_v5, %v2180_v58 }
 0x172   : > { %v2107_v34 = vsel %vm2095_vm10, %v2089_v37, %v2106_v36  ;;  %v2099_v49 = vsel %vm2095_vm10, %v2083_v14, %v2098_v7  ;;  %v2104_v51 = vsel %vm2094_vm3, %v2101_v26, %v2103_v23  ;;  %v2186_v40 = vshrl.u32 %v15820_v33, %v2180_v58 }
 0x173   : > { %v2108_v0 = vsel %vm2094_vm3, %v2105_v48, %v2107_v34  ;;  %v10486_v42 = vmul.u32.u64.low %v10453_v28, %v2104_v51  ;;  %v10487_v6 = vmul.u32.u64.high %v10453_v28, %v2104_v51, %v10486_v42  ;;  %v2184_v30 = vor.u32 %v2183_v57, %v2182_v47 }
 0x174   : > { %v10482_v55 = vmul.u32.u64.low %v10453_v28, %v2108_v0  ;;  %v10483_v24 = vmul.u32.u64.high %v10453_v28, %v2108_v0, %v10482_v55  ;;  %v2187_v36 = vor.u32 %v2186_v40, %v2185_v2  ;;  %v2188_v53 = vshll.u32 %v15820_v33, %v2179_v52 }
 0x175   : > { %v2189_v7 = vshrl.u32 %v15815_v45, %v2180_v58  ;;  %v2191_v26 = vshll.u32 %v15815_v45, %v2179_v52  ;;  %v2192_v14 = vshrl.u32 %v15816_v22, %v2180_v58  ;;  %v2195_v29 = vshrl.u32 %v15817_v20, %v2180_v58 }
 0x176   : > { %v10495_v37 = vshll.u32 %v2173_v12, 8  ;;  %v2100_v43 = vsel %vm2094_vm3, %v2097_v39, %v2099_v49  ;;  %v2194_v47 = vshll.u32 %v15816_v22, %v2179_v52  ;;  %v2376_v2 = vand.u32 2139095040, %v10451_v54 }
 0x177   : > { %v2190_v48 = vor.u32 %v2189_v7, %v2188_v53  ;;  %vm2118_vm12 = vc.u32 %v10483_v24, %v10486_v42  ;;  %v2119_v23 = vadd.s32 1, %v10487_v6  ;;  %v2193_v34 = vor.u32 %v2192_v14, %v2191_v26 }
 0x178   : > { %vm2197_vm0 = vcmp.lt.s32.totalorder %v10457_v9, 1  ;;  %v2196_v57 = vor.u32 %v2195_v29, %v2194_v47  ;;  %vm2200_vm9 = vcmp.lt.s32.totalorder %v10457_v9, 4  ;;  %vm2280_vm3 = vcmp.gt.s32.totalorder %v10459_v35, 0 }
 0x179   : > { %v2205_v12 = vsel %vm2197_vm0, %v2184_v30, %v2187_v36  ;;  %v2116_v63 = vmul.u32 %v10453_v28, %v2100_v43  ;;  %vm2199_vm10 = vcmp.lt.s32.totalorder %v10457_v9, 3  ;;  %v2206_v52 = vsel %vm2200_vm9, %v2193_v34, 920167782 }
 0x17a   : > { %v2209_v39 = vsel %vm2197_vm0, %v2187_v36, %v2190_v48  ;;  %v2120_v49 = vsel %vm2118_vm12, %v2119_v23, %v10487_v6  ;;  %vm2198_vm1 = vcmp.lt.s32.totalorder %v10457_v9, 2  ;;  %v2207_v51 = vsel %vm2199_vm10, %v2190_v48, %v2206_v52 }
 0x17b   : > { %v2210_v0 = vsel %vm2200_vm9, %v2196_v57, 1326507024  ;;  %v2202_v40 = vsel %vm2200_vm9, %v2190_v48, 2102212464  ;;  %v2208_v55 = vsel %vm2198_vm1, %v2205_v12, %v2207_v51  ;;  %v2281_v53 = vsel %vm2280_vm3, %v10459_v35, 0 }
 0x17c   : > { %v2211_v28 = vsel %vm2199_vm10, %v2193_v34, %v2210_v0  ;;  %v2181_v7 = vshrl.u32 %v15818_v10, %v2180_v58  ;;  %v10526_v26 = vmul.u32.u64.low %v10495_v37, %v2208_v55  ;;  %v10527_v14 = vmul.u32.u64.high %v10495_v37, %v2208_v55, %v10526_v26 }
 0x17d   : > { %v2212_v6 = vsel %vm2198_vm1, %v2209_v39, %v2211_v28  ;;  %v10530_v29 = vadd.s32 %v2120_v49, %v2116_v63  ;;  %v15876_v47 = vand.u32 2147483647, %v10396_v62  ;;  %v2203_v35 = vsel %vm2199_vm10, %v2187_v36, %v2202_v40 }
 0x17e   : > { %v10533_v43 = vmul.u32.u64.low %v10495_v37, %v2212_v6  ;;  %v10534_v48 = vmul.u32.u64.high %v10495_v37, %v2212_v6, %v10533_v43  ;;  %v2201_v58 = vsel %vm2197_vm0, %v2181_v7, %v2184_v30  ;;  %v2283_v34 = vand.u32 31, %v2281_v53 }
 0x17f   : > { %v2276_v23 = vand.u32 8388607, %v15876_v47  ;;  %v2377_v57 = vshrl.u32 %v2376_v2, 23  ;;  %v10545_v12 = vsel %vm15457_vm11, %v10427_v46, 920167782  ;;  %v15878_v63 = vor.u32 %v10412_v8, %v10420_v4 }
 0x180   : > { %15877 = vst [vmem:[#allocation96_spill] sm:$0xff] %v10545_v12  ;;  %v1360_v30 = vshrl.u32 %v15816_v22, %v10425_v44  ;;  %v10558_v36 = vshrl.u32 %v15817_v20, %v10425_v44  ;;  %v10562_v39 = vsub.s32 32, %v10447_v21  ;;  %v1463_v49 = vshll.u32 %v15815_v45, %v10447_v21 }
 0x181   : > { %v10552_v52 = vsel %vm15457_vm11, %v15878_v63, 1326507024  ;;  %v2284_v8 = vsub.s32 32, %v2283_v34  ;;  %v2122_v4 = vadd.s32 536870912, %v10530_v29  ;;  %v2204_v51 = vsel %vm2198_vm1, %v2201_v58, %v2203_v35 }
 0x182   : > { %15879 = vst [vmem:[#allocation97_spill] sm:$0xff] %v10552_v52  ;;  %15880 = vst [vmem:[#allocation98_spill] sm:$0xff] %v10562_v39  ;;  %v2277_v0 = vor.u32 8388608, %v2276_v23  ;;  %v10569_v40 = vshrl.u32 %v2281_v53, 5  ;;  %vm8205_vm12 = vcmp.lt.s32.totalorder %v10449_v38, 0  ;;  %v2223_v55 = vadd.s32 1, %v10527_v14 }
 0x183   : > { %v2286_v28 = vshll.u32 %v15818_v10, %v2283_v34  ;;  %v2287_v7 = vshrl.u32 %v15819_v5, %v2284_v8  ;;  %v8218_v6 = vadd.s32 4294967169, %v2377_v57  ;;  %v2289_v43 = vshll.u32 %v15819_v5, %v2283_v34 }
 0x184   : > { %v2290_v47 = vshrl.u32 %v15820_v33, %v2284_v8  ;;  %v2292_v63 = vshll.u32 %v15820_v33, %v2283_v34  ;;  %v2293_v9 = vshrl.u32 %v15815_v45, %v2284_v8  ;;  %vm2222_vm1 = vc.u32 %v10534_v48, %v10526_v26 }
 0x185   : > { %v2288_v53 = vor.u32 %v2287_v7, %v2286_v28  ;;  %v2295_v23 = vshll.u32 %v15815_v45, %v2283_v34  ;;  %v2296_v58 = vshrl.u32 %v15816_v22, %v2284_v8  ;;  %vm1552_vm0 = vcmp.gt.s32.totalorder %v10394_v59, 0  ;;  %v15882_v28 = vld [vmem:[#allocation21_spill] sm:$0xff] }
 0x186   : > { %v2291_v35 = vor.u32 %v2290_v47, %v2289_v43  ;;  %v2294_v57 = vor.u32 %v2293_v9, %v2292_v63  ;;  %v2298_v2 = vshll.u32 %v15816_v22, %v2283_v34  ;;  %v2299_v46 = vshrl.u32 %v15817_v20, %v2284_v8 }
 0x187   : > { %v10586_v52 = vshrl.u32 %v2122_v4, 30  ;;  %v2220_v12 = vmul.u32 %v10495_v37, %v2204_v51  ;;  %v2297_v32 = vor.u32 %v2296_v58, %v2295_v23  ;;  %vm2301_vm9 = vcmp.lt.s32.totalorder %v10569_v40, 1 }
 0x188   : > { %vm15495_vm3 = vcmp.lt.s32.totalorder %v15882_v28, 0  ;;  %v2224_v7 = vsel %vm2222_vm1, %v2223_v55, %v10527_v14  ;;  %v2300_v44 = vor.u32 %v2299_v46, %v2298_v2  ;;  %vm2304_vm10 = vcmp.lt.s32.totalorder %v10569_v40, 4 }
 0x189   : > { %15881 = vst [vmem:[#allocation99_spill] sm:$0xff] %v10586_v52  ;;  %v2309_v43 = vsel %vm2301_vm9, %v2288_v53, %v2291_v35  ;;  %vm2303_vm11 = vcmp.lt.s32.totalorder %v10569_v40, 3  ;;  %v2310_v34 = vsel %vm2304_vm10, %v2297_v32, 920167782  ;;  %v2313_v37 = vsel %vm2301_vm9, %v2291_v35, %v2294_v57 }
 0x18a   : > { %v2383_v4 = vadd.s32 1, %v8218_v6  ;;  %vm1368_vm2 = vcmp.lt.s32.totalorder %v10398_v60, 4  ;;  %vm2302_vm15 = vcmp.lt.s32.totalorder %v10569_v40, 2  ;;  %v2311_v46 = vsel %vm2303_vm11, %v2294_v57, %v2310_v34 }
 0x18b   : > { %v2314_v14 = vsel %vm2304_vm10, %v2300_v44, 1326507024  ;;  %v10606_v2 = vshll.u32 %v2277_v0, 8  ;;  %v2124_v51 = vshll.u32 %v10586_v52, 30  ;;  %v10609_v55 = vadd.s32 %v2224_v7, %v2220_v12 }
 0x18c   : > { %v2312_v47 = vsel %vm2302_vm15, %v2309_v43, %v2311_v46  ;;  %v2315_v6 = vsel %vm2303_vm11, %v2297_v32, %v2314_v14  ;;  %v10616_v63 = vor.u32 %v1360_v30, %v10431_v1  ;;  %v1464_v9 = vshrl.u32 %v15816_v22, %v10562_v39 }
 0x18d   : > { %v1466_v44 = vshll.u32 %v15816_v22, %v10447_v21  ;;  %v2316_v0 = vsel %vm2302_vm15, %v2313_v37, %v2315_v6  ;;  %v1467_v12 = vshrl.u32 %v15817_v20, %v10562_v39  ;;  %vm2384_vm1 = vcmp.gt.s32.totalorder %v2383_v4, 0 }
 0x18e   : > { %15883 = vst [vmem:[#allocation100_spill] sm:$0xff] %v10616_v63  ;;  %v10627_v23 = vmul.u32.u64.low %v10606_v2, %v2312_v47  ;;  %v10628_v58 = vmul.u32.u64.high %v10606_v2, %v2312_v47, %v10627_v23  ;;  %v10634_v32 = vsel %vm8205_vm12, 0, %v10449_v38  ;;  %v2385_v7 = vsel %vm2384_vm1, %v2383_v4, 0 }
 0x18f   : > { %v10637_v1 = vmul.u32.u64.low %v10606_v2, %v2316_v0  ;;  %v10638_v30 = vmul.u32.u64.high %v10606_v2, %v2316_v0, %v10637_v1  ;;  %v10641_v43 = vsub.s32 %v10530_v29, %v2124_v51  ;;  %v2226_v34 = vadd.s32 536870912, %v10609_v55 }
 0x190   : > { %v2306_v37 = vsel %vm2304_vm10, %v2294_v57, 2102212464  ;;  %v15460_v46 = vand.u32 2147483647, %v10451_v54  ;;  %v1364_v14 = vor.u32 %v10558_v36, %v10441_v56  ;;  %v10649_v38 = vor.u32 %v1464_v9, %v1463_v49  ;;  %v10693_v1 = vpop.permute.xlu0 %272 }
 0x191   : > { %v2285_v47 = vshrl.u32 %v15818_v10, %v2284_v8  ;;  %v2387_v6 = vand.u32 31, %v2385_v7  ;;  %v15885_v4 = vxor.u32 2147483648, %v10445_v61  ;;  %v1468_v51 = vor.u32 %v1467_v12, %v1466_v44 }
 0x192   : > { %15884 = vst [vmem:[#allocation101_spill] sm:$0xff] %v10649_v38  ;;  %vm15500_vm12 = vcmp.lt.s32.totalorder %v10422_v11, 4  ;;  %v1553_v57 = vsel %vm1552_vm0, %v10394_v59, 0  ;;  %v2033_v56 = vsub.s32 4294967266, %v10634_v32  ;;  %v2307_v49 = vsel %vm2303_vm11, %v2291_v35, %v2306_v37 }
 0x193   : > { %v10657_v29 = vsel %vm15495_vm3, %v15885_v4, %v10445_v61  ;;  %v2305_v36 = vsel %vm2301_vm9, %v2285_v47, %v2288_v53  ;;  %v10668_v8 = vsub.s32 32, %v2387_v6  ;;  %v10673_v61 = vsel %vm1368_vm2, %v10616_v63, 920167782 }
 0x194   : > { %15886 = vst [vmem:[#allocation102_spill] sm:$0xff] %v10657_v29  ;;  %15887 = vst [vmem:[#allocation103_spill] sm:$0xff] %v10673_v61  ;;  %v2127_v9 = vsub.s32 0, %v10641_v43  ;;  %v10676_v44 = vshrl.u32 %v2226_v34, 30  ;;  %v2380_v59 = vand.u32 8388607, %v15460_v46  ;;  %vm2326_vm11 = vc.u32 %v10638_v30, %v10627_v23 }
 0x195   : > { %v10682_v53 = vsel %vm1368_vm2, %v1364_v14, 1326507024  ;;  %v10687_v35 = vsel %vm15500_vm12, %v10649_v38, 920167782  ;;  %v10689_v0 = vshrl.u32 %v1553_v57, 5  ;;  %v10691_v12 = vand.u32 31, %v1553_v57 }
 0x196   : > { %15888 = vst [vmem:[#allocation104_spill] sm:$0xff] %v10676_v44  ;;  %15889 = vst [vmem:[#allocation105_spill] sm:$0xff] %v10682_v53  ;;  %v2029_v34 = vsub.s32 32, %v10634_v32  ;;  %v10698_v37 = vsel %vm15500_vm12, %v1468_v51, 1326507024  ;;  %v2308_v14 = vsel %vm2302_vm15, %v2305_v36, %v2307_v49  ;;  %v2327_v47 = vadd.s32 1, %v10628_v58 }
 0x197   : > { %15890 = vst [vmem:[#allocation106_spill] sm:$0xff] %v10687_v35  ;;  %15891 = vst [vmem:[#allocation107_spill] sm:$0xff] %v10689_v0  ;;  %v10703_v4 = vadd.s32 127, %v2033_v56  ;;  %v2391_v57 = vshrl.u32 %v15819_v5, %v10668_v8  ;;  %v2394_v46 = vshrl.u32 %v15820_v33, %v10668_v8  ;;  %v8207_v52 = vmin.u32 %v2127_v9, %v10641_v43 }
 0x198   : > { %15892 = vst [vmem:[#allocation108_spill] sm:$0xff] %v10691_v12  ;;  %15893 = vst [vmem:[#allocation109_spill] sm:$0xff] %v10698_v37  ;;  %v2228_v51 = vshll.u32 %v10676_v44, 30  ;;  %v2381_v29 = vor.u32 8388608, %v2380_v59  ;;  %v2397_v40 = vshrl.u32 %v15815_v45, %v10668_v8  ;;  %v2324_v56 = vmul.u32 %v10606_v2, %v2308_v14 }
 0x199   : > { %v10716_v36 = vshrl.u32 %v2385_v7, 5  ;;  %v2390_v49 = vshll.u32 %v15818_v10, %v2387_v6  ;;  %v2393_v28 = vshll.u32 %v15819_v5, %v2387_v6  ;;  %v2328_v38 = vsel %vm2326_vm11, %v2327_v47, %v10628_v58  ;;  %v10728_v7 = vpop.permute.xlu0 %358 }
 0x19a   : > { %v2396_v37 = vshll.u32 %v15820_v33, %v2387_v6  ;;  %v2399_v9 = vshll.u32 %v15815_v45, %v2387_v6  ;;  %v2400_v59 = vshrl.u32 %v15816_v22, %v10668_v8  ;;  %v2402_v11 = vshll.u32 %v15816_v22, %v2387_v6 }
 0x19b   : > { %v2392_v44 = vor.u32 %v2391_v57, %v2390_v49  ;;  %v2395_v35 = vor.u32 %v2394_v46, %v2393_v28  ;;  %v2403_v2 = vshrl.u32 %v15817_v20, %v10668_v8  ;;  %v325_v14 = vmul.f32 %v9762_v16, %v10693_v1 }
 0x19c   : > { %v10733_v58 = vsub.s32 %v10609_v55, %v2228_v51  ;;  %v2398_v47 = vor.u32 %v2397_v40, %v2396_v37  ;;  %v2401_v21 = vor.u32 %v2400_v59, %v2399_v9  ;;  %v2031_v39 = vshrl.u32 %v10369_v50, %v2029_v34 }
 0x19d   : > { %v10737_v57 = vsub.s32 32, %v10691_v12  ;;  %v2329_v28 = vadd.s32 %v2328_v38, %v2324_v56  ;;  %v2404_v46 = vor.u32 %v2403_v2, %v2402_v11  ;;  %v2035_v6 = vshll.u32 %v10703_v4, 23 }
 0x19e   : > { %v326_v49 = vmul.f32 %v9766_v18, %v10693_v1  ;;  %vm2405_vm15 = vcmp.lt.s32.totalorder %v10716_v36, 1  ;;  %v10744_v61 = vadd.f32 %v10728_v7, %v325_v14  ;;  %v2129_v55 = vclz %v8207_v52 }
 0x19f   : > { %15894 = vst [vmem:[#allocation110_spill] sm:$0xff] %v10737_v57  ;;  %vm2408_vm0 = vcmp.lt.s32.totalorder %v10716_v36, 4  ;;  %v2413_v50 = vsel %vm2405_vm15, %v2392_v44, %v2395_v35  ;;  %v2421_v34 = vshll.u32 %v2381_v29, 8  ;;  %v2231_v38 = vsub.s32 0, %v10733_v58 }
 0x1a0   : > { %15895 = vst [vmem:[#allocation111_spill] sm:$0xff] %v10744_v61  ;;  %vm2407_vm9 = vcmp.lt.s32.totalorder %v10716_v36, 3  ;;  %v2414_v11 = vsel %vm2408_vm0, %v2401_v21, 920167782  ;;  %v2417_v37 = vsel %vm2405_vm15, %v2395_v35, %v2398_v47  ;;  %v2330_v4 = vadd.s32 536870912, %v2329_v28 }
 0x1a1   : > { %vm2406_vm10 = vcmp.lt.s32.totalorder %v10716_v36, 2  ;;  %v2415_v52 = vsel %vm2407_vm9, %v2398_v47, %v2414_v11  ;;  %v2418_v51 = vsel %vm2408_vm0, %v2404_v46, 1326507024  ;;  %v2410_v40 = vsel %vm2408_vm0, %v2398_v47, 2102212464 }
 0x1a2   : > { %v2416_v56 = vsel %vm2406_vm10, %v2413_v50, %v2415_v52  ;;  %v2419_v29 = vsel %vm2407_vm9, %v2401_v21, %v2418_v51  ;;  %v10761_v9 = vadd.f32 %v10728_v7, %v326_v49  ;;  %v2389_v59 = vshrl.u32 %v15818_v10, %v10668_v8 }
 0x1a3   : > { %v2420_v2 = vsel %vm2406_vm10, %v2417_v37, %v2419_v29  ;;  %v10767_v14 = vmul.u32.u64.low %v2421_v34, %v2416_v56  ;;  %v10768_v63 = vmul.u32.u64.high %v2421_v34, %v2416_v56, %v10767_v14  ;;  %v8208_v47 = vadd.s32 4294967294, %v2129_v55 }
 0x1a4   : > { %15896 = vst [vmem:[#allocation112_spill] sm:$0xff] %v10761_v9  ;;  %v8211_v46 = vmin.u32 %v2231_v38, %v10733_v58  ;;  %v10772_v50 = vmul.u32.u64.low %v2421_v34, %v2420_v2  ;;  %v10773_v11 = vmul.u32.u64.high %v2421_v34, %v2420_v2, %v10772_v50  ;;  %v10775_v21 = vshrl.u32 %v2330_v4, 30 }
 0x1a5   : > { %v2409_v49 = vsel %vm2405_vm15, %v2389_v59, %v2392_v44  ;;  %v2411_v8 = vsel %vm2407_vm9, %v2395_v35, %v2410_v40  ;;  %v2896_v37 = vand.u32 2139095040, %v10744_v61  ;;  %v2030_v52 = vshll.u32 %v10360_v15, %v10634_v32 }
 0x1a6   : > { %15897 = vst [vmem:[#allocation113_spill] sm:$0xff] %v10775_v21  ;;  %v1567_v55 = vshll.u32 %v15815_v45, %v10691_v12  ;;  %v1568_v38 = vshrl.u32 %v15816_v22, %v10737_v57  ;;  %v3000_v4 = vand.u32 2139095040, %v10761_v9  ;;  %v2036_v51 = vor.u32 4788187, %v2035_v6 }
 0x1a7   : > { %v1571_v44 = vshrl.u32 %v15817_v20, %v10737_v57  ;;  %v2431_v56 = vadd.s32 1, %v10768_v63  ;;  %v2897_v35 = vshrl.u32 %v2896_v37, 23  ;;  %v2032_v40 = vor.u32 %v2031_v39, %v2030_v52 }
 0x1a8   : > { %v1570_v29 = vshll.u32 %v15816_v22, %v10691_v12  ;;  %v2233_v15 = vclz %v8211_v46  ;;  %v2412_v32 = vsel %vm2406_vm10, %v2409_v49, %v2411_v8  ;;  %vm8209_vm1 = vcmp.lt.s32.totalorder %v8208_v47, 0 }
 0x1a9   : > { %v2332_v59 = vshll.u32 %v10775_v21, 30  ;;  %vm2430_vm11 = vc.u32 %v10773_v11, %v10767_v14  ;;  %v8238_v6 = vadd.s32 4294967169, %v2897_v35  ;;  %v10799_v2 = vor.u32 %v1568_v38, %v1567_v55 }
 0x1aa   : > { %vm15501_vm15 = vcmp.lt.s32.totalorder %v10689_v0, 4  ;;  %v2432_v39 = vsel %vm2430_vm11, %v2431_v56, %v10768_v63  ;;  %v3001_v50 = vshrl.u32 %v3000_v4, 23  ;;  %v2037_v37 = vand.u32 2147483647, %v2036_v51 }
 0x1ab   : > { %15898 = vst [vmem:[#allocation114_spill] sm:$0xff] %v10799_v2  ;;  %v1572_v52 = vor.u32 %v1571_v44, %v1570_v29  ;;  %v2428_v46 = vmul.u32 %v2421_v34, %v2412_v32  ;;  %v2903_v57 = vadd.s32 1, %v8238_v6  ;;  %v2039_v36 = vcvt.s32.f32 %v2032_v40 }
 0x1ac   : > { %v327_v49 = vmul.f32 %v9764_v17, %v10693_v1  ;;  %v10805_v8 = vsel %vm8209_vm1, 0, %v8208_v47  ;;  %v8212_v21 = vadd.s32 4294967294, %v2233_v15  ;;  %v10807_v12 = vsub.s32 %v2329_v28, %v2332_v59 }
 0x1ad   : > { %v10809_v55 = vadd.s32 %v2432_v39, %v2428_v46  ;;  %v15480_v38 = vand.u32 2147483647, %v10744_v61  ;;  %vm2904_vm0 = vcmp.gt.s32.totalorder %v2903_v57, 0  ;;  %v10815_v63 = vsel %vm15501_vm15, %v10799_v2, 920167782 }
 0x1ae   : > { %15899 = vst [vmem:[#allocation115_spill] sm:$0xff] %v10815_v63  ;;  %v328_v34 = vmul.f32 %v9776_v27, %v10693_v1  ;;  %v2905_v4 = vsel %vm2904_vm0, %v2903_v57, 0  ;;  %v8242_v51 = vadd.s32 4294967169, %v3001_v50  ;;  %v10819_v47 = vmul.f32 %v2039_v36, %v2037_v37 }
 0x1af   : > { %v10823_v28 = vsel %vm15501_vm15, %v1572_v52, 1326507024  ;;  %v2117_v44 = vadd.s32 %v10486_v42, %v10483_v24  ;;  %v2907_v56 = vand.u32 31, %v2905_v4  ;;  %v2137_v35 = vsub.s32 4294967266, %v10805_v8 }
 0x1b0   : > { %15900 = vst [vmem:[#allocation116_spill] sm:$0xff] %v10823_v28  ;;  %v10830_v40 = vadd.s32 %v10526_v26, %v10534_v48  ;;  %vm8213_vm9 = vcmp.lt.s32.totalorder %v8212_v21, 0  ;;  %v10833_v1 = vadd.f32 %v10728_v7, %v327_v49  ;;  %v2335_v57 = vsub.s32 0, %v10807_v12 }
 0x1b1   : > { %v2434_v29 = vadd.s32 536870912, %v10809_v55  ;;  %v2900_v15 = vand.u32 8388607, %v15480_v38  ;;  %v2908_v32 = vsub.s32 32, %v2907_v56  ;;  %v10839_v24 = vshrl.u32 %v2905_v4, 5 }
 0x1b2   : > { %15901 = vst [vmem:[#allocation117_spill] sm:$0xff] %v10833_v1  ;;  %v2910_v42 = vshll.u32 %v15818_v10, %v2907_v56  ;;  %v2913_v59 = vshll.u32 %v15819_v5, %v2907_v56  ;;  %v3007_v26 = vadd.s32 1, %v8242_v51  ;;  %v2916_v39 = vshll.u32 %v15820_v33, %v2907_v56 }
 0x1b3   : > { %v2911_v48 = vshrl.u32 %v15819_v5, %v2908_v32  ;;  %v2914_v6 = vshrl.u32 %v15820_v33, %v2908_v32  ;;  %v2919_v50 = vshll.u32 %v15815_v45, %v2907_v56  ;;  %v2917_v37 = vshrl.u32 %v15815_v45, %v2908_v32 }
 0x1b4   : > { %v2920_v52 = vshrl.u32 %v15816_v22, %v2908_v32  ;;  %v2922_v46 = vshll.u32 %v15816_v22, %v2907_v56  ;;  %v2923_v36 = vshrl.u32 %v15817_v20, %v2908_v32  ;;  %v2133_v49 = vsub.s32 32, %v10805_v8 }
 0x1b5   : > { %v8215_v4 = vmin.u32 %v2335_v57, %v10807_v12  ;;  %v2912_v51 = vor.u32 %v2911_v48, %v2910_v42  ;;  %v2915_v38 = vor.u32 %v2914_v6, %v2913_v59  ;;  %v2918_v2 = vor.u32 %v2917_v37, %v2916_v39 }
 0x1b6   : > { %v2921_v28 = vor.u32 %v2920_v52, %v2919_v50  ;;  %v2924_v63 = vor.u32 %v2923_v36, %v2922_v46  ;;  %vm3008_vm10 = vcmp.gt.s32.totalorder %v3007_v26, 0  ;;  %v10853_v0 = vadd.s32 127, %v2137_v35 }
 0x1b7   : > { %v10856_v53 = vsel %vm8213_vm9, 0, %v8212_v21  ;;  %v2901_v60 = vor.u32 8388608, %v2900_v15  ;;  %vm2928_vm1 = vcmp.lt.s32.totalorder %v10839_v24, 4  ;;  %v10859_v56 = vshrl.u32 %v2434_v29, 30 }
 0x1b8   : > { %vm2925_vm11 = vcmp.lt.s32.totalorder %v10839_v24, 1  ;;  %vm2927_vm0 = vcmp.lt.s32.totalorder %v10839_v24, 3  ;;  %v2934_v57 = vsel %vm2928_vm1, %v2921_v28, 920167782  ;;  %v3009_v15 = vsel %vm3008_vm10, %v3007_v26, 0 }
 0x1b9   : > { %15902 = vst [vmem:[#allocation118_spill] sm:$0xff] %v10859_v56  ;;  %v2933_v42 = vsel %vm2925_vm11, %v2912_v51, %v2915_v38  ;;  %v2935_v35 = vsel %vm2927_vm0, %v2918_v2, %v2934_v57  ;;  %v2937_v21 = vsel %vm2925_vm11, %v2915_v38, %v2918_v2  ;;  %v2241_v59 = vsub.s32 4294967266, %v10856_v53 }
 0x1ba   : > { %v2337_v48 = vclz %v8215_v4  ;;  %v2938_v6 = vsel %vm2928_vm1, %v2924_v63, 1326507024  ;;  %v10876_v39 = vshrl.u32 %v2117_v44, %v2133_v49  ;;  %v10879_v50 = vadd.f32 %v10728_v7, %v328_v34 }
 0x1bb   : > { %vm2926_vm9 = vcmp.lt.s32.totalorder %v10839_v24, 2  ;;  %v2939_v37 = vsel %vm2927_vm0, %v2921_v28, %v2938_v6  ;;  %v3011_v36 = vand.u32 31, %v3009_v15  ;;  %v2237_v63 = vsub.s32 32, %v10856_v53 }
 0x1bc   : > { %15903 = vst [vmem:[#allocation119_spill] sm:$0xff] %v10879_v50  ;;  %v2936_v52 = vsel %vm2926_vm9, %v2933_v42, %v2935_v35  ;;  %v2940_v46 = vsel %vm2926_vm9, %v2937_v21, %v2939_v37  ;;  %v2436_v44 = vshll.u32 %v10859_v56, 30  ;;  %v10891_v7 = vshll.u32 %v2901_v60, 8 }
 0x1bd   : > { %v15488_v34 = vand.u32 2147483647, %v10761_v9  ;;  %v10896_v49 = vadd.s32 127, %v2241_v59  ;;  %v8216_v4 = vadd.s32 4294967294, %v2337_v48  ;;  %v3012_v57 = vsub.s32 32, %v3011_v36 }
 0x1be   : > { %v10899_v42 = vmul.u32.u64.low %v10891_v7, %v2940_v46  ;;  %v10900_v35 = vmul.u32.u64.high %v10891_v7, %v2940_v46, %v10899_v42  ;;  %v10903_v21 = vmul.u32.u64.low %v10891_v7, %v2936_v52  ;;  %v10904_v6 = vmul.u32.u64.high %v10891_v7, %v2936_v52, %v10903_v21 }
 0x1bf   : > { %v2909_v60 = vshrl.u32 %v15818_v10, %v2908_v32  ;;  %v2930_v37 = vsel %vm2928_vm1, %v2918_v2, 2102212464  ;;  %v3015_v28 = vshrl.u32 %v15819_v5, %v3012_v57  ;;  %v3018_v59 = vshrl.u32 %v15820_v33, %v3012_v57 }
 0x1c0   : > { %v10913_v48 = vsub.s32 %v10809_v55, %v2436_v44  ;;  %v3004_v46 = vand.u32 8388607, %v15488_v34  ;;  %v3014_v42 = vshll.u32 %v15818_v10, %v3011_v36  ;;  %v3017_v52 = vshll.u32 %v15819_v5, %v3011_v36 }
 0x1c1   : > { %v2929_v32 = vsel %vm2925_vm11, %v2909_v60, %v2912_v51  ;;  %v10921_v26 = vshrl.u32 %v3009_v15, 5  ;;  %v3020_v2 = vshll.u32 %v15820_v33, %v3011_v36  ;;  %v3021_v29 = vshrl.u32 %v15815_v45, %v3012_v57 }
 0x1c2   : > { %v2931_v55 = vsel %vm2927_vm0, %v2915_v38, %v2930_v37  ;;  %v3016_v44 = vor.u32 %v3015_v28, %v3014_v42  ;;  %v3019_v56 = vor.u32 %v3018_v59, %v3017_v52  ;;  %v3023_v34 = vshll.u32 %v15815_v45, %v3011_v36 }
 0x1c3   : > { %v3022_v27 = vor.u32 %v3021_v29, %v3020_v2  ;;  %v3024_v17 = vshrl.u32 %v15816_v22, %v3012_v57  ;;  %v3026_v9 = vshll.u32 %v15816_v22, %v3011_v36  ;;  %v3027_v51 = vshrl.u32 %v15817_v20, %v3012_v57 }
 0x1c4   : > { %vm8217_vm10 = vcmp.lt.s32.totalorder %v8216_v4, 0  ;;  %v2439_v15 = vsub.s32 0, %v10913_v48  ;;  %v3005_v60 = vor.u32 8388608, %v3004_v46  ;;  %v3104_v61 = vand.u32 2139095040, %v10833_v1 }
 0x1c5   : > { %v2932_v38 = vsel %vm2926_vm9, %v2929_v32, %v2931_v55  ;;  %v3025_v28 = vor.u32 %v3024_v17, %v3023_v34  ;;  %v3028_v37 = vor.u32 %v3027_v51, %v3026_v9  ;;  %vm3029_vm1 = vcmp.lt.s32.totalorder %v10921_v26, 1 }
 0x1c6   : > { %vm2950_vm11 = vc.u32 %v10900_v35, %v10903_v21  ;;  %v2951_v29 = vadd.s32 1, %v10904_v6  ;;  %vm3032_vm0 = vcmp.lt.s32.totalorder %v10921_v26, 4  ;;  %v3037_v36 = vsel %vm3029_vm1, %v3016_v44, %v3019_v56 }
 0x1c7   : > { %vm3031_vm3 = vcmp.lt.s32.totalorder %v10921_v26, 3  ;;  %v3038_v24 = vsel %vm3032_vm0, %v3025_v28, 920167782  ;;  %v3041_v17 = vsel %vm3029_vm1, %v3019_v56, %v3022_v27  ;;  %v3042_v9 = vsel %vm3032_vm0, %v3028_v37, 1326507024 }
 0x1c8   : > { %v10950_v34 = vsel %vm8217_vm10, 0, %v8216_v4  ;;  %vm3030_vm9 = vcmp.lt.s32.totalorder %v10921_v26, 2  ;;  %v3039_v59 = vsel %vm3031_vm3, %v3022_v27, %v3038_v24  ;;  %v10955_v46 = vshll.u32 %v3005_v60, 8 }
 0x1c9   : > { %v8219_v42 = vmin.u32 %v2439_v15, %v10913_v48  ;;  %v3040_v52 = vsel %vm3030_vm9, %v3037_v36, %v3039_v59  ;;  %v3043_v32 = vsel %vm3031_vm3, %v3025_v28, %v3042_v9  ;;  %v3105_v2 = vshrl.u32 %v3104_v61, 23 }
 0x1ca   : > { %v2239_v55 = vshrl.u32 %v10830_v40, %v2237_v63  ;;  %v2948_v4 = vmul.u32 %v10891_v7, %v2932_v38  ;;  %v2952_v51 = vsel %vm2950_vm11, %v2951_v29, %v10904_v6  ;;  %v3044_v60 = vsel %vm3030_vm9, %v3041_v17, %v3043_v32 }
 0x1cb   : > { %v10971_v15 = vmul.u32.u64.low %v10955_v46, %v3044_v60  ;;  %v10972_v37 = vmul.u32.u64.high %v10955_v46, %v3044_v60, %v10971_v15  ;;  %v10975_v36 = vmul.u32.u64.low %v10955_v46, %v3040_v52  ;;  %v10976_v28 = vmul.u32.u64.high %v10955_v46, %v3040_v52, %v10975_v36 }
 0x1cc   : > { %v2243_v61 = vshll.u32 %v10896_v49, 23  ;;  %v2345_v40 = vsub.s32 4294967266, %v10950_v34  ;;  %v3034_v63 = vsel %vm3032_vm0, %v3022_v27, 2102212464  ;;  %v8246_v7 = vadd.s32 4294967169, %v3105_v2 }
 0x1cd   : > { %v2441_v6 = vclz %v8219_v42  ;;  %v10983_v38 = vadd.s32 %v2952_v51, %v2948_v4  ;;  %v3013_v29 = vshrl.u32 %v15818_v10, %v3012_v57  ;;  %v15496_v24 = vand.u32 2147483647, %v10833_v1 }
 0x1ce   : > { %v15904_v17 = vshll.u32 %v10641_v43, %v10805_v8  ;;  %v2325_v49 = vadd.s32 %v10627_v23, %v10638_v30  ;;  %v3111_v59 = vadd.s32 1, %v8246_v7  ;;  %v3208_v52 = vand.u32 2139095040, %v10879_v50 }
 0x1cf   : > { %v15905_v27 = vshll.u32 %v10853_v0, 23  ;;  %v15906_v32 = vshll.u32 %v10733_v58, %v10856_v53  ;;  %v3033_v2 = vsel %vm3029_vm1, %v3013_v29, %v3016_v44  ;;  %v3035_v43 = vsel %vm3031_vm3, %v3019_v56, %v3034_v63 }
 0x1d0   : > { %v2136_v9 = vor.u32 %v10876_v39, %v15904_v17  ;;  %v2244_v8 = vor.u32 4788187, %v2243_v61  ;;  %v2341_v39 = vsub.s32 32, %v10950_v34  ;;  %v2346_v23 = vadd.s32 127, %v2345_v40 }
 0x1d1   : > { %v2140_v42 = vor.u32 4788187, %v15905_v27  ;;  %v2240_v57 = vor.u32 %v2239_v55, %v15906_v32  ;;  %vm3112_vm10 = vcmp.gt.s32.totalorder %v3111_v59, 0  ;;  %v8220_v30 = vadd.s32 4294967294, %v2441_v6 }
 0x1d2   : > { %v2954_v4 = vadd.s32 536870912, %v10983_v38  ;;  %v3108_v0 = vand.u32 8388607, %v15496_v24  ;;  %v3113_v51 = vsel %vm3112_vm10, %v3111_v59, 0  ;;  %v3036_v53 = vsel %vm3030_vm9, %v3033_v2, %v3035_v43 }
 0x1d3   : > { %v3055_v58 = vadd.s32 1, %v10976_v28  ;;  %v3115_v44 = vand.u32 31, %v3113_v51  ;;  %v3209_v55 = vshrl.u32 %v3208_v52, 23  ;;  %v2141_v56 = vand.u32 2147483647, %v2140_v42 }
 0x1d4   : > { %v2143_v60 = vcvt.s32.f32 %v2136_v9  ;;  %v2247_v15 = vcvt.s32.f32 %v2240_v57  ;;  %vm3054_vm3 = vc.u32 %v10972_v37, %v10975_v36  ;;  %v2245_v61 = vand.u32 2147483647, %v2244_v8 }
 0x1d5   : > { %v2342_v40 = vshll.u32 %v10807_v12, %v10950_v34  ;;  %v2343_v63 = vshrl.u32 %v2325_v49, %v2341_v39  ;;  %v3116_v7 = vsub.s32 32, %v3115_v44  ;;  %v2347_v6 = vshll.u32 %v2346_v23, 23 }
 0x1d6   : > { %vm8221_vm1 = vcmp.lt.s32.totalorder %v8220_v30, 0  ;;  %v11014_v26 = vshrl.u32 %v2954_v4, 30  ;;  %v3052_v29 = vmul.u32 %v10955_v46, %v3036_v53  ;;  %v3056_v17 = vsel %vm3054_vm3, %v3055_v58, %v10976_v28 }
 0x1d7   : > { %v3109_v59 = vor.u32 8388608, %v3108_v0  ;;  %v3118_v9 = vshll.u32 %v15818_v10, %v3115_v44  ;;  %v8250_v52 = vadd.s32 4294967169, %v3209_v55  ;;  %v3119_v27 = vshrl.u32 %v15819_v5, %v3116_v7 }
 0x1d8   : > { %15907 = vst [vmem:[#allocation120_spill] sm:$0xff] %v11014_v26  ;;  %v3121_v42 = vshll.u32 %v15819_v5, %v3115_v44  ;;  %v3122_v12 = vshrl.u32 %v15820_v33, %v3116_v7  ;;  %v3125_v34 = vshrl.u32 %v15815_v45, %v3116_v7  ;;  %v3114_v49 = vshrl.u32 %v3113_v51, 5 }
 0x1d9   : > { %v3124_v32 = vshll.u32 %v15820_v33, %v3115_v44  ;;  %v3127_v57 = vshll.u32 %v15815_v45, %v3115_v44  ;;  %v3128_v46 = vshrl.u32 %v15816_v22, %v3116_v7  ;;  %v11026_v28 = vmul.f32 %v2143_v60, %v2141_v56 }
 0x1da   : > { %v11028_v2 = vadd.s32 %v3056_v17, %v3052_v29  ;;  %v3120_v43 = vor.u32 %v3119_v27, %v3118_v9  ;;  %v3123_v8 = vor.u32 %v3122_v12, %v3121_v42  ;;  %v11030_v39 = vmul.f32 %v2247_v15, %v2245_v61 }
 0x1db   : > { %v2344_v23 = vor.u32 %v2343_v63, %v2342_v40  ;;  %v3126_v4 = vor.u32 %v3125_v34, %v3124_v32  ;;  %v3129_v0 = vor.u32 %v3128_v46, %v3127_v57  ;;  %v2348_v53 = vor.u32 4788187, %v2347_v6 }
 0x1dc   : > { %v11033_v51 = vsel %vm8221_vm1, 0, %v8220_v30  ;;  %v3130_v58 = vshll.u32 %v15816_v22, %v3115_v44  ;;  %v3131_v55 = vshrl.u32 %v15817_v20, %v3116_v7  ;;  %v2956_v56 = vshll.u32 %v11014_v26, 30 }
 0x1dd   : > { %vm3133_vm11 = vcmp.lt.s32.totalorder %v3114_v49, 1  ;;  %v3149_v60 = vshll.u32 %v3109_v59, 8  ;;  %v3215_v29 = vadd.s32 1, %v8250_v52  ;;  %v3058_v17 = vadd.s32 536870912, %v11028_v2 }
 0x1de   : > { %v3132_v15 = vor.u32 %v3131_v55, %v3130_v58  ;;  %vm3136_vm0 = vcmp.lt.s32.totalorder %v3114_v49, 4  ;;  %v3141_v61 = vsel %vm3133_vm11, %v3120_v43, %v3123_v8  ;;  %v3117_v40 = vshrl.u32 %v15818_v10, %v3116_v7 }
 0x1df   : > { %vm3135_vm9 = vcmp.lt.s32.totalorder %v3114_v49, 3  ;;  %v3138_v30 = vsel %vm3136_vm0, %v3126_v4, 2102212464  ;;  %v3142_v63 = vsel %vm3136_vm0, %v3129_v0, 920167782  ;;  %vm3134_vm10 = vcmp.lt.s32.totalorder %v3114_v49, 2 }
 0x1e0   : > { %v3143_v44 = vsel %vm3135_vm9, %v3126_v4, %v3142_v63  ;;  %v3145_v6 = vsel %vm3133_vm11, %v3123_v8, %v3126_v4  ;;  %v3146_v9 = vsel %vm3136_vm0, %v3132_v15, 1326507024  ;;  %v11043_v27 = vsub.s32 %v10983_v38, %v2956_v56  ;;  %v15909_v38 = vld [vmem:[#allocation47_spill] sm:$0xff] }
 0x1e1   : > { %v3137_v59 = vsel %vm3133_vm11, %v3117_v40, %v3120_v43  ;;  %v3144_v52 = vsel %vm3134_vm10, %v3141_v61, %v3143_v44  ;;  %v3147_v42 = vsel %vm3135_vm9, %v3129_v0, %v3146_v9  ;;  %v3139_v12 = vsel %vm3135_vm9, %v3123_v8, %v3138_v30  ;;  %v11065_v30 = vpop.permute.xlu1 %354 }
 0x1e2   : > { %v3148_v34 = vsel %vm3134_vm10, %v3145_v6, %v3147_v42  ;;  %v11048_v7 = vmul.u32.u64.low %v3149_v60, %v3144_v52  ;;  %v11049_v32 = vmul.u32.u64.high %v3149_v60, %v3144_v52, %v11048_v7  ;;  %v2349_v57 = vand.u32 2147483647, %v2348_v53 }
 0x1e3   : > { %v11052_v46 = vshrl.u32 %v3058_v17, 30  ;;  %v11054_v4 = vmul.u32.u64.low %v3149_v60, %v3148_v34  ;;  %v11055_v58 = vmul.u32.u64.high %v3149_v60, %v3148_v34, %v11054_v4  ;;  %v2351_v55 = vcvt.s32.f32 %v2344_v23 }
 0x1e4   : > { %vm3216_vm3 = vcmp.gt.s32.totalorder %v3215_v29, 0  ;;  %v2449_v8 = vsub.s32 4294967266, %v11033_v51  ;;  %v2959_v0 = vsub.s32 0, %v11043_v27  ;;  %v3140_v56 = vsel %vm3134_vm10, %v3137_v59, %v3139_v12 }
 0x1e5   : > { %15908 = vst [vmem:[#allocation121_spill] sm:$0xff] %v11052_v46  ;;  %v3217_v15 = vsel %vm3216_vm3, %v3215_v29, 0  ;;  %v3159_v17 = vadd.s32 1, %v11049_v32  ;;  %v15497_v61 = vand.u32 2147483647, %v10879_v50  ;;  %v11067_v63 = vmul.f32 %v2351_v55, %v2349_v57 }
 0x1e6   : > { %v3219_v40 = vand.u32 31, %v3217_v15  ;;  %v2429_v23 = vadd.s32 %v10767_v14, %v10773_v11  ;;  %v2445_v44 = vsub.s32 32, %v11033_v51  ;;  %v3060_v49 = vshll.u32 %v11052_v46, 30 }
 0x1e7   : > { %v2446_v29 = vshll.u32 %v10913_v48, %v11033_v51  ;;  %v3156_v6 = vmul.u32 %v3149_v60, %v3140_v56  ;;  %vm3158_vm1 = vc.u32 %v11055_v58, %v11048_v7  ;;  %v2450_v59 = vadd.s32 127, %v2449_v8 }
 0x1e8   : > { %v3220_v9 = vsub.s32 32, %v3219_v40  ;;  %v8239_v52 = vmin.u32 %v2959_v0, %v11043_v27  ;;  %v3160_v42 = vsel %vm3158_vm1, %v3159_v17, %v11049_v32  ;;  %v11081_v14 = vadd.f32 %v11065_v30, %v10357_v13 }
 0x1e9   : > { %v11083_v11 = vadd.s32 %v3160_v42, %v3156_v6  ;;  %v3212_v12 = vand.u32 8388607, %v15497_v61  ;;  %v11090_v60 = vsub.s32 %v11028_v2, %v3060_v49  ;;  %v3222_v34 = vshll.u32 %v15818_v10, %v3219_v40 }
 0x1ea   : > { %v3223_v48 = vshrl.u32 %v15819_v5, %v3220_v9  ;;  %v3226_v51 = vshrl.u32 %v15820_v33, %v3220_v9  ;;  %v3225_v32 = vshll.u32 %v15819_v5, %v3219_v40  ;;  %v3229_v57 = vshrl.u32 %v15815_v45, %v3220_v9 }
 0x1eb   : > { %v11095_v13 = vshrl.u32 %v3217_v15, 5  ;;  %v3228_v4 = vshll.u32 %v15820_v33, %v3219_v40  ;;  %v3231_v55 = vshll.u32 %v15815_v45, %v3219_v40  ;;  %v3232_v8 = vshrl.u32 %v15816_v22, %v3220_v9 }
 0x1ec   : > { %v3162_v0 = vadd.s32 536870912, %v11083_v11  ;;  %v3224_v56 = vor.u32 %v3223_v48, %v3222_v34  ;;  %v3227_v17 = vor.u32 %v3226_v51, %v3225_v32  ;;  %v2480_v2 = vand.u32 2139095040, %v11081_v14 }
 0x1ed   : > { %v3230_v49 = vor.u32 %v3229_v57, %v3228_v4  ;;  %v3233_v6 = vor.u32 %v3232_v8, %v3231_v55  ;;  %v3234_v42 = vshll.u32 %v15816_v22, %v3219_v40  ;;  %v3235_v24 = vshrl.u32 %v15817_v20, %v3220_v9 }
 0x1ee   : > { %v2447_v15 = vshrl.u32 %v2429_v23, %v2445_v44  ;;  %v2451_v61 = vshll.u32 %v2450_v59, 23  ;;  %v2961_v53 = vclz %v8239_v52  ;;  %v3213_v43 = vor.u32 8388608, %v3212_v12 }
 0x1ef   : > { %vm1959_vm11 = vcmp.lt.s32.totalorder %v15909_v38, 0  ;;  %vm15518_vm0 = vcmp.lt.s32.totalorder %v10388_v41, 0  ;;  %v3063_v26 = vsub.s32 0, %v11090_v60  ;;  %v3236_v48 = vor.u32 %v3235_v24, %v3234_v42 }
 0x1f0   : > { %vm3237_vm9 = vcmp.lt.s32.totalorder %v11095_v13, 1  ;;  %vm3240_vm10 = vcmp.lt.s32.totalorder %v11095_v13, 4  ;;  %vm3239_vm3 = vcmp.lt.s32.totalorder %v11095_v13, 3  ;;  %v2481_v44 = vshrl.u32 %v2480_v2, 23 }
 0x1f1   : > { %v3245_v40 = vsel %vm3237_vm9, %v3224_v56, %v3227_v17  ;;  %v3246_v23 = vsel %vm3240_vm10, %v3233_v6, 920167782  ;;  %vm15519_vm1 = vcmp.lt.s32.totalorder %v10390_v25, 0  ;;  %v11115_v59 = vshrl.u32 %v3162_v0, 30 }
 0x1f2   : > { %vm3238_vm12 = vcmp.lt.s32.totalorder %v11095_v13, 2  ;;  %v3247_v24 = vsel %vm3239_vm3, %v3230_v49, %v3246_v23  ;;  %v3249_v52 = vsel %vm3237_vm9, %v3227_v17, %v3230_v49  ;;  %v2448_v12 = vor.u32 %v2447_v15, %v2446_v29 }
 0x1f3   : > { %15910 = vst [vmem:[#allocation122_spill] sm:$0xff] %v11115_v59  ;;  %v8240_v51 = vadd.s32 4294967294, %v2961_v53  ;;  %v3248_v34 = vsel %vm3238_vm12, %v3245_v40, %v3247_v24  ;;  %v3250_v32 = vsel %vm3240_vm10, %v3236_v48, 1326507024  ;;  %v2452_v57 = vor.u32 4788187, %v2451_v61 }
 0x1f4   : > { %v3251_v4 = vsel %vm3239_vm3, %v3233_v6, %v3250_v32  ;;  %v11128_v55 = vshll.u32 %v3213_v43, 8  ;;  %v15502_v8 = vand.u32 2147483647, %v11081_v14  ;;  %v8243_v0 = vmin.u32 %v3063_v26, %v11090_v60 }
 0x1f5   : > { %v3242_v29 = vsel %vm3240_vm10, %v3230_v49, 2102212464  ;;  %v3252_v53 = vsel %vm3238_vm12, %v3249_v52, %v3251_v4  ;;  %v8222_v2 = vadd.s32 4294967169, %v2481_v44  ;;  %v3164_v42 = vshll.u32 %v11115_v59, 30 }
 0x1f6   : > { %v3221_v61 = vshrl.u32 %v15818_v10, %v3220_v9  ;;  %v11139_v15 = vmul.u32.u64.low %v11128_v55, %v3248_v34  ;;  %v11140_v6 = vmul.u32.u64.high %v11128_v55, %v3248_v34, %v11139_v15  ;;  %vm8241_vm15 = vcmp.lt.s32.totalorder %v8240_v51, 0 }
 0x1f7   : > { %v11144_v43 = vmul.u32.u64.low %v11128_v55, %v3252_v53  ;;  %v11145_v26 = vmul.u32.u64.high %v11128_v55, %v3252_v53, %v11144_v43  ;;  %v2487_v48 = vadd.s32 1, %v8222_v2  ;;  %v2453_v49 = vand.u32 2147483647, %v2452_v57 }
 0x1f8   : > { %v3241_v40 = vsel %vm3237_vm9, %v3221_v61, %v3224_v56  ;;  %v3243_v23 = vsel %vm3239_vm3, %v3227_v17, %v3242_v29  ;;  %v11153_v9 = vadd.f32 %v11065_v30, %v10365_v3  ;;  %v15911_v44 = vxor.u32 2147483648, %v10819_v47 }
 0x1f9   : > { %v15913_v52 = vxor.u32 2147483648, %v11026_v28  ;;  %v2455_v34 = vcvt.s32.f32 %v2448_v12  ;;  %vm2488_vm9 = vcmp.gt.s32.totalorder %v2487_v48, 0  ;;  %v11169_v17 = vsel %vm8241_vm15, 0, %v8240_v51 }
 0x1fa   : > { %v11160_v24 = vsel %vm1959_vm11, %v15911_v44, %v10819_v47  ;;  %v3065_v3 = vclz %v8243_v0  ;;  %v11172_v32 = vsub.s32 %v11083_v11, %v3164_v42  ;;  %v2489_v57 = vsel %vm2488_vm9, %v2487_v48, 0 }
 0x1fb   : > { %15912 = vst [vmem:[#allocation123_spill] sm:$0xff] %v11160_v24  ;;  %v11167_v56 = vsel %vm15518_vm0, %v15913_v52, %v11026_v28  ;;  %v15915_v47 = vxor.u32 2147483648, %v11030_v39  ;;  %v3244_v28 = vsel %vm3238_vm12, %v3241_v40, %v3243_v23  ;;  %v2484_v12 = vand.u32 8388607, %v15502_v8 }
 0x1fc   : > { %15914 = vst [vmem:[#allocation124_spill] sm:$0xff] %v11167_v56  ;;  %v2491_v51 = vand.u32 31, %v2489_v57  ;;  %v11186_v29 = vmul.f32 %v2455_v34, %v2453_v49  ;;  %v2949_v11 = vadd.s32 %v10903_v21, %v10900_v35  ;;  %v2584_v53 = vand.u32 2139095040, %v11153_v9 }
 0x1fd   : > { %v11179_v4 = vsel %vm15519_vm1, %v15915_v47, %v11030_v39  ;;  %v2965_v2 = vsub.s32 32, %v11169_v17  ;;  %v2969_v39 = vsub.s32 4294967266, %v11169_v17  ;;  %v11195_v13 = vadd.f32 %v11065_v30, %v10372_v19 }
 0x1fe   : > { %15916 = vst [vmem:[#allocation125_spill] sm:$0xff] %v11179_v4  ;;  %v2492_v42 = vsub.s32 32, %v2491_v51  ;;  %v8244_v61 = vadd.s32 4294967294, %v3065_v3  ;;  %v3167_v43 = vsub.s32 0, %v11172_v32  ;;  %v3260_v48 = vmul.u32 %v11128_v55, %v3244_v28 }
 0x1ff   : > { %v3263_v49 = vadd.s32 1, %v11140_v6  ;;  %vm3262_vm12 = vc.u32 %v11145_v26, %v11139_v15  ;;  %v2485_v35 = vor.u32 8388608, %v2484_v12  ;;  %v2494_v23 = vshll.u32 %v15818_v10, %v2491_v51 }
 0x200   : > { %v2495_v21 = vshrl.u32 %v15819_v5, %v2492_v42  ;;  %v2498_v40 = vshrl.u32 %v15820_v33, %v2492_v42  ;;  %v2497_v19 = vshll.u32 %v15819_v5, %v2491_v51  ;;  %v2501_v44 = vshrl.u32 %v15815_v45, %v2492_v42 }
 0x201   : > { %v2585_v52 = vshrl.u32 %v2584_v53, 23  ;;  %v2490_v34 = vshrl.u32 %v2489_v57, 5  ;;  %v2500_v55 = vshll.u32 %v15820_v33, %v2491_v51  ;;  %v2503_v3 = vshll.u32 %v15815_v45, %v2491_v51 }
 0x202   : > { %v2504_v47 = vshrl.u32 %v15816_v22, %v2492_v42  ;;  %v8247_v28 = vmin.u32 %v3167_v43, %v11172_v32  ;;  %v3264_v12 = vsel %vm3262_vm12, %v3263_v49, %v11140_v6  ;;  %v2496_v8 = vor.u32 %v2495_v21, %v2494_v23 }
 0x203   : > { %v2499_v0 = vor.u32 %v2498_v40, %v2497_v19  ;;  %v2502_v59 = vor.u32 %v2501_v44, %v2500_v55  ;;  %v2506_v56 = vshll.u32 %v15816_v22, %v2491_v51  ;;  %v2507_v41 = vshrl.u32 %v15817_v20, %v2492_v42 }
 0x204   : > { %v2505_v46 = vor.u32 %v2504_v47, %v2503_v3  ;;  %v2967_v53 = vshrl.u32 %v2949_v11, %v2965_v2  ;;  %v2970_v57 = vadd.s32 127, %v2969_v39  ;;  %vm8245_vm15 = vcmp.lt.s32.totalorder %v8244_v61, 0 }
 0x205   : > { %v2525_v4 = vshll.u32 %v2485_v35, 8  ;;  %v11214_v25 = vadd.s32 %v3264_v12, %v3260_v48  ;;  %v2508_v24 = vor.u32 %v2507_v41, %v2506_v56  ;;  %vm2509_vm10 = vcmp.lt.s32.totalorder %v2490_v34, 1 }
 0x206   : > { %v8226_v38 = vadd.s32 4294967169, %v2585_v52  ;;  %v3169_v43 = vclz %v8247_v28  ;;  %vm2511_vm3 = vcmp.lt.s32.totalorder %v2490_v34, 3  ;;  %vm2512_vm9 = vcmp.lt.s32.totalorder %v2490_v34, 4 }
 0x207   : > { %v2517_v6 = vsel %vm2509_vm10, %v2496_v8, %v2499_v0  ;;  %v2514_v49 = vsel %vm2512_vm9, %v2502_v59, 2102212464  ;;  %v2518_v21 = vsel %vm2512_vm9, %v2505_v46, 920167782  ;;  %v2521_v51 = vsel %vm2509_vm10, %v2499_v0, %v2502_v59 }
 0x208   : > { %v2522_v40 = vsel %vm2512_vm9, %v2508_v24, 1326507024  ;;  %v2493_v11 = vshrl.u32 %v15818_v10, %v2492_v42  ;;  %vm2510_vm12 = vcmp.lt.s32.totalorder %v2490_v34, 2  ;;  %v2519_v2 = vsel %vm2511_vm3, %v2502_v59, %v2518_v21 }
 0x209   : > { %v2688_v39 = vand.u32 2139095040, %v11195_v13  ;;  %v3266_v41 = vadd.s32 536870912, %v11214_v25  ;;  %v2520_v56 = vsel %vm2510_vm12, %v2517_v6, %v2519_v2  ;;  %v2523_v48 = vsel %vm2511_vm3, %v2505_v46, %v2522_v40 }
 0x20a   : > { %v2591_v35 = vadd.s32 1, %v8226_v38  ;;  %v8248_v23 = vadd.s32 4294967294, %v3169_v43  ;;  %v2513_v19 = vsel %vm2509_vm10, %v2493_v11, %v2496_v8  ;;  %v2515_v44 = vsel %vm2511_vm3, %v2499_v0, %v2514_v49 }
 0x20b   : > { %v2524_v24 = vsel %vm2510_vm12, %v2521_v51, %v2523_v48  ;;  %v11230_v59 = vmul.u32.u64.low %v2525_v4, %v2520_v56  ;;  %v11231_v55 = vmul.u32.u64.high %v2525_v4, %v2520_v56, %v11230_v59  ;;  %v2966_v3 = vshll.u32 %v11043_v27, %v11169_v17 }
 0x20c   : > { %v11227_v42 = vmul.u32.u64.low %v2525_v4, %v2524_v24  ;;  %v11228_v52 = vmul.u32.u64.high %v2525_v4, %v2524_v24, %v11227_v42  ;;  %v2971_v47 = vshll.u32 %v2970_v57, 23  ;;  %v15513_v46 = vand.u32 2147483647, %v11153_v9 }
 0x20d   : > { %vm2592_vm9 = vcmp.gt.s32.totalorder %v2591_v35, 0  ;;  %v11238_v38 = vsel %vm8245_vm15, 0, %v8244_v61  ;;  %v11240_v8 = vshrl.u32 %v3266_v41, 30  ;;  %v2516_v0 = vsel %vm2510_vm12, %v2513_v19, %v2515_v44 }
 0x20e   : > { %v2593_v28 = vsel %vm2592_vm9, %v2591_v35, 0  ;;  %v3053_v12 = vadd.s32 %v10975_v36, %v10972_v37  ;;  %vm8249_vm10 = vcmp.lt.s32.totalorder %v8248_v23, 0  ;;  %v2689_v6 = vshrl.u32 %v2688_v39, 23 }
 0x20f   : > { %15917 = vst [vmem:[#allocation126_spill] sm:$0xff] %v11240_v8  ;;  %v2595_v43 = vand.u32 31, %v2593_v28  ;;  %v11245_v49 = vor.u32 %v2967_v53, %v2966_v3  ;;  %v11249_v27 = vadd.f32 %v11065_v30, %v10375_v31  ;;  %vm2534_vm15 = vc.u32 %v11228_v52, %v11230_v59 }
 0x210   : > { %v2535_v17 = vadd.s32 1, %v11231_v55  ;;  %v11254_v61 = vor.u32 4788187, %v2971_v47  ;;  %v3073_v34 = vsub.s32 4294967266, %v11238_v38  ;;  %v2532_v57 = vmul.u32 %v2525_v4, %v2516_v0 }
 0x211   : > { %v2596_v37 = vsub.s32 32, %v2595_v43  ;;  %v11257_v36 = vsel %vm8249_vm10, 0, %v8248_v23  ;;  %v3268_v53 = vshll.u32 %v11240_v8, 30  ;;  %v2588_v31 = vand.u32 8388607, %v15513_v46 }
 0x212   : > { %v2536_v21 = vsel %vm2534_vm15, %v2535_v17, %v11231_v55  ;;  %v11265_v51 = vshrl.u32 %v2593_v28, 5  ;;  %v2598_v40 = vshll.u32 %v15818_v10, %v2595_v43  ;;  %v8230_v11 = vadd.s32 4294967169, %v2689_v6 }
 0x213   : > { %v11263_v30 = vadd.s32 %v2536_v21, %v2532_v57  ;;  %v2599_v2 = vshrl.u32 %v15819_v5, %v2596_v37  ;;  %v2601_v4 = vshll.u32 %v15819_v5, %v2595_v43  ;;  %v2602_v39 = vshrl.u32 %v15820_v33, %v2596_v37 }
 0x214   : > { %v2605_v41 = vshrl.u32 %v15815_v45, %v2596_v37  ;;  %v2604_v48 = vshll.u32 %v15820_v33, %v2595_v43  ;;  %v2607_v35 = vshll.u32 %v15815_v45, %v2595_v43  ;;  %v2608_v23 = vshrl.u32 %v15816_v22, %v2596_v37 }
 0x215   : > { %v2538_v56 = vadd.s32 536870912, %v11263_v30  ;;  %v3069_v19 = vsub.s32 32, %v11238_v38  ;;  %v3070_v44 = vshll.u32 %v11090_v60, %v11238_v38  ;;  %v2600_v24 = vor.u32 %v2599_v2, %v2598_v40 }
 0x216   : > { %v2603_v42 = vor.u32 %v2602_v39, %v2601_v4  ;;  %v3074_v55 = vadd.s32 127, %v3073_v34  ;;  %v2589_v3 = vor.u32 8388608, %v2588_v31  ;;  %v2606_v47 = vor.u32 %v2605_v41, %v2604_v48 }
 0x217   : > { %v2609_v0 = vor.u32 %v2608_v23, %v2607_v35  ;;  %v3177_v28 = vsub.s32 4294967266, %v11257_v36  ;;  %v11281_v6 = vsub.s32 %v11214_v25, %v3268_v53  ;;  %v2610_v17 = vshll.u32 %v15816_v22, %v2595_v43 }
 0x218   : > { %v2611_v57 = vshrl.u32 %v15817_v20, %v2596_v37  ;;  %v11285_v21 = vshrl.u32 %v2538_v56, 30  ;;  %vm2613_vm3 = vcmp.lt.s32.totalorder %v11265_v51, 1  ;;  %vm2616_vm12 = vcmp.lt.s32.totalorder %v11265_v51, 4 }
 0x219   : > { %v2695_v60 = vadd.s32 1, %v8230_v11  ;;  %vm2615_vm9 = vcmp.lt.s32.totalorder %v11265_v51, 3  ;;  %v2621_v34 = vsel %vm2613_vm3, %v2600_v24, %v2603_v42  ;;  %v2622_v25 = vsel %vm2616_vm12, %v2609_v0, 920167782 }
 0x21a   : > { %15918 = vst [vmem:[#allocation127_spill] sm:$0xff] %v11285_v21  ;;  %v2612_v38 = vor.u32 %v2611_v57, %v2610_v17  ;;  %v3071_v53 = vshrl.u32 %v3053_v12, %v3069_v19  ;;  %vm2614_vm10 = vcmp.lt.s32.totalorder %v11265_v51, 2  ;;  %v2623_v43 = vsel %vm2615_vm9, %v2606_v47, %v2622_v25 }
 0x21b   : > { %v11297_v31 = vshll.u32 %v2589_v3, 8  ;;  %v3178_v40 = vadd.s32 127, %v3177_v28  ;;  %v2624_v11 = vsel %vm2614_vm10, %v2621_v34, %v2623_v43  ;;  %v2625_v2 = vsel %vm2613_vm3, %v2603_v42, %v2606_v47 }
 0x21c   : > { %v2626_v4 = vsel %vm2616_vm12, %v2612_v38, 1326507024  ;;  %v3075_v39 = vshll.u32 %v3074_v55, 23  ;;  %v3271_v12 = vsub.s32 0, %v11281_v6  ;;  %v2540_v41 = vshll.u32 %v11285_v21, 30 }
 0x21d   : > { %v2627_v56 = vsel %vm2615_vm9, %v2609_v0, %v2626_v4  ;;  %v11312_v35 = vmul.u32.u64.low %v11297_v31, %v2624_v11  ;;  %v11313_v23 = vmul.u32.u64.high %v11297_v31, %v2624_v11, %v11312_v35  ;;  %vm2696_vm15 = vcmp.gt.s32.totalorder %v2695_v60, 0 }
 0x21e   : > { %v2628_v48 = vsel %vm2614_vm10, %v2625_v2, %v2627_v56  ;;  %v11317_v3 = vor.u32 %v3071_v53, %v3070_v44  ;;  %v3173_v17 = vsub.s32 32, %v11257_v36  ;;  %v3179_v0 = vshll.u32 %v3178_v40, 23 }
 0x21f   : > { %v11320_v55 = vmul.u32.u64.low %v11297_v31, %v2628_v48  ;;  %v11321_v28 = vmul.u32.u64.high %v11297_v31, %v2628_v48, %v11320_v55  ;;  %v2618_v57 = vsel %vm2616_vm12, %v2606_v47, 2102212464  ;;  %v2697_v38 = vsel %vm2696_vm15, %v2695_v60, 0 }
 0x220   : > { %v8251_v34 = vmin.u32 %v3271_v12, %v11281_v6  ;;  %v2597_v25 = vshrl.u32 %v15818_v10, %v2596_v37  ;;  %v15512_v43 = vand.u32 2147483647, %v11195_v13  ;;  %v2699_v11 = vand.u32 31, %v2697_v38 }
 0x221   : > { %v11330_v53 = vor.u32 4788187, %v3075_v39  ;;  %v3157_v2 = vadd.s32 %v11048_v7, %v11055_v58  ;;  %v11335_v40 = vsub.s32 %v11263_v30, %v2540_v41  ;;  %v2619_v37 = vsel %vm2615_vm9, %v2603_v42, %v2618_v57 }
 0x222   : > { %v2617_v60 = vsel %vm2613_vm3, %v2597_v25, %v2600_v24  ;;  %v11342_v4 = vsub.s32 32, %v2699_v11  ;;  %v3174_v39 = vshll.u32 %v11172_v32, %v11257_v36  ;;  %v11346_v56 = vor.u32 4788187, %v3179_v0 }
 0x223   : > { %v3175_v12 = vshrl.u32 %v3157_v2, %v3173_v17  ;;  %v2639_v7 = vadd.s32 1, %v11313_v23  ;;  %v3273_v58 = vclz %v8251_v34  ;;  %vm2638_vm12 = vc.u32 %v11321_v28, %v11312_v35 }
 0x224   : > { %v2692_v30 = vand.u32 8388607, %v15512_v43  ;;  %v2703_v24 = vshrl.u32 %v15819_v5, %v11342_v4  ;;  %v2543_v42 = vsub.s32 0, %v11335_v40  ;;  %v2620_v32 = vsel %vm2614_vm10, %v2617_v60, %v2619_v37 }
 0x225   : > { %v2706_v36 = vshrl.u32 %v15820_v33, %v11342_v4  ;;  %v2709_v41 = vshrl.u32 %v15815_v45, %v11342_v4  ;;  %v11362_v48 = vshrl.u32 %v2697_v38, 5  ;;  %v2702_v55 = vshll.u32 %v15818_v10, %v2699_v11 }
 0x226   : > { %v2705_v17 = vshll.u32 %v15819_v5, %v2699_v11  ;;  %v2792_v0 = vand.u32 2139095040, %v11249_v27  ;;  %v2640_v57 = vsel %vm2638_vm12, %v2639_v7, %v11313_v23  ;;  %v2708_v34 = vshll.u32 %v15820_v33, %v2699_v11 }
 0x227   : > { %v2711_v51 = vshll.u32 %v15815_v45, %v2699_v11  ;;  %v2712_v25 = vshrl.u32 %v15816_v22, %v11342_v4  ;;  %v8252_v2 = vadd.s32 4294967294, %v3273_v58  ;;  %v2636_v60 = vmul.u32 %v11297_v31, %v2620_v32 }
 0x228   : > { %v2704_v38 = vor.u32 %v2703_v24, %v2702_v55  ;;  %v2707_v37 = vor.u32 %v2706_v36, %v2705_v17  ;;  %v2710_v43 = vor.u32 %v2709_v41, %v2708_v34  ;;  %v2714_v47 = vshll.u32 %v15816_v22, %v2699_v11 }
 0x229   : > { %v2713_v46 = vor.u32 %v2712_v25, %v2711_v51  ;;  %v2715_v19 = vshrl.u32 %v15817_v20, %v11342_v4  ;;  %v3077_v23 = vand.u32 2147483647, %v11330_v53  ;;  %v3176_v7 = vor.u32 %v3175_v12, %v3174_v39 }
 0x22a   : > { %v8223_v44 = vmin.u32 %v2543_v42, %v11335_v40  ;;  %v11378_v8 = vadd.s32 %v2640_v57, %v2636_v60  ;;  %v2693_v21 = vor.u32 8388608, %v2692_v30  ;;  %vm2717_vm3 = vcmp.lt.s32.totalorder %v11362_v48, 1 }
 0x22b   : > { %v2716_v58 = vor.u32 %v2715_v19, %v2714_v47  ;;  %v2793_v31 = vshrl.u32 %v2792_v0, 23  ;;  %vm15521_vm9 = vcmp.lt.s32.totalorder %v10396_v62, 0  ;;  %v3181_v24 = vand.u32 2147483647, %v11346_v56 }
 0x22c   : > { %vm8253_vm10 = vcmp.lt.s32.totalorder %v8252_v2, 0  ;;  %vm2720_vm15 = vcmp.lt.s32.totalorder %v11362_v48, 4  ;;  %v2725_v11 = vsel %vm2717_vm3, %v2704_v38, %v2707_v37  ;;  %vm2719_vm12 = vcmp.lt.s32.totalorder %v11362_v48, 3 }
 0x22d   : > { %v2726_v53 = vsel %vm2720_vm15, %v2713_v46, 920167782  ;;  %v2729_v19 = vsel %vm2717_vm3, %v2707_v37, %v2710_v43  ;;  %v2730_v47 = vsel %vm2720_vm15, %v2716_v58, 1326507024  ;;  %vm15542_vm0 = vcmp.lt.s32.totalorder %v10451_v54, 0 }
 0x22e   : > { %v2545_v39 = vclz %v8223_v44  ;;  %v2642_v12 = vadd.s32 536870912, %v11378_v8  ;;  %vm2718_vm1 = vcmp.lt.s32.totalorder %v11362_v48, 2  ;;  %v2727_v56 = vsel %vm2719_vm12, %v2710_v43, %v2726_v53 }
 0x22f   : > { %v2728_v30 = vsel %vm2718_vm1, %v2725_v11, %v2727_v56  ;;  %v2731_v42 = vsel %vm2719_vm12, %v2713_v46, %v2730_v47  ;;  %v2733_v32 = vshll.u32 %v2693_v21, 8  ;;  %v8234_v36 = vadd.s32 4294967169, %v2793_v31 }
 0x230   : > { %v3183_v41 = vcvt.s32.f32 %v3176_v7  ;;  %v11403_v55 = vsel %vm8253_vm10, 0, %v8252_v2  ;;  %v2722_v44 = vsel %vm2720_vm15, %v2710_v43, 2102212464  ;;  %v2732_v17 = vsel %vm2718_vm1, %v2729_v19, %v2731_v42 }
 0x231   : > { %v11409_v0 = vmul.u32.u64.low %v2733_v32, %v2732_v17  ;;  %v11410_v57 = vmul.u32.u64.high %v2733_v32, %v2732_v17, %v11409_v0  ;;  %v11412_v34 = vmul.u32.u64.low %v2733_v32, %v2728_v30  ;;  %v11413_v51 = vmul.u32.u64.high %v2733_v32, %v2728_v30, %v11412_v34 }
 0x232   : > { %v8224_v46 = vadd.s32 4294967294, %v2545_v39  ;;  %v11416_v21 = vshrl.u32 %v2642_v12, 30  ;;  %v2701_v25 = vshrl.u32 %v15818_v10, %v11342_v4  ;;  %v2799_v2 = vadd.s32 1, %v8234_v36 }
 0x233   : > { %v2457_v60 = vxor.u32 2147483648, %v11186_v29  ;;  %v15919_v43 = vand.u32 2147483647, %v11254_v61  ;;  %v15920_v7 = vcvt.s32.f32 %v11245_v49  ;;  %v15921_v31 = vcvt.s32.f32 %v11317_v3 }
 0x234   : > { %v11431_v53 = vmul.f32 %v3183_v41, %v3181_v24  ;;  %v3281_v19 = vsub.s32 4294967266, %v11403_v55  ;;  %v2721_v4 = vsel %vm2717_vm3, %v2701_v25, %v2704_v38  ;;  %v2723_v47 = vsel %vm2719_vm12, %v2707_v37, %v2722_v44  ;;  %v11450_v37 = vpop.permute.xlu1 %277 }
 0x235   : > { %v11425_v58 = vmul.f32 %v15920_v7, %v15919_v43  ;;  %v11429_v11 = vmul.f32 %v15921_v31, %v3077_v23  ;;  %vm2800_vm10 = vcmp.gt.s32.totalorder %v2799_v2, 0  ;;  %v15922_v49 = vxor.u32 2147483648, %v11067_v63 }
 0x236   : > { %v2743_v3 = vadd.s32 1, %v11413_v51  ;;  %v15520_v23 = vand.u32 2147483647, %v11249_v27  ;;  %v2801_v24 = vsel %vm2800_vm10, %v2799_v2, 0  ;;  %vm8225_vm15 = vcmp.lt.s32.totalorder %v8224_v46, 0 }
 0x237   : > { %v11443_v61 = vsel %vm15521_vm9, %v15922_v49, %v11067_v63  ;;  %v2644_v39 = vshll.u32 %v11416_v21, 30  ;;  %vm2742_vm3 = vc.u32 %v11410_v57, %v11412_v34  ;;  %v2803_v38 = vand.u32 31, %v2801_v24 }
 0x238   : > { %15923 = vst [vmem:[#allocation128_spill] sm:$0xff] %v11443_v61  ;;  %v11455_v12 = vsel %vm15542_vm0, %v2457_v60, %v11186_v29  ;;  %v2724_v30 = vsel %vm2718_vm1, %v2721_v4, %v2723_v47  ;;  %v3261_v36 = vadd.s32 %v11139_v15, %v11145_v26  ;;  %v3277_v41 = vsub.s32 32, %v11403_v55 }
 0x239   : > { %v11465_v44 = vadd.s32 127, %v3281_v19  ;;  %v11467_v17 = vsel %vm8225_vm15, 0, %v8224_v46  ;;  %v2744_v29 = vsel %vm2742_vm3, %v2743_v3, %v11413_v51  ;;  %v2796_v0 = vand.u32 8388607, %v15520_v23 }
 0x23a   : > { %v2804_v25 = vsub.s32 32, %v2803_v38  ;;  %v11473_v48 = vsub.s32 %v11378_v8, %v2644_v39  ;;  %v2740_v2 = vmul.u32 %v2733_v32, %v2724_v30  ;;  %v2806_v60 = vshll.u32 %v15818_v10, %v2803_v38  ;;  %v11485_v32 = vpop.permute.xlu1 %362 }
 0x23b   : > { %v2809_v15 = vshll.u32 %v15819_v5, %v2803_v38  ;;  %v2812_v46 = vshll.u32 %v15820_v33, %v2803_v38  ;;  %v2802_v31 = vshrl.u32 %v2801_v24, 5  ;;  %v2815_v19 = vshll.u32 %v15815_v45, %v2803_v38 }
 0x23c   : > { %v2807_v26 = vshrl.u32 %v15819_v5, %v2804_v25  ;;  %v2810_v43 = vshrl.u32 %v15820_v33, %v2804_v25  ;;  %v2813_v51 = vshrl.u32 %v15815_v45, %v2804_v25  ;;  %v11481_v7 = vadd.s32 %v2744_v29, %v2740_v2 }
 0x23d   : > { %v2816_v8 = vshrl.u32 %v15816_v22, %v2804_v25  ;;  %v329_v3 = vmul.f32 %v9762_v16, %v11450_v37  ;;  %v2647_v39 = vsub.s32 0, %v11473_v48  ;;  %v2797_v30 = vor.u32 8388608, %v2796_v0 }
 0x23e   : > { %v2808_v4 = vor.u32 %v2807_v26, %v2806_v60  ;;  %v2811_v47 = vor.u32 %v2810_v43, %v2809_v15  ;;  %v2814_v49 = vor.u32 %v2813_v51, %v2812_v46  ;;  %v330_v29 = vmul.f32 %v9766_v18, %v11450_v37  ;;  %v15925_v51 = vld [vmem:[#allocation111_spill] sm:$0xff] }
 0x23f   : > { %v2817_v23 = vor.u32 %v2816_v8, %v2815_v19  ;;  %v2553_v24 = vsub.s32 4294967266, %v11467_v17  ;;  %v2818_v2 = vshll.u32 %v15816_v22, %v2803_v38  ;;  %v2819_v42 = vshrl.u32 %v15817_v20, %v2804_v25 }
 0x240   : > { %v11496_v60 = vadd.f32 %v11485_v32, %v329_v3  ;;  %v2746_v15 = vadd.s32 536870912, %v11481_v7  ;;  %vm2821_vm1 = vcmp.lt.s32.totalorder %v2802_v31, 1  ;;  %vm2823_vm12 = vcmp.lt.s32.totalorder %v2802_v31, 3 }
 0x241   : > { %vm2824_vm10 = vcmp.lt.s32.totalorder %v2802_v31, 4  ;;  %v2820_v16 = vor.u32 %v2819_v42, %v2818_v2  ;;  %v2829_v26 = vsel %vm2821_vm1, %v2808_v4, %v2811_v47  ;;  %v8227_v18 = vmin.u32 %v2647_v39, %v11473_v48  ;;  %v15926_v42 = vld [vmem:[#allocation112_spill] sm:$0xff] }
 0x242   : > { %15924 = vst [vmem:[#allocation129_spill] sm:$0xff] %v11496_v60  ;;  %v2826_v0 = vsel %vm2824_vm10, %v2814_v49, 2102212464  ;;  %v2830_v43 = vsel %vm2824_vm10, %v2817_v23, 920167782  ;;  %v2805_v46 = vshrl.u32 %v15818_v10, %v2804_v25  ;;  %vm2822_vm15 = vcmp.lt.s32.totalorder %v2802_v31, 2 }
 0x243   : > { %v2831_v38 = vsel %vm2823_vm12, %v2814_v49, %v2830_v43  ;;  %vm15529_vm3 = vcmp.lt.s32.totalorder %v15925_v51, 0  ;;  %v2833_v8 = vsel %vm2821_vm1, %v2811_v47, %v2814_v49  ;;  %v2834_v3 = vsel %vm2824_vm10, %v2820_v16, 1326507024 }
 0x244   : > { %v2832_v19 = vsel %vm2822_vm15, %v2829_v26, %v2831_v38  ;;  %v2837_v56 = vshll.u32 %v2797_v30, 8  ;;  %vm15533_vm9 = vcmp.lt.s32.totalorder %v15926_v42, 0  ;;  %v11507_v2 = vshrl.u32 %v2746_v15, 30 }
 0x245   : > { %v2825_v63 = vsel %vm2821_vm1, %v2805_v46, %v2808_v4  ;;  %v2827_v39 = vsel %vm2823_vm12, %v2811_v47, %v2826_v0  ;;  %v2835_v25 = vsel %vm2823_vm12, %v2817_v23, %v2834_v3  ;;  %v3312_v49 = vand.u32 2139095040, %v11496_v60 }
 0x246   : > { %v2836_v43 = vsel %vm2822_vm15, %v2833_v8, %v2835_v25  ;;  %v11513_v61 = vmul.u32.u64.low %v2837_v56, %v2832_v19  ;;  %v11514_v62 = vmul.u32.u64.high %v2837_v56, %v2832_v19, %v11513_v61  ;;  %vm15528_vm10 = vcmp.lt.s32.totalorder %v10833_v1, 0 }
 0x247   : > { %v2649_v30 = vclz %v8227_v18  ;;  %v11519_v16 = vmul.u32.u64.low %v2837_v56, %v2836_v43  ;;  %v11520_v15 = vmul.u32.u64.high %v2837_v56, %v2836_v43, %v11519_v16  ;;  %v11523_v4 = vadd.f32 %v11485_v32, %v330_v29 }
 0x248   : > { %v3279_v47 = vshrl.u32 %v3261_v36, %v3277_v41  ;;  %v3283_v23 = vshll.u32 %v11465_v44, 23  ;;  %v2828_v0 = vsel %vm2822_vm15, %v2825_v63, %v2827_v39  ;;  %v3313_v26 = vshrl.u32 %v3312_v49, 23 }
 0x249   : > { %15927 = vst [vmem:[#allocation130_spill] sm:$0xff] %v11523_v4  ;;  %v3278_v46 = vshll.u32 %v11281_v6, %v11403_v55  ;;  %v2533_v38 = vadd.s32 %v11230_v59, %v11228_v52  ;;  %v2549_v18 = vsub.s32 32, %v11467_v17  ;;  %v2554_v19 = vadd.s32 127, %v2553_v24 }
 0x24a   : > { %v2748_v8 = vshll.u32 %v11507_v2, 30  ;;  %v2847_v29 = vadd.s32 1, %v11514_v62  ;;  %v15524_v36 = vand.u32 2147483647, %v11496_v60  ;;  %v8254_v41 = vadd.s32 4294967169, %v3313_v26 }
 0x24b   : > { %v8228_v44 = vadd.s32 4294967294, %v2649_v30  ;;  %v2844_v31 = vmul.u32 %v2837_v56, %v2828_v0  ;;  %vm2846_vm1 = vc.u32 %v11520_v15, %v11513_v61  ;;  %v3416_v6 = vand.u32 2139095040, %v11523_v4 }
 0x24c   : > { %v11538_v55 = vor.u32 %v3279_v47, %v3278_v46  ;;  %v11540_v52 = vor.u32 4788187, %v3283_v23  ;;  %v2848_v59 = vsel %vm2846_vm1, %v2847_v29, %v11514_v62  ;;  %v3319_v63 = vadd.s32 1, %v8254_v41 }
 0x24d   : > { %v15928_v24 = vxor.u32 2147483648, %v11425_v58  ;;  %v2551_v56 = vshrl.u32 %v2533_v38, %v2549_v18  ;;  %v2555_v39 = vshll.u32 %v2554_v19, 23  ;;  %v11550_v25 = vadd.s32 %v2848_v59, %v2844_v31 }
 0x24e   : > { %v15930_v43 = vxor.u32 2147483648, %v11429_v11  ;;  %v11560_v62 = vsub.s32 %v11481_v7, %v2748_v8  ;;  %v3316_v30 = vand.u32 8388607, %v15524_v36  ;;  %vm3320_vm12 = vcmp.gt.s32.totalorder %v3319_v63, 0 }
 0x24f   : > { %v11548_v3 = vsel %vm15529_vm3, %v15928_v24, %v11425_v58  ;;  %v2550_v58 = vshll.u32 %v11335_v40, %v11467_v17  ;;  %vm8229_vm15 = vcmp.lt.s32.totalorder %v8228_v44, 0  ;;  %v3321_v16 = vsel %vm3320_vm12, %v3319_v63, 0  ;;  %v15934_v17 = vld [vmem:[#allocation12_spill] sm:$0xff] }
 0x250   : > { %15929 = vst [vmem:[#allocation131_spill] sm:$0xff] %v11548_v3  ;;  %v11557_v49 = vsel %vm15533_vm9, %v15930_v43, %v11429_v11  ;;  %v3417_v47 = vshrl.u32 %v3416_v6, 23  ;;  %v15932_v23 = vxor.u32 2147483648, %v11431_v53  ;;  %v3285_v7 = vand.u32 2147483647, %v11540_v52 }
 0x251   : > { %15931 = vst [vmem:[#allocation132_spill] sm:$0xff] %v11557_v49  ;;  %v3287_v0 = vcvt.s32.f32 %v11538_v55  ;;  %v3323_v26 = vand.u32 31, %v3321_v16  ;;  %v11575_v46 = vor.u32 %v2551_v56, %v2550_v58  ;;  %v11577_v38 = vor.u32 4788187, %v2555_v39 }
 0x252   : > { %v11571_v11 = vsel %vm15528_vm10, %v15932_v23, %v11431_v53  ;;  %v2850_v40 = vadd.s32 536870912, %v11550_v25  ;;  %v331_v18 = vmul.f32 %v15934_v17, %v11450_v37  ;;  %v11582_v19 = vsel %vm8229_vm15, 0, %v8228_v44 }
 0x253   : > { %15933 = vst [vmem:[#allocation133_spill] sm:$0xff] %v11571_v11  ;;  %v2751_v8 = vsub.s32 0, %v11560_v62  ;;  %v3317_v53 = vor.u32 8388608, %v3316_v30  ;;  %v3324_v29 = vsub.s32 32, %v3323_v26  ;;  %v3322_v41 = vshrl.u32 %v3321_v16, 5 }
 0x254   : > { %v3326_v31 = vshll.u32 %v15818_v10, %v3323_v26  ;;  %v3329_v6 = vshll.u32 %v15819_v5, %v3323_v26  ;;  %v8258_v55 = vadd.s32 4294967169, %v3417_v47  ;;  %v3332_v63 = vshll.u32 %v15820_v33, %v3323_v26 }
 0x255   : > { %v3327_v52 = vshrl.u32 %v15819_v5, %v3324_v29  ;;  %v3330_v59 = vshrl.u32 %v15820_v33, %v3324_v29  ;;  %v3333_v24 = vshrl.u32 %v15815_v45, %v3324_v29  ;;  %v11591_v44 = vshrl.u32 %v2850_v40, 30 }
 0x256   : > { %v3335_v56 = vshll.u32 %v15815_v45, %v3323_v26  ;;  %v3336_v39 = vshrl.u32 %v15816_v22, %v3324_v29  ;;  %v3338_v43 = vshll.u32 %v15816_v22, %v3323_v26  ;;  %v3339_v47 = vshrl.u32 %v15817_v20, %v3324_v29 }
 0x257   : > { %v3328_v30 = vor.u32 %v3327_v52, %v3326_v31  ;;  %v3331_v58 = vor.u32 %v3330_v59, %v3329_v6  ;;  %v3334_v16 = vor.u32 %v3333_v24, %v3332_v63  ;;  %v2657_v23 = vsub.s32 4294967266, %v11582_v19 }
 0x258   : > { %v11599_v17 = vmin.u32 %v2751_v8, %v11560_v62  ;;  %v11602_v36 = vadd.f32 %v11485_v32, %v331_v18  ;;  %v3337_v40 = vor.u32 %v3336_v39, %v3335_v56  ;;  %v3340_v11 = vor.u32 %v3339_v47, %v3338_v43 }
 0x259   : > { %v3357_v1 = vshll.u32 %v3317_v53, 8  ;;  %v3423_v51 = vadd.s32 1, %v8258_v55  ;;  %v2852_v26 = vshll.u32 %v11591_v44, 30  ;;  %v3325_v31 = vshrl.u32 %v15818_v10, %v3324_v29 }
 0x25a   : > { %15935 = vst [vmem:[#allocation12_spill] sm:$0xff] %v11602_v36  ;;  %vm3341_vm1 = vcmp.lt.s32.totalorder %v3322_v41, 1  ;;  %vm3344_vm12 = vcmp.lt.s32.totalorder %v3322_v41, 4  ;;  %vm3343_vm15 = vcmp.lt.s32.totalorder %v3322_v41, 3  ;;  %vm3342_vm10 = vcmp.lt.s32.totalorder %v3322_v41, 2 }
 0x25b   : > { %v3346_v6 = vsel %vm3344_vm12, %v3334_v16, 2102212464  ;;  %v3349_v52 = vsel %vm3341_vm1, %v3328_v30, %v3331_v58  ;;  %v3350_v8 = vsel %vm3344_vm12, %v3337_v40, 920167782  ;;  %v3353_v18 = vsel %vm3341_vm1, %v3331_v58, %v3334_v16 }
 0x25c   : > { %v3351_v59 = vsel %vm3343_vm15, %v3334_v16, %v3350_v8  ;;  %v3520_v63 = vand.u32 2139095040, %v11602_v36  ;;  %v3345_v24 = vsel %vm3341_vm1, %v3325_v31, %v3328_v30  ;;  %v3354_v56 = vsel %vm3344_vm12, %v3340_v11, 1326507024 }
 0x25d   : > { %v3352_v53 = vsel %vm3342_vm10, %v3349_v52, %v3351_v59  ;;  %vm3424_vm3 = vcmp.gt.s32.totalorder %v3423_v51, 0  ;;  %v3347_v55 = vsel %vm3343_vm15, %v3331_v58, %v3346_v6  ;;  %v3355_v39 = vsel %vm3343_vm15, %v3337_v40, %v3354_v56 }
 0x25e   : > { %v11609_v43 = vmul.u32.u64.low %v3357_v1, %v3352_v53  ;;  %v11610_v29 = vmul.u32.u64.high %v3357_v1, %v3352_v53, %v11609_v43  ;;  %v11614_v47 = vsub.s32 %v11550_v25, %v2852_v26  ;;  %v3356_v3 = vsel %vm3342_vm10, %v3353_v18, %v3355_v39 }
 0x25f   : > { %v15936_v16 = vand.u32 2147483647, %v11523_v4  ;;  %v3425_v49 = vsel %vm3424_vm3, %v3423_v51, 0  ;;  %v11619_v30 = vmul.f32 %v3287_v0, %v3285_v7  ;;  %v3521_v58 = vshrl.u32 %v3520_v63, 23 }
 0x260   : > { %v11621_v31 = vmul.u32.u64.low %v3357_v1, %v3356_v3  ;;  %v11622_v11 = vmul.u32.u64.high %v3357_v1, %v3356_v3, %v11621_v31  ;;  %v2637_v6 = vadd.s32 %v11312_v35, %v11321_v28  ;;  %v3348_v25 = vsel %vm3342_vm10, %v3345_v24, %v3347_v55 }
 0x261   : > { %v3420_v8 = vand.u32 8388607, %v15936_v16  ;;  %v3427_v26 = vand.u32 31, %v3425_v49  ;;  %v2653_v59 = vsub.s32 32, %v11582_v19  ;;  %v11630_v18 = vadd.s32 127, %v2657_v23 }
 0x262   : > { %v3367_v51 = vadd.s32 1, %v11610_v29  ;;  %v2753_v3 = vclz %v11599_v17  ;;  %v2855_v7 = vsub.s32 0, %v11614_v47  ;;  %v3364_v53 = vmul.u32 %v3357_v1, %v3348_v25 }
 0x263   : > { %v3421_v0 = vor.u32 8388608, %v3420_v8  ;;  %v3428_v63 = vsub.s32 32, %v3427_v26  ;;  %vm3366_vm3 = vc.u32 %v11622_v11, %v11609_v43  ;;  %v3430_v35 = vshll.u32 %v15818_v10, %v3427_v26 }
 0x264   : > { %v8262_v28 = vadd.s32 4294967169, %v3521_v58  ;;  %v3368_v41 = vsel %vm3366_vm3, %v3367_v51, %v11610_v29  ;;  %v3433_v24 = vshll.u32 %v15819_v5, %v3427_v26  ;;  %v3426_v55 = vshrl.u32 %v3425_v49, 5  ;;  %v15937_v51 = vld [vmem:[#allocation15_spill] sm:$0xff] }
 0x265   : > { %v3431_v23 = vshrl.u32 %v15819_v5, %v3428_v63  ;;  %v3434_v56 = vshrl.u32 %v15820_v33, %v3428_v63  ;;  %v3369_v17 = vadd.s32 %v3368_v41, %v3364_v53  ;;  %v3436_v39 = vshll.u32 %v15820_v33, %v3427_v26 }
 0x266   : > { %v3437_v1 = vshrl.u32 %v15815_v45, %v3428_v63  ;;  %v3439_v31 = vshll.u32 %v15815_v45, %v3427_v26  ;;  %v3440_v58 = vshrl.u32 %v15816_v22, %v3428_v63  ;;  %v2655_v25 = vshrl.u32 %v2637_v6, %v2653_v59 }
 0x267   : > { %v3432_v16 = vor.u32 %v3431_v23, %v3430_v35  ;;  %v3435_v8 = vor.u32 %v3434_v56, %v3433_v24  ;;  %v2659_v29 = vshll.u32 %v11630_v18, 23  ;;  %v332_v40 = vmul.f32 %v15937_v51, %v11450_v37 }
 0x268   : > { %v3370_v52 = vadd.s32 536870912, %v3369_v17  ;;  %v3438_v42 = vor.u32 %v3437_v1, %v3436_v39  ;;  %v3441_v53 = vor.u32 %v3440_v58, %v3439_v31  ;;  %v3442_v49 = vshll.u32 %v15816_v22, %v3427_v26 }
 0x269   : > { %v3443_v41 = vshrl.u32 %v15817_v20, %v3428_v63  ;;  %v8232_v4 = vadd.s32 4294967294, %v2753_v3  ;;  %v8235_v35 = vmin.u32 %v2855_v7, %v11614_v47  ;;  %vm3445_vm10 = vcmp.lt.s32.totalorder %v3426_v55, 1 }
 0x26a   : > { %v3461_v23 = vshll.u32 %v3421_v0, 8  ;;  %vm3448_vm1 = vcmp.lt.s32.totalorder %v3426_v55, 4  ;;  %v3453_v6 = vsel %vm3445_vm10, %v3432_v16, %v3435_v8  ;;  %v3527_v59 = vadd.s32 1, %v8262_v28 }
 0x26b   : > { %v3444_v24 = vor.u32 %v3443_v41, %v3442_v49  ;;  %v11653_v18 = vshrl.u32 %v3370_v52, 30  ;;  %vm3446_vm12 = vcmp.lt.s32.totalorder %v3426_v55, 2  ;;  %vm3447_vm15 = vcmp.lt.s32.totalorder %v3426_v55, 3 }
 0x26c   : > { %v3454_v37 = vsel %vm3448_vm1, %v3441_v53, 920167782  ;;  %v3450_v56 = vsel %vm3448_vm1, %v3438_v42, 2102212464  ;;  %v3457_v26 = vsel %vm3445_vm10, %v3435_v8, %v3438_v42  ;;  %vm8233_vm3 = vcmp.lt.s32.totalorder %v8232_v4, 0 }
 0x26d   : > { %15938 = vst [vmem:[#allocation15_spill] sm:$0xff] %v11653_v18  ;;  %v3455_v39 = vsel %vm3447_vm15, %v3438_v42, %v3454_v37  ;;  %v3458_v1 = vsel %vm3448_vm1, %v3444_v24, 1326507024  ;;  %v3429_v3 = vshrl.u32 %v15818_v10, %v3428_v63  ;;  %v15534_v0 = vand.u32 2147483647, %v11602_v36 }
 0x26e   : > { %v3456_v7 = vsel %vm3446_vm12, %v3453_v6, %v3455_v39  ;;  %v2857_v31 = vclz %v8235_v35  ;;  %v3459_v58 = vsel %vm3447_vm15, %v3441_v53, %v3458_v1  ;;  %v3451_v49 = vsel %vm3447_vm15, %v3435_v8, %v3450_v56 }
 0x26f   : > { %v11659_v28 = vmul.u32.u64.low %v3461_v23, %v3456_v7  ;;  %v11660_v52 = vmul.u32.u64.high %v3461_v23, %v3456_v7, %v11659_v28  ;;  %v3449_v51 = vsel %vm3445_vm10, %v3429_v3, %v3432_v16  ;;  %v3460_v41 = vsel %vm3446_vm12, %v3457_v26, %v3459_v58 }
 0x270   : > { %vm3528_vm9 = vcmp.gt.s32.totalorder %v3527_v59, 0  ;;  %v3372_v42 = vshll.u32 %v11653_v18, 30  ;;  %v11666_v24 = vmul.u32.u64.low %v3461_v23, %v3460_v41  ;;  %v11667_v63 = vmul.u32.u64.high %v3461_v23, %v3460_v41, %v11666_v24 }
 0x271   : > { %v3529_v6 = vsel %vm3528_vm9, %v3527_v59, 0  ;;  %v15939_v53 = vand.u32 2147483647, %v11577_v38  ;;  %v15940_v35 = vcvt.s32.f32 %v11575_v46  ;;  %v2654_v16 = vshll.u32 %v11473_v48, %v11582_v19 }
 0x272   : > { %v3531_v8 = vand.u32 31, %v3529_v6  ;;  %v11680_v56 = vadd.s32 %v11412_v34, %v11410_v57  ;;  %v11683_v26 = vadd.f32 %v11485_v32, %v332_v40  ;;  %v3452_v59 = vsel %vm3446_vm12, %v3449_v51, %v3451_v49 }
 0x273   : > { %v11674_v39 = vmul.f32 %v15940_v35, %v15939_v53  ;;  %v3471_v1 = vadd.s32 1, %v11660_v52  ;;  %v11687_v38 = vor.u32 %v2655_v25, %v2654_v16  ;;  %v11689_v46 = vor.u32 4788187, %v2659_v29 }
 0x274   : > { %15941 = vst [vmem:[#allocation134_spill] sm:$0xff] %v11683_v26  ;;  %v11692_v3 = vsel %vm8233_vm3, 0, %v8232_v4  ;;  %v3532_v48 = vsub.s32 32, %v3531_v8  ;;  %v8236_v19 = vadd.s32 4294967294, %v2857_v31  ;;  %v11694_v7 = vsub.s32 %v3369_v17, %v3372_v42 }
 0x275   : > { %vm3470_vm9 = vc.u32 %v11667_v63, %v11659_v28  ;;  %v3524_v57 = vand.u32 8388607, %v15534_v0  ;;  %v3468_v34 = vmul.u32 %v3461_v23, %v3452_v59  ;;  %v3534_v40 = vshll.u32 %v15818_v10, %v3531_v8 }
 0x276   : > { %v3472_v32 = vsel %vm3470_vm9, %v3471_v1, %v11660_v52  ;;  %v3535_v55 = vshrl.u32 %v15819_v5, %v3532_v48  ;;  %v3537_v4 = vshll.u32 %v15819_v5, %v3531_v8  ;;  %v3538_v25 = vshrl.u32 %v15820_v33, %v3532_v48 }
 0x277   : > { %v3541_v17 = vshrl.u32 %v15815_v45, %v3532_v48  ;;  %v3544_v29 = vshrl.u32 %v15816_v22, %v3532_v48  ;;  %v11707_v31 = vadd.s32 %v3472_v32, %v3468_v34  ;;  %v11709_v58 = vshrl.u32 %v3529_v6, 5 }
 0x278   : > { %v3543_v23 = vshll.u32 %v15815_v45, %v3531_v8  ;;  %v3547_v52 = vshrl.u32 %v15817_v20, %v3532_v48  ;;  %v2761_v51 = vsub.s32 4294967266, %v11692_v3  ;;  %v3536_v49 = vor.u32 %v3535_v55, %v3534_v40 }
 0x279   : > { %v3539_v41 = vor.u32 %v3538_v25, %v3537_v4  ;;  %v3540_v42 = vshll.u32 %v15820_v33, %v3531_v8  ;;  %vm8237_vm10 = vcmp.lt.s32.totalorder %v8236_v19, 0  ;;  %v3375_v24 = vsub.s32 0, %v11694_v7 }
 0x27a   : > { %v3545_v53 = vor.u32 %v3544_v29, %v3543_v23  ;;  %v3546_v35 = vshll.u32 %v15816_v22, %v3531_v8  ;;  %v2661_v16 = vand.u32 2147483647, %v11689_v46  ;;  %v2663_v6 = vcvt.s32.f32 %v11687_v38 }
 0x27b   : > { %v3525_v59 = vor.u32 8388608, %v3524_v57  ;;  %v3542_v1 = vor.u32 %v3541_v17, %v3540_v42  ;;  %v2757_v34 = vsub.s32 32, %v11692_v3  ;;  %v3474_v32 = vadd.s32 536870912, %v11707_v31 }
 0x27c   : > { %v3548_v40 = vor.u32 %v3547_v52, %v3546_v35  ;;  %vm3549_vm1 = vcmp.lt.s32.totalorder %v11709_v58, 1  ;;  %v2762_v55 = vadd.s32 127, %v2761_v51  ;;  %v2860_v4 = vsel %vm8237_vm10, 0, %v8236_v19 }
 0x27d   : > { %vm3552_vm12 = vcmp.lt.s32.totalorder %v11709_v58, 4  ;;  %v3557_v8 = vsel %vm3549_vm1, %v3536_v49, %v3539_v41  ;;  %v8255_v46 = vmin.u32 %v3375_v24, %v11694_v7  ;;  %vm3551_vm15 = vcmp.lt.s32.totalorder %v11709_v58, 3 }
 0x27e   : > { %v3558_v38 = vsel %vm3552_vm12, %v3545_v53, 920167782  ;;  %v3624_v57 = vand.u32 2139095040, %v11683_v26  ;;  %vm15541_vm3 = vcmp.lt.s32.totalorder %v10879_v50, 0  ;;  %vm3550_vm9 = vcmp.lt.s32.totalorder %v11709_v58, 2 }
 0x27f   : > { %v3559_v25 = vsel %vm3551_vm15, %v3542_v1, %v3558_v38  ;;  %v3561_v19 = vsel %vm3549_vm1, %v3539_v41, %v3542_v1  ;;  %v3565_v17 = vshll.u32 %v3525_v59, 8  ;;  %v2865_v29 = vsub.s32 4294967266, %v2860_v4 }
 0x280   : > { %v11734_v23 = vshrl.u32 %v3474_v32, 30  ;;  %v3560_v52 = vsel %vm3550_vm9, %v3557_v8, %v3559_v25  ;;  %v3562_v51 = vsel %vm3552_vm12, %v3548_v40, 1326507024  ;;  %v3554_v42 = vsel %vm3552_vm12, %v3542_v1, 2102212464 }
 0x281   : > { %v3563_v24 = vsel %vm3551_vm15, %v3545_v53, %v3562_v51  ;;  %v11740_v35 = vmul.u32.u64.low %v3565_v17, %v3560_v52  ;;  %v11741_v0 = vmul.u32.u64.high %v3565_v17, %v3560_v52, %v11740_v35  ;;  %v3377_v38 = vclz %v8255_v46 }
 0x282   : > { %15942 = vst [vmem:[#allocation135_spill] sm:$0xff] %v11734_v23  ;;  %v3533_v37 = vshrl.u32 %v15818_v10, %v3532_v48  ;;  %v3564_v59 = vsel %vm3550_vm9, %v3561_v19, %v3563_v24  ;;  %v3625_v32 = vshrl.u32 %v3624_v57, 23  ;;  %v2759_v18 = vshrl.u32 %v11680_v56, %v2757_v34 }
 0x283   : > { %v2763_v36 = vshll.u32 %v2762_v55, 23  ;;  %v11748_v8 = vmul.u32.u64.low %v3565_v17, %v3564_v59  ;;  %v11749_v40 = vmul.u32.u64.high %v3565_v17, %v3564_v59, %v11748_v8  ;;  %v2861_v1 = vsub.s32 32, %v2860_v4  ;;  %v15945_v59 = vld [vmem:[#allocation16_spill] sm:$0xff] }
 0x284   : > { %v3553_v53 = vsel %vm3549_vm1, %v3533_v37, %v3536_v49  ;;  %v3555_v25 = vsel %vm3551_vm15, %v3539_v41, %v3554_v42  ;;  %v8266_v46 = vadd.s32 4294967169, %v3625_v32  ;;  %v2758_v48 = vshll.u32 %v11560_v62, %v11692_v3 }
 0x285   : > { %v2866_v52 = vadd.s32 127, %v2865_v29  ;;  %v3476_v57 = vshll.u32 %v11734_v23, 30  ;;  %v3575_v56 = vadd.s32 1, %v11741_v0  ;;  %v11759_v34 = vmul.f32 %v2663_v6, %v2661_v16 }
 0x286   : > { %v2845_v55 = vadd.s32 %v11513_v61, %v11520_v15  ;;  %v8256_v19 = vadd.s32 4294967294, %v3377_v38  ;;  %v3631_v51 = vadd.s32 1, %v8266_v46  ;;  %v2760_v37 = vor.u32 %v2759_v18, %v2758_v48 }
 0x287   : > { %v2764_v49 = vor.u32 4788187, %v2763_v36  ;;  %v3556_v41 = vsel %vm3550_vm9, %v3553_v53, %v3555_v25  ;;  %vm3574_vm10 = vc.u32 %v11749_v40, %v11740_v35  ;;  %v15943_v62 = vxor.u32 2147483648, %v11619_v30 }
 0x288   : > { %v2863_v61 = vshrl.u32 %v2845_v55, %v2861_v1  ;;  %vm3632_vm1 = vcmp.gt.s32.totalorder %v3631_v51, 0  ;;  %v2867_v15 = vshll.u32 %v2866_v52, 23  ;;  %v11776_v36 = vsub.s32 %v11707_v31, %v3476_v57 }
 0x289   : > { %v11772_v3 = vsel %vm15541_vm3, %v15943_v62, %v11619_v30  ;;  %v3576_v18 = vsel %vm3574_vm10, %v3575_v56, %v11741_v0  ;;  %v3633_v58 = vsel %vm3632_vm1, %v3631_v51, 0  ;;  %v2862_v6 = vshll.u32 %v11614_v47, %v2860_v4 }
 0x28a   : > { %15944 = vst [vmem:[#allocation136_spill] sm:$0xff] %v11772_v3  ;;  %vm8257_vm12 = vcmp.lt.s32.totalorder %v8256_v19, 0  ;;  %v3572_v29 = vmul.u32 %v3565_v17, %v3556_v41  ;;  %v3635_v42 = vand.u32 31, %v3633_v58  ;;  %v2765_v30 = vand.u32 2147483647, %v2764_v49 }
 0x28b   : > { %v2767_v38 = vcvt.s32.f32 %v2760_v37  ;;  %v15540_v32 = vand.u32 2147483647, %v15945_v59  ;;  %v11782_v8 = vor.u32 %v2863_v61, %v2862_v6  ;;  %v15539_v31 = vand.u32 2147483647, %v11683_v26 }
 0x28c   : > { %v11784_v1 = vadd.s32 %v3576_v18, %v3572_v29  ;;  %v11787_v53 = vsub.s32 32, %v3635_v42  ;;  %v11789_v0 = vor.u32 4788187, %v2867_v15  ;;  %v11791_v47 = vsel %vm8257_vm12, 0, %v8256_v19 }
 0x28d   : > { %v3479_v4 = vsub.s32 0, %v11776_v36  ;;  %v11794_v17 = vshrl.u32 %v3633_v58, 5  ;;  %v3638_v25 = vshll.u32 %v15818_v10, %v3635_v42  ;;  %v3641_v57 = vshll.u32 %v15819_v5, %v3635_v42 }
 0x28e   : > { %v3639_v46 = vshrl.u32 %v15819_v5, %v11787_v53  ;;  %v3642_v48 = vshrl.u32 %v15820_v33, %v11787_v53  ;;  %v3645_v52 = vshrl.u32 %v15815_v45, %v11787_v53  ;;  %v3644_v56 = vshll.u32 %v15820_v33, %v3635_v42 }
 0x28f   : > { %v3647_v55 = vshll.u32 %v15815_v45, %v3635_v42  ;;  %v3648_v19 = vshrl.u32 %v15816_v22, %v11787_v53  ;;  %v11808_v51 = vmul.f32 %v2767_v38, %v2765_v30  ;;  %v3365_v37 = vadd.s32 %v11609_v43, %v11622_v11 }
 0x290   : > { %v3578_v49 = vadd.s32 536870912, %v11784_v1  ;;  %v3628_v41 = vand.u32 8388607, %v15539_v31  ;;  %v3640_v62 = vor.u32 %v3639_v46, %v3638_v25  ;;  %v11815_v61 = vor.u32 %v3642_v48, %v3641_v57 }
 0x291   : > { %v3646_v15 = vor.u32 %v3645_v52, %v3644_v56  ;;  %v3649_v18 = vor.u32 %v3648_v19, %v3647_v55  ;;  %v3385_v6 = vsub.s32 4294967266, %v11791_v47  ;;  %v3650_v29 = vshll.u32 %v15816_v22, %v3635_v42  ;;  %v15947_v56 = vld [vmem:[#allocation27_spill] sm:$0xff] }
 0x292   : > { %v3651_v30 = vshrl.u32 %v15817_v20, %v11787_v53  ;;  %v3381_v11 = vsub.s32 32, %v11791_v47  ;;  %v8259_v38 = vmin.u32 %v3479_v4, %v11776_v36  ;;  %vm3656_vm15 = vcmp.lt.s32.totalorder %v11794_v17, 4 }
 0x293   : > { %vm3653_vm9 = vcmp.lt.s32.totalorder %v11794_v17, 1  ;;  %vm3655_vm10 = vcmp.lt.s32.totalorder %v11794_v17, 3  ;;  %v3662_v46 = vsel %vm3656_vm15, %v3649_v18, 920167782  ;;  %v11830_v22 = vshrl.u32 %v3578_v49, 30 }
 0x294   : > { %v3652_v25 = vor.u32 %v3651_v30, %v3650_v29  ;;  %v3629_v42 = vor.u32 8388608, %v3628_v41  ;;  %v3661_v20 = vsel %vm3653_vm9, %v3640_v62, %v11815_v61  ;;  %v3663_v4 = vsel %vm3655_vm10, %v3646_v15, %v3662_v46  ;;  %v15948_v29 = vld [vmem:[#allocation23_spill] sm:$0xff] }
 0x295   : > { %15946 = vst [vmem:[#allocation16_spill] sm:$0xff] %v11830_v22  ;;  %v3386_v48 = vadd.s32 127, %v3385_v6  ;;  %v3665_v52 = vsel %vm3653_vm9, %v11815_v61, %v3646_v15  ;;  %v519_v55 = vshrl.u32 %v15819_v5, %v15947_v56  ;;  %v3481_v19 = vclz %v8259_v38 }
 0x296   : > { %v3666_v57 = vsel %vm3656_vm15, %v3652_v25, 1326507024  ;;  %vm3654_vm1 = vcmp.lt.s32.totalorder %v11794_v17, 2  ;;  %v508_v41 = vand.u32 8388607, %v15540_v32  ;;  %v518_v30 = vshll.u32 %v15818_v10, %v15948_v29 }
 0x297   : > { %v3667_v49 = vsel %vm3655_vm10, %v3649_v18, %v3666_v57  ;;  %v3664_v6 = vsel %vm3654_vm1, %v3661_v20, %v3663_v4  ;;  %v521_v25 = vshll.u32 %v15819_v5, %v15948_v29  ;;  %v522_v38 = vshrl.u32 %v15820_v33, %v15947_v56 }
 0x298   : > { %v3382_v46 = vshll.u32 %v11694_v7, %v11791_v47  ;;  %v3580_v18 = vshll.u32 %v11830_v22, 30  ;;  %v3668_v57 = vsel %vm3654_vm1, %v3665_v52, %v3667_v49  ;;  %v11862_v31 = vshll.u32 %v3629_v42, 8  ;;  %v15960_v22 = vld [vmem:[#allocation68_spill] sm:$0xff] }
 0x299   : > { %v520_v20 = vor.u32 %v519_v55, %v518_v30  ;;  %v523_v4 = vor.u32 %v522_v38, %v521_v25  ;;  %v524_v32 = vshll.u32 %v15820_v33, %v15948_v29  ;;  %v525_v24 = vshrl.u32 %v15815_v45, %v15947_v56  ;;  %v15949_v30 = vld [vmem:[#allocation29_spill] sm:$0xff]  ;;  %v15951_v38 = vld [vmem:[#allocation43_spill] sm:$0xff] }
 0x29a   : > { %v3387_v16 = vshll.u32 %v3386_v48, 23  ;;  %v8260_v58 = vadd.s32 4294967294, %v3481_v19  ;;  %v11869_v43 = vmul.u32.u64.low %v11862_v31, %v3664_v6  ;;  %v11870_v7 = vmul.u32.u64.high %v11862_v31, %v3664_v6, %v11869_v43  ;;  %v15950_v6 = vld [vmem:[#allocation42_spill] sm:$0xff] }
 0x29b   : > { %v11874_v47 = vmul.u32.u64.low %v11862_v31, %v3668_v57  ;;  %v11875_v52 = vmul.u32.u64.high %v11862_v31, %v3668_v57, %v11874_v47  ;;  %v509_v42 = vor.u32 8388608, %v508_v41  ;;  %v526_v55 = vor.u32 %v525_v24, %v524_v32 }
 0x29c   : > { %v11878_v49 = vsub.s32 %v11784_v1, %v3580_v18  ;;  %v3637_v29 = vshrl.u32 %v15818_v10, %v11787_v53  ;;  %vm533_vm12 = vcmp.lt.s32.totalorder %v15949_v30, 1  ;;  %vm535_vm3 = vcmp.lt.s32.totalorder %v15949_v30, 3  ;;  %v15952_v18 = vld [vmem:[#allocation36_spill] sm:$0xff] }
 0x29d   : > { %v3658_v48 = vsel %vm3656_vm15, %v3646_v15, 2102212464  ;;  %v541_v19 = vsel %vm533_vm12, %v520_v20, %v523_v4  ;;  %v543_v24 = vsel %vm535_vm3, %v526_v55, %v15950_v6  ;;  %v545_v32 = vsel %vm533_vm12, %v523_v4, %v526_v55 }
 0x29e   : > { %v3383_v1 = vshrl.u32 %v3365_v37, %v3381_v11  ;;  %v11893_v41 = vor.u32 4788187, %v3387_v16  ;;  %vm8261_vm0 = vcmp.lt.s32.totalorder %v8260_v58, 0  ;;  %v517_v53 = vshrl.u32 %v15818_v10, %v15947_v56 }
 0x29f   : > { %v3657_v15 = vsel %vm3653_vm9, %v3637_v29, %v3640_v62  ;;  %vm534_vm15 = vcmp.lt.s32.totalorder %v15949_v30, 2  ;;  %v538_v25 = vsel %vm536_vm5, %v526_v55, 2102212464  ;;  %v547_v57 = vsel %vm535_vm3, %v15952_v18, %v15951_v38  ;;  %v15953_v29 = vld [vmem:[#allocation35_spill] sm:$0xff] }
 0x2a0   : > { %v3659_v16 = vsel %vm3655_vm10, %v11815_v61, %v3658_v48  ;;  %v544_v37 = vsel %vm534_vm15, %v541_v19, %v543_v24  ;;  %v548_v62 = vsel %vm534_vm15, %v545_v32, %v547_v57  ;;  %v549_v11 = vshll.u32 %v509_v42, 8  ;;  %v15956_v57 = vld [vmem:[#allocation55_spill] sm:$0xff] }
 0x2a1   : > { %v11913_v56 = vsel %vm8261_vm0, 0, %v8260_v58  ;;  %v3583_v47 = vsub.s32 0, %v11878_v49  ;;  %v537_v55 = vsel %vm533_vm12, %v517_v53, %v520_v20  ;;  %v15543_v6 = vand.u32 2147483647, %v15953_v29 }
 0x2a2   : > { %v3679_v38 = vadd.s32 1, %v11870_v7  ;;  %v539_v61 = vsel %vm535_vm3, %v523_v4, %v538_v25  ;;  %v11922_v48 = vmul.u32.u64.low %v549_v11, %v548_v62  ;;  %v11923_v19 = vmul.u32.u64.high %v549_v11, %v548_v62, %v11922_v48 }
 0x2a3   : > { %v3660_v42 = vsel %vm3654_vm1, %v3657_v15, %v3659_v16  ;;  %vm3678_vm5 = vc.u32 %v11875_v52, %v11869_v43  ;;  %v11929_v58 = vmul.u32.u64.low %v549_v11, %v544_v37  ;;  %v11930_v24 = vmul.u32.u64.high %v549_v11, %v544_v37, %v11929_v58  ;;  %v15957_v37 = vld [vmem:[#allocation60_spill] sm:$0xff] }
 0x2a4   : > { %v15954_v20 = vand.u32 2147483647, %v11789_v0  ;;  %v15955_v32 = vcvt.s32.f32 %v11782_v8  ;;  %v3384_v4 = vor.u32 %v3383_v1, %v3382_v46  ;;  %v3389_v25 = vand.u32 2147483647, %v11893_v41 }
 0x2a5   : > { %v3489_v18 = vsub.s32 4294967266, %v11913_v56  ;;  %v540_v17 = vsel %vm534_vm15, %v537_v55, %v539_v61  ;;  %v924_v15 = vand.u32 8388607, %v15543_v6  ;;  %v934_v16 = vshll.u32 %v15818_v10, %v15956_v57  ;;  %v15959_v6 = vld [vmem:[#allocation77_spill] sm:$0xff] }
 0x2a6   : > { %v11937_v53 = vmul.f32 %v15955_v32, %v15954_v20  ;;  %v935_v0 = vshrl.u32 %v15819_v5, %v15957_v37  ;;  %v8263_v8 = vmin.u32 %v3583_v47, %v11878_v49  ;;  %v3676_v46 = vmul.u32 %v11862_v31, %v3660_v42 }
 0x2a7   : > { %v3680_v1 = vsel %vm3678_vm5, %v3679_v38, %v11870_v7  ;;  %vm558_vm0 = vc.u32 %v11923_v19, %v11929_v58  ;;  %v559_v30 = vadd.s32 1, %v11930_v24  ;;  %v937_v62 = vshll.u32 %v15819_v5, %v15956_v57 }
 0x2a8   : > { %v936_v41 = vor.u32 %v935_v0, %v934_v16  ;;  %v938_v55 = vshrl.u32 %v15820_v33, %v15957_v37  ;;  %v3485_v61 = vsub.s32 32, %v11913_v56  ;;  %v556_v48 = vmul.u32 %v549_v11, %v540_v17  ;;  %v15958_v0 = vld [vmem:[#allocation54_spill] sm:$0xff] }
 0x2a9   : > { %v940_v31 = vshll.u32 %v15820_v33, %v15956_v57  ;;  %v941_v7 = vshrl.u32 %v15815_v45, %v15957_v37  ;;  %vm15558_vm3 = vcmp.lt.s32.totalorder %v11081_v14, 0  ;;  %v11965_v47 = vadd.s32 %v3680_v1, %v3676_v46 }
 0x2aa   : > { %v560_v38 = vsel %vm558_vm0, %v559_v30, %v11930_v24  ;;  %v925_v42 = vor.u32 8388608, %v924_v15  ;;  %v939_v20 = vor.u32 %v938_v55, %v937_v62  ;;  %vm949_vm9 = vcmp.lt.s32.totalorder %v15958_v0, 1  ;;  %v15961_v15 = vld [vmem:[#allocation76_spill] sm:$0xff] }
 0x2ab   : > { %v561_v32 = vadd.s32 %v560_v38, %v556_v48  ;;  %v942_v16 = vor.u32 %v941_v7, %v940_v31  ;;  %vm951_vm10 = vcmp.lt.s32.totalorder %v15958_v0, 3  ;;  %v3490_v11 = vadd.s32 127, %v3489_v18 }
 0x2ac   : > { %v3585_v17 = vclz %v8263_v8  ;;  %v957_v57 = vsel %vm949_vm9, %v936_v41, %v939_v20  ;;  %v963_v46 = vsel %vm951_vm10, %v15960_v22, %v15959_v6  ;;  %vm2583_vm1 = vcmp.lt.s32.totalorder %v11153_v9, 0 }
 0x2ad   : > { %v562_v24 = vadd.s32 536870912, %v561_v32  ;;  %vm950_vm12 = vcmp.lt.s32.totalorder %v15958_v0, 2  ;;  %v959_v1 = vsel %vm951_vm10, %v942_v16, %v15961_v15  ;;  %v961_v18 = vsel %vm949_vm9, %v939_v20, %v942_v16 }
 0x2ae   : > { %vm15557_vm15 = vcmp.lt.s32.totalorder %v11195_v13, 0  ;;  %v3391_v8 = vcvt.s32.f32 %v3384_v4  ;;  %v3469_v30 = vadd.s32 %v11659_v28, %v11667_v63  ;;  %v3682_v22 = vadd.s32 536870912, %v11965_v47 }
 0x2af   : > { %v964_v6 = vsel %vm950_vm12, %v961_v18, %v963_v46  ;;  %vm2791_vm5 = vcmp.lt.s32.totalorder %v11249_v27, 0  ;;  %v11990_v62 = vshrl.u32 %v562_v24, 30  ;;  %v954_v55 = vsel %vm952_vm14, %v942_v16, 2102212464 }
 0x2b0   : > { %v960_v48 = vsel %vm950_vm12, %v957_v57, %v959_v1  ;;  %v965_v31 = vshll.u32 %v925_v42, 8  ;;  %v3392_v4 = vmul.f32 %v3391_v8, %v3389_v25  ;;  %v3487_v7 = vshrl.u32 %v3469_v30, %v3485_v61 }
 0x2b1   : > { %v8264_v38 = vadd.s32 4294967294, %v3585_v17  ;;  %v933_v28 = vshrl.u32 %v15818_v10, %v15957_v37  ;;  %v3491_v63 = vshll.u32 %v3490_v11, 23  ;;  %v564_v46 = vshll.u32 %v11990_v62, 30 }
 0x2b2   : > { %v11999_v15 = vmul.u32.u64.low %v965_v31, %v964_v6  ;;  %v12000_v18 = vmul.u32.u64.high %v965_v31, %v964_v6, %v11999_v15  ;;  %v955_v16 = vsel %vm951_vm10, %v939_v20, %v954_v55  ;;  %v15962_v25 = vxor.u32 2147483648, %v11674_v39 }
 0x2b3   : > { %v953_v24 = vsel %vm949_vm9, %v933_v28, %v936_v41  ;;  %v12006_v57 = vmul.u32.u64.low %v965_v31, %v960_v48  ;;  %v12007_v42 = vmul.u32.u64.high %v965_v31, %v960_v48, %v12006_v57  ;;  %v2769_v61 = vxor.u32 2147483648, %v11808_v51 }
 0x2b4   : > { %v12015_v37 = vsel %vm15558_vm3, %v15962_v25, %v11674_v39  ;;  %v12018_v11 = vshrl.u32 %v3682_v22, 30  ;;  %v12020_v17 = vsub.s32 %v561_v32, %v564_v46  ;;  %v2873_v41 = vxor.u32 2147483648, %v11937_v53  ;;  %v15967_v46 = vld [vmem:[#allocation17_spill] sm:$0xff] }
 0x2b5   : > { %vm15549_vm14 = vcmp.lt.s32.totalorder %v11496_v60, 0  ;;  %v3486_v20 = vshll.u32 %v11776_v36, %v11913_v56  ;;  %vm8265_vm0 = vcmp.lt.s32.totalorder %v8264_v38, 0  ;;  %v3393_v1 = vxor.u32 2147483648, %v3392_v4 }
 0x2b6   : > { %15963 = vst [vmem:[#allocation27_spill] sm:$0xff] %v12018_v11  ;;  %v567_v8 = vsub.s32 0, %v12020_v17  ;;  %v956_v39 = vsel %vm950_vm12, %v953_v24, %v955_v16  ;;  %vm974_vm9 = vc.u32 %v12000_v18, %v12006_v57  ;;  %v15964_v32 = vxor.u32 2147483648, %v11759_v34 }
 0x2b7   : > { %v12038_v22 = vor.u32 %v3487_v7, %v3486_v20  ;;  %v12040_v36 = vor.u32 4788187, %v3491_v63  ;;  %v975_v56 = vadd.s32 1, %v12007_v42  ;;  %v12046_v0 = vsel %vm15557_vm15, %v2769_v61, %v11808_v51  ;;  %v15969_v20 = vld [vmem:[#allocation33_spill] sm:$0xff] }
 0x2b8   : > { %v12036_v30 = vsel %vm2583_vm1, %v15964_v32, %v11759_v34  ;;  %15965 = vst [vmem:[#allocation23_spill] sm:$0xff] %v12046_v0  ;;  %v12048_v6 = vsel %vm8265_vm0, 0, %v8264_v38  ;;  %v3684_v55 = vshll.u32 %v12018_v11, 30  ;;  %v8147_v48 = vmin.u32 %v567_v8, %v12020_v17 }
 0x2b9   : > { %v12055_v34 = vsel %vm2791_vm5, %v2873_v41, %v11937_v53  ;;  %vm503_vm10 = vcmp.lt.s32.totalorder %v15945_v59, 0  ;;  %v972_v7 = vmul.u32 %v965_v31, %v956_v39  ;;  %v976_v28 = vsel %vm974_vm9, %v975_v56, %v12007_v42 }
 0x2ba   : > { %v12061_v51 = vsel %vm15549_vm14, %v3393_v1, %v3392_v4  ;;  %v12065_v38 = vadd.s32 %v11740_v35, %v11749_v40  ;;  %v569_v63 = vclz %v8147_v48  ;;  %v15546_v15 = vand.u32 2147483647, %v15967_v46  ;;  %v15968_v4 = vld [vmem:[#allocation38_spill] sm:$0xff] }
 0x2bb   : > { %15966 = vst [vmem:[#allocation29_spill] sm:$0xff] %v12061_v51  ;;  %v977_v31 = vadd.s32 %v976_v28, %v972_v7  ;;  %v12072_v42 = vsub.s32 %v11965_v47, %v3684_v55  ;;  %v727_v61 = vshrl.u32 %v15819_v5, %v15968_v4  ;;  %v730_v35 = vshrl.u32 %v15820_v33, %v15968_v4 }
 0x2bc   : > { %v8148_v25 = vadd.s32 4294967294, %v569_v63  ;;  %v587_v40 = vsub.s32 4, %v11990_v62  ;;  %v732_v1 = vshll.u32 %v15820_v33, %v15969_v20  ;;  %v733_v8 = vshrl.u32 %v15815_v45, %v15968_v4 }
 0x2bd   : > { %v978_v41 = vadd.s32 536870912, %v977_v31  ;;  %v15970_v39 = vand.u32 2147483647, %v15945_v59  ;;  %v716_v32 = vand.u32 8388607, %v15546_v15  ;;  %v726_v56 = vshll.u32 %v15818_v10, %v15969_v20 }
 0x2be   : > { %vm8149_vm0 = vcmp.lt.s32.totalorder %v8148_v25, 0  ;;  %v729_v55 = vshll.u32 %v15819_v5, %v15969_v20  ;;  %v557_v48 = vadd.s32 %v11929_v58, %v11923_v19  ;;  %v734_v63 = vor.u32 %v733_v8, %v732_v1 }
 0x2bf   : > { %vm12085_vm12 = vcmp.le.f32.partialorder %v15970_v39, 0.7853982  ;;  %v572_v7 = vsel %vm8149_vm0, 0, %v8148_v25  ;;  %v12097_v28 = vshrl.u32 %v978_v41, 30  ;;  %v728_v24 = vor.u32 %v727_v61, %v726_v56  ;;  %v15973_v61 = vld [vmem:[#allocation32_spill] sm:$0xff]  ;;  %v15974_v56 = vld [vmem:[#allocation49_spill] sm:$0xff] }
 0x2c0   : > { %v573_v39 = vsub.s32 32, %v572_v7  ;;  %v577_v53 = vsub.s32 4294967266, %v572_v7  ;;  %v731_v16 = vor.u32 %v730_v35, %v729_v55  ;;  %v3687_v51 = vsub.s32 0, %v12072_v42 }
 0x2c1   : > { %v588_v15 = vsel %vm503_vm10, %v587_v40, %v11990_v62  ;;  %v980_v60 = vshll.u32 %v12097_v28, 30  ;;  %v725_v20 = vshrl.u32 %v15818_v10, %v15968_v4  ;;  %v574_v19 = vshll.u32 %v12020_v17, %v572_v7 }
 0x2c2   : > { %v575_v58 = vshrl.u32 %v557_v48, %v573_v39  ;;  %v578_v25 = vadd.s32 127, %v577_v53  ;;  %v717_v41 = vor.u32 8388608, %v716_v32  ;;  %vm741_vm9 = vcmp.lt.s32.totalorder %v15973_v61, 1  ;;  %v15975_v32 = vld [vmem:[#allocation51_spill] sm:$0xff]  ;;  %v15976_v48 = vld [vmem:[#allocation48_spill] sm:$0xff] }
 0x2c3   : > { %v12107_v1 = vsub.s32 %v977_v31, %v980_v60  ;;  %vm743_vm0 = vcmp.lt.s32.totalorder %v15973_v61, 3  ;;  %v746_v35 = vsel %vm744_vm7, %v734_v63, 2102212464  ;;  %v749_v8 = vsel %vm741_vm9, %v728_v24, %v731_v16 }
 0x2c4   : > { %v576_v62 = vor.u32 %v575_v58, %v574_v19  ;;  %v579_v40 = vshll.u32 %v578_v25, 23  ;;  %v751_v55 = vsel %vm743_vm0, %v734_v63, %v15974_v56  ;;  %vm742_vm14 = vcmp.lt.s32.totalorder %v15973_v61, 2 }
 0x2c5   : > { %v983_v4 = vsub.s32 0, %v12107_v1  ;;  %v745_v17 = vsel %vm741_vm9, %v725_v20, %v728_v24  ;;  %v753_v53 = vsel %vm741_vm9, %v731_v16, %v734_v63  ;;  %v747_v31 = vsel %vm743_vm0, %v731_v16, %v746_v35 }
 0x2c6   : > { %v580_v60 = vor.u32 4788187, %v579_v40  ;;  %v755_v7 = vsel %vm743_vm0, %v15976_v48, %v15975_v32  ;;  %v757_v39 = vshll.u32 %v717_v41, 8  ;;  %v590_v11 = vsel %vm12085_vm12, 0, %v588_v15 }
 0x2c7   : > { %v8163_v19 = vmin.u32 %v983_v4, %v12107_v1  ;;  %v752_v58 = vsel %vm742_vm14, %v749_v8, %v751_v55  ;;  %v756_v25 = vsel %vm742_vm14, %v753_v53, %v755_v7  ;;  %v583_v24 = vcvt.s32.f32 %v576_v62 }
 0x2c8   : > { %v581_v56 = vand.u32 2147483647, %v580_v60  ;;  %v12125_v63 = vmul.u32.u64.low %v757_v39, %v756_v25  ;;  %v12126_v20 = vmul.u32.u64.high %v757_v39, %v756_v25, %v12125_v63  ;;  %v748_v15 = vsel %vm742_vm14, %v745_v17, %v747_v31  ;;  %v15977_v60 = vld [vmem:[#allocation41_spill] sm:$0xff] }
 0x2c9   : > { %v985_v35 = vclz %v8163_v19  ;;  %vm919_vm7 = vcmp.lt.s32.totalorder %v15953_v29, 0  ;;  %v12134_v8 = vmul.u32.u64.low %v757_v39, %v752_v58  ;;  %v12135_v55 = vmul.u32.u64.high %v757_v39, %v752_v58, %v12134_v8  ;;  %v15982_v58 = vld [vmem:[#allocation67_spill] sm:$0xff] }
 0x2ca   : > { %v584_v40 = vmul.f32 %v583_v24, %v581_v56  ;;  %v12139_v62 = vmin.u32 %v3687_v51, %v12072_v42  ;;  %v594_v4 = vadd.s32 3, %v590_v11  ;;  %v15552_v32 = vand.u32 2147483647, %v15977_v60  ;;  %v15981_v11 = vld [vmem:[#allocation63_spill] sm:$0xff] }
 0x2cb   : > { %v8164_v53 = vadd.s32 4294967294, %v985_v35  ;;  %v973_v7 = vadd.s32 %v12006_v57, %v12000_v18  ;;  %v1003_v61 = vsub.s32 4, %v12097_v28  ;;  %v764_v17 = vmul.u32 %v757_v39, %v748_v15 }
 0x2cc   : > { %v585_v48 = vxor.u32 2147483648, %v584_v40  ;;  %v15978_v31 = vand.u32 2147483647, %v15953_v29  ;;  %vm766_vm0 = vc.u32 %v12126_v20, %v12134_v8  ;;  %v1142_v51 = vshll.u32 %v15818_v10, %v15981_v11 }
 0x2cd   : > { %vm8165_vm9 = vcmp.lt.s32.totalorder %v8164_v53, 0  ;;  %v1143_v25 = vshrl.u32 %v15819_v5, %v15982_v58  ;;  %v767_v39 = vadd.s32 1, %v12135_v55  ;;  %v1146_v56 = vshrl.u32 %v15820_v33, %v15982_v58 }
 0x2ce   : > { %vm12147_vm14 = vcmp.le.f32.partialorder %v15978_v31, 0.7853982  ;;  %v586_v18 = vsel %vm503_vm10, %v585_v48, %v584_v40  ;;  %v988_v57 = vsel %vm8165_vm9, 0, %v8164_v53  ;;  %v1132_v15 = vand.u32 8388607, %v15552_v32 }
 0x2cf   : > { %v589_v24 = vsel %vm12085_vm12, %v15945_v59, %v586_v18  ;;  %v989_v63 = vsub.s32 32, %v988_v57  ;;  %v993_v35 = vsub.s32 4294967266, %v988_v57  ;;  %v990_v31 = vshll.u32 %v12107_v1, %v988_v57 }
 0x2d0   : > { %9269 = vcosq.f32 %v589_v24  ;;  %v768_v40 = vsel %vm766_vm0, %v767_v39, %v12135_v55  ;;  %v1145_v53 = vshll.u32 %v15819_v5, %v15981_v11  ;;  %v1144_v3 = vor.u32 %v1143_v25, %v1142_v51  ;;  %v15985_v25 = vld [vmem:[#allocation75_spill] sm:$0xff] }
 0x2d1   : > { %9271 = vsinq.f32 %v589_v24  ;;  %v991_v48 = vshrl.u32 %v973_v7, %v989_v63  ;;  %v994_v16 = vadd.s32 127, %v993_v35  ;;  %v769_v41 = vadd.s32 %v768_v40, %v764_v17  ;;  %v15983_v24 = vld [vmem:[#allocation69_spill] sm:$0xff] }
 0x2d2   : > { %v1147_v47 = vor.u32 %v1146_v56, %v1145_v53  ;;  %v1148_v18 = vshll.u32 %v15820_v33, %v15981_v11  ;;  %v1149_v32 = vshrl.u32 %v15815_v45, %v15982_v58  ;;  %v1004_v1 = vsel %vm919_vm7, %v1003_v61, %v12097_v28  ;;  %v15984_v11 = vld [vmem:[#allocation81_spill] sm:$0xff] }
 0x2d3   : > { %v992_v50 = vor.u32 %v991_v48, %v990_v31  ;;  %v995_v23 = vshll.u32 %v994_v16, 23  ;;  %v770_v55 = vadd.s32 536870912, %v769_v41  ;;  %v595_v57 = vand.u32 3, %v594_v4  ;;  %v15986_v4 = vld [vmem:[#allocation80_spill] sm:$0xff] }
 0x2d4   : > { %v1133_v39 = vor.u32 8388608, %v1132_v15  ;;  %v1150_v7 = vor.u32 %v1149_v32, %v1148_v18  ;;  %vm1159_vm10 = vcmp.lt.s32.totalorder %v15983_v24, 3  ;;  %vm1157_vm12 = vcmp.lt.s32.totalorder %v15983_v24, 1 }
 0x2d5   : > { %v996_v17 = vor.u32 4788187, %v995_v23  ;;  %v771_v51 = vshrl.u32 %v770_v55, 30  ;;  %v1171_v56 = vsel %vm1159_vm10, %v15985_v25, %v15984_v11  ;;  %v1006_v16 = vsel %vm12147_vm14, 0, %v1004_v1 }
 0x2d6   : > { %v1165_v28 = vsel %vm1157_vm12, %v1144_v3, %v1147_v47  ;;  %v1167_v32 = vsel %vm1159_vm10, %v1150_v7, %v15986_v4  ;;  %v1169_v23 = vsel %vm1157_vm12, %v1147_v47, %v1150_v7  ;;  %vm593_vm9 = vweird.f32 %v15945_v59 }
 0x2d7   : > { %v997_v61 = vand.u32 2147483647, %v996_v17  ;;  %v999_v63 = vcvt.s32.f32 %v992_v50  ;;  %vm711_vm0 = vcmp.lt.s32.totalorder %v15967_v46, 0  ;;  %v772_v35 = vshll.u32 %v771_v51, 30 }
 0x2d8   : > { %vm1158_vm15 = vcmp.lt.s32.totalorder %v15983_v24, 2  ;;  %vm600_vm3 = vcmp.eq.s32.totalorder %v595_v57, 2  ;;  %v1141_v15 = vshrl.u32 %v15818_v10, %v15982_v58  ;;  %v1173_v40 = vshll.u32 %v1133_v39, 8 }
 0x2d9   : > { %v1172_v31 = vsel %vm1158_vm15, %v1169_v23, %v1171_v56  ;;  %v1000_v53 = vmul.f32 %v999_v63, %v997_v61  ;;  %v12200_v48 = vsub.s32 %v769_v41, %v772_v35  ;;  %v1162_v18 = vsel %vm1160_vm8, %v1150_v7, 2102212464 }
 0x2da   : > { %v1168_v50 = vsel %vm1158_vm15, %v1165_v28, %v1167_v32  ;;  %v9270_v1 = vpop.eup %9269  ;;  %v1010_v55 = vadd.s32 3, %v1006_v16  ;;  %v1161_v17 = vsel %vm1157_vm12, %v1141_v15, %v1144_v3  ;;  %v795_v4 = vsub.s32 4, %v771_v51 }
 0x2db   : > { %v12208_v11 = vmul.u32.u64.low %v1173_v40, %v1172_v31  ;;  %v12209_v58 = vmul.u32.u64.high %v1173_v40, %v1172_v31, %v12208_v11  ;;  %v9272_v25 = vpop.eup %9271  ;;  %v601_v56 = vxor.u32 2147483648, %v9270_v1  ;;  %v1001_v39 = vxor.u32 2147483648, %v1000_v53 }
 0x2dc   : > { %v775_v41 = vsub.s32 0, %v12200_v48  ;;  %v598_v23 = vxor.u32 2147483648, %v9272_v25  ;;  %v1163_v7 = vsel %vm1159_vm10, %v1147_v47, %v1162_v18  ;;  %vm597_vm8 = vcmp.eq.s32.totalorder %v595_v57, 0 }
 0x2dd   : > { %v12214_v61 = vmul.u32.u64.low %v1173_v40, %v1168_v50  ;;  %v12215_v28 = vmul.u32.u64.high %v1173_v40, %v1168_v50, %v12214_v61  ;;  %v602_v3 = vsel %vm600_vm3, %v601_v56, %v9272_v25  ;;  %v1002_v16 = vsel %vm919_vm7, %v1001_v39, %v1000_v53 }
 0x2de   : > { %v8155_v32 = vmin.u32 %v775_v41, %v12200_v48  ;;  %vm596_vm12 = vcmp.lt.s32.totalorder %v595_v57, 2  ;;  %v599_v63 = vsel %vm597_vm8, %v9270_v1, %v598_v23  ;;  %v1005_v35 = vsel %vm12147_vm14, %v15953_v29, %v1002_v16 }
 0x2df   : > { %v12225_v15 = vand.u32 3, %v1010_v55  ;;  %v603_v47 = vsel %vm596_vm12, %v599_v63, %v602_v3  ;;  %9273 = vcosq.f32 %v1005_v35  ;;  %v1164_v18 = vsel %vm1158_vm15, %v1161_v17, %v1163_v7  ;;  %v15987_v55 = vld [vmem:[#allocation13_spill] sm:$0xff]  ;;  %v15993_v3 = vld [vmem:[#allocation24_spill] sm:$0xff]  ;;  %v15994_v63 = vld [vmem:[#allocation22_spill] sm:$0xff] }
 0x2e0   : > { %v777_v31 = vclz %v8155_v32  ;;  %v12231_v50 = vsel %vm593_vm9, nan, %v603_v47  ;;  %9275 = vsinq.f32 %v1005_v35  ;;  %v796_v57 = vsel %vm711_vm0, %v795_v4, %v771_v51 }
 0x2e1   : > { %vm1182_vm3 = vc.u32 %v12209_v58, %v12214_v61  ;;  %v15560_v19 = vand.u32 4294901760, %v12231_v50  ;;  %v1183_v1 = vadd.s32 1, %v12215_v28  ;;  %v15559_v11 = vand.u32 2147483647, %v15987_v55 }
 0x2e2   : > { %v8156_v53 = vadd.s32 4294967294, %v777_v31  ;;  %v15988_v24 = vsub.s32 32, %v12048_v6  ;;  %v15989_v25 = vand.u32 2147483647, %v15967_v46  ;;  %v1180_v56 = vmul.u32 %v1173_v40, %v1164_v18 }
 0x2e3   : > { %v12255_v39 = vsub.f32 %v12231_v50, %v15560_v19  ;;  %v765_v41 = vadd.s32 %v12134_v8, %v12126_v20  ;;  %vm1013_vm14 = vcmp.eq.s32.totalorder %v12225_v15, 0  ;;  %v415_v40 = vshrl.u32 %v15819_v5, %v15993_v3 }
 0x2e4   : > { %v12243_v59 = vshrl.u32 %v12065_v38, %v15988_v24  ;;  %vm12248_vm15 = vcmp.le.f32.partialorder %v15989_v25, 0.7853982  ;;  %vm8157_vm7 = vcmp.lt.s32.totalorder %v8156_v53, 0  ;;  %v1184_v38 = vsel %vm1182_vm3, %v1183_v1, %v12215_v28 }
 0x2e5   : > { %15992 = vst [vmem:[#allocation42_spill] sm:$0xff] %v12255_v39  ;;  %v780_v4 = vsel %vm8157_vm7, 0, %v8156_v53  ;;  %v798_v23 = vsel %vm12248_vm15, 0, %v796_v57  ;;  %v1185_v7 = vadd.s32 %v1184_v38, %v1180_v56  ;;  %vm1012_vm10 = vcmp.lt.s32.totalorder %v12225_v15, 2 }
 0x2e6   : > { %v781_v16 = vsub.s32 32, %v780_v4  ;;  %v785_v32 = vsub.s32 4294967266, %v780_v4  ;;  %v404_v20 = vand.u32 8388607, %v15559_v11  ;;  %v418_v8 = vshrl.u32 %v15820_v33, %v15993_v3 }
 0x2e7   : > { %vm1009_vm9 = vweird.f32 %v15953_v29  ;;  %v1186_v28 = vadd.s32 536870912, %v1185_v7  ;;  %v414_v35 = vshll.u32 %v15818_v10, %v15994_v63  ;;  %v417_v47 = vshll.u32 %v15819_v5, %v15994_v63 }
 0x2e8   : > { %v421_v31 = vshrl.u32 %v15815_v45, %v15993_v3  ;;  %vm1016_vm8 = vcmp.eq.s32.totalorder %v12225_v15, 2  ;;  %v782_v18 = vshll.u32 %v12200_v48, %v780_v4  ;;  %v783_v57 = vshrl.u32 %v765_v41, %v781_v16 }
 0x2e9   : > { %v786_v53 = vadd.s32 127, %v785_v32  ;;  %v12279_v1 = vshrl.u32 %v1186_v28, 30  ;;  %v416_v24 = vor.u32 %v415_v40, %v414_v35  ;;  %v419_v25 = vor.u32 %v418_v8, %v417_v47  ;;  %v9274_v38 = vpop.eup %9273  ;;  %v15995_v40 = vld [vmem:[#allocation26_spill] sm:$0xff] }
 0x2ea   : > { %v420_v56 = vshll.u32 %v15820_v33, %v15994_v63  ;;  %v784_v11 = vor.u32 %v783_v57, %v782_v18  ;;  %v802_v19 = vadd.s32 3, %v798_v23  ;;  %v413_v39 = vshrl.u32 %v15818_v10, %v15993_v3  ;;  %v9276_v26 = vpop.eup %9275  ;;  %v15997_v35 = vld [vmem:[#allocation34_spill] sm:$0xff] }
 0x2eb   : > { %v787_v17 = vshll.u32 %v786_v53, 23  ;;  %v1017_v0 = vxor.u32 2147483648, %v9274_v38  ;;  %v1188_v48 = vshll.u32 %v12279_v1, 30  ;;  %v405_v41 = vor.u32 8388608, %v404_v20 }
 0x2ec   : > { %v422_v4 = vor.u32 %v421_v31, %v420_v56  ;;  %v1014_v16 = vxor.u32 2147483648, %v9276_v26  ;;  %vm429_vm12 = vcmp.lt.s32.totalorder %v15995_v40, 1  ;;  %vm430_vm3 = vcmp.lt.s32.totalorder %v15995_v40, 2  ;;  %v15998_v31 = vld [vmem:[#allocation37_spill] sm:$0xff] }
 0x2ed   : > { %v788_v32 = vor.u32 4788187, %v787_v17  ;;  %v1018_v8 = vsel %vm1016_vm8, %v1017_v0, %v9276_v26  ;;  %v12290_v28 = vsub.s32 %v1185_v7, %v1188_v48  ;;  %vm431_vm7 = vcmp.lt.s32.totalorder %v15995_v40, 3  ;;  %v15996_v17 = vld [vmem:[#allocation39_spill] sm:$0xff] }
 0x2ee   : > { %v437_v23 = vsel %vm429_vm12, %v416_v24, %v419_v25  ;;  %v1015_v3 = vsel %vm1013_vm14, %v9274_v38, %v1014_v16  ;;  %v791_v63 = vcvt.s32.f32 %v784_v11  ;;  %v443_v47 = vsel %vm431_vm7, %v15997_v35, %v15996_v17 }
 0x2ef   : > { %v789_v20 = vand.u32 2147483647, %v788_v32  ;;  %v1019_v26 = vsel %vm1012_vm10, %v1015_v3, %v1018_v8  ;;  %v1191_v0 = vsub.s32 0, %v12290_v28  ;;  %v434_v7 = vsel %vm432_vm4, %v422_v4, 2102212464 }
 0x2f0   : > { %v439_v18 = vsel %vm431_vm7, %v422_v4, %v15998_v31  ;;  %v1020_v11 = vsel %vm1009_vm9, nan, %v1019_v26  ;;  %v441_v53 = vsel %vm429_vm12, %v419_v25, %v422_v4  ;;  %v445_v56 = vshll.u32 %v405_v41, 8  ;;  %v16004_v31 = vld [vmem:[#allocation18_spill] sm:$0xff] }
 0x2f1   : > { %v792_v57 = vmul.f32 %v791_v63, %v789_v20  ;;  %v3794_v38 = vand.u32 4294901760, %v1020_v11  ;;  %v8171_v15 = vmin.u32 %v1191_v0, %v12290_v28  ;;  %v433_v48 = vsel %vm429_vm12, %v413_v39, %v416_v24 }
 0x2f2   : > { %v444_v16 = vsel %vm430_vm3, %v441_v53, %v443_v47  ;;  %v440_v8 = vsel %vm430_vm3, %v437_v23, %v439_v18  ;;  %v15999_v20 = vand.u32 4294901760, %v12231_v50  ;;  %v435_v39 = vsel %vm431_vm7, %v419_v25, %v434_v7 }
 0x2f3   : > { %v793_v32 = vxor.u32 2147483648, %v792_v57  ;;  %v12320_v29 = vmul.u32.u64.low %v445_v56, %v444_v16  ;;  %v12321_v3 = vmul.u32.u64.high %v445_v56, %v444_v16, %v12320_v29  ;;  %v12327_v41 = vsub.f32 %v1020_v11, %v3794_v38 }
 0x2f4   : > { %v12325_v4 = vpack.c.bf16 %v3794_v38, %v15999_v20  ;;  %v1193_v63 = vclz %v8171_v15  ;;  %v16002_v24 = vsub.s32 4294967266, %v12048_v6  ;;  %v16003_v35 = vclz %v12139_v62  ;;  %v16008_v29 = vld [vmem:[#allocation58_spill] sm:$0xff] }
 0x2f5   : > { %16001 = vst [vmem:[#allocation36_spill] sm:$0xff] %v12327_v41  ;;  %v794_v47 = vsel %vm711_vm0, %v793_v32, %v792_v57  ;;  %v1211_v50 = vsub.s32 4, %v12279_v1  ;;  %v12346_v0 = vmul.u32.u64.low %v445_v56, %v440_v8  ;;  %v12347_v7 = vmul.u32.u64.high %v445_v56, %v440_v8, %v12346_v0 }
 0x2f6   : > { %16000 = vst [vmem:[#allocation43_spill] sm:$0xff] %v12325_v4  ;;  %v12333_v17 = vadd.s32 127, %v16002_v24  ;;  %v12337_v23 = vadd.s32 4294967294, %v16003_v35  ;;  %8278 = vmatprep.subr.bf16.mxu0 %v12325_v4  ;;  %v797_v26 = vsel %vm12248_vm15, %v15967_v46, %v794_v47  ;;  %v8172_v25 = vadd.s32 4294967294, %v1193_v63 }
 0x2f7   : > { %9277 = vcosq.f32 %v797_v26  ;;  %vm1127_vm4 = vcmp.lt.s32.totalorder %v15977_v60, 0  ;;  %v436_v62 = vsel %vm430_vm3, %v433_v48, %v435_v39  ;;  %v15564_v18 = vand.u32 2147483647, %v16004_v31  ;;  %v16009_v39 = vld [vmem:[#allocation52_spill] sm:$0xff] }
 0x2f8   : > { %9279 = vsinq.f32 %v797_v26  ;;  %v803_v11 = vand.u32 3, %v802_v19  ;;  %v16005_v57 = vand.u32 2147483647, %v15977_v60  ;;  %vm8173_vm15 = vcmp.lt.s32.totalorder %v8172_v25, 0 }
 0x2f9   : > { %v1181_v53 = vadd.s32 %v12214_v61, %v12209_v58  ;;  %v1196_v38 = vsel %vm8173_vm15, 0, %v8172_v25  ;;  %v1212_v40 = vsel %vm1127_vm4, %v1211_v50, %v12279_v1  ;;  %vm454_vm14 = vc.u32 %v12321_v3, %v12346_v0 }
 0x2fa   : > { %vm12356_vm0 = vcmp.le.f32.partialorder %v16005_v57, 0.7853982  ;;  %v1197_v15 = vsub.s32 32, %v1196_v38  ;;  %v1201_v19 = vsub.s32 4294967266, %v1196_v38  ;;  %v452_v48 = vmul.u32 %v445_v56, %v436_v62 }
 0x2fb   : > { %v455_v16 = vadd.s32 1, %v12347_v7  ;;  %v1198_v32 = vshll.u32 %v12290_v28, %v1196_v38  ;;  %v820_v8 = vand.u32 8388607, %v15564_v18  ;;  %v831_v58 = vshrl.u32 %v15819_v5, %v16008_v29 }
 0x2fc   : > { %v834_v61 = vshrl.u32 %v15820_v33, %v16008_v29  ;;  %v1199_v1 = vshrl.u32 %v1181_v53, %v1197_v15  ;;  %v1202_v20 = vadd.s32 127, %v1201_v19  ;;  %v833_v56 = vshll.u32 %v15819_v5, %v16009_v39 }
 0x2fd   : > { %v456_v63 = vsel %vm454_vm14, %v455_v16, %v12347_v7  ;;  %vm804_vm10 = vcmp.lt.s32.totalorder %v803_v11, 2  ;;  %v830_v28 = vshll.u32 %v15818_v10, %v16009_v39  ;;  %v836_v35 = vshll.u32 %v15820_v33, %v16009_v39  ;;  %v16010_v39 = vld [vmem:[#allocation53_spill] sm:$0xff] }
 0x2fe   : > { %v457_v24 = vadd.s32 %v456_v63, %v452_v48  ;;  %v837_v47 = vshrl.u32 %v15815_v45, %v16008_v29  ;;  %vm801_vm9 = vweird.f32 %v15967_v46  ;;  %vm805_vm8 = vcmp.eq.s32.totalorder %v803_v11, 0 }
 0x2ff   : > { %v1200_v50 = vor.u32 %v1199_v1, %v1198_v32  ;;  %v1203_v26 = vshll.u32 %v1202_v20, 23  ;;  %v835_v25 = vor.u32 %v834_v61, %v833_v56  ;;  %vm808_vm12 = vcmp.eq.s32.totalorder %v803_v11, 2  ;;  %v16011_v20 = vld [vmem:[#allocation74_spill] sm:$0xff] }
 0x300   : > { %v458_v7 = vadd.s32 536870912, %v457_v24  ;;  %v832_v62 = vor.u32 %v831_v58, %v830_v28  ;;  %v838_v57 = vor.u32 %v837_v47, %v836_v35  ;;  %v1214_v38 = vsel %vm12356_vm0, 0, %v1212_v40  ;;  %v16012_v40 = vld [vmem:[#allocation65_spill] sm:$0xff] }
 0x301   : > { %v1204_v53 = vor.u32 4788187, %v1203_v26  ;;  %v821_v15 = vor.u32 8388608, %v820_v8  ;;  %v829_v19 = vshrl.u32 %v15818_v10, %v16008_v29  ;;  %v9278_v48 = vpop.eup %9277  ;;  %v1207_v16 = vcvt.s32.f32 %v1200_v50  ;;  %v16013_v26 = vld [vmem:[#allocation71_spill] sm:$0xff] }
 0x302   : > { %v12389_v63 = vshrl.u32 %v458_v7, 30  ;;  %vm845_vm3 = vcmp.lt.s32.totalorder %v16010_v39, 1  ;;  %vm847_vm7 = vcmp.lt.s32.totalorder %v16010_v39, 3  ;;  %v9280_v32 = vpop.eup %9279  ;;  %v809_v61 = vxor.u32 2147483648, %v9278_v48 }
 0x303   : > { %v1205_v58 = vand.u32 2147483647, %v1204_v53  ;;  %v857_v1 = vsel %vm845_vm3, %v835_v25, %v838_v57  ;;  %v859_v8 = vsel %vm847_vm7, %v16012_v40, %v16011_v20  ;;  %v806_v29 = vxor.u32 2147483648, %v9280_v32 }
 0x304   : > { %v460_v56 = vshll.u32 %v12389_v63, 30  ;;  %vm846_vm15 = vcmp.lt.s32.totalorder %v16010_v39, 2  ;;  %v853_v28 = vsel %vm845_vm3, %v832_v62, %v835_v25  ;;  %v810_v35 = vsel %vm808_vm12, %v809_v61, %v9280_v32 }
 0x305   : > { %v1208_v47 = vmul.f32 %v1207_v16, %v1205_v58  ;;  %v850_v50 = vsel %vm848_vm13, %v838_v57, 2102212464  ;;  %v855_v7 = vsel %vm847_vm7, %v838_v57, %v16013_v26  ;;  %v807_v53 = vsel %vm805_vm8, %v9278_v48, %v806_v29 }
 0x306   : > { %v1218_v20 = vadd.s32 3, %v1214_v38  ;;  %v12410_v40 = vsub.s32 %v457_v24, %v460_v56  ;;  %v860_v18 = vsel %vm846_vm15, %v857_v1, %v859_v8  ;;  %v811_v4 = vsel %vm804_vm10, %v807_v53, %v810_v35  ;;  %v16014_v1 = vld [vmem:[#allocation14_spill] sm:$0xff] }
 0x307   : > { %v1209_v41 = vxor.u32 2147483648, %v1208_v47  ;;  %v849_v16 = vsel %vm845_vm3, %v829_v19, %v832_v62  ;;  %v861_v32 = vshll.u32 %v821_v15, 8  ;;  %v12419_v61 = vsel %vm801_vm9, nan, %v811_v4 }
 0x308   : > { %v463_v57 = vsub.s32 0, %v12410_v40  ;;  %v851_v24 = vsel %vm847_vm7, %v835_v25, %v850_v50  ;;  %v856_v38 = vsel %vm846_vm15, %v853_v28, %v855_v7  ;;  %v4780_v48 = vand.u32 4294901760, %v12419_v61 }
 0x309   : > { %v1210_v11 = vsel %vm1127_vm4, %v1209_v41, %v1208_v47  ;;  %v12429_v58 = vmul.u32.u64.low %v861_v32, %v860_v18  ;;  %v12430_v62 = vmul.u32.u64.high %v861_v32, %v860_v18, %v12429_v58  ;;  %vm8269_vm13 = vcmp.lt.s32.totalorder %v12337_v23, 0 }
 0x30a   : > { %v1213_v46 = vsel %vm12356_vm0, %v15977_v60, %v1210_v11  ;;  %v12436_v4 = vand.u32 3, %v1218_v20  ;;  %v8143_v25 = vmin.u32 %v463_v57, %v12410_v40  ;;  %v12442_v41 = vsub.f32 %v12419_v61, %v4780_v48 }
 0x30b   : > { %9281 = vcosq.f32 %v1213_v46  ;;  %v12444_v15 = vmul.u32.u64.low %v861_v32, %v856_v38  ;;  %v12445_v19 = vmul.u32.u64.high %v861_v32, %v856_v38, %v12444_v15  ;;  %v852_v51 = vsel %vm846_vm15, %v849_v16, %v851_v24  ;;  %v16019_v16 = vld [vmem:[#allocation25_spill] sm:$0xff] }
 0x30c   : > { %9283 = vsinq.f32 %v1213_v46  ;;  %v465_v18 = vclz %v8143_v25  ;;  %v15568_v8 = vand.u32 2147483647, %v16014_v1  ;;  %v16015_v29 = vand.u32 2147483647, %v12040_v36 }
 0x30d   : > { %v16016_v56 = vcvt.s32.f32 %v12038_v22  ;;  %v16017_v35 = vshll.u32 %v11878_v49, %v12048_v6  ;;  %v12466_v39 = vadd.s32 %v11869_v43, %v11875_v52  ;;  %v12471_v36 = vsel %vm8269_vm13, 0, %v12337_v23  ;;  %v16018_v43 = vld [vmem:[#allocation31_spill] sm:$0xff] }
 0x30e   : > { %vm399_vm4 = vcmp.lt.s32.totalorder %v15987_v55, 0  ;;  %v8144_v22 = vadd.s32 4294967294, %v465_v18  ;;  %vm870_vm0 = vc.u32 %v12430_v62, %v12444_v15  ;;  %vm1224_vm14 = vcmp.eq.s32.totalorder %v12436_v4, 2 }
 0x30f   : > { %v12455_v28 = vmul.f32 %v16016_v56, %v16015_v29  ;;  %v12461_v47 = vor.u32 %v12243_v59, %v16017_v35  ;;  %v483_v49 = vsub.s32 4, %v12389_v63  ;;  %v868_v6 = vmul.u32 %v861_v32, %v852_v51 }
 0x310   : > { %v871_v59 = vadd.s32 1, %v12445_v19  ;;  %v626_v52 = vshrl.u32 %v15820_v33, %v16018_v43  ;;  %vm1221_vm10 = vcmp.eq.s32.totalorder %v12436_v4, 0  ;;  %vm8145_vm9 = vcmp.lt.s32.totalorder %v8144_v22, 0 }
 0x311   : > { %v612_v23 = vand.u32 8388607, %v15568_v8  ;;  %v623_v26 = vshrl.u32 %v15819_v5, %v16018_v43  ;;  %v629_v7 = vshrl.u32 %v15815_v45, %v16018_v43  ;;  %vm1220_vm8 = vcmp.lt.s32.totalorder %v12436_v4, 2 }
 0x312   : > { %v468_v53 = vsel %vm8145_vm9, 0, %v8144_v22  ;;  %v872_v20 = vsel %vm870_vm0, %v871_v59, %v12445_v19  ;;  %v625_v32 = vshll.u32 %v15819_v5, %v16019_v16  ;;  %v628_v57 = vshll.u32 %v15820_v33, %v16019_v16 }
 0x313   : > { %vm1217_vm12 = vweird.f32 %v15977_v60  ;;  %v16020_v24 = vand.u32 2147483647, %v15987_v55  ;;  %v453_v11 = vadd.s32 %v12346_v0, %v12321_v3  ;;  %v469_v58 = vsub.s32 32, %v468_v53  ;;  %v16023_v0 = vld [vmem:[#allocation30_spill] sm:$0xff] }
 0x314   : > { %v473_v46 = vsub.s32 4294967266, %v468_v53  ;;  %v873_v25 = vadd.s32 %v872_v20, %v868_v6  ;;  %v484_v19 = vsel %vm399_vm4, %v483_v49, %v12389_v63  ;;  %v622_v18 = vshll.u32 %v15818_v10, %v16019_v16 }
 0x315   : > { %vm12497_vm3 = vcmp.le.f32.partialorder %v16020_v24, 0.7853982  ;;  %v627_v51 = vor.u32 %v626_v52, %v625_v32  ;;  %v630_v29 = vor.u32 %v629_v7, %v628_v57  ;;  %v470_v56 = vshll.u32 %v12410_v40, %v468_v53  ;;  %v9282_v24 = vpop.eup %9281  ;;  %v16024_v52 = vld [vmem:[#allocation46_spill] sm:$0xff]  ;;  %v16025_v7 = vld [vmem:[#allocation40_spill] sm:$0xff] }
 0x316   : > { %v471_v35 = vshrl.u32 %v453_v11, %v469_v58  ;;  %v474_v22 = vadd.s32 127, %v473_v46  ;;  %v874_v59 = vadd.s32 536870912, %v873_v25  ;;  %v613_v8 = vor.u32 8388608, %v612_v23  ;;  %v9284_v6 = vpop.eup %9283 }
 0x317   : > { %v624_v3 = vor.u32 %v623_v26, %v622_v18  ;;  %vm637_vm7 = vcmp.lt.s32.totalorder %v16023_v0, 1  ;;  %vm639_vm15 = vcmp.lt.s32.totalorder %v16023_v0, 3  ;;  %v1225_v20 = vxor.u32 2147483648, %v9282_v24  ;;  %v16026_v18 = vld [vmem:[#allocation44_spill] sm:$0xff] }
 0x318   : > { %v472_v63 = vor.u32 %v471_v35, %v470_v56  ;;  %v475_v49 = vshll.u32 %v474_v22, 23  ;;  %v875_v50 = vshrl.u32 %v874_v59, 30  ;;  %v1222_v16 = vxor.u32 2147483648, %v9284_v6 }
 0x319   : > { %vm638_vm13 = vcmp.lt.s32.totalorder %v16023_v0, 2  ;;  %v649_v40 = vsel %vm637_vm7, %v627_v51, %v630_v29  ;;  %v651_v23 = vsel %vm639_vm15, %v16025_v7, %v16024_v52  ;;  %v1226_v26 = vsel %vm1224_vm14, %v1225_v20, %v9284_v6 }
 0x31a   : > { %v476_v53 = vor.u32 4788187, %v475_v49  ;;  %v876_v32 = vshll.u32 %v875_v50, 30  ;;  %v642_v57 = vsel %vm640_vm6, %v630_v29, 2102212464  ;;  %v1223_v11 = vsel %vm1221_vm10, %v9282_v24, %v1222_v16 }
 0x31b   : > { %v479_v58 = vcvt.s32.f32 %v472_v63  ;;  %v645_v46 = vsel %vm637_vm7, %v624_v3, %v627_v51  ;;  %v647_v56 = vsel %vm639_vm15, %v630_v29, %v16026_v18  ;;  %v1227_v35 = vsel %vm1220_vm8, %v1223_v11, %v1226_v26 }
 0x31c   : > { %v477_v22 = vand.u32 2147483647, %v476_v53  ;;  %v12531_v59 = vsub.s32 %v873_v25, %v876_v32  ;;  %v652_v6 = vsel %vm638_vm13, %v649_v40, %v651_v23  ;;  %v1228_v24 = vsel %vm1217_vm12, nan, %v1227_v35 }
 0x31d   : > { %v486_v20 = vsel %vm12497_vm3, 0, %v484_v19  ;;  %v621_v63 = vshrl.u32 %v15818_v10, %v16018_v43  ;;  %v653_v49 = vshll.u32 %v613_v8, 8  ;;  %v4784_v29 = vand.u32 4294901760, %v1228_v24 }
 0x31e   : > { %v480_v16 = vmul.f32 %v479_v58, %v477_v22  ;;  %v879_v4 = vsub.s32 0, %v12531_v59  ;;  %v648_v25 = vsel %vm638_vm13, %v645_v46, %v647_v56  ;;  %v643_v60 = vsel %vm639_vm15, %v627_v51, %v642_v57  ;;  %v16032_v22 = vld [vmem:[#allocation19_spill] sm:$0xff] }
 0x31f   : > { %v641_v40 = vsel %vm637_vm7, %v621_v63, %v624_v3  ;;  %v12548_v52 = vmul.u32.u64.low %v653_v49, %v652_v6  ;;  %v12549_v7 = vmul.u32.u64.high %v653_v49, %v652_v6, %v12548_v52  ;;  %v12553_v43 = vpack.c.bf16 %v4784_v29, %v4780_v48 }
 0x320   : > { %v12555_v8 = vsub.f32 %v1228_v24, %v4784_v29  ;;  %v481_v19 = vxor.u32 2147483648, %v480_v16  ;;  %v8159_v23 = vmin.u32 %v879_v4, %v12531_v59  ;;  %v16028_v26 = vshll.u32 %v12333_v17, 23  ;;  %v16033_v29 = vld [vmem:[#allocation62_spill] sm:$0xff] }
 0x321   : > { %16027 = vst [vmem:[#allocation35_spill] sm:$0xff] %v12553_v43  ;;  %v490_v3 = vadd.s32 3, %v486_v20  ;;  %v12562_v32 = vmul.u32.u64.low %v653_v49, %v648_v25  ;;  %v12563_v11 = vmul.u32.u64.high %v653_v49, %v648_v25, %v12562_v32  ;;  %v3693_v51 = vsub.s32 32, %v12471_v36  ;;  %8374 = vmatprep.subr.bf16.mxu1 %v12553_v43 }
 0x322   : > { %v12560_v53 = vor.u32 4788187, %v16028_v26  ;;  %v482_v61 = vsel %vm399_vm4, %v481_v19, %v480_v16  ;;  %v881_v48 = vclz %v8159_v23  ;;  %v899_v57 = vsub.s32 4, %v875_v50 }
 0x323   : > { %v485_v17 = vsel %vm12497_vm3, %v15987_v55, %v482_v61  ;;  %vm815_vm6 = vcmp.lt.s32.totalorder %v16004_v31, 0  ;;  %v644_v46 = vsel %vm638_vm13, %v641_v40, %v643_v60  ;;  %v16029_v18 = vand.u32 2147483647, %v16004_v31  ;;  %v16034_v40 = vld [vmem:[#allocation57_spill] sm:$0xff] }
 0x324   : > { %9285 = vcosq.f32 %v485_v17  ;;  %v8160_v35 = vadd.s32 4294967294, %v881_v48  ;;  %vm662_vm4 = vc.u32 %v12549_v7, %v12562_v32  ;;  %v15569_v6 = vand.u32 2147483647, %v16032_v22 }
 0x325   : > { %vm12580_vm0 = vcmp.le.f32.partialorder %v16029_v18, 0.7853982  ;;  %9287 = vsinq.f32 %v485_v17  ;;  %v491_v38 = vand.u32 3, %v490_v3  ;;  %v869_v24 = vadd.s32 %v12444_v15, %v12430_v62  ;;  %v16035_v18 = vld [vmem:[#allocation56_spill] sm:$0xff] }
 0x326   : > { %v663_v0 = vadd.s32 1, %v12563_v11  ;;  %vm8161_vm14 = vcmp.lt.s32.totalorder %v8160_v35, 0  ;;  %v12592_v20 = vsel %vm815_vm6, %v899_v57, %v875_v50  ;;  %v660_v63 = vmul.u32 %v653_v49, %v644_v46 }
 0x327   : > { %v1039_v16 = vshrl.u32 %v15819_v5, %v16033_v29  ;;  %v884_v4 = vsel %vm8161_vm14, 0, %v8160_v35  ;;  %v1041_v60 = vshll.u32 %v15819_v5, %v16034_v40  ;;  %v1042_v62 = vshrl.u32 %v15820_v33, %v16033_v29 }
 0x328   : > { %v664_v25 = vsel %vm662_vm4, %v663_v0, %v12563_v11  ;;  %v885_v15 = vsub.s32 32, %v884_v4  ;;  %v889_v52 = vsub.s32 4294967266, %v884_v4  ;;  %v1028_v50 = vand.u32 8388607, %v15569_v6 }
 0x329   : > { %v665_v19 = vadd.s32 %v664_v25, %v660_v63  ;;  %vm493_vm10 = vcmp.eq.s32.totalorder %v491_v38, 0  ;;  %v1038_v49 = vshll.u32 %v15818_v10, %v16034_v40  ;;  %v1043_v23 = vor.u32 %v1042_v62, %v1041_v60 }
 0x32a   : > { %v1044_v26 = vshll.u32 %v15820_v33, %v16034_v40  ;;  %v1045_v3 = vshrl.u32 %v15815_v45, %v16033_v29  ;;  %vm492_vm9 = vcmp.lt.s32.totalorder %v491_v38, 2  ;;  %v886_v11 = vshll.u32 %v12531_v59, %v884_v4  ;;  %v16036_v4 = vld [vmem:[#allocation79_spill] sm:$0xff]  ;;  %v16037_v40 = vld [vmem:[#allocation72_spill] sm:$0xff] }
 0x32b   : > { %v887_v61 = vshrl.u32 %v869_v24, %v885_v15  ;;  %v890_v48 = vadd.s32 127, %v889_v52  ;;  %v666_v57 = vadd.s32 536870912, %v665_v19  ;;  %vm489_vm8 = vweird.f32 %v15987_v55 }
 0x32c   : > { %vm496_vm12 = vcmp.eq.s32.totalorder %v491_v38, 2  ;;  %v1040_v17 = vor.u32 %v1039_v16, %v1038_v49  ;;  %v1046_v46 = vor.u32 %v1045_v3, %v1044_v26  ;;  %vm1053_vm3 = vcmp.lt.s32.totalorder %v16035_v18, 1  ;;  %v16038_v3 = vld [vmem:[#allocation78_spill] sm:$0xff] }
 0x32d   : > { %v888_v35 = vor.u32 %v887_v61, %v886_v11  ;;  %v891_v0 = vshll.u32 %v890_v48, 23  ;;  %v667_v63 = vshrl.u32 %v666_v57, 30  ;;  %vm1055_vm7 = vcmp.lt.s32.totalorder %v16035_v18, 3 }
 0x32e   : > { %v902_v25 = vsel %vm12580_vm0, 0, %v12592_v20  ;;  %v1029_v59 = vor.u32 8388608, %v1028_v50  ;;  %v1065_v24 = vsel %vm1053_vm3, %v1043_v23, %v1046_v46  ;;  %v1067_v16 = vsel %vm1055_vm7, %v16037_v40, %v16036_v4  ;;  %v9286_v60 = vpop.eup %9285 }
 0x32f   : > { %v892_v62 = vor.u32 4788187, %v891_v0  ;;  %v668_v15 = vshll.u32 %v667_v63, 30  ;;  %v1037_v52 = vshrl.u32 %v15818_v10, %v16033_v29  ;;  %vm1054_vm15 = vcmp.lt.s32.totalorder %v16035_v18, 2  ;;  %v9288_v49 = vpop.eup %9287 }
 0x330   : > { %v497_v26 = vxor.u32 2147483648, %v9286_v60  ;;  %v895_v20 = vcvt.s32.f32 %v888_v35  ;;  %v1061_v50 = vsel %vm1053_vm3, %v1040_v17, %v1043_v23  ;;  %v1063_v11 = vsel %vm1055_vm7, %v1046_v46, %v16038_v3 }
 0x331   : > { %v494_v61 = vxor.u32 2147483648, %v9288_v49  ;;  %v893_v48 = vand.u32 2147483647, %v892_v62  ;;  %v12630_v57 = vsub.s32 %v665_v19, %v668_v15  ;;  %v1068_v0 = vsel %vm1054_vm15, %v1065_v24, %v1067_v16 }
 0x332   : > { %v498_v29 = vsel %vm496_vm12, %v497_v26, %v9288_v49  ;;  %v1057_v4 = vsel %vm1053_vm3, %v1037_v52, %v1040_v17  ;;  %vm16039_vm13 = vcmp.lt.s32.totalorder %v16035_v18, 4  ;;  %v1069_v40 = vshll.u32 %v1029_v59, 8  ;;  %v16046_v52 = vld [vmem:[#allocation90_spill] sm:$0xff] }
 0x333   : > { %v1058_v35 = vsel %vm16039_vm13, %v1046_v46, 2102212464  ;;  %v495_v58 = vsel %vm493_vm10, %v9286_v60, %v494_v61  ;;  %v896_v6 = vmul.f32 %v895_v20, %v893_v48  ;;  %v671_v3 = vsub.s32 0, %v12630_v57  ;;  %v16040_v61 = vld [vmem:[#allocation64_spill] sm:$0xff] }
 0x334   : > { %v1064_v19 = vsel %vm1054_vm15, %v1061_v50, %v1063_v11  ;;  %v499_v62 = vsel %vm492_vm9, %v495_v58, %v498_v29  ;;  %v691_v24 = vsub.s32 4, %v667_v63  ;;  %v1059_v60 = vsel %vm1055_vm7, %v1043_v23, %v1058_v35 }
 0x335   : > { %v12644_v16 = vmul.u32.u64.low %v1069_v40, %v1068_v0  ;;  %v12645_v15 = vmul.u32.u64.high %v1069_v40, %v1068_v0, %v12644_v16  ;;  %v12649_v17 = vsel %vm489_vm8, nan, %v499_v62  ;;  %v897_v46 = vxor.u32 2147483648, %v896_v6 }
 0x336   : > { %v8151_v59 = vmin.u32 %v671_v3, %v12630_v57  ;;  %v15571_v49 = vand.u32 4294901760, %v12649_v17  ;;  %v12656_v38 = vmul.u32.u64.low %v1069_v40, %v1064_v19  ;;  %v12657_v58 = vmul.u32.u64.high %v1069_v40, %v1064_v19, %v12656_v38 }
 0x337   : > { %v898_v26 = vsel %vm815_vm6, %v897_v46, %v896_v6  ;;  %v906_v55 = vadd.s32 3, %v902_v25  ;;  %vm607_vm4 = vcmp.lt.s32.totalorder %v16014_v1, 0  ;;  %v1060_v11 = vsel %vm1054_vm15, %v1057_v4, %v1059_v60  ;;  %v16044_v46 = vld [vmem:[#allocation93_spill] sm:$0xff]  ;;  %v16045_v60 = vld [vmem:[#allocation91_spill] sm:$0xff] }
 0x338   : > { %v673_v20 = vclz %v8151_v59  ;;  %v901_v50 = vsel %vm12580_vm0, %v16004_v31, %v898_v26  ;;  %v12669_v23 = vsub.f32 %v12649_v17, %v15571_v49  ;;  %v15570_v48 = vand.u32 2147483647, %v16040_v61  ;;  %v16052_v49 = vld [vmem:[#allocation103_spill] sm:$0xff] }
 0x339   : > { %9289 = vcosq.f32 %v901_v50  ;;  %v692_v25 = vsel %vm607_vm4, %v691_v24, %v667_v63  ;;  %vm1078_vm6 = vc.u32 %v12645_v15, %v12656_v38  ;;  %v12681_v56 = vshrl.u32 %v12466_v39, %v3693_v51 }
 0x33a   : > { %v8152_v6 = vadd.s32 4294967294, %v673_v20  ;;  %9291 = vsinq.f32 %v901_v50  ;;  %v16041_v0 = vand.u32 2147483647, %v16014_v1  ;;  %v1079_v29 = vadd.s32 1, %v12657_v58 }
 0x33b   : > { %v907_v4 = vand.u32 3, %v906_v55  ;;  %v661_v63 = vadd.s32 %v12562_v32, %v12549_v7  ;;  %v1076_v35 = vmul.u32 %v1069_v40, %v1060_v11  ;;  %v1340_v19 = vand.u32 8388607, %v15570_v48 }
 0x33c   : > { %vm12685_vm0 = vcmp.le.f32.partialorder %v16041_v0, 0.7853982  ;;  %vm8153_vm14 = vcmp.lt.s32.totalorder %v8152_v6, 0  ;;  %v1080_v51 = vsel %vm1078_vm6, %v1079_v29, %v12657_v58  ;;  %v1351_v59 = vshrl.u32 %v15819_v5, %v16044_v46 }
 0x33d   : > { %v676_v3 = vsel %vm8153_vm14, 0, %v8152_v6  ;;  %v694_v39 = vsel %vm12685_vm0, 0, %v692_v25  ;;  %v1081_v16 = vadd.s32 %v1080_v51, %v1076_v35  ;;  %v1353_v7 = vshll.u32 %v15819_v5, %v16045_v60 }
 0x33e   : > { %v677_v62 = vsub.s32 32, %v676_v3  ;;  %v681_v24 = vsub.s32 4294967266, %v676_v3  ;;  %v1354_v32 = vshrl.u32 %v15820_v33, %v16044_v46  ;;  %v1356_v40 = vshll.u32 %v15820_v33, %v16045_v60 }
 0x33f   : > { %v1357_v58 = vshrl.u32 %v15815_v45, %v16044_v46  ;;  %vm908_vm10 = vcmp.lt.s32.totalorder %v907_v4, 2  ;;  %v678_v26 = vshll.u32 %v12630_v57, %v676_v3  ;;  %v1082_v50 = vadd.s32 536870912, %v1081_v16 }
 0x340   : > { %v679_v55 = vshrl.u32 %v661_v63, %v677_v62  ;;  %v682_v20 = vadd.s32 127, %v681_v24  ;;  %vm905_vm9 = vweird.f32 %v16004_v31  ;;  %vm909_vm8 = vcmp.eq.s32.totalorder %v907_v4, 0 }
 0x341   : > { %v1350_v11 = vshll.u32 %v15818_v10, %v16045_v60  ;;  %v1355_v6 = vor.u32 %v1354_v32, %v1353_v7  ;;  %v1358_v25 = vor.u32 %v1357_v58, %v1356_v40  ;;  %vm912_vm12 = vcmp.eq.s32.totalorder %v907_v4, 2  ;;  %v16047_v32 = vld [vmem:[#allocation105_spill] sm:$0xff] }
 0x342   : > { %v680_v0 = vor.u32 %v679_v55, %v678_v26  ;;  %v683_v29 = vshll.u32 %v682_v20, 23  ;;  %v1083_v35 = vshrl.u32 %v1082_v50, 30  ;;  %v698_v51 = vadd.s32 3, %v694_v39 }
 0x343   : > { %vm1023_vm3 = vcmp.lt.s32.totalorder %v16032_v22, 0  ;;  %v1341_v48 = vor.u32 8388608, %v1340_v19  ;;  %v1349_v57 = vshrl.u32 %v15818_v10, %v16044_v46  ;;  %v1352_v63 = vor.u32 %v1351_v59, %v1350_v11  ;;  %v9290_v3 = vpop.eup %9289  ;;  %v16048_v19 = vld [vmem:[#allocation100_spill] sm:$0xff] }
 0x344   : > { %v684_v62 = vor.u32 4788187, %v683_v29  ;;  %v1084_v24 = vshll.u32 %v1083_v35, 30  ;;  %vm1365_vm7 = vcmp.lt.s32.totalorder %v16046_v52, 1  ;;  %vm1367_vm15 = vcmp.lt.s32.totalorder %v16046_v52, 3  ;;  %v9292_v60 = vpop.eup %9291 }
 0x345   : > { %v913_v7 = vxor.u32 2147483648, %v9290_v3  ;;  %vm1366_vm13 = vcmp.lt.s32.totalorder %v16046_v52, 2  ;;  %v1377_v39 = vsel %vm1365_vm7, %v1355_v6, %v1358_v25  ;;  %v1379_v46 = vsel %vm1367_vm15, %v16048_v19, %v16047_v32 }
 0x346   : > { %v910_v59 = vxor.u32 2147483648, %v9292_v60  ;;  %v685_v40 = vand.u32 2147483647, %v684_v62  ;;  %v687_v58 = vcvt.s32.f32 %v680_v0  ;;  %v16049_v26 = vand.u32 2147483647, %v16032_v22 }
 0x347   : > { %v12729_v20 = vsub.s32 %v1081_v16, %v1084_v24  ;;  %v914_v50 = vsel %vm912_vm12, %v913_v7, %v9292_v60  ;;  %v1107_v11 = vsub.s32 4, %v1083_v35  ;;  %v1373_v29 = vsel %vm1365_vm7, %v1352_v63, %v1355_v6 }
 0x348   : > { %vm12725_vm6 = vcmp.le.f32.partialorder %v16049_v26, 0.7853982  ;;  %v1375_v32 = vsel %vm1367_vm15, %v1358_v25, %v16052_v49  ;;  %v911_v0 = vsel %vm909_vm8, %v9290_v3, %v910_v59  ;;  %v688_v62 = vmul.f32 %v687_v58, %v685_v40 }
 0x349   : > { %v1087_v19 = vsub.s32 0, %v12729_v20  ;;  %v1380_v26 = vsel %vm1366_vm13, %v1377_v39, %v1379_v46  ;;  %v915_v16 = vsel %vm908_vm10, %v911_v0, %v914_v50  ;;  %v12742_v24 = vand.u32 3, %v698_v51 }
 0x34a   : > { %v1370_v60 = vsel %vm1368_vm2, %v1358_v25, 2102212464  ;;  %v1381_v7 = vshll.u32 %v1341_v48, 8  ;;  %v916_v43 = vsel %vm905_vm9, nan, %v915_v16  ;;  %v689_v49 = vxor.u32 2147483648, %v688_v62 }
 0x34b   : > { %v8167_v3 = vmin.u32 %v1087_v19, %v12729_v20  ;;  %v1369_v59 = vsel %vm1365_vm7, %v1349_v57, %v1352_v63  ;;  %v3796_v40 = vand.u32 4294901760, %v916_v43  ;;  %v1376_v4 = vsel %vm1366_vm13, %v1373_v29, %v1375_v32  ;;  %v16056_v29 = vld [vmem:[#allocation28_spill] sm:$0xff] }
 0x34c   : > { %v12753_v39 = vmul.u32.u64.low %v1381_v7, %v1380_v26  ;;  %v12754_v51 = vmul.u32.u64.high %v1381_v7, %v1380_v26, %v12753_v39  ;;  %v690_v25 = vsel %vm607_vm4, %v689_v49, %v688_v62  ;;  %v1108_v31 = vsel %vm1023_vm3, %v1107_v11, %v1083_v35  ;;  %v16061_v62 = vld [vmem:[#allocation83_spill] sm:$0xff] }
 0x34d   : > { %v1089_v48 = vclz %v8167_v3  ;;  %v1371_v46 = vsel %vm1367_vm15, %v1355_v6, %v1370_v60  ;;  %v16053_v58 = vand.u32 4294901760, %v12649_v17  ;;  %v12766_v63 = vsub.f32 %v916_v43, %v3796_v40  ;;  %v16060_v17 = vld [vmem:[#allocation50_spill] sm:$0xff] }
 0x34e   : > { %v693_v50 = vsel %vm12685_vm0, %v16014_v1, %v690_v25  ;;  %v16057_v32 = vand.u32 2147483647, %v16056_v29  ;;  %v12777_v11 = vmul.u32.u64.low %v1381_v7, %v1376_v4  ;;  %v12778_v6 = vmul.u32.u64.high %v1381_v7, %v1376_v4, %v12777_v11 }
 0x34f   : > { %v12764_v57 = vpack.c.bf16 %v3796_v40, %v16053_v58  ;;  %16055 = vst [vmem:[#allocation60_spill] sm:$0xff] %v12766_v63  ;;  %9293 = vcosq.f32 %v693_v50  ;;  %v8168_v35 = vadd.s32 4294967294, %v1089_v48  ;;  %v1110_v43 = vsel %vm12725_vm6, 0, %v1108_v31 }
 0x350   : > { %vm12773_vm2 = vcmp.le.f32.partialorder %v16057_v32, 0.7853982  ;;  %9295 = vsinq.f32 %v693_v50  ;;  %v1835_v18 = vsub.s32 4, %v16060_v17  ;;  %v1077_v26 = vadd.s32 %v12656_v38, %v12645_v15 }
 0x351   : > { %16054 = vst [vmem:[#allocation55_spill] sm:$0xff] %v12764_v57  ;;  %8280 = vmatpush1.bf16.msra.mxu0 %v12764_v57  ;;  %v1837_v19 = vsel %vm12773_vm2, %v16056_v29, %v16061_v62  ;;  %vm8169_vm4 = vcmp.lt.s32.totalorder %v8168_v35, 0  ;;  %v1372_v16 = vsel %vm1366_vm13, %v1369_v59, %v1371_v46  ;;  %vm1390_vm0 = vc.u32 %v12754_v51, %v12777_v11  ;;  %v16063_v59 = vld [vmem:[#allocation70_spill] sm:$0xff] }
 0x352   : > { %9297 = vcosq.f32 %v1837_v19  ;;  %v1092_v60 = vsel %vm8169_vm4, 0, %v8168_v35  ;;  %vm16062_vm14 = vcmp.lt.s32.totalorder %v16056_v29, 0  ;;  %v1114_v4 = vadd.s32 3, %v1110_v43 }
 0x353   : > { %v1836_v49 = vsel %vm16062_vm14, %v1835_v18, %v16060_v17  ;;  %9299 = vsinq.f32 %v1837_v19  ;;  %v1093_v3 = vsub.s32 32, %v1092_v60  ;;  %v1097_v40 = vsub.s32 4294967266, %v1092_v60  ;;  %v16065_v19 = vld [vmem:[#allocation108_spill] sm:$0xff] }
 0x354   : > { %v1391_v39 = vadd.s32 1, %v12778_v6  ;;  %v1094_v15 = vshll.u32 %v12729_v20, %v1092_v60  ;;  %v1388_v38 = vmul.u32 %v1381_v7, %v1372_v16  ;;  %v1838_v52 = vsel %vm12773_vm2, 0, %v1836_v49  ;;  %v16066_v16 = vld [vmem:[#allocation110_spill] sm:$0xff] }
 0x355   : > { %v15574_v25 = vand.u32 2147483647, %v16063_v59  ;;  %v1095_v48 = vshrl.u32 %v1077_v26, %v1093_v3  ;;  %v1098_v31 = vadd.s32 127, %v1097_v40  ;;  %v1842_v58 = vadd.s32 3, %v1838_v52 }
 0x356   : > { %v1392_v46 = vsel %vm1390_vm0, %v1391_v39, %v12778_v6  ;;  %v16064_v50 = vsub.s32 4294967266, %v12471_v36  ;;  %vm697_vm10 = vweird.f32 %v16014_v1  ;;  %vm700_vm9 = vcmp.lt.s32.totalorder %v12742_v24, 2 }
 0x357   : > { %v1393_v20 = vadd.s32 %v1392_v46, %v1388_v38  ;;  %vm701_vm8 = vcmp.eq.s32.totalorder %v12742_v24, 0  ;;  %vm704_vm12 = vcmp.eq.s32.totalorder %v12742_v24, 2  ;;  %v1096_v7 = vor.u32 %v1095_v48, %v1094_v15 }
 0x358   : > { %v12806_v32 = vadd.s32 127, %v16064_v50  ;;  %v1099_v0 = vshll.u32 %v1098_v31, 23  ;;  %v12812_v35 = vand.u32 3, %v1114_v4  ;;  %vm1841_vm7 = vweird.f32 %v16056_v29 }
 0x359   : > { %v1394_v43 = vadd.s32 536870912, %v1393_v20  ;;  %v1843_v6 = vand.u32 3, %v1842_v58  ;;  %v9294_v17 = vpop.eup %9293  ;;  %v12817_v62 = vand.u32 8388607, %v15574_v25  ;;  %v1558_v26 = vshll.u32 %v15818_v10, %v16065_v19 }
 0x35a   : > { %v1100_v18 = vor.u32 4788187, %v1099_v0  ;;  %v1559_v60 = vshrl.u32 %v15819_v5, %v16066_v16  ;;  %v9296_v49 = vpop.eup %9295  ;;  %v705_v3 = vxor.u32 2147483648, %v9294_v17  ;;  %v1561_v4 = vshll.u32 %v15819_v5, %v16065_v19 }
 0x35b   : > { %v1395_v40 = vshrl.u32 %v1394_v43, 30  ;;  %v1562_v39 = vshrl.u32 %v15820_v33, %v16066_v16  ;;  %v702_v38 = vxor.u32 2147483648, %v9296_v49  ;;  %v1103_v48 = vcvt.s32.f32 %v1096_v7 }
 0x35c   : > { %v9298_v15 = vpop.eup %9297  ;;  %v1101_v52 = vand.u32 2147483647, %v1100_v18  ;;  %vm1335_vm15 = vcmp.lt.s32.totalorder %v16040_v61, 0  ;;  %v1564_v31 = vshll.u32 %v15820_v33, %v16065_v19  ;;  %v706_v58 = vsel %vm704_vm12, %v705_v3, %v9296_v49 }
 0x35d   : > { %v9300_v46 = vpop.eup %9299  ;;  %v1396_v50 = vshll.u32 %v1395_v40, 30  ;;  %vm1845_vm13 = vcmp.eq.s32.totalorder %v1843_v6, 0  ;;  %v1849_v0 = vxor.u32 2147483648, %v9298_v15  ;;  %v703_v43 = vsel %vm701_vm8, %v9294_v17, %v702_v38 }
 0x35e   : > { %v1104_v25 = vmul.f32 %v1103_v48, %v1101_v52  ;;  %v1846_v57 = vxor.u32 2147483648, %v9300_v46  ;;  %vm1848_vm2 = vcmp.eq.s32.totalorder %v1843_v6, 2  ;;  %v707_v7 = vsel %vm700_vm9, %v703_v43, %v706_v58 }
 0x35f   : > { %v16067_v18 = vand.u32 2147483647, %v16040_v61  ;;  %v12842_v63 = vsub.s32 %v1393_v20, %v1396_v50  ;;  %v1850_v49 = vsel %vm1848_vm2, %v1849_v0, %v9300_v46  ;;  %v1565_v3 = vshrl.u32 %v15815_v45, %v16066_v16 }
 0x360   : > { %v12848_v17 = vsel %vm697_vm10, nan, %v707_v7  ;;  %v1105_v38 = vxor.u32 2147483648, %v1104_v25  ;;  %vm1844_vm0 = vcmp.lt.s32.totalorder %v1843_v6, 2  ;;  %v1847_v24 = vsel %vm1845_vm13, %v9298_v15, %v1846_v57  ;;  %v16072_v7 = vld [vmem:[#allocation115_spill] sm:$0xff] }
 0x361   : > { %vm12838_vm4 = vcmp.le.f32.partialorder %v16067_v18, 0.7853982  ;;  %v4782_v52 = vand.u32 4294901760, %v12848_v17  ;;  %v1399_v48 = vsub.s32 0, %v12842_v63  ;;  %v1419_v58 = vsub.s32 4, %v1395_v40 }
 0x362   : > { %v1851_v43 = vsel %vm1844_vm0, %v1847_v24, %v1850_v49  ;;  %v1106_v20 = vsel %vm1023_vm3, %v1105_v38, %v1104_v25  ;;  %v1560_v50 = vor.u32 %v1559_v60, %v1558_v26  ;;  %v1563_v1 = vor.u32 %v1562_v39, %v1561_v4  ;;  %v16070_v4 = vld [vmem:[#allocation107_spill] sm:$0xff]  ;;  %v16074_v38 = vld [vmem:[#allocation114_spill] sm:$0xff] }
 0x363   : > { %v12856_v46 = vsel %vm1841_vm7, nan, %v1851_v43  ;;  %v1109_v6 = vsel %vm12725_vm6, %v16032_v22, %v1106_v20  ;;  %v12864_v57 = vsub.f32 %v12848_v17, %v4782_v52  ;;  %v8179_v15 = vmin.u32 %v1399_v48, %v12842_v63 }
 0x364   : > { %v1566_v0 = vor.u32 %v1565_v3, %v1564_v31  ;;  %9301 = vcosq.f32 %v1109_v6  ;;  %v1389_v29 = vadd.s32 %v12777_v11, %v12754_v51  ;;  %v15578_v25 = vand.u32 4294901760, %v12856_v46  ;;  %v16073_v3 = vld [vmem:[#allocation116_spill] sm:$0xff] }
 0x365   : > { %v1549_v26 = vor.u32 8388608, %v12817_v62  ;;  %9303 = vsinq.f32 %v1109_v6  ;;  %v1401_v60 = vclz %v8179_v15  ;;  %v1420_v55 = vsel %vm1335_vm15, %v1419_v58, %v1395_v40 }
 0x366   : > { %vm1573_vm3 = vcmp.lt.s32.totalorder %v16070_v4, 1  ;;  %v12877_v39 = vsub.f32 %v12856_v46, %v15578_v25  ;;  %v1557_v31 = vshrl.u32 %v15818_v10, %v16066_v16  ;;  %vm1575_vm6 = vcmp.lt.s32.totalorder %v16070_v4, 3 }
 0x367   : > { %v1581_v51 = vsel %vm1573_vm3, %v1560_v50, %v1563_v1  ;;  %v8180_v11 = vadd.s32 4294967294, %v1401_v60  ;;  %vm16071_vm14 = vcmp.lt.s32.totalorder %v16070_v4, 4  ;;  %v1583_v40 = vsel %vm1575_vm6, %v1566_v0, %v16072_v7 }
 0x368   : > { %v1578_v62 = vsel %vm16071_vm14, %v1566_v0, 2102212464  ;;  %v1585_v18 = vsel %vm1573_vm3, %v1563_v1, %v1566_v0  ;;  %v1422_v49 = vsel %vm12838_vm4, 0, %v1420_v55  ;;  %vm1574_vm10 = vcmp.lt.s32.totalorder %v16070_v4, 2  ;;  %v16075_v55 = vld [vmem:[#allocation47_spill] sm:$0xff] }
 0x369   : > { %v1587_v16 = vsel %vm1575_vm6, %v16074_v38, %v16073_v3  ;;  %v1589_v24 = vshll.u32 %v1549_v26, 8  ;;  %vm1117_vm9 = vcmp.eq.s32.totalorder %v12812_v35, 0  ;;  %vm8181_vm8 = vcmp.lt.s32.totalorder %v8180_v11, 0 }
 0x36a   : > { %v1577_v48 = vsel %vm1573_vm3, %v1557_v31, %v1560_v50  ;;  %v1584_v58 = vsel %vm1574_vm10, %v1581_v51, %v1583_v40  ;;  %v1588_v43 = vsel %vm1574_vm10, %v1585_v18, %v1587_v16  ;;  %v1404_v20 = vsel %vm8181_vm8, 0, %v8180_v11  ;;  %v16079_v31 = vld [vmem:[#allocation73_spill] sm:$0xff] }
 0x36b   : > { %v1579_v6 = vsel %vm1575_vm6, %v1563_v1, %v1578_v62  ;;  %v12901_v15 = vmul.u32.u64.low %v1589_v24, %v1588_v43  ;;  %v12902_v0 = vmul.u32.u64.high %v1589_v24, %v1588_v43, %v12901_v15  ;;  %vm1113_vm12 = vweird.f32 %v16032_v22  ;;  %v16080_v1 = vld [vmem:[#allocation123_spill] sm:$0xff] }
 0x36c   : > { %v1405_v26 = vsub.s32 32, %v1404_v20  ;;  %v1409_v60 = vsub.s32 4294967266, %v1404_v20  ;;  %v16076_v7 = vand.u32 2147483647, %v16075_v55  ;;  %v2043_v51 = vsub.s32 4, %v16079_v31 }
 0x36d   : > { %v1406_v11 = vshll.u32 %v12842_v63, %v1404_v20  ;;  %v12913_v40 = vmul.u32.u64.low %v1589_v24, %v1584_v58  ;;  %v12914_v18 = vmul.u32.u64.high %v1589_v24, %v1584_v58, %v12913_v40  ;;  %v1580_v63 = vsel %vm1574_vm10, %v1577_v48, %v1579_v6 }
 0x36e   : > { %vm12907_vm7 = vcmp.le.f32.partialorder %v16076_v7, 0.7853982  ;;  %v1407_v3 = vshrl.u32 %v1389_v29, %v1405_v26  ;;  %v1410_v38 = vadd.s32 127, %v1409_v60  ;;  %v2044_v16 = vsel %vm1959_vm11, %v2043_v51, %v16079_v31  ;;  %v9302_v43 = vpop.eup %9301 }
 0x36f   : > { %v2045_v62 = vsel %vm12907_vm7, %v16075_v55, %v16080_v1  ;;  %vm1598_vm13 = vc.u32 %v12902_v0, %v12913_v40  ;;  %v2046_v58 = vsel %vm12907_vm7, 0, %v2044_v16  ;;  %v9304_v20 = vpop.eup %9303  ;;  %v1121_v15 = vxor.u32 2147483648, %v9302_v43  ;;  %v16081_v1 = vld [vmem:[#allocation61_spill] sm:$0xff] }
 0x370   : > { %9305 = vcosq.f32 %v2045_v62  ;;  %v1408_v29 = vor.u32 %v1407_v3, %v1406_v11  ;;  %v1411_v26 = vshll.u32 %v1410_v38, 23  ;;  %v2050_v60 = vadd.s32 3, %v2046_v58 }
 0x371   : > { %9307 = vsinq.f32 %v2045_v62  ;;  %v1118_v7 = vxor.u32 2147483648, %v9304_v20  ;;  %vm1120_vm11 = vcmp.eq.s32.totalorder %v12812_v35, 2  ;;  %v1426_v31 = vadd.s32 3, %v1422_v49 }
 0x372   : > { %v1599_v51 = vadd.s32 1, %v12914_v18  ;;  %v1122_v4 = vsel %vm1120_vm11, %v1121_v15, %v9304_v20  ;;  %v1412_v48 = vor.u32 4788187, %v1411_v26  ;;  %v1596_v6 = vmul.u32 %v1589_v24, %v1580_v63  ;;  %v16082_v15 = vld [vmem:[#allocation84_spill] sm:$0xff]  ;;  %v16083_v26 = vld [vmem:[#allocation85_spill] sm:$0xff] }
 0x373   : > { %v15579_v25 = vand.u32 2147483647, %v16081_v1  ;;  %vm1116_vm2 = vcmp.lt.s32.totalorder %v12812_v35, 2  ;;  %v1119_v50 = vsel %vm1117_vm9, %v9302_v43, %v1118_v7  ;;  %v2051_v62 = vand.u32 3, %v2050_v60 }
 0x374   : > { %v1600_v11 = vsel %vm1598_vm13, %v1599_v51, %v12914_v18  ;;  %v1123_v3 = vsel %vm1116_vm2, %v1119_v50, %v1122_v4  ;;  %v1413_v49 = vand.u32 2147483647, %v1412_v48  ;;  %v1415_v38 = vcvt.s32.f32 %v1408_v29 }
 0x375   : > { %v1601_v16 = vadd.s32 %v1600_v11, %v1596_v6  ;;  %v1124_v24 = vsel %vm1113_vm12, nan, %v1123_v3  ;;  %v12943_v63 = vand.u32 3, %v1426_v31  ;;  %vm2049_vm0 = vweird.f32 %v16075_v55 }
 0x376   : > { %v4786_v35 = vand.u32 4294901760, %v1124_v24  ;;  %v1416_v43 = vmul.f32 %v1415_v38, %v1413_v49  ;;  %v1236_v18 = vand.u32 8388607, %v15579_v25  ;;  %vm2052_vm3 = vcmp.lt.s32.totalorder %v2051_v62, 2 }
 0x377   : > { %v1602_v20 = vadd.s32 536870912, %v1601_v16  ;;  %v1246_v29 = vshll.u32 %v15818_v10, %v16082_v15  ;;  %v1247_v60 = vshrl.u32 %v15819_v5, %v16083_v26  ;;  %v1250_v22 = vshrl.u32 %v15820_v33, %v16083_v26 }
 0x378   : > { %v12956_v31 = vpack.c.bf16 %v4786_v35, %v4782_v52  ;;  %v12958_v51 = vsub.f32 %v1124_v24, %v4786_v35  ;;  %v1417_v4 = vxor.u32 2147483648, %v1416_v43  ;;  %vm1543_vm6 = vcmp.lt.s32.totalorder %v16063_v59, 0 }
 0x379   : > { %v1603_v48 = vshrl.u32 %v1602_v20, 30  ;;  %vm2053_vm14 = vcmp.eq.s32.totalorder %v2051_v62, 0  ;;  %vm2056_vm10 = vcmp.eq.s32.totalorder %v2051_v62, 2  ;;  %v1249_v11 = vshll.u32 %v15819_v5, %v16082_v15 }
 0x37a   : > { %v9306_v7 = vpop.eup %9305  ;;  %16084 = vst [vmem:[#allocation54_spill] sm:$0xff] %v12956_v31  ;;  %8376 = vmatpush1.bf16.msra.mxu1 %v12956_v31  ;;  %v1418_v17 = vsel %vm1335_vm15, %v1417_v4, %v1416_v43  ;;  %v1248_v49 = vor.u32 %v1247_v60, %v1246_v29  ;;  %v1252_v35 = vshll.u32 %v15820_v33, %v16082_v15  ;;  %v16085_v43 = vand.u32 2147483647, %v16063_v59 }
 0x37b   : > { %v9308_v6 = vpop.eup %9307  ;;  %v2057_v50 = vxor.u32 2147483648, %v9306_v7  ;;  %v1604_v52 = vshll.u32 %v1603_v48, 30  ;;  %v1421_v38 = vsel %vm12838_vm4, %v16040_v61, %v1418_v17  ;;  %v1253_v20 = vshrl.u32 %v15815_v45, %v16083_v26  ;;  %v16090_v17 = vld [vmem:[#allocation96_spill] sm:$0xff] }
 0x37c   : > { %v2054_v3 = vxor.u32 2147483648, %v9308_v6  ;;  %9309 = vcosq.f32 %v1421_v38  ;;  %v1251_v31 = vor.u32 %v1250_v22, %v1249_v11  ;;  %vm12977_vm15 = vcmp.le.f32.partialorder %v16085_v43, 0.7853982  ;;  %v16091_v43 = vld [vmem:[#allocation97_spill] sm:$0xff] }
 0x37d   : > { %v2058_v24 = vsel %vm2056_vm10, %v2057_v50, %v9308_v6  ;;  %v12973_v25 = vsub.s32 %v1601_v16, %v1604_v52  ;;  %9311 = vsinq.f32 %v1421_v38  ;;  %v1237_v60 = vor.u32 8388608, %v1236_v18  ;;  %v16088_v50 = vld [vmem:[#allocation88_spill] sm:$0xff] }
 0x37e   : > { %v2055_v58 = vsel %vm2053_vm14, %v9306_v7, %v2054_v3  ;;  %v1254_v4 = vor.u32 %v1253_v20, %v1252_v35  ;;  %v1627_v6 = vsub.s32 4, %v1603_v48  ;;  %v1245_v22 = vshrl.u32 %v15818_v10, %v16083_v26 }
 0x37f   : > { %v2059_v19 = vsel %vm2052_vm3, %v2055_v58, %v2058_v24  ;;  %v1607_v15 = vsub.s32 0, %v12973_v25  ;;  %vm1261_vm4 = vcmp.lt.s32.totalorder %v16088_v50, 1  ;;  %vm1263_vm9 = vcmp.lt.s32.totalorder %v16088_v50, 3 }
 0x380   : > { %v12985_v16 = vsel %vm2049_vm0, nan, %v2059_v19  ;;  %vm16089_vm8 = vcmp.lt.s32.totalorder %v16088_v50, 4  ;;  %v1265_v18 = vsel %vm1261_vm4, %v1245_v22, %v1248_v49  ;;  %v1269_v11 = vsel %vm1261_vm4, %v1248_v49, %v1251_v31  ;;  %v16092_v19 = vld [vmem:[#allocation94_spill] sm:$0xff] }
 0x381   : > { %v15582_v7 = vand.u32 4294901760, %v12985_v16  ;;  %v1266_v62 = vsel %vm16089_vm8, %v1254_v4, 2102212464  ;;  %v8187_v58 = vmin.u32 %v1607_v15, %v12973_v25  ;;  %vm1429_vm12 = vcmp.eq.s32.totalorder %v12943_v63, 0 }
 0x382   : > { %v1267_v55 = vsel %vm1263_vm9, %v1251_v31, %v1266_v62  ;;  %vm1432_vm7 = vcmp.eq.s32.totalorder %v12943_v63, 2  ;;  %v1271_v52 = vsel %vm1263_vm9, %v1254_v4, %v16090_v17  ;;  %v1273_v3 = vsel %vm1261_vm4, %v1251_v31, %v1254_v4  ;;  %v16093_v62 = vld [vmem:[#allocation20_spill] sm:$0xff] }
 0x383   : > { %v13002_v26 = vsub.f32 %v12985_v16, %v15582_v7  ;;  %vm1428_vm13 = vcmp.lt.s32.totalorder %v12943_v63, 2  ;;  %v1597_v38 = vadd.s32 %v12913_v40, %v12902_v0  ;;  %v1609_v49 = vclz %v8187_v58  ;;  %v16097_v40 = vld [vmem:[#allocation45_spill] sm:$0xff] }
 0x384   : > { %v1628_v24 = vsel %vm1543_vm6, %v1627_v6, %v1603_v48  ;;  %vm1262_vm11 = vcmp.lt.s32.totalorder %v16088_v50, 2  ;;  %v1275_v15 = vsel %vm1263_vm9, %v16092_v19, %v16091_v43  ;;  %v1277_v22 = vshll.u32 %v1237_v60, 8 }
 0x385   : > { %v1268_v35 = vsel %vm1262_vm11, %v1265_v18, %v1267_v55  ;;  %v1272_v20 = vsel %vm1262_vm11, %v1269_v11, %v1271_v52  ;;  %v8188_v31 = vadd.s32 4294967294, %v1609_v49  ;;  %v1276_v4 = vsel %vm1262_vm11, %v1273_v3, %v1275_v15  ;;  %v16099_v52 = vld [vmem:[#allocation82_spill] sm:$0xff] }
 0x386   : > { %v16094_v17 = vand.u32 2147483647, %v16093_v62  ;;  %v1731_v48 = vsub.s32 4, %v16097_v40  ;;  %v13024_v6 = vmul.u32.u64.low %v1277_v22, %v1276_v4  ;;  %v13025_v58 = vmul.u32.u64.high %v1277_v22, %v1276_v4, %v13024_v6  ;;  %v9310_v11 = vpop.eup %9309 }
 0x387   : > { %v13027_v18 = vmul.u32.u64.low %v1277_v22, %v1272_v20  ;;  %v13028_v55 = vmul.u32.u64.high %v1277_v22, %v1272_v20, %v13027_v18  ;;  %vm8189_vm0 = vcmp.lt.s32.totalorder %v8188_v31, 0  ;;  %v1630_v60 = vsel %vm12977_vm15, 0, %v1628_v24  ;;  %v9312_v49 = vpop.eup %9311 }
 0x388   : > { %vm13019_vm2 = vcmp.le.f32.partialorder %v16094_v17, 0.7853982  ;;  %vm16098_vm3 = vcmp.lt.s32.totalorder %v16093_v62, 0  ;;  %v1433_v43 = vxor.u32 2147483648, %v9310_v11  ;;  %v1612_v19 = vsel %vm8189_vm0, 0, %v8188_v31 }
 0x389   : > { %v1732_v50 = vsel %vm16098_vm3, %v1731_v48, %v16097_v40  ;;  %v1733_v3 = vsel %vm13019_vm2, %v16093_v62, %v16099_v52  ;;  %v1284_v15 = vmul.u32 %v1277_v22, %v1268_v35  ;;  %v1430_v20 = vxor.u32 2147483648, %v9312_v49 }
 0x38a   : > { %9313 = vcosq.f32 %v1733_v3  ;;  %v1613_v4 = vsub.s32 32, %v1612_v19  ;;  %v1617_v17 = vsub.s32 4294967266, %v1612_v19  ;;  %v1734_v24 = vsel %vm13019_vm2, 0, %v1732_v50 }
 0x38b   : > { %v1434_v6 = vsel %vm1432_vm7, %v1433_v43, %v9312_v49  ;;  %v1614_v40 = vshll.u32 %v12973_v25, %v1612_v19  ;;  %vm1286_vm14 = vc.u32 %v13025_v58, %v13027_v18  ;;  %v1287_v48 = vadd.s32 1, %v13028_v55 }
 0x38c   : > { %v1431_v31 = vsel %vm1429_vm12, %v9310_v11, %v1430_v20  ;;  %v1615_v35 = vshrl.u32 %v1597_v38, %v1613_v4  ;;  %v1618_v22 = vadd.s32 127, %v1617_v17  ;;  %9315 = vsinq.f32 %v1733_v3 }
 0x38d   : > { %vm1425_vm10 = vweird.f32 %v16040_v61  ;;  %v1435_v0 = vsel %vm1428_vm13, %v1431_v31, %v1434_v6  ;;  %v1288_v50 = vsel %vm1286_vm14, %v1287_v48, %v13028_v55  ;;  %v1738_v52 = vadd.s32 3, %v1734_v24 }
 0x38e   : > { %v1436_v49 = vsel %vm1425_vm10, nan, %v1435_v0  ;;  %v1616_v25 = vor.u32 %v1615_v35, %v1614_v40  ;;  %v1619_v43 = vshll.u32 %v1618_v22, 23  ;;  %v1289_v19 = vadd.s32 %v1288_v50, %v1284_v15 }
 0x38f   : > { %v16100_v7 = vshll.u32 %v12072_v42, %v12471_v36  ;;  %v16101_v38 = vshll.u32 %v12806_v32, 23  ;;  %v3798_v61 = vand.u32 4294901760, %v1436_v49  ;;  %v1634_v63 = vadd.s32 3, %v1630_v60 }
 0x390   : > { %v3599_v55 = vcvt.s32.f32 %v12461_v47  ;;  %v1620_v4 = vor.u32 4788187, %v1619_v43  ;;  %v1290_v17 = vadd.s32 536870912, %v1289_v19  ;;  %v16102_v15 = vand.u32 4294901760, %v12856_v46 }
 0x391   : > { %v13056_v11 = vor.u32 %v12681_v56, %v16100_v7  ;;  %v13060_v3 = vor.u32 4788187, %v16101_v38  ;;  %v13068_v42 = vsub.f32 %v1436_v49, %v3798_v61  ;;  %v1739_v36 = vand.u32 3, %v1738_v52  ;;  %v16104_v56 = vld [vmem:[#allocation66_spill] sm:$0xff] }
 0x392   : > { %v13066_v24 = vpack.c.bf16 %v16102_v15, %v3798_v61  ;;  %v15583_v7 = vand.u32 2147483647, %v16104_v56  ;;  %v3597_v32 = vand.u32 2147483647, %v12560_v53  ;;  %v1621_v6 = vand.u32 2147483647, %v1620_v4 }
 0x393   : > { %v1623_v40 = vcvt.s32.f32 %v1616_v25  ;;  %v1291_v60 = vshrl.u32 %v1290_v17, 30  ;;  %v13075_v46 = vand.u32 3, %v1634_v63  ;;  %v13078_v22 = vadd.s32 %v13027_v18, %v13025_v58  ;;  %v16105_v49 = vld [vmem:[#allocation98_spill] sm:$0xff]  ;;  %v16106_v58 = vld [vmem:[#allocation95_spill] sm:$0xff] }
 0x394   : > { %16103 = vst [vmem:[#allocation77_spill] sm:$0xff] %v13066_v24  ;;  %v9314_v48 = vpop.eup %9313  ;;  %8282 = vmatprep.subr.bf16.mxu0 %v13066_v24  ;;  %v1455_v43 = vshrl.u32 %v15819_v5, %v16105_v49  ;;  %vm1740_vm4 = vcmp.lt.s32.totalorder %v1739_v36, 2  ;;  %vm1744_vm9 = vcmp.eq.s32.totalorder %v1739_v36, 2  ;;  %v1444_v25 = vand.u32 8388607, %v15583_v7 }
 0x395   : > { %v1624_v0 = vmul.f32 %v1623_v40, %v1621_v6  ;;  %v1292_v50 = vshll.u32 %v1291_v60, 30  ;;  %v1745_v52 = vxor.u32 2147483648, %v9314_v48  ;;  %v1458_v38 = vshrl.u32 %v15820_v33, %v16105_v49 }
 0x396   : > { %v9316_v61 = vpop.eup %9315  ;;  %v1454_v18 = vshll.u32 %v15818_v10, %v16106_v58  ;;  %v1461_v17 = vshrl.u32 %v15815_v45, %v16105_v49  ;;  %vm1231_vm8 = vcmp.lt.s32.totalorder %v16081_v1, 0  ;;  %v1457_v40 = vshll.u32 %v15819_v5, %v16106_v58 }
 0x397   : > { %v1625_v63 = vxor.u32 2147483648, %v1624_v0  ;;  %v13086_v4 = vsub.s32 %v1289_v19, %v1292_v50  ;;  %v1742_v15 = vxor.u32 2147483648, %v9316_v61  ;;  %v1746_v6 = vsel %vm1744_vm9, %v1745_v52, %v9316_v61 }
 0x398   : > { %v1460_v20 = vshll.u32 %v15820_v33, %v16106_v58  ;;  %vm1741_vm12 = vcmp.eq.s32.totalorder %v1739_v36, 0  ;;  %v1456_v7 = vor.u32 %v1455_v43, %v1454_v18  ;;  %v1459_v31 = vor.u32 %v1458_v38, %v1457_v40  ;;  %v16114_v40 = vld [vmem:[#allocation101_spill] sm:$0xff] }
 0x399   : > { %v1626_v19 = vsel %vm1543_vm6, %v1625_v63, %v1624_v0  ;;  %v1295_v50 = vsub.s32 0, %v13086_v4  ;;  %v1743_v35 = vsel %vm1741_vm12, %v9314_v48, %v1742_v15  ;;  %vm1737_vm7 = vweird.f32 %v16093_v62  ;;  %v16110_v63 = vld [vmem:[#allocation92_spill] sm:$0xff] }
 0x39a   : > { %v1629_v45 = vsel %vm12977_vm15, %v16063_v59, %v1626_v19  ;;  %v1462_v52 = vor.u32 %v1461_v17, %v1460_v20  ;;  %v1747_v33 = vsel %vm1740_vm4, %v1743_v35, %v1746_v6  ;;  %v1445_v61 = vor.u32 8388608, %v1444_v25  ;;  %v16112_v25 = vld [vmem:[#allocation106_spill] sm:$0xff]  ;;  %v16113_v6 = vld [vmem:[#allocation109_spill] sm:$0xff] }
 0x39b   : > { %9317 = vcosq.f32 %v1629_v45  ;;  %v8175_v5 = vmin.u32 %v1295_v50, %v13086_v4  ;;  %v13106_v0 = vsel %vm1737_vm7, nan, %v1747_v33  ;;  %v1453_v43 = vshrl.u32 %v15818_v10, %v16105_v49 }
 0x39c   : > { %9319 = vsinq.f32 %v1629_v45  ;;  %v16107_v29 = vand.u32 2147483647, %v16081_v1  ;;  %v1315_v38 = vsub.s32 4, %v1291_v60  ;;  %vm1469_vm15 = vcmp.lt.s32.totalorder %v16110_v63, 1 }
 0x39d   : > { %v1297_v20 = vclz %v8175_v5  ;;  %vm1471_vm13 = vcmp.lt.s32.totalorder %v16110_v63, 3  ;;  %v15584_v62 = vand.u32 4294901760, %v13106_v0  ;;  %vm16111_vm11 = vcmp.lt.s32.totalorder %v16110_v63, 4 }
 0x39e   : > { %vm13112_vm6 = vcmp.le.f32.partialorder %v16107_v29, 0.7853982  ;;  %v1474_v36 = vsel %vm16111_vm11, %v1462_v52, 2102212464  ;;  %v1477_v35 = vsel %vm1469_vm15, %v1456_v7, %v1459_v31  ;;  %v1479_v10 = vsel %vm1471_vm13, %v1462_v52, %v16112_v25  ;;  %v16119_v25 = vld [vmem:[#allocation59_spill] sm:$0xff] }
 0x39f   : > { %v8176_v49 = vadd.s32 4294967294, %v1297_v20  ;;  %v1473_v58 = vsel %vm1469_vm15, %v1453_v43, %v1456_v7  ;;  %v1475_v18 = vsel %vm1471_vm13, %v1459_v31, %v1474_v36  ;;  %v1481_v17 = vsel %vm1469_vm15, %v1459_v31, %v1462_v52 }
 0x3a0   : > { %vm1637_vm2 = vcmp.eq.s32.totalorder %v13075_v46, 0  ;;  %v13126_v15 = vsub.f32 %v13106_v0, %v15584_v62  ;;  %vm1470_vm0 = vcmp.lt.s32.totalorder %v16110_v63, 2  ;;  %v1483_v19 = vsel %vm1471_vm13, %v16114_v40, %v16113_v6  ;;  %v16115_v63 = vld [vmem:[#allocation21_spill] sm:$0xff] }
 0x3a1   : > { %v1485_v50 = vshll.u32 %v1445_v61, 8  ;;  %vm1636_vm3 = vcmp.lt.s32.totalorder %v13075_v46, 2  ;;  %vm8177_vm14 = vcmp.lt.s32.totalorder %v8176_v49, 0  ;;  %v1316_v7 = vsel %vm1231_vm8, %v1315_v38, %v1291_v60  ;;  %v16127_v61 = vld [vmem:[#allocation125_spill] sm:$0xff] }
 0x3a2   : > { %v1480_v31 = vsel %vm1470_vm0, %v1477_v35, %v1479_v10  ;;  %v1484_v45 = vsel %vm1470_vm0, %v1481_v17, %v1483_v19  ;;  %vm1633_vm10 = vweird.f32 %v16063_v59  ;;  %v1300_v52 = vsel %vm8177_vm14, 0, %v8176_v49  ;;  %v16120_v10 = vld [vmem:[#allocation102_spill] sm:$0xff] }
 0x3a3   : > { %v1476_v5 = vsel %vm1470_vm0, %v1473_v58, %v1475_v18  ;;  %v13135_v33 = vmul.u32.u64.low %v1485_v50, %v1484_v45  ;;  %v13136_v43 = vmul.u32.u64.high %v1485_v50, %v1484_v45, %v13135_v33  ;;  %v1301_v29 = vsub.s32 32, %v1300_v52 }
 0x3a4   : > { %v1305_v20 = vsub.s32 4294967266, %v1300_v52  ;;  %v16116_v36 = vand.u32 2147483647, %v16115_v63  ;;  %v1939_v6 = vsub.s32 4, %v16119_v25  ;;  %v1302_v60 = vshll.u32 %v13086_v4, %v1300_v52 }
 0x3a5   : > { %v13146_v38 = vmul.u32.u64.low %v1485_v50, %v1480_v31  ;;  %v13147_v35 = vmul.u32.u64.high %v1485_v50, %v1480_v31, %v13146_v38  ;;  %v9318_v58 = vpop.eup %9317  ;;  %v1303_v18 = vshrl.u32 %v13078_v22, %v1301_v29  ;;  %vm16121_vm9 = vcmp.lt.s32.totalorder %v16115_v63, 0 }
 0x3a6   : > { %vm13140_vm4 = vcmp.le.f32.partialorder %v16116_v36, 0.7853982  ;;  %v1306_v17 = vadd.s32 127, %v1305_v20  ;;  %v1940_v40 = vsel %vm16121_vm9, %v1939_v6, %v16119_v25  ;;  %v9320_v19 = vpop.eup %9319  ;;  %vm1640_vm12 = vcmp.eq.s32.totalorder %v13075_v46, 2 }
 0x3a7   : > { %v1941_v49 = vsel %vm13140_vm4, %v16115_v63, %v16120_v10  ;;  %v1641_v4 = vxor.u32 2147483648, %v9318_v58  ;;  %v1318_v31 = vsel %vm13112_vm6, 0, %v1316_v7  ;;  %vm1494_vm7 = vc.u32 %v13136_v43, %v13146_v38  ;;  %v16122_v10 = vld [vmem:[#allocation87_spill] sm:$0xff] }
 0x3a8   : > { %9321 = vcosq.f32 %v1941_v49  ;;  %v1638_v45 = vxor.u32 2147483648, %v9320_v19  ;;  %v1304_v52 = vor.u32 %v1303_v18, %v1302_v60  ;;  %v1307_v33 = vshll.u32 %v1306_v17, 23  ;;  %v16126_v60 = vld [vmem:[#allocation104_spill] sm:$0xff] }
 0x3a9   : > { %9323 = vsinq.f32 %v1941_v49  ;;  %v1642_v22 = vsel %vm1640_vm12, %v1641_v4, %v9320_v19  ;;  %v1492_v29 = vmul.u32 %v1485_v50, %v1476_v5  ;;  %v1495_v20 = vadd.s32 1, %v13147_v35 }
 0x3aa   : > { %v1942_v36 = vsel %vm13140_vm4, 0, %v1940_v40  ;;  %v1639_v25 = vsel %vm1637_vm2, %v9318_v58, %v1638_v45  ;;  %v1308_v6 = vor.u32 4788187, %v1307_v33  ;;  %v16123_v62 = vand.u32 2147483647, %v16122_v10 }
 0x3ab   : > { %v2251_v18 = vsub.s32 4, %v16126_v60  ;;  %v1643_v50 = vsel %vm1636_vm3, %v1639_v25, %v1642_v22  ;;  %v1311_v5 = vcvt.s32.f32 %v1304_v52  ;;  %v1496_v49 = vsel %vm1494_vm7, %v1495_v20, %v13147_v35 }
 0x3ac   : > { %vm13168_vm15 = vcmp.le.f32.partialorder %v16123_v62, 0.7853982  ;;  %v1644_v17 = vsel %vm1633_vm10, nan, %v1643_v50  ;;  %v1309_v62 = vand.u32 2147483647, %v1308_v6  ;;  %v1497_v40 = vadd.s32 %v1496_v49, %v1492_v29 }
 0x3ad   : > { %v2253_v58 = vsel %vm13168_vm15, %v16122_v10, %v16127_v61  ;;  %vm16128_vm13 = vcmp.lt.s32.totalorder %v16122_v10, 0  ;;  %v13189_v46 = vmul.f32 %v3599_v55, %v3597_v32  ;;  %v4788_v35 = vand.u32 4294901760, %v1644_v17 }
 0x3ae   : > { %v2252_v19 = vsel %vm16128_vm13, %v2251_v18, %v16126_v60  ;;  %v1322_v4 = vadd.s32 3, %v1318_v31  ;;  %v1946_v45 = vadd.s32 3, %v1942_v36  ;;  %v16129_v52 = vand.u32 2147483647, %v13060_v3 }
 0x3af   : > { %v16130_v59 = vcvt.s32.f32 %v13056_v11  ;;  %v1312_v22 = vmul.f32 %v1311_v5, %v1309_v62  ;;  %v1498_v29 = vadd.s32 536870912, %v1497_v40  ;;  %9325 = vcosq.f32 %v2253_v58 }
 0x3b0   : > { %v16131_v20 = vand.u32 4294901760, %v12985_v16  ;;  %v13201_v53 = vsub.f32 %v1644_v17, %v4788_v35  ;;  %v2254_v47 = vsel %vm13168_vm15, 0, %v2252_v19  ;;  %9327 = vsinq.f32 %v2253_v58 }
 0x3b1   : > { %v13195_v33 = vmul.f32 %v16130_v59, %v16129_v52  ;;  %v1313_v32 = vxor.u32 2147483648, %v1312_v22  ;;  %v16133_v3 = vand.u32 2147483647, %v16104_v56  ;;  %vm15585_vm2 = vcmp.lt.s32.totalorder %v16104_v56, 0 }
 0x3b2   : > { %v13199_v25 = vpack.c.bf16 %v16131_v20, %v4788_v35  ;;  %v9322_v55 = vpop.eup %9321  ;;  %v1499_v31 = vshrl.u32 %v1498_v29, 30  ;;  %v13213_v16 = vand.u32 3, %v1322_v4  ;;  %v13216_v36 = vadd.s32 %v13146_v38, %v13136_v43 }
 0x3b3   : > { %vm13207_vm11 = vcmp.le.f32.partialorder %v16133_v3, 0.7853982  ;;  %v1947_v6 = vand.u32 3, %v1946_v45  ;;  %v2667_v7 = vsub.s32 4, %v11416_v21  ;;  %v9324_v60 = vpop.eup %9323  ;;  %v1314_v18 = vsel %vm1231_vm8, %v1313_v32, %v1312_v22  ;;  %v16142_v3 = vld [vmem:[#allocation118_spill] sm:$0xff] }
 0x3b4   : > { %16132 = vst [vmem:[#allocation68_spill] sm:$0xff] %v13199_v25  ;;  %8378 = vmatprep.subr.bf16.mxu1 %v13199_v25  ;;  %v1500_v50 = vshll.u32 %v1499_v31, 30  ;;  %v1523_v5 = vsub.s32 4, %v1499_v31  ;;  %v2258_v49 = vadd.s32 3, %v2254_v47  ;;  %v1317_v61 = vsel %vm13112_vm6, %v16081_v1, %v1314_v18 }
 0x3b5   : > { %v1950_v58 = vxor.u32 2147483648, %v9324_v60  ;;  %v1953_v17 = vxor.u32 2147483648, %v9322_v55  ;;  %v16136_v62 = vand.u32 2147483647, %v11153_v9  ;;  %9329 = vcosq.f32 %v1317_v61 }
 0x3b6   : > { %v13230_v38 = vsub.s32 %v1497_v40, %v1500_v50  ;;  %vm1945_vm8 = vweird.f32 %v16115_v63  ;;  %v2668_v19 = vsel %vm2583_vm1, %v2667_v7, %v11416_v21  ;;  %9331 = vsinq.f32 %v1317_v61 }
 0x3b7   : > { %vm13226_vm0 = vcmp.le.f32.partialorder %v16136_v62, 0.7853982  ;;  %v1524_v35 = vsel %vm15585_vm2, %v1523_v5, %v1499_v31  ;;  %vm1948_vm6 = vcmp.lt.s32.totalorder %v1947_v6, 2  ;;  %vm1949_vm3 = vcmp.eq.s32.totalorder %v1947_v6, 0 }
 0x3b8   : > { %v2669_v48 = vsel %vm13226_vm0, %v11153_v9, %v12036_v30  ;;  %v1503_v40 = vsub.s32 0, %v13230_v38  ;;  %vm1952_vm14 = vcmp.eq.s32.totalorder %v1947_v6, 2  ;;  %vm2257_vm10 = vweird.f32 %v16122_v10 }
 0x3b9   : > { %v2259_v4 = vand.u32 3, %v2258_v49  ;;  %v1951_v45 = vsel %vm1949_vm3, %v9322_v55, %v1950_v58  ;;  %v1954_v52 = vsel %vm1952_vm14, %v1953_v17, %v9324_v60  ;;  %v2670_v21 = vsel %vm13226_vm0, 0, %v2668_v19  ;;  %v9326_v59 = vpop.eup %9325 }
 0x3ba   : > { %9333 = vcosq.f32 %v2669_v48  ;;  %vm1328_vm1 = vcmp.eq.s32.totalorder %v13213_v16, 2  ;;  %v8183_v30 = vmin.u32 %v1503_v40, %v13230_v38  ;;  %v1526_v22 = vsel %vm13207_vm11, 0, %v1524_v35  ;;  %v9328_v47 = vpop.eup %9327 }
 0x3bb   : > { %9335 = vsinq.f32 %v2669_v48  ;;  %v16139_v29 = vand.u32 2147483647, %v10451_v54  ;;  %vm1325_vm9 = vcmp.eq.s32.totalorder %v13213_v16, 0  ;;  %v2265_v55 = vxor.u32 2147483648, %v9326_v59 }
 0x3bc   : > { %v2674_v32 = vadd.s32 3, %v2670_v21  ;;  %v2459_v31 = vsub.s32 4, %v16142_v3  ;;  %vm1324_vm12 = vcmp.lt.s32.totalorder %v13213_v16, 2  ;;  %v1505_v60 = vclz %v8183_v30 }
 0x3bd   : > { %vm13252_vm4 = vcmp.le.f32.partialorder %v16139_v29, 0.7853982  ;;  %v1955_v18 = vsel %vm1948_vm6, %v1951_v45, %v1954_v52  ;;  %vm2260_vm7 = vcmp.lt.s32.totalorder %v2259_v4, 2  ;;  %vm2264_vm15 = vcmp.eq.s32.totalorder %v2259_v4, 2 }
 0x3be   : > { %v2461_v7 = vsel %vm13252_vm4, %v10451_v54, %v11455_v12  ;;  %vm1321_vm13 = vweird.f32 %v16081_v1  ;;  %vm2261_vm0 = vcmp.eq.s32.totalorder %v2259_v4, 0  ;;  %v2262_v50 = vxor.u32 2147483648, %v9328_v47 }
 0x3bf   : > { %v2266_v5 = vsel %vm2264_vm15, %v2265_v55, %v9328_v47  ;;  %v2675_v49 = vand.u32 3, %v2674_v32  ;;  %v8184_v61 = vadd.s32 4294967294, %v1505_v60  ;;  %v13265_v58 = vadd.s32 3, %v1526_v22  ;;  %v9330_v62 = vpop.eup %9329 }
 0x3c0   : > { %vm16143_vm3 = vcmp.lt.s32.totalorder %v10451_v54, 0  ;;  %9337 = vcosq.f32 %v2461_v7  ;;  %v13272_v6 = vsel %vm1945_vm8, nan, %v1955_v18  ;;  %v2263_v17 = vsel %vm2261_vm0, %v9326_v59, %v2262_v50  ;;  %v9332_v48 = vpop.eup %9331 }
 0x3c1   : > { %v2460_v12 = vsel %vm16143_vm3, %v2459_v31, %v16142_v3  ;;  %vm2676_vm6 = vcmp.lt.s32.totalorder %v2675_v49, 2  ;;  %vm2677_vm14 = vcmp.eq.s32.totalorder %v2675_v49, 0  ;;  %vm8185_vm2 = vcmp.lt.s32.totalorder %v8184_v61, 0 }
 0x3c2   : > { %v2267_v43 = vsel %vm2260_vm7, %v2263_v17, %v2266_v5  ;;  %vm2673_vm15 = vweird.f32 %v11153_v9  ;;  %v2462_v19 = vsel %vm13252_vm4, 0, %v2460_v12  ;;  %9339 = vsinq.f32 %v2461_v7 }
 0x3c3   : > { %v1329_v35 = vxor.u32 2147483648, %v9330_v62  ;;  %v1508_v40 = vsel %vm8185_vm2, 0, %v8184_v61  ;;  %v2268_v63 = vsel %vm2257_vm10, nan, %v2267_v43  ;;  %v2466_v45 = vadd.s32 3, %v2462_v19 }
 0x3c4   : > { %v1326_v52 = vxor.u32 2147483648, %v9332_v48  ;;  %v1509_v21 = vsub.s32 32, %v1508_v40  ;;  %v1513_v59 = vsub.s32 4294967266, %v1508_v40  ;;  %vm2680_vm8 = vcmp.eq.s32.totalorder %v2675_v49, 2  ;;  %v9334_v30 = vpop.eup %9333 }
 0x3c5   : > { %v1330_v4 = vsel %vm1328_vm1, %v1329_v35, %v9332_v48  ;;  %v1510_v22 = vshll.u32 %v13230_v38, %v1508_v40  ;;  %v3806_v29 = vand.u32 4294901760, %v2268_v63  ;;  %v2467_v20 = vand.u32 3, %v2466_v45  ;;  %v9336_v47 = vpop.eup %9335  ;;  %v16155_v38 = vld [vmem:[#allocation124_spill] sm:$0xff] }
 0x3c6   : > { %v1327_v55 = vsel %vm1325_vm9, %v9330_v62, %v1326_v52  ;;  %v1511_v10 = vshrl.u32 %v13216_v36, %v1509_v21  ;;  %v1514_v32 = vadd.s32 127, %v1513_v59  ;;  %v2681_v3 = vxor.u32 2147483648, %v9334_v30 }
 0x3c7   : > { %v1331_v31 = vsel %vm1324_vm12, %v1327_v55, %v1330_v4  ;;  %v2678_v7 = vxor.u32 2147483648, %v9336_v47  ;;  %v13288_v60 = vsub.f32 %v2268_v63, %v3806_v29  ;;  %v16144_v18 = vand.u32 2147483647, %v11249_v27 }
 0x3c8   : > { %v1332_v50 = vsel %vm1321_vm13, nan, %v1331_v31  ;;  %v1512_v5 = vor.u32 %v1511_v10, %v1510_v22  ;;  %v1515_v61 = vshll.u32 %v1514_v32, 23  ;;  %v2682_v36 = vsel %vm2680_vm8, %v2681_v3, %v9336_v47 }
 0x3c9   : > { %vm13292_vm2 = vcmp.le.f32.partialorder %v16144_v18, 0.7853982  ;;  %vm2465_vm10 = vweird.f32 %v10451_v54  ;;  %v3800_v16 = vand.u32 4294901760, %v1332_v50  ;;  %v2679_v12 = vsel %vm2677_vm14, %v9334_v30, %v2678_v7  ;;  %v16154_v18 = vld [vmem:[#allocation99_spill] sm:$0xff] }
 0x3ca   : > { %vm2469_vm1 = vcmp.eq.s32.totalorder %v2467_v20, 0  ;;  %vm2472_vm4 = vcmp.eq.s32.totalorder %v2467_v20, 2  ;;  %v9338_v17 = vpop.eup %9337  ;;  %v1516_v62 = vor.u32 4788187, %v1515_v61  ;;  %v1519_v43 = vcvt.s32.f32 %v1512_v5 }
 0x3cb   : > { %v2683_v19 = vsel %vm2676_vm6, %v2679_v12, %v2682_v36  ;;  %v2875_v48 = vsub.s32 4, %v11591_v44  ;;  %v16147_v1 = vand.u32 4294901760, %v13106_v0  ;;  %v13307_v40 = vsub.f32 %v1332_v50, %v3800_v16 }
 0x3cc   : > { %v2684_v63 = vsel %vm2673_vm15, nan, %v2683_v19  ;;  %v2473_v45 = vxor.u32 2147483648, %v9338_v17  ;;  %v9340_v52 = vpop.eup %9339  ;;  %v1517_v21 = vand.u32 2147483647, %v1516_v62  ;;  %v2877_v0 = vsel %vm13292_vm2, %v11249_v27, %v12055_v34  ;;  %v16150_v34 = vld [vmem:[#allocation86_spill] sm:$0xff] }
 0x3cd   : > { %v13305_v35 = vpack.c.bf16 %v16147_v1, %v3800_v16  ;;  %v3810_v59 = vand.u32 4294901760, %v2684_v63  ;;  %v2876_v49 = vsel %vm2791_vm5, %v2875_v48, %v11591_v44  ;;  %v2470_v30 = vxor.u32 2147483648, %v9340_v52 }
 0x3ce   : > { %v2474_v4 = vsel %vm2472_vm4, %v2473_v45, %v9340_v52  ;;  %v2878_v9 = vsel %vm13292_vm2, 0, %v2876_v49  ;;  %9341 = vcosq.f32 %v2877_v0  ;;  %v1520_v22 = vmul.f32 %v1519_v43, %v1517_v21  ;;  %v16162_v21 = vld [vmem:[#allocation89_spill] sm:$0xff] }
 0x3cf   : > { %16148 = vst [vmem:[#allocation76_spill] sm:$0xff] %v13305_v35  ;;  %8284 = vmatpush1.bf16.msra.mxu0 %v13305_v35  ;;  %v13322_v47 = vpack.c.bf16 %v3810_v59, %v3806_v29  ;;  %v13324_v55 = vsub.f32 %v2684_v63, %v3810_v59  ;;  %9343 = vsinq.f32 %v2877_v0  ;;  %vm2468_vm5 = vcmp.lt.s32.totalorder %v2467_v20, 2  ;;  %v16161_v63 = vld [vmem:[#allocation127_spill] sm:$0xff]  ;;  %v16166_v0 = vld [vmem:[#allocation113_spill] sm:$0xff] }
 0x3d0   : > { %v2471_v44 = vsel %vm2469_vm1, %v9338_v17, %v2470_v30  ;;  %v2882_v10 = vadd.s32 3, %v2878_v9  ;;  %v16151_v32 = vand.u32 2147483647, %v16150_v34  ;;  %v1521_v31 = vxor.u32 2147483648, %v1520_v22 }
 0x3d1   : > { %16149 = vst [vmem:[#allocation17_spill] sm:$0xff] %v13322_v47  ;;  %8286 = vmatprep.subr.bf16.mxu0 %v13322_v47  ;;  %v2475_v7 = vsel %vm2468_vm5, %v2471_v44, %v2474_v4  ;;  %v2147_v29 = vsub.s32 4, %v16154_v18  ;;  %v3601_v20 = vxor.u32 2147483648, %v13189_v46  ;;  %v3705_v5 = vxor.u32 2147483648, %v13195_v33  ;;  %v16168_v44 = vld [vmem:[#allocation128_spill] sm:$0xff] }
 0x3d2   : > { %vm13329_vm9 = vcmp.le.f32.partialorder %v16151_v32, 0.7853982  ;;  %v13343_v61 = vsel %vm2465_vm10, nan, %v2475_v7  ;;  %vm16156_vm12 = vcmp.lt.s32.totalorder %v16104_v56, 0  ;;  %vm16157_vm7 = vcmp.lt.s32.totalorder %v16150_v34, 0 }
 0x3d3   : > { %v2149_v50 = vsel %vm13329_vm9, %v16150_v34, %v16155_v38  ;;  %v1522_v36 = vsel %vm16156_vm12, %v1521_v31, %v1520_v22  ;;  %v4796_v16 = vand.u32 4294901760, %v13343_v61  ;;  %v2148_v12 = vsel %vm16157_vm7, %v2147_v29, %v16154_v18 }
 0x3d4   : > { %9345 = vcosq.f32 %v2149_v50  ;;  %v1525_v17 = vsel %vm13207_vm11, %v16104_v56, %v1522_v36  ;;  %v13355_v62 = vand.u32 3, %v13265_v58  ;;  %v4794_v54 = vand.u32 4294901760, %v13272_v6 }
 0x3d5   : > { %9347 = vsinq.f32 %v2149_v50  ;;  %v2883_v43 = vand.u32 3, %v2882_v10  ;;  %v13361_v19 = vsub.f32 %v13343_v61, %v4796_v16  ;;  %v2150_v48 = vsel %vm13329_vm9, 0, %v2148_v12 }
 0x3d6   : > { %9349 = vcosq.f32 %v1525_v17  ;;  %v16158_v1 = vand.u32 2147483647, %v11081_v14  ;;  %v2154_v58 = vadd.s32 3, %v2150_v48  ;;  %v2563_v45 = vsub.s32 4, %v16161_v63 }
 0x3d7   : > { %9351 = vsinq.f32 %v1525_v17  ;;  %vm2881_vm11 = vweird.f32 %v11249_v27  ;;  %v16163_v59 = vand.u32 2147483647, %v16162_v21  ;;  %v2355_v30 = vsub.s32 4, %v16166_v0  ;;  %v16174_v27 = vld [vmem:[#allocation12_spill] sm:$0xff] }
 0x3d8   : > { %vm13367_vm13 = vcmp.le.f32.partialorder %v16158_v1, 0.7853982  ;;  %v9342_v4 = vpop.eup %9341  ;;  %v2155_v9 = vand.u32 3, %v2154_v58  ;;  %vm16167_vm3 = vcmp.lt.s32.totalorder %v11081_v14, 0  ;;  %vm1536_vm6 = vcmp.eq.s32.totalorder %v13355_v62, 2 }
 0x3d9   : > { %v2565_v52 = vsel %vm13367_vm13, %v11081_v14, %v12015_v37  ;;  %vm13379_vm0 = vcmp.le.f32.partialorder %v16163_v59, 0.7853982  ;;  %v2564_v22 = vsel %vm16167_vm3, %v2563_v45, %v16161_v63  ;;  %v9344_v10 = vpop.eup %9343  ;;  %v2889_v32 = vxor.u32 2147483648, %v9342_v4 }
 0x3da   : > { %9353 = vcosq.f32 %v2565_v52  ;;  %v2357_v37 = vsel %vm13379_vm0, %v16162_v21, %v16168_v44  ;;  %v2566_v3 = vsel %vm13367_vm13, 0, %v2564_v22  ;;  %vm16169_vm14 = vcmp.lt.s32.totalorder %v16162_v21, 0  ;;  %v16173_v22 = vld [vmem:[#allocation130_spill] sm:$0xff] }
 0x3db   : > { %9355 = vsinq.f32 %v2565_v52  ;;  %v2356_v31 = vsel %vm16169_vm14, %v2355_v30, %v16166_v0  ;;  %vm1533_vm15 = vcmp.eq.s32.totalorder %v13355_v62, 0  ;;  %vm2885_vm8 = vcmp.eq.s32.totalorder %v2883_v43, 0 }
 0x3dc   : > { %9357 = vcosq.f32 %v2357_v37  ;;  %v2886_v7 = vxor.u32 2147483648, %v9344_v10  ;;  %vm2888_vm2 = vcmp.eq.s32.totalorder %v2883_v43, 2  ;;  %vm2153_vm10 = vweird.f32 %v16150_v34 }
 0x3dd   : > { %vm1532_vm1 = vcmp.lt.s32.totalorder %v13355_v62, 2  ;;  %v2890_v18 = vsel %vm2888_vm2, %v2889_v32, %v9344_v10  ;;  %v2570_v29 = vadd.s32 3, %v2566_v3  ;;  %v2358_v38 = vsel %vm13379_vm0, 0, %v2356_v31  ;;  %v16175_v10 = vld [vmem:[#allocation23_spill] sm:$0xff] }
 0x3de   : > { %9359 = vsinq.f32 %v2357_v37  ;;  %v9346_v50 = vpop.eup %9345  ;;  %vm1529_vm4 = vweird.f32 %v16104_v56  ;;  %vm2884_vm5 = vcmp.lt.s32.totalorder %v2883_v43, 2  ;;  %v2887_v36 = vsel %vm2885_vm8, %v9342_v4, %v2886_v7 }
 0x3df   : > { %vm2156_vm9 = vcmp.lt.s32.totalorder %v2155_v9, 2  ;;  %v2362_v12 = vadd.s32 3, %v2358_v38  ;;  %v9348_v17 = vpop.eup %9347  ;;  %v2891_v48 = vsel %vm2884_vm5, %v2887_v36, %v2890_v18  ;;  %vm2157_vm12 = vcmp.eq.s32.totalorder %v2155_v9, 0  ;;  %v16176_v38 = vld [vmem:[#allocation134_spill] sm:$0xff] }
 0x3e0   : > { %v2161_v1 = vxor.u32 2147483648, %v9346_v50  ;;  %v2571_v11 = vand.u32 3, %v2570_v29  ;;  %v2892_v58 = vsel %vm2881_vm11, nan, %v2891_v48  ;;  %v2158_v63 = vxor.u32 2147483648, %v9348_v17  ;;  %v9350_v43 = vpop.eup %9349 }
 0x3e1   : > { %vm2160_vm7 = vcmp.eq.s32.totalorder %v2155_v9, 2  ;;  %vm2569_vm13 = vweird.f32 %v11081_v14  ;;  %v16170_v45 = vand.u32 2147483647, %v11195_v13  ;;  %v4800_v59 = vand.u32 4294901760, %v2892_v58  ;;  %v9352_v4 = vpop.eup %9351 }
 0x3e2   : > { %v2162_v49 = vsel %vm2160_vm7, %v2161_v1, %v9348_v17  ;;  %v2363_v0 = vand.u32 3, %v2362_v12  ;;  %v2771_v30 = vsub.s32 4, %v11507_v2  ;;  %vm3415_vm3 = vcmp.lt.s32.totalorder %v16173_v22, 0 }
 0x3e3   : > { %vm13408_vm0 = vcmp.le.f32.partialorder %v16170_v45, 0.7853982  ;;  %vm3519_vm11 = vcmp.lt.s32.totalorder %v16174_v27, 0  ;;  %v1537_v44 = vxor.u32 2147483648, %v9350_v43  ;;  %v2159_v37 = vsel %vm2157_vm12, %v9346_v50, %v2158_v63 }
 0x3e4   : > { %vm2572_vm14 = vcmp.lt.s32.totalorder %v2571_v11, 2  ;;  %v2773_v32 = vsel %vm13408_vm0, %v11195_v13, %v16175_v10  ;;  %v9354_v3 = vpop.eup %9353  ;;  %v1534_v31 = vxor.u32 2147483648, %v9352_v4  ;;  %v13420_v7 = vsub.f32 %v2892_v58, %v4800_v59 }
 0x3e5   : > { %v2163_v18 = vsel %vm2156_vm9, %v2159_v37, %v2162_v49  ;;  %vm2573_vm8 = vcmp.eq.s32.totalorder %v2571_v11, 0  ;;  %v9356_v29 = vpop.eup %9355  ;;  %vm3623_vm2 = vcmp.lt.s32.totalorder %v16176_v38, 0  ;;  %v1538_v36 = vsel %vm1536_vm6, %v1537_v44, %v9352_v4 }
 0x3e6   : > { %v2164_v50 = vsel %vm2153_vm10, nan, %v2163_v18  ;;  %vm2576_vm5 = vcmp.eq.s32.totalorder %v2571_v11, 2  ;;  %v2577_v12 = vxor.u32 2147483648, %v9354_v3  ;;  %v9358_v17 = vpop.eup %9357  ;;  %v1535_v48 = vsel %vm1533_vm15, %v9350_v43, %v1534_v31 }
 0x3e7   : > { %v13432_v9 = vpack.c.bf16 %v4800_v59, %v4796_v16  ;;  %v2574_v1 = vxor.u32 2147483648, %v9356_v29  ;;  %v3808_v58 = vand.u32 4294901760, %v2164_v50  ;;  %v1539_v63 = vsel %vm1532_vm1, %v1535_v48, %v1538_v36  ;;  %v16182_v36 = vld [vmem:[#allocation121_spill] sm:$0xff] }
 0x3e8   : > { %v2578_v45 = vsel %vm2576_vm5, %v2577_v12, %v9356_v29  ;;  %v2369_v49 = vxor.u32 2147483648, %v9358_v17  ;;  %vm16178_vm6 = vcmp.lt.s32.totalorder %v11195_v13, 0  ;;  %v9360_v4 = vpop.eup %9359  ;;  %v1540_v44 = vsel %vm1529_vm4, nan, %v1539_v63 }
 0x3e9   : > { %16177 = vst [vmem:[#allocation38_spill] sm:$0xff] %v13432_v9  ;;  %v2772_v34 = vsel %vm16178_vm6, %v2771_v30, %v11507_v2  ;;  %v2575_v43 = vsel %vm2573_vm8, %v9354_v3, %v2574_v1  ;;  %v13442_v61 = vsub.f32 %v2164_v50, %v3808_v58  ;;  %vm2368_vm15 = vcmp.eq.s32.totalorder %v2363_v0, 2  ;;  %v16190_v1 = vld [vmem:[#allocation135_spill] sm:$0xff] }
 0x3ea   : > { %v4790_v16 = vand.u32 4294901760, %v1540_v44  ;;  %v2579_v59 = vsel %vm2572_vm14, %v2575_v43, %v2578_v45  ;;  %v2366_v62 = vxor.u32 2147483648, %v9360_v4  ;;  %v2370_v37 = vsel %vm2368_vm15, %v2369_v49, %v9360_v4  ;;  %v16191_v4 = vld [vmem:[#allocation119_spill] sm:$0xff] }
 0x3eb   : > { %v2580_v10 = vsel %vm2569_vm13, nan, %v2579_v59  ;;  %vm2365_vm10 = vcmp.eq.s32.totalorder %v2363_v0, 0  ;;  %v2774_v2 = vsel %vm13408_vm0, 0, %v2772_v34  ;;  %9361 = vcosq.f32 %v2773_v32 }
 0x3ec   : > { %v13451_v56 = vpack.c.bf16 %v4794_v54, %v4790_v16  ;;  %v3812_v30 = vand.u32 4294901760, %v2580_v10  ;;  %vm2364_vm1 = vcmp.lt.s32.totalorder %v2363_v0, 2  ;;  %v2367_v3 = vsel %vm2365_vm10, %v9358_v17, %v2366_v62 }
 0x3ed   : > { %v16180_v11 = vxor.u32 2147483648, %v12455_v28  ;;  %v13463_v14 = vsel %vm3519_vm11, %v3601_v20, %v13189_v46  ;;  %v2371_v52 = vsel %vm2364_vm1, %v2367_v3, %v2370_v37  ;;  %9363 = vsinq.f32 %v2773_v32  ;;  %v16183_v20 = vld [vmem:[#allocation112_spill] sm:$0xff] }
 0x3ee   : > { %16179 = vst [vmem:[#allocation33_spill] sm:$0xff] %v13451_v56  ;;  %8380 = vmatpush1.bf16.msra.mxu1 %v13451_v56  ;;  %v13466_v18 = vpack.c.bf16 %v3812_v30, %v3808_v58  ;;  %v13468_v0 = vsub.f32 %v2580_v10, %v3812_v30  ;;  %v2778_v29 = vadd.s32 3, %v2774_v2  ;;  %v3083_v50 = vsub.s32 4, %v16182_v36  ;;  %v16196_v10 = vld [vmem:[#allocation136_spill] sm:$0xff] }
 0x3ef   : > { %v3498_v31 = vsel %vm3415_vm3, %v16180_v11, %v12455_v28  ;;  %v3706_v28 = vsel %vm3623_vm2, %v3705_v5, %v13195_v33  ;;  %v13479_v46 = vsub.f32 %v13272_v6, %v4794_v54  ;;  %8382 = vmatprep.subr.bf16.mxu1 %v13432_v9  ;;  %vm2361_vm4 = vweird.f32 %v16162_v21  ;;  %v16186_v5 = vld [vmem:[#allocation132_spill] sm:$0xff] }
 0x3f0   : > { %16181 = vst [vmem:[#allocation32_spill] sm:$0xff] %v13466_v18  ;;  %v16184_v32 = vand.u32 2147483647, %v16183_v20  ;;  %v13485_v12 = vsub.f32 %v1540_v44, %v4790_v16  ;;  %8288 = vmatpush1.bf16.msra.mxu0 %v13466_v18  ;;  %v13488_v17 = vsel %vm2361_vm4, nan, %v2371_v52  ;;  %vm16185_vm12 = vcmp.lt.s32.totalorder %v16183_v20, 0  ;;  %v16195_v16 = vld [vmem:[#allocation126_spill] sm:$0xff] }
 0x3f1   : > { %v3084_v33 = vsel %vm16185_vm12, %v3083_v50, %v16182_v36  ;;  %v16187_v21 = vand.u32 2147483647, %v16173_v22  ;;  %v3499_v58 = vsub.s32 4, %v16190_v1  ;;  %v2779_v63 = vand.u32 3, %v2778_v29 }
 0x3f2   : > { %vm2998_vm9 = vcmp.le.f32.partialorder %v16184_v32, 0.7853982  ;;  %vm2777_vm13 = vweird.f32 %v11195_v13  ;;  %v16192_v44 = vand.u32 2147483647, %v16191_v4  ;;  %v3291_v59 = vsub.s32 4, %v16195_v16 }
 0x3f3   : > { %v3085_v6 = vsel %vm2998_vm9, %v16183_v20, %v16186_v5  ;;  %v3086_v54 = vsel %vm2998_vm9, 0, %v3084_v33  ;;  %vm13497_vm7 = vcmp.le.f32.partialorder %v16187_v21, 0.7853982  ;;  %v3500_v34 = vsel %vm3415_vm3, %v3499_v58, %v16190_v1  ;;  %v16201_v21 = vld [vmem:[#allocation27_spill] sm:$0xff] }
 0x3f4   : > { %9365 = vcosq.f32 %v3085_v6  ;;  %v3090_v45 = vadd.s32 3, %v3086_v54  ;;  %v3501_v49 = vsel %vm13497_vm7, %v16173_v22, %v3498_v31  ;;  %vm13511_vm0 = vcmp.le.f32.partialorder %v16192_v44, 0.7853982 }
 0x3f5   : > { %9367 = vsinq.f32 %v3085_v6  ;;  %v4798_v62 = vand.u32 4294901760, %v13488_v17  ;;  %v3502_v37 = vsel %vm13497_vm7, 0, %v3500_v34  ;;  %v3293_v2 = vsel %vm13511_vm0, %v16191_v4, %v16196_v10  ;;  %v9362_v30 = vpop.eup %9361 }
 0x3f6   : > { %9369 = vcosq.f32 %v3501_v49  ;;  %v3091_v3 = vand.u32 3, %v3090_v45  ;;  %v3506_v11 = vadd.s32 3, %v3502_v37  ;;  %vm16197_vm3 = vcmp.lt.s32.totalorder %v16191_v4, 0 }
 0x3f7   : > { %9371 = vsinq.f32 %v3501_v49  ;;  %v3292_v31 = vsel %vm16197_vm3, %v3291_v59, %v16195_v16  ;;  %vm2780_vm14 = vcmp.lt.s32.totalorder %v2779_v63, 2  ;;  %vm2781_vm8 = vcmp.eq.s32.totalorder %v2779_v63, 0  ;;  %v9364_v29 = vpop.eup %9363 }
 0x3f8   : > { %9373 = vcosq.f32 %v3293_v2  ;;  %vm2784_vm5 = vcmp.eq.s32.totalorder %v2779_v63, 2  ;;  %v2785_v52 = vxor.u32 2147483648, %v9362_v30  ;;  %v3507_v36 = vand.u32 3, %v3506_v11 }
 0x3f9   : > { %v3294_v50 = vsel %vm13511_vm0, 0, %v3292_v31  ;;  %9375 = vsinq.f32 %v3293_v2  ;;  %v16198_v32 = vand.u32 2147483647, %v16176_v38  ;;  %v2782_v5 = vxor.u32 2147483648, %v9364_v29 }
 0x3fa   : > { %v2786_v6 = vsel %vm2784_vm5, %v2785_v52, %v9364_v29  ;;  %v3298_v54 = vadd.s32 3, %v3294_v50  ;;  %v3707_v48 = vsub.s32 4, %v16201_v21  ;;  %v13536_v1 = vsub.f32 %v13488_v17, %v4798_v62  ;;  %v16202_v52 = vld [vmem:[#allocation120_spill] sm:$0xff] }
 0x3fb   : > { %vm13530_vm6 = vcmp.le.f32.partialorder %v16198_v32, 0.7853982  ;;  %vm3089_vm15 = vweird.f32 %v16183_v20  ;;  %vm3092_vm10 = vcmp.lt.s32.totalorder %v3091_v3, 2  ;;  %v2783_v45 = vsel %vm2781_vm8, %v9362_v30, %v2782_v5 }
 0x3fc   : > { %v3709_v58 = vsel %vm13530_vm6, %v16176_v38, %v3706_v28  ;;  %vm3093_vm1 = vcmp.eq.s32.totalorder %v3091_v3, 0  ;;  %vm3505_vm4 = vweird.f32 %v16173_v22  ;;  %v3708_v49 = vsel %vm3623_vm2, %v3707_v48, %v16201_v21  ;;  %v16204_v21 = vld [vmem:[#allocation111_spill] sm:$0xff] }
 0x3fd   : > { %9377 = vcosq.f32 %v3709_v58  ;;  %v2787_v17 = vsel %vm2780_vm14, %v2783_v45, %v2786_v6  ;;  %v3299_v44 = vand.u32 3, %v3298_v54  ;;  %v3710_v43 = vsel %vm13530_vm6, 0, %v3708_v49 }
 0x3fe   : > { %v9366_v34 = vpop.eup %9365  ;;  %9379 = vsinq.f32 %v3709_v58  ;;  %v2788_v28 = vsel %vm2777_vm13, nan, %v2787_v17  ;;  %vm3096_vm9 = vcmp.eq.s32.totalorder %v3091_v3, 2  ;;  %vm3508_vm12 = vcmp.lt.s32.totalorder %v3507_v36, 2 }
 0x3ff   : > { %v9368_v16 = vpop.eup %9367  ;;  %v3097_v59 = vxor.u32 2147483648, %v9366_v34  ;;  %v4802_v10 = vand.u32 4294901760, %v2788_v28  ;;  %vm3509_vm2 = vcmp.eq.s32.totalorder %v3507_v36, 0  ;;  %vm3297_vm7 = vweird.f32 %v16191_v4 }
 0x400   : > { %v9370_v37 = vpop.eup %9369  ;;  %v3094_v2 = vxor.u32 2147483648, %v9368_v16  ;;  %v3714_v63 = vadd.s32 3, %v3710_v43  ;;  %vm3512_vm0 = vcmp.eq.s32.totalorder %v3507_v36, 2  ;;  %v2979_v29 = vsub.s32 4, %v16202_v52 }
 0x401   : > { %v9372_v30 = vpop.eup %9371  ;;  %v3098_v11 = vsel %vm3096_vm9, %v3097_v59, %v9368_v16  ;;  %v3513_v31 = vxor.u32 2147483648, %v9370_v37  ;;  %v13554_v32 = vpack.c.bf16 %v4802_v10, %v4798_v62  ;;  %vm3304_vm13 = vcmp.eq.s32.totalorder %v3299_v44, 2  ;;  %v16209_v59 = vld [vmem:[#allocation131_spill] sm:$0xff] }
 0x402   : > { %v9374_v50 = vpop.eup %9373  ;;  %v3095_v13 = vsel %vm3093_vm1, %v9366_v34, %v3094_v2  ;;  %v3510_v33 = vxor.u32 2147483648, %v9372_v30  ;;  %v16205_v48 = vand.u32 2147483647, %v16204_v21  ;;  %v3715_v34 = vand.u32 3, %v3714_v63 }
 0x403   : > { %16203 = vst [vmem:[#allocation49_spill] sm:$0xff] %v13554_v32  ;;  %v3099_v5 = vsel %vm3092_vm10, %v3095_v13, %v3098_v11  ;;  %v3514_v6 = vsel %vm3512_vm0, %v3513_v31, %v9372_v30  ;;  %v3305_v54 = vxor.u32 2147483648, %v9374_v50  ;;  %v9376_v45 = vpop.eup %9375  ;;  %8384 = vmatpush1.bf16.msra.mxu1 %v13554_v32  ;;  %vm16208_vm14 = vcmp.lt.s32.totalorder %v16204_v21, 0 }
 0x404   : > { %vm13560_vm3 = vcmp.le.f32.partialorder %v16205_v48, 0.7853982  ;;  %v3100_v62 = vsel %vm3089_vm15, nan, %v3099_v5  ;;  %v3511_v49 = vsel %vm3509_vm2, %v9370_v37, %v3510_v33  ;;  %v2980_v3 = vsel %vm16208_vm14, %v2979_v29, %v16202_v52 }
 0x405   : > { %v3515_v17 = vsel %vm3508_vm12, %v3511_v49, %v3514_v6  ;;  %v3302_v43 = vxor.u32 2147483648, %v9376_v45  ;;  %v3306_v16 = vsel %vm3304_vm13, %v3305_v54, %v9376_v45  ;;  %v2981_v2 = vsel %vm13560_vm3, %v16204_v21, %v16209_v59  ;;  %v16211_v54 = vld [vmem:[#allocation129_spill] sm:$0xff]  ;;  %v16215_v45 = vld [vmem:[#allocation15_spill] sm:$0xff] }
 0x406   : > { %v3516_v20 = vsel %vm3505_vm4, nan, %v3515_v17  ;;  %vm3300_vm8 = vcmp.lt.s32.totalorder %v3299_v44, 2  ;;  %vm3301_vm5 = vcmp.eq.s32.totalorder %v3299_v44, 0  ;;  %vm3713_vm6 = vweird.f32 %v16176_v38 }
 0x407   : > { %v9378_v37 = vpop.eup %9377  ;;  %v3814_v63 = vand.u32 4294901760, %v3100_v62  ;;  %v3818_v30 = vand.u32 4294901760, %v3516_v20  ;;  %v3303_v11 = vsel %vm3301_vm5, %v9374_v50, %v3302_v43  ;;  %v2982_v36 = vsel %vm13560_vm3, 0, %v2980_v3  ;;  %v16216_v43 = vld [vmem:[#allocation29_spill] sm:$0xff] }
 0x408   : > { %v9380_v31 = vpop.eup %9379  ;;  %v3307_v52 = vsel %vm3300_vm8, %v3303_v11, %v3306_v16  ;;  %vm3717_vm15 = vcmp.eq.s32.totalorder %v3715_v34, 0  ;;  %v3721_v29 = vxor.u32 2147483648, %v9378_v37  ;;  %9381 = vcosq.f32 %v2981_v2  ;;  %v16218_v11 = vld [vmem:[#allocation117_spill] sm:$0xff] }
 0x409   : > { %v13581_v13 = vpack.c.bf16 %v3818_v30, %v3814_v63  ;;  %v3308_v22 = vsel %vm3297_vm7, nan, %v3307_v52  ;;  %v3718_v44 = vxor.u32 2147483648, %v9380_v31  ;;  %vm3720_vm10 = vcmp.eq.s32.totalorder %v3715_v34, 2  ;;  %v16223_v52 = vld [vmem:[#allocation133_spill] sm:$0xff] }
 0x40a   : > { %v3722_v33 = vsel %vm3720_vm10, %v3721_v29, %v9380_v31  ;;  %v4804_v5 = vand.u32 4294901760, %v3308_v22  ;;  %9383 = vsinq.f32 %v2981_v2  ;;  %v2986_v6 = vadd.s32 3, %v2982_v36 }
 0x40b   : > { %16210 = vst [vmem:[#allocation51_spill] sm:$0xff] %v13581_v13  ;;  %8290 = vmatprep.subr.bf16.mxu0 %v13581_v13  ;;  %vm3716_vm1 = vcmp.lt.s32.totalorder %v3715_v34, 2  ;;  %v3719_v50 = vsel %vm3717_vm15, %v9378_v37, %v3718_v44  ;;  %v16212_v48 = vand.u32 2147483647, %v16211_v54  ;;  %v3395_v49 = vsub.s32 4, %v16215_v45 }
 0x40c   : > { %v13593_v4 = vsub.f32 %v2788_v28, %v4802_v10  ;;  %v3723_v3 = vsel %vm3716_vm1, %v3719_v50, %v3722_v33  ;;  %v2987_v17 = vand.u32 3, %v2986_v6  ;;  %v13599_v59 = vsub.f32 %v3100_v62, %v3814_v63  ;;  %v16222_v62 = vld [vmem:[#allocation122_spill] sm:$0xff] }
 0x40d   : > { %vm13588_vm4 = vcmp.le.f32.partialorder %v16212_v48, 0.7853982  ;;  %v3724_v34 = vsel %vm3713_vm6, nan, %v3723_v3  ;;  %vm16217_vm9 = vcmp.lt.s32.totalorder %v16211_v54, 0  ;;  %v13606_v37 = vsub.f32 %v3516_v20, %v3818_v30  ;;  %v16229_v48 = vld [vmem:[#allocation16_spill] sm:$0xff] }
 0x40e   : > { %v3397_v16 = vsel %vm13588_vm4, %v16211_v54, %v16216_v43  ;;  %v3396_v2 = vsel %vm16217_vm9, %v3395_v49, %v16215_v45  ;;  %v4808_v28 = vand.u32 4294901760, %v3724_v34  ;;  %v13608_v10 = vsub.f32 %v3308_v22, %v4804_v5 }
 0x40f   : > { %9385 = vcosq.f32 %v3397_v16  ;;  %v16219_v36 = vand.u32 2147483647, %v16218_v11  ;;  %v3398_v38 = vsel %vm13588_vm4, 0, %v3396_v2  ;;  %v3187_v63 = vsub.s32 4, %v16222_v62 }
 0x410   : > { %9387 = vsinq.f32 %v3397_v16  ;;  %v13623_v30 = vpack.c.bf16 %v4808_v28, %v4804_v5  ;;  %vm2985_vm2 = vweird.f32 %v16204_v21  ;;  %vm2988_vm7 = vcmp.lt.s32.totalorder %v2987_v17, 2 }
 0x411   : > { %vm13612_vm12 = vcmp.le.f32.partialorder %v16219_v36, 0.7853982  ;;  %v3402_v29 = vadd.s32 3, %v3398_v38  ;;  %vm2989_vm0 = vcmp.eq.s32.totalorder %v2987_v17, 0  ;;  %vm16225_vm13 = vcmp.lt.s32.totalorder %v16218_v11, 0 }
 0x412   : > { %v3189_v20 = vsel %vm13612_vm12, %v16218_v11, %v16223_v52  ;;  %16224 = vst [vmem:[#allocation48_spill] sm:$0xff] %v13623_v30  ;;  %v3188_v22 = vsel %vm16225_vm13, %v3187_v63, %v16222_v62  ;;  %v16226_v44 = vand.u32 2147483647, %v16174_v27  ;;  %v9382_v6 = vpop.eup %9381  ;;  %8386 = vmatprep.subr.bf16.mxu1 %v13623_v30  ;;  %v3603_v58 = vsub.s32 4, %v16229_v48  ;;  %v16230_v63 = vld [vmem:[#allocation42_spill] sm:$0xff] }
 0x413   : > { %9389 = vcosq.f32 %v3189_v20  ;;  %v3403_v5 = vand.u32 3, %v3402_v29  ;;  %v3190_v50 = vsel %vm13612_vm12, 0, %v3188_v22  ;;  %vm2992_vm14 = vcmp.eq.s32.totalorder %v2987_v17, 2 }
 0x414   : > { %9391 = vsinq.f32 %v3189_v20  ;;  %vm13631_vm3 = vcmp.le.f32.partialorder %v16226_v44, 0.7853982  ;;  %v2993_v49 = vxor.u32 2147483648, %v9382_v6  ;;  %v3194_v3 = vadd.s32 3, %v3190_v50  ;;  %v9384_v43 = vpop.eup %9383 }
 0x415   : > { %v3605_v45 = vsel %vm13631_vm3, %v16174_v27, %v13463_v14  ;;  %v13643_v16 = vsub.f32 %v3724_v34, %v4808_v28  ;;  %vm3404_vm8 = vcmp.lt.s32.totalorder %v3403_v5, 2  ;;  %vm3405_vm5 = vcmp.eq.s32.totalorder %v3403_v5, 0  ;;  %v16231_v34 = vld [vmem:[#allocation36_spill] sm:$0xff] }
 0x416   : > { %9393 = vcosq.f32 %v3605_v45  ;;  %v3604_v2 = vsel %vm3519_vm11, %v3603_v58, %v16229_v48  ;;  %v2990_v36 = vxor.u32 2147483648, %v9384_v43  ;;  %v2994_v31 = vsel %vm2992_vm14, %v2993_v49, %v9384_v43 }
 0x417   : > { %vm3401_vm6 = vweird.f32 %v16211_v54  ;;  %v3195_v38 = vand.u32 3, %v3194_v3  ;;  %v3606_v14 = vsel %vm13631_vm3, 0, %v3604_v2  ;;  %9395 = vsinq.f32 %v3605_v45 }
 0x418   : > { %v3610_v62 = vadd.s32 3, %v3606_v14  ;;  %v15587_v52 = vand.u32 4294901760, %v16230_v63  ;;  %v15586_v28 = vand.u32 4294901760, %v16231_v34  ;;  %v2991_v29 = vsel %vm2989_vm0, %v9382_v6, %v2990_v36 }
 0x419   : > { %v9386_v20 = vpop.eup %9385  ;;  %vm3408_vm15 = vcmp.eq.s32.totalorder %v3403_v5, 2  ;;  %vm3193_vm11 = vweird.f32 %v16218_v11  ;;  %vm3196_vm10 = vcmp.lt.s32.totalorder %v3195_v38, 2  ;;  %vm3197_vm1 = vcmp.eq.s32.totalorder %v3195_v38, 0 }
 0x41a   : > { %v2995_v22 = vsel %vm2988_vm7, %v2991_v29, %v2994_v31  ;;  %v3409_v44 = vxor.u32 2147483648, %v9386_v20  ;;  %v3611_v50 = vand.u32 3, %v3610_v62  ;;  %v3962_v33 = vsub.f32 %v16230_v63, %v15587_v52  ;;  %v9388_v48 = vpop.eup %9387 }
 0x41b   : > { %v2996_v58 = vsel %vm2985_vm2, nan, %v2995_v22  ;;  %v3974_v6 = vsub.f32 %v16231_v34, %v15586_v28  ;;  %v15595_v45 = vand.u32 4294901760, %v12442_v41  ;;  %v15590_v49 = vand.u32 4294901760, %v12555_v8 }
 0x41c   : > { %v3406_v3 = vxor.u32 2147483648, %v9388_v48  ;;  %v3410_v43 = vsel %vm3408_vm15, %v3409_v44, %v9388_v48  ;;  %v3816_v2 = vand.u32 4294901760, %v2996_v58  ;;  %vm3200_vm4 = vcmp.eq.s32.totalorder %v3195_v38, 2 }
 0x41d   : > { %v9390_v17 = vpop.eup %9389  ;;  %vm3612_vm9 = vcmp.lt.s32.totalorder %v3611_v50, 2  ;;  %vm3613_vm12 = vcmp.eq.s32.totalorder %v3611_v50, 0  ;;  %vm3616_vm7 = vcmp.eq.s32.totalorder %v3611_v50, 2  ;;  %v3963_v21 = vand.u32 4294901760, %v3962_v33 }
 0x41e   : > { %v9392_v36 = vpop.eup %9391  ;;  %v3201_v31 = vxor.u32 2147483648, %v9390_v17  ;;  %v3407_v14 = vsel %vm3405_vm5, %v9386_v20, %v3406_v3  ;;  %v13667_v62 = vsub.f32 %v2996_v58, %v3816_v2  ;;  %vm3609_vm2 = vweird.f32 %v16174_v27 }
 0x41f   : > { %v3198_v29 = vxor.u32 2147483648, %v9392_v36  ;;  %v3975_v22 = vand.u32 4294901760, %v3974_v6  ;;  %v3411_v52 = vsel %vm3404_vm8, %v3407_v14, %v3410_v43  ;;  %v4952_v48 = vsub.f32 %v12442_v41, %v15595_v45 }
 0x420   : > { %v9394_v28 = vpop.eup %9393  ;;  %v3202_v44 = vsel %vm3200_vm4, %v3201_v31, %v9392_v36  ;;  %v4964_v33 = vsub.f32 %v12555_v8, %v15590_v49  ;;  %v3412_v20 = vsel %vm3401_vm6, nan, %v3411_v52  ;;  %v3725_v31 = vld [vmem:[%s15324_s2] sm:$0xff]  ;;  %vm3765_vm0 = vcmask 523264  }
 0x421   : > { %v3199_v58 = vsel %vm3197_vm1, %v9390_v17, %v3198_v29  ;;  %v3617_v3 = vxor.u32 2147483648, %v9394_v28  ;;  %v8293_v30 = vpack.c.bf16 %v3975_v22, %v3963_v21  ;;  %v3820_v6 = vand.u32 4294901760, %v3412_v20  ;;  %v9396_v14 = vpop.eup %9395 }
 0x422   : > { %v3203_v5 = vsel %vm3196_vm10, %v3199_v58, %v3202_v44  ;;  %v4953_v43 = vand.u32 4294901760, %v4952_v48  ;;  %v4965_v36 = vand.u32 4294901760, %v4964_v33  ;;  %v15594_v54 = vand.u32 4294901760, %v12669_v23 }
 0x423   : > { %v3204_v49 = vsel %vm3193_vm11, nan, %v3203_v5  ;;  %v13687_v52 = vpack.c.bf16 %v3820_v6, %v3816_v2  ;;  %v13689_v17 = vsub.f32 %v3412_v20, %v3820_v6  ;;  %v3614_v21 = vxor.u32 2147483648, %v9396_v14  ;;  %v16233_v20 = vld [vmem:[#allocation60_spill] sm:$0xff] }
 0x424   : > { %v3618_v38 = vsel %vm3616_vm7, %v3617_v3, %v9396_v14  ;;  %v15597_v29 = vmov 0.0   ;;  %v4806_v22 = vand.u32 4294901760, %v3204_v49  ;;  %v8389_v44 = vpack.c.bf16 %v4965_v36, %v4953_v43 }
 0x425   : > { %16232 = vst [vmem:[#allocation41_spill] sm:$0xff] %v13687_v52  ;;  %3870 = vmatprep.mubr.f32.mxu0 %v15597_v29  ;;  %4860 = vmatprep.mubr.f32.mxu1 %v15597_v29  ;;  %v3767_v11 = vsel %vm3765_vm0, %v3725_v31, 0  ;;  %v3968_v48 = vsub.f32 %v12669_v23, %v15594_v54  ;;  %v3615_v2 = vsel %vm3613_vm12, %v9394_v28, %v3614_v21  ;;  %v15592_v58 = vand.u32 4294901760, %v16233_v20 }
 0x426   : > { %8292 = vmatpush1.bf16.msra.mxu0 %v13687_v52  ;;  %v13700_v33 = vand.u32 4294901760, %v3767_v11  ;;  %v15591_v3 = vand.u32 4294901760, %v12864_v57  ;;  %v3619_v6 = vsel %vm3612_vm9, %v3615_v2, %v3618_v38  ;;  %v13705_v5 = vsub.f32 %v3204_v49, %v4806_v22 }
 0x427   : > { %8294 = vmatprep.subr.bf16.mxu0 %v8293_v30  ;;  %v3969_v43 = vand.u32 4294901760, %v3968_v48  ;;  %v15593_v36 = vand.u32 4294901760, %v12958_v51  ;;  %v3620_v31 = vsel %vm3609_vm2, nan, %v3619_v6  ;;  %v3980_v28 = vsub.f32 %v16233_v20, %v15592_v58  ;;  %v3726_v6 = vld [vmem:[%s15324_s2 + $0x8] sm:$0xff] }
 0x428   : > { %v13711_v14 = vsub.f32 %v3767_v11, %v13700_v33  ;;  %v4958_v50 = vsub.f32 %v12864_v57, %v15591_v3  ;;  %v4810_v49 = vand.u32 4294901760, %v3620_v31  ;;  %v15596_v21 = vand.u32 4294901760, %v13068_v42 }
 0x429   : > { %v4970_v30 = vsub.f32 %v12958_v51, %v15593_v36  ;;  %v15601_v27 = vand.u32 4294901760, %v12877_v39  ;;  %v3981_v11 = vand.u32 4294901760, %v3980_v28  ;;  %v15602_v2 = vand.u32 4294901760, %v13201_v53 }
 0x42a   : > { %v13725_v38 = vand.u32 4294901760, %v13711_v14  ;;  %v4959_v48 = vand.u32 4294901760, %v4958_v50  ;;  %v13731_v3 = vpack.c.bf16 %v4810_v49, %v4806_v22  ;;  %v13733_v58 = vsub.f32 %v3620_v31, %v4810_v49 }
 0x42b   : > { %v4971_v36 = vand.u32 4294901760, %v4970_v30  ;;  %v3986_v54 = vsub.f32 %v13068_v42, %v15596_v21  ;;  %v8295_v28 = vpack.c.bf16 %v3981_v11, %v3969_v43  ;;  %v3998_v50 = vsub.f32 %v12877_v39, %v15601_v27 }
 0x42c   : > { %16234 = vst [vmem:[#allocation63_spill] sm:$0xff] %v13725_v38  ;;  %16235 = vst [vmem:[#allocation67_spill] sm:$0xff] %v13731_v3  ;;  %v3874_v45 = vsub.f32 %v13711_v14, %v13725_v38  ;;  %v4976_v22 = vsub.f32 %v13201_v53, %v15602_v2  ;;  %8388 = vmatpush1.bf16.msra.mxu1 %v13731_v3  ;;  %v15608_v30 = vand.u32 4294901760, %v13002_v26  ;;  %v3770_v21 = vsel %vm3765_vm0, %v3726_v6, 0 }
 0x42d   : > { %v8391_v31 = vpack.c.bf16 %v4971_v36, %v4959_v48  ;;  %v3987_v49 = vand.u32 4294901760, %v3986_v54  ;;  %8390 = vmatprep.subr.bf16.mxu1 %v8389_v44  ;;  %v3999_v38 = vand.u32 4294901760, %v3998_v50  ;;  %v13749_v11 = vand.u32 4294901760, %v3770_v21 }
 0x42e   : > { %v3875_v29 = vand.u32 4294901760, %v3874_v45  ;;  %v4977_v43 = vand.u32 4294901760, %v4976_v22  ;;  %v4988_v27 = vsub.f32 %v13002_v26, %v15608_v30  ;;  %v15607_v2 = vand.u32 4294901760, %v13307_v40 }
 0x42f   : > { %v15606_v3 = vand.u32 4294901760, %v13126_v15  ;;  %v15605_v54 = vand.u32 4294901760, %v13485_v12  ;;  %v8297_v36 = vpack.c.bf16 %v3999_v38, %v3987_v49  ;;  %v13758_v44 = vsub.f32 %v3770_v21, %v13749_v11  ;;  %v3727_v49 = vld [vmem:[%s15324_s2 + $0x10] sm:$0xff] }
 0x430   : > { %3876 = vmatmul.mubr.f32.vlgmr.msra.gmra.mrb[0].mxu0 %v3875_v29  ;;  %4866 = vmatmul.mubr.f32.vlgmr.msra.gmra.mrb[0].mxu1 %v3875_v29  ;;  %v15609_v45 = vand.u32 4294901760, %v13479_v46  ;;  %v15612_v48 = vand.u32 4294901760, %v13288_v60  ;;  %v4989_v6 = vand.u32 4294901760, %v4988_v27  ;;  %v3992_v50 = vsub.f32 %v13307_v40, %v15607_v2 }
 0x431   : > { %16236 = vst [vmem:[#allocation69_spill] sm:$0xff] %v13758_v44  ;;  %8296 = vmatpush1.bf16.msra.mxu0 %v8295_v28  ;;  %8392 = vmatpush1.bf16.msra.mxu1 %v8391_v31  ;;  %v4004_v22 = vsub.f32 %v13126_v15, %v15606_v3  ;;  %v4982_v29 = vsub.f32 %v13485_v12, %v15605_v54  ;;  %v16237_v21 = vmov 0.0   ;;  %v13773_v38 = vand.u32 4294901760, %v13758_v44 }
 0x432   : > { %8298 = vmatprep.subr.bf16.mxu0 %v8297_v36  ;;  %3881 = vmatprep.mubr.f32.mxu0 %v16237_v21  ;;  %v4994_v27 = vsub.f32 %v13479_v46, %v15609_v45  ;;  %v4010_v28 = vsub.f32 %v13288_v60, %v15612_v48  ;;  %v15625_v31 = vand.u32 4294901760, %v13324_v55  ;;  %v8393_v36 = vpack.c.bf16 %v4989_v6, %v4977_v43 }
 0x433   : > { %16238 = vst [vmem:[#allocation81_spill] sm:$0xff] %v13773_v38  ;;  %4871 = vmatprep.mubr.f32.mxu1 %v16237_v21  ;;  %v3993_v54 = vand.u32 4294901760, %v3992_v50  ;;  %v4005_v3 = vand.u32 4294901760, %v4004_v22  ;;  %v4983_v2 = vand.u32 4294901760, %v4982_v29  ;;  %v3885_v30 = vsub.f32 %v13758_v44, %v13773_v38 }
 0x434   : > { %v4995_v45 = vand.u32 4294901760, %v4994_v27  ;;  %v4011_v52 = vand.u32 4294901760, %v4010_v28  ;;  %v4022_v48 = vsub.f32 %v13324_v55, %v15625_v31  ;;  %8394 = vmatprep.subr.bf16.mxu1 %v8393_v36  ;;  %v15622_v32 = vand.u32 4294901760, %v13361_v19 }
 0x435   : > { %v8299_v13 = vpack.c.bf16 %v4005_v3, %v3993_v54  ;;  %v15621_v43 = vand.u32 4294901760, %v13420_v7  ;;  %v3773_v6 = vsel %vm3765_vm0, %v3727_v49, 0  ;;  %v3886_v50 = vand.u32 4294901760, %v3885_v30 }
 0x436   : > { %v8395_v22 = vpack.c.bf16 %v4995_v45, %v4983_v2  ;;  %v4023_v29 = vand.u32 4294901760, %v4022_v48  ;;  %v13794_v18 = vand.u32 4294901760, %v3773_v6  ;;  %v5000_v27 = vsub.f32 %v13361_v19, %v15622_v32 }
 0x437   : > { %8300 = vmatpush1.bf16.msra.mxu0 %v8299_v13  ;;  %v5012_v3 = vsub.f32 %v13420_v7, %v15621_v43  ;;  %v15619_v54 = vand.u32 4294901760, %v13442_v61  ;;  %v15620_v28 = vand.u32 4294901760, %v13468_v0  ;;  %4877 = vmatmul.mubr.f32.gmra.mrb[2].mxu1 %v3886_v50  ;;  %v15623_v13 = vand.u32 4294901760, %v13536_v1 }
 0x438   : > { %3887 = vmatmul.mubr.f32.gmra.mrb[2].mxu0 %v3886_v50  ;;  %v8301_v30 = vpack.c.bf16 %v4023_v29, %v4011_v52  ;;  %v13805_v2 = vsub.f32 %v3773_v6, %v13794_v18  ;;  %v15624_v45 = vand.u32 4294901760, %v13593_v4  ;;  %8396 = vmatpush1.bf16.msra.mxu1 %v8395_v22  ;;  %v5001_v48 = vand.u32 4294901760, %v5000_v27 }
 0x439   : > { %v5013_v49 = vand.u32 4294901760, %v5012_v3  ;;  %3892 = vmatprep.mubr.f32.mxu0 %v16237_v21  ;;  %v4016_v36 = vsub.f32 %v13442_v61, %v15619_v54  ;;  %v4028_v52 = vsub.f32 %v13468_v0, %v15620_v28  ;;  %4882 = vmatprep.mubr.f32.mxu1 %v16237_v21  ;;  %v5006_v50 = vsub.f32 %v13536_v1, %v15623_v13  ;;  %v3728_v28 = vld [vmem:[%s15324_s2 + $0x18] sm:$0xff] }
 0x43a   : > { %16239 = vst [vmem:[#allocation75_spill] sm:$0xff] %v13805_v2  ;;  %8302 = vmatprep.subr.bf16.mxu0 %v8301_v30  ;;  %v13818_v6 = vand.u32 4294901760, %v13805_v2  ;;  %v5018_v22 = vsub.f32 %v13593_v4, %v15624_v45  ;;  %v15637_v29 = vand.u32 4294901760, %v13599_v59  ;;  %v15636_v30 = vand.u32 4294901760, %v13606_v37 }
 0x43b   : > { %v8397_v27 = vpack.c.bf16 %v5013_v49, %v5001_v48  ;;  %v4017_v3 = vand.u32 4294901760, %v4016_v36  ;;  %v4029_v54 = vand.u32 4294901760, %v4028_v52  ;;  %v5007_v32 = vand.u32 4294901760, %v5006_v50 }
 0x43c   : > { %16240 = vst [vmem:[#allocation80_spill] sm:$0xff] %v13818_v6  ;;  %v3896_v43 = vsub.f32 %v13805_v2, %v13818_v6  ;;  %v5019_v13 = vand.u32 4294901760, %v5018_v22  ;;  %v4034_v45 = vsub.f32 %v13599_v59, %v15637_v29  ;;  %v4046_v48 = vsub.f32 %v13606_v37, %v15636_v30  ;;  %v3732_v2 = vld [vmem:[%s15324_s2 + $0x38] sm:$0xff] }
 0x43d   : > { %8398 = vmatprep.subr.bf16.mxu1 %v8397_v27  ;;  %v8303_v31 = vpack.c.bf16 %v4029_v54, %v4017_v3  ;;  %v15631_v49 = vand.u32 4294901760, %v13608_v10  ;;  %v15630_v36 = vand.u32 4294901760, %v13643_v16  ;;  %v3776_v50 = vsel %vm3765_vm0, %v3728_v28, 0 }
 0x43e   : > { %v3897_v52 = vand.u32 4294901760, %v3896_v43  ;;  %v8399_v38 = vpack.c.bf16 %v5019_v13, %v5007_v32  ;;  %v4035_v9 = vand.u32 4294901760, %v4034_v45  ;;  %v4047_v22 = vand.u32 4294901760, %v4046_v48 }
 0x43f   : > { %8304 = vmatpush1.bf16.msra.mxu0 %v8303_v31  ;;  %v5024_v27 = vsub.f32 %v13608_v10, %v15631_v49  ;;  %v5036_v54 = vsub.f32 %v13643_v16, %v15630_v36  ;;  %v13848_v3 = vand.u32 4294901760, %v3776_v50  ;;  %v15635_v43 = vand.u32 4294901760, %v13667_v62 }
 0x440   : > { %3898 = vmatmul.mubr.f32.gmra.mrb[4].mxu0 %v3897_v52  ;;  %4888 = vmatmul.mubr.f32.gmra.mrb[4].mxu1 %v3897_v52  ;;  %v15634_v32 = vand.u32 4294901760, %v13689_v17  ;;  %v15632_v28 = vand.u32 4294901760, %v13705_v5  ;;  %v15633_v31 = vand.u32 4294901760, %v13733_v58  ;;  %v8305_v13 = vpack.c.bf16 %v4047_v22, %v4035_v9  ;;  %v3730_v22 = vld [vmem:[%s15324_s2 + $0x28] sm:$0xff] }
 0x441   : > { %8400 = vmatpush1.bf16.msra.mxu1 %v8399_v38  ;;  %v5025_v45 = vand.u32 4294901760, %v5024_v27  ;;  %v5037_v48 = vand.u32 4294901760, %v5036_v54  ;;  %3903 = vmatprep.mubr.f32.mxu0 %v16237_v21  ;;  %v13856_v36 = vsub.f32 %v3776_v50, %v13848_v3  ;;  %v4040_v52 = vsub.f32 %v13667_v62, %v15635_v43  ;;  %v3729_v50 = vld [vmem:[%s15324_s2 + $0x20] sm:$0xff]  ;;  %v3731_v27 = vld [vmem:[%s15324_s2 + $0x30] sm:$0xff] }
 0x442   : > { %4893 = vmatprep.mubr.f32.mxu1 %v16237_v21  ;;  %v4052_v49 = vsub.f32 %v13689_v17, %v15634_v32  ;;  %v5030_v9 = vsub.f32 %v13705_v5, %v15632_v28  ;;  %v5042_v38 = vsub.f32 %v13733_v58, %v15633_v31  ;;  %8306 = vmatprep.subr.bf16.mxu0 %v8305_v13  ;;  %v3785_v47 = vsel %vm3765_vm0, %v3731_v27, 0 }
 0x443   : > { %16241 = vst [vmem:[#allocation13_spill] sm:$0xff] %v13856_v36  ;;  %v8401_v54 = vpack.c.bf16 %v5037_v48, %v5025_v45  ;;  %v13881_v28 = vand.u32 4294901760, %v13856_v36  ;;  %v8309_v31 = vpack.c.bf16 %v16231_v34, %v16230_v63  ;;  %v8405_v32 = vpack.c.bf16 %v12555_v8, %v12442_v41 }
 0x444   : > { %v4041_v43 = vand.u32 4294901760, %v4040_v52  ;;  %v4053_v30 = vand.u32 4294901760, %v4052_v49  ;;  %v5031_v29 = vand.u32 4294901760, %v5030_v9  ;;  %v5043_v6 = vand.u32 4294901760, %v5042_v38 }
 0x445   : > { %16242 = vst [vmem:[#allocation24_spill] sm:$0xff] %v13881_v28  ;;  %8402 = vmatprep.subr.bf16.mxu1 %v8401_v54  ;;  %v3907_v13 = vsub.f32 %v13856_v36, %v13881_v28  ;;  %v3779_v45 = vsel %vm3765_vm0, %v3729_v50, 0  ;;  %v3782_v48 = vsel %vm3765_vm0, %v3730_v22, 0  ;;  %v13899_v38 = vand.u32 4294901760, %v3785_v47 }
 0x446   : > { %v8307_v56 = vpack.c.bf16 %v4053_v30, %v4041_v43  ;;  %v8403_v35 = vpack.c.bf16 %v5043_v6, %v5031_v29  ;;  %v13895_v52 = vand.u32 4294901760, %v3779_v45  ;;  %v13897_v49 = vand.u32 4294901760, %v3782_v48 }
 0x447   : > { %v3908_v9 = vand.u32 4294901760, %v3907_v13  ;;  %v3788_v54 = vsel %vm3765_vm0, %v3732_v2, 0  ;;  %v8407_v29 = vpack.c.bf16 %v12958_v51, %v12864_v57  ;;  %v13915_v2 = vsub.f32 %v3785_v47, %v13899_v38 }
 0x448   : > { %8308 = vmatpush1.bf16.msra.mxu0 %v8307_v56  ;;  %8404 = vmatpush1.bf16.msra.mxu1 %v8403_v35  ;;  %v13905_v50 = vsub.f32 %v3779_v45, %v13895_v52  ;;  %v13908_v30 = vsub.f32 %v3782_v48, %v13897_v49  ;;  %v13910_v6 = vand.u32 4294901760, %v3788_v54  ;;  %v8313_v56 = vpack.c.bf16 %v12877_v39, %v13068_v42 }
 0x449   : > { %3909 = vmatmul.mubr.f32.gmra.mrb[6].mxu0 %v3908_v9  ;;  %4899 = vmatmul.mubr.f32.gmra.mrb[6].mxu1 %v3908_v9  ;;  %16245 = vst [vmem:[#allocation39_spill] sm:$0xff] %v13915_v2  ;;  %v8409_v35 = vpack.c.bf16 %v13002_v26, %v13201_v53  ;;  %v8315_v27 = vpack.c.bf16 %v13126_v15, %v13307_v40  ;;  %v13932_v47 = vand.u32 4294901760, %v13915_v2  ;;  %v16249_v44 = vand.u32 4294901760, %v16230_v63 }
 0x44a   : > { %16243 = vst [vmem:[#allocation22_spill] sm:$0xff] %v13905_v50  ;;  %16244 = vst [vmem:[#allocation26_spill] sm:$0xff] %v13908_v30  ;;  %8310 = vmatprep.subr.bf16.mxu0 %v8309_v31  ;;  %8406 = vmatprep.subr.bf16.mxu1 %v8405_v32  ;;  %v13922_v43 = vand.u32 4294901760, %v13905_v50  ;;  %v13925_v22 = vand.u32 4294901760, %v13908_v30  ;;  %v13935_v13 = vsub.f32 %v3788_v54, %v13910_v6  ;;  %v16250_v25 = vand.u32 4294901760, %v16231_v34 }
 0x44b   : > { %3914 = vmatprep.mubr.f32.mxu0 %v16237_v21  ;;  %4904 = vmatprep.mubr.f32.mxu1 %v16237_v21  ;;  %16248 = vst [vmem:[#allocation18_spill] sm:$0xff] %v13932_v47  ;;  %v8317_v32 = vpack.c.bf16 %v13324_v55, %v13288_v60  ;;  %v8413_v31 = vpack.c.bf16 %v13420_v7, %v13361_v19  ;;  %v16255_v63 = vand.u32 4294901760, %v12864_v57  ;;  %v16261_v57 = vand.u32 4294901760, %v13307_v40 }
 0x44c   : > { %16246 = vst [vmem:[#allocation34_spill] sm:$0xff] %v13922_v43  ;;  %16247 = vst [vmem:[#allocation37_spill] sm:$0xff] %v13925_v22  ;;  %v3918_v45 = vsub.f32 %v13905_v50, %v13922_v43  ;;  %v3929_v48 = vsub.f32 %v13908_v30, %v13925_v22  ;;  %v8319_v9 = vpack.c.bf16 %v13468_v0, %v13442_v61  ;;  %v13950_v36 = vand.u32 4294901760, %v13935_v13 }
 0x44d   : > { %v3940_v54 = vsub.f32 %v13915_v2, %v13932_v47  ;;  %v13956_v24 = vpack.c.bf16 %v16250_v25, %v16249_v44  ;;  %v16251_v43 = vand.u32 4294901760, %v12442_v41  ;;  %v16252_v22 = vand.u32 4294901760, %v12555_v8 }
 0x44e   : > { %v3919_v28 = vand.u32 4294901760, %v3918_v45  ;;  %v3930_v45 = vand.u32 4294901760, %v3929_v48  ;;  %v16253_v47 = vand.u32 4294901760, %v12669_v23  ;;  %v16254_v2 = vand.u32 4294901760, %v16233_v20 }
 0x44f   : > { %v13962_v30 = vpack.c.bf16 %v16252_v22, %v16251_v43  ;;  %v16256_v25 = vand.u32 4294901760, %v12958_v51  ;;  %v16257_v41 = vand.u32 4294901760, %v13068_v42  ;;  %v16258_v8 = vand.u32 4294901760, %v12877_v39 }
 0x450   : > { %3920 = vmatmul.mubr.f32.gmra.mrb[8].mxu0 %v3919_v28  ;;  %4910 = vmatmul.mubr.f32.gmra.mrb[8].mxu1 %v3919_v28  ;;  %v13968_v50 = vpack.c.bf16 %v16254_v2, %v16253_v47  ;;  %v16259_v28 = vand.u32 4294901760, %v13201_v53  ;;  %v16260_v2 = vand.u32 4294901760, %v13002_v26  ;;  %v16262_v51 = vand.u32 4294901760, %v13126_v15 }
 0x451   : > { %v13974_v34 = vpack.c.bf16 %v16256_v25, %v16255_v63  ;;  %v13980_v44 = vpack.c.bf16 %v16258_v8, %v16257_v41  ;;  %3925 = vmatprep.mubr.f32.mxu0 %v16237_v21  ;;  %4915 = vmatprep.mubr.f32.mxu1 %v16237_v21  ;;  %v16263_v39 = vand.u32 4294901760, %v13485_v12  ;;  %v16264_v42 = vand.u32 4294901760, %v13479_v46 }
 0x452   : > { %v13988_v43 = vpack.c.bf16 %v16260_v2, %v16259_v28  ;;  %v13994_v22 = vpack.c.bf16 %v16262_v51, %v16261_v57  ;;  %v16265_v48 = vand.u32 4294901760, %v13288_v60  ;;  %v16266_v53 = vand.u32 4294901760, %v13324_v55 }
 0x453   : > { %v14000_v47 = vpack.c.bf16 %v16264_v42, %v16263_v39  ;;  %v16267_v26 = vand.u32 4294901760, %v13361_v19  ;;  %v16268_v40 = vand.u32 4294901760, %v13420_v7  ;;  %v16269_v15 = vand.u32 4294901760, %v13442_v61 }
 0x454   : > { %v14006_v63 = vpack.c.bf16 %v16266_v53, %v16265_v48  ;;  %v16270_v41 = vand.u32 4294901760, %v13468_v0  ;;  %v16271_v28 = vand.u32 4294901760, %v13536_v1  ;;  %v16272_v60 = vand.u32 4294901760, %v13593_v4  ;;  %3931 = vmatmul.mubr.f32.gmra.mrb[10].mxu0 %v3930_v45  ;;  %4921 = vmatmul.mubr.f32.gmra.mrb[10].mxu1 %v3930_v45 }
 0x455   : > { %v14012_v25 = vpack.c.bf16 %v16268_v40, %v16267_v26  ;;  %v16273_v55 = vand.u32 4294901760, %v13599_v59  ;;  %v16274_v19 = vand.u32 4294901760, %v13606_v37  ;;  %v16275_v7 = vand.u32 4294901760, %v13608_v10  ;;  %3936 = vmatprep.mubr.f32.mxu0 %v16237_v21  ;;  %4926 = vmatprep.mubr.f32.mxu1 %v16237_v21 }
 0x456   : > { %v14018_v8 = vpack.c.bf16 %v16270_v41, %v16269_v15  ;;  %v14024_v2 = vpack.c.bf16 %v16272_v60, %v16271_v28  ;;  %v16276_v61 = vand.u32 4294901760, %v13643_v16  ;;  %v16277_v0 = vand.u32 4294901760, %v13667_v62  ;;  %v16296_v28 = vld [vmem:[#allocation51_spill] sm:$0xff]  ;;  %v16297_v60 = vld [vmem:[#allocation48_spill] sm:$0xff] }
 0x457   : > { %v14030_v57 = vpack.c.bf16 %v16274_v19, %v16273_v55  ;;  %v16278_v39 = vand.u32 4294901760, %v13689_v17  ;;  %v16279_v48 = vand.u32 4294901760, %v13705_v5  ;;  %v16280_v53 = vand.u32 4294901760, %v13733_v58  ;;  %v16298_v55 = vld [vmem:[#allocation13_spill] sm:$0xff] }
 0x458   : > { %v14036_v51 = vpack.c.bf16 %v16276_v61, %v16275_v7  ;;  %v3941_v40 = vand.u32 4294901760, %v3940_v54  ;;  %v3951_v15 = vsub.f32 %v13935_v13, %v13950_v36  ;;  %v16281_v54 = vpack.c.bf16 %v16233_v20, %v12669_v23  ;;  %v16285_v20 = vld [vmem:[#allocation54_spill] sm:$0xff]  ;;  %v16299_v19 = vld [vmem:[#allocation41_spill] sm:$0xff]  ;;  %v16300_v7 = vld [vmem:[#allocation67_spill] sm:$0xff] }
 0x459   : > { %v14042_v42 = vpack.c.bf16 %v16278_v39, %v16277_v0  ;;  %v14048_v26 = vpack.c.bf16 %v16280_v53, %v16279_v48  ;;  %v8411_v45 = vpack.c.bf16 %v13479_v46, %v13485_v12  ;;  %v8415_v23 = vpack.c.bf16 %v13593_v4, %v13536_v1  ;;  %v16301_v61 = vld [vmem:[#allocation22_spill] sm:$0xff]  ;;  %v9399_v0 = vld [vmem:[%s15323_s1 + $0x10] sm:$0xff]  ;;  %v9401_v39 = vld [vmem:[%s15323_s1 + $0x18] sm:$0xff] }
 0x45a   : > { %3942 = vmatmul.mubr.f32.gmra.mrb[12].mxu0 %v3941_v40  ;;  %4932 = vmatmul.mubr.f32.gmra.mrb[12].mxu1 %v3941_v40  ;;  %v3952_v41 = vand.u32 4294901760, %v3951_v15  ;;  %v8321_v46 = vpack.c.bf16 %v13606_v37, %v13599_v59  ;;  %v8417_v12 = vpack.c.bf16 %v13643_v16, %v13608_v10  ;;  %v8323_v1 = vpack.c.bf16 %v13689_v17, %v13667_v62  ;;  %v16282_v59 = vld [vmem:[#allocation43_spill] sm:$0xff]  ;;  %v9397_v16 = vld [vmem:[%s15323_s1] sm:$0xff]  ;;  %v9398_v62 = vld [vmem:[%s15323_s1 + $0x8] sm:$0xff] }
 0x45b   : > { %3947 = vmatprep.mubr.f32.mxu0 %v16237_v21  ;;  %4937 = vmatprep.mubr.f32.mxu1 %v16237_v21  ;;  %v8419_v4 = vpack.c.bf16 %v13733_v58, %v13705_v5  ;;  %v16283_v37 = vld [vmem:[#allocation35_spill] sm:$0xff]  ;;  %v9556_v10 = vmov 2   ;;  %v16286_v58 = vld [vmem:[#allocation77_spill] sm:$0xff]  ;;  %v16287_v5 = vld [vmem:[#allocation68_spill] sm:$0xff] }
 0x45c   : > { %9257 = vset.pattern.permute.xlu1 %v9556_v10  ;;  %9258 = vset.pattern.permute.xlu0 %v9556_v10  ;;  %v16284_v17 = vld [vmem:[#allocation55_spill] sm:$0xff]  ;;  %v9403_v40 = vld [vmem:[%s15323_s1 + $0x28] sm:$0xff]  ;;  %v9404_v15 = vld [vmem:[%s15323_s1 + $0x38] sm:$0xff] }
 0x45d   : > { %3734 = vperm.xlu1 %9257, %v9397_v16   ;;  %3738 = vperm.xlu0 %9258, %v9398_v62   ;;  %v9402_v48 = vld [vmem:[%s15323_s1 + $0x30] sm:$0xff] }
 0x45e   : > { %3953 = vmatmul.mubr.f32.gmra.mrb[14].mxu0 %v3952_v41  ;;  %4943 = vmatmul.mubr.f32.gmra.mrb[14].mxu1 %v3952_v41  ;;  %v16303_v53 = vld [vmem:[#allocation39_spill] sm:$0xff] }
 0x45f   : > { %4103 = vmatprep.mubr.f32.mxu0 %v16237_v21  ;;  %5093 = vmatprep.mubr.f32.mxu1 %v16237_v21  ;;  %v16304_v41 = vld [vmem:[#allocation63_spill] sm:$0xff] }
 0x461   : > { %3742 = vperm.xlu1 %9257, %v9399_v0  }
 0x462   : > { %4105 = vmatmul.mubr.f32.vlgmr.msra.gmra.mrb[0].mxu0 %v13700_v33  ;;  %5095 = vmatmul.mubr.f32.vlgmr.msra.gmra.mrb[0].mxu1 %v13700_v33 }
 0x463   : > { %8312 = vmatpush1.bf16.msra.mxu0 %v16281_v54  ;;  %8408 = vmatpush1.bf16.msra.mxu1 %v8407_v29  ;;  %v16288_v29 = vld [vmem:[#allocation69_spill] sm:$0xff] }
 0x464   : > { %8314 = vmatprep.subr.bf16.mxu0 %v8313_v56  ;;  %8410 = vmatprep.subr.bf16.mxu1 %v8409_v35  ;;  %v16289_v56 = vld [vmem:[#allocation76_spill] sm:$0xff]  ;;  %v16290_v35 = vld [vmem:[#allocation33_spill] sm:$0xff] }
 0x465   : > { %4110 = vmatprep.mubr.f32.mxu0 %v16237_v21  ;;  %5100 = vmatprep.mubr.f32.mxu1 %v16237_v21 }
 0x466   : > { %4112 = vmatmul.mubr.f32.gmra.mrb[2].mxu0 %v13749_v11  ;;  %5102 = vmatmul.mubr.f32.gmra.mrb[2].mxu1 %v13749_v11 }
 0x467   : > { %8316 = vmatpush1.bf16.msra.mxu0 %v8315_v27  ;;  %8412 = vmatpush1.bf16.msra.mxu1 %v8411_v45  ;;  %v16292_v27 = vld [vmem:[#allocation38_spill] sm:$0xff] }
 0x468   : > { %8318 = vmatprep.subr.bf16.mxu0 %v8317_v32  ;;  %8414 = vmatprep.subr.bf16.mxu1 %v8413_v31  ;;  %v16293_v32 = vld [vmem:[#allocation75_spill] sm:$0xff]  ;;  %v16294_v31 = vld [vmem:[#allocation32_spill] sm:$0xff] }
 0x469   : > { %4117 = vmatprep.mubr.f32.mxu0 %v16237_v21  ;;  %5107 = vmatprep.mubr.f32.mxu1 %v16237_v21 }
 0x46a   : > { %4119 = vmatmul.mubr.f32.gmra.mrb[4].mxu0 %v13794_v18  ;;  %5109 = vmatmul.mubr.f32.gmra.mrb[4].mxu1 %v13794_v18 }
 0x46b   : > { %8320 = vmatpush1.bf16.msra.mxu0 %v8319_v9  ;;  %8416 = vmatpush1.bf16.msra.mxu1 %v8415_v23  ;;  %v16295_v9 = vld [vmem:[#allocation49_spill] sm:$0xff] }
 0x46c   : > { %8322 = vmatprep.subr.bf16.mxu0 %v8321_v46  ;;  %8418 = vmatprep.subr.bf16.mxu1 %v8417_v12 }
 0x46d   : > { %4124 = vmatprep.mubr.f32.mxu0 %v16237_v21  ;;  %5114 = vmatprep.mubr.f32.mxu1 %v16237_v21 }
 0x46e   : > { %4126 = vmatmul.mubr.f32.gmra.mrb[6].mxu0 %v13848_v3  ;;  %5116 = vmatmul.mubr.f32.gmra.mrb[6].mxu1 %v13848_v3 }
 0x46f   : > { %8324 = vmatpush1.bf16.msra.mxu0 %v8323_v1  ;;  %8420 = vmatpush1.bf16.msra.mxu1 %v8419_v4 }
 0x470   : > { %8326 = vmatprep.subr.bf16.mxu0 %v16282_v59  ;;  %8422 = vmatprep.subr.bf16.mxu1 %v16283_v37 }
 0x471   : > { %4131 = vmatprep.mubr.f32.mxu0 %v16237_v21  ;;  %5121 = vmatprep.mubr.f32.mxu1 %v16237_v21 }
 0x472   : > { %4133 = vmatmul.mubr.f32.gmra.mrb[8].mxu0 %v13895_v52  ;;  %5123 = vmatmul.mubr.f32.gmra.mrb[8].mxu1 %v13895_v52 }
 0x473   : > { %4138 = vmatprep.mubr.f32.mxu0 %v16237_v21  ;;  %5128 = vmatprep.mubr.f32.mxu1 %v16237_v21 }
 0x474   : > { %3746 = vperm.xlu1 %9257, %v9401_v39  }
 0x476   : > { %4140 = vmatmul.mubr.f32.gmra.mrb[10].mxu0 %v13897_v49  ;;  %5130 = vmatmul.mubr.f32.gmra.mrb[10].mxu1 %v13897_v49 }
 0x477   : > { %4145 = vmatprep.mubr.f32.mxu0 %v16237_v21  ;;  %5135 = vmatprep.mubr.f32.mxu1 %v16237_v21 }
 0x478   : > { %3754 = vperm.xlu1 %9257, %v9403_v40  }
 0x47a   : > { %4147 = vmatmul.mubr.f32.gmra.mrb[12].mxu0 %v13899_v38  ;;  %5137 = vmatmul.mubr.f32.gmra.mrb[12].mxu1 %v13899_v38 }
 0x47b   : > { %4152 = vmatprep.mubr.f32.mxu0 %v16237_v21  ;;  %5142 = vmatprep.mubr.f32.mxu1 %v16237_v21 }
 0x47c   : > { %3762 = vperm.xlu1 %9257, %v9404_v15  }
 0x47e   : > { %4154 = vmatmul.mubr.f32.gmra.mrb[14].mxu0 %v13910_v6  ;;  %5144 = vmatmul.mubr.f32.gmra.mrb[14].mxu1 %v13910_v6 }
 0x47f   : > { %4256 = vmatprep.mubr.f32.mxu0 %v16237_v21  ;;  %5246 = vmatprep.mubr.f32.mxu1 %v16237_v21 }
 0x482   : > { %4259 = vmatmul.mubr.f32.vlgmr.msra.gmra.mrb[0].mxu0 %v13711_v14  ;;  %5249 = vmatmul.mubr.f32.vlgmr.msra.gmra.mrb[0].mxu1 %v13711_v14  ;;  %v16291_v14 = vld [vmem:[#allocation17_spill] sm:$0xff] }
 0x483   : > { %8328 = vmatpush1.bf16.msra.mxu0 %v16284_v17  ;;  %8424 = vmatpush1.bf16.msra.mxu1 %v16285_v20 }
 0x484   : > { %8330 = vmatprep.subr.bf16.mxu0 %v16286_v58  ;;  %8426 = vmatprep.subr.bf16.mxu1 %v16287_v5 }
 0x485   : > { %4264 = vmatprep.mubr.f32.mxu0 %v16237_v21  ;;  %5254 = vmatprep.mubr.f32.mxu1 %v16237_v21 }
 0x486   : > { %4267 = vmatmul.mubr.f32.gmra.mrb[2].mxu0 %v16288_v29  ;;  %5257 = vmatmul.mubr.f32.gmra.mrb[2].mxu1 %v16288_v29 }
 0x487   : > { %8332 = vmatpush1.bf16.msra.mxu0 %v16289_v56  ;;  %8428 = vmatpush1.bf16.msra.mxu1 %v16290_v35 }
 0x488   : > { %8334 = vmatprep.subr.bf16.mxu0 %v16291_v14  ;;  %8430 = vmatprep.subr.bf16.mxu1 %v16292_v27 }
 0x489   : > { %4272 = vmatprep.mubr.f32.mxu0 %v16237_v21  ;;  %5262 = vmatprep.mubr.f32.mxu1 %v16237_v21 }
 0x48a   : > { %4275 = vmatmul.mubr.f32.gmra.mrb[4].mxu0 %v16293_v32  ;;  %5265 = vmatmul.mubr.f32.gmra.mrb[4].mxu1 %v16293_v32 }
 0x48b   : > { %8336 = vmatpush1.bf16.msra.mxu0 %v16294_v31  ;;  %8432 = vmatpush1.bf16.msra.mxu1 %v16295_v9 }
 0x48c   : > { %8338 = vmatprep.subr.bf16.mxu0 %v16296_v28  ;;  %8434 = vmatprep.subr.bf16.mxu1 %v16297_v60 }
 0x48d   : > { %4280 = vmatprep.mubr.f32.mxu0 %v16237_v21  ;;  %5270 = vmatprep.mubr.f32.mxu1 %v16237_v21 }
 0x48e   : > { %4283 = vmatmul.mubr.f32.gmra.mrb[6].mxu0 %v16298_v55  ;;  %5273 = vmatmul.mubr.f32.gmra.mrb[6].mxu1 %v16298_v55 }
 0x48f   : > { %8340 = vmatpush1.bf16.msra.mxu0 %v16299_v19  ;;  %8436 = vmatpush1.bf16.msra.mxu1 %v16300_v7 }
 0x490   : > { %8342 = vmatprep.subr.bf16.mxu0 %v13956_v24  ;;  %8438 = vmatprep.subr.bf16.mxu1 %v13962_v30  ;;  %v9400_v24 = vld [vmem:[%s15323_s1 + $0x20] sm:$0xff]  ;;  %v16302_v30 = vld [vmem:[#allocation26_spill] sm:$0xff] }
 0x491   : > { %4288 = vmatprep.mubr.f32.mxu0 %v16237_v21  ;;  %5278 = vmatprep.mubr.f32.mxu1 %v16237_v21 }
 0x492   : > { %4291 = vmatmul.mubr.f32.gmra.mrb[8].mxu0 %v16301_v61  ;;  %5281 = vmatmul.mubr.f32.gmra.mrb[8].mxu1 %v16301_v61 }
 0x493   : > { %4296 = vmatprep.mubr.f32.mxu0 %v16237_v21  ;;  %5286 = vmatprep.mubr.f32.mxu1 %v16237_v21 }
 0x494   : > { %3750 = vperm.xlu0 %9258, %v9400_v24  }
 0x496   : > { %4299 = vmatmul.mubr.f32.gmra.mrb[10].mxu0 %v16302_v30  ;;  %5289 = vmatmul.mubr.f32.gmra.mrb[10].mxu1 %v16302_v30 }
 0x497   : > { %4304 = vmatprep.mubr.f32.mxu0 %v16237_v21  ;;  %5294 = vmatprep.mubr.f32.mxu1 %v16237_v21 }
 0x498   : > { %3758 = vperm.xlu0 %9258, %v9402_v48  }
 0x49a   : > { %4307 = vmatmul.mubr.f32.gmra.mrb[12].mxu0 %v16303_v53  ;;  %5297 = vmatmul.mubr.f32.gmra.mrb[12].mxu1 %v16303_v53 }
 0x49b   : > { %4312 = vmatprep.mubr.f32.mxu0 %v16237_v21  ;;  %5302 = vmatprep.mubr.f32.mxu1 %v16237_v21 }
 0x49e   : > { %4315 = vmatmul.mubr.f32.gmra.mrb[14].mxu0 %v13935_v13  ;;  %5305 = vmatmul.mubr.f32.gmra.mrb[14].mxu1 %v13935_v13  ;;  %v16305_v13 = vld [vmem:[#allocation81_spill] sm:$0xff] }
 0x49f   : > { %4401 = vmatprep.mubr.f32.mxu0 %v16237_v21  ;;  %5391 = vmatprep.mubr.f32.mxu1 %v16237_v21 }
 0x4a2   : > { %4405 = vmatmul.mubr.f32.vlgmr.msra.gmra.mrb[0].mxu0 %v16304_v41  ;;  %5395 = vmatmul.mubr.f32.vlgmr.msra.gmra.mrb[0].mxu1 %v16304_v41 }
 0x4a3   : > { %8344 = vmatpush1.bf16.msra.mxu0 %v13968_v50  ;;  %8440 = vmatpush1.bf16.msra.mxu1 %v13974_v34  ;;  %v16306_v50 = vld [vmem:[#allocation80_spill] sm:$0xff] }
 0x4a4   : > { %8346 = vmatprep.subr.bf16.mxu0 %v13980_v44  ;;  %8442 = vmatprep.subr.bf16.mxu1 %v13988_v43  ;;  %v16307_v34 = vld [vmem:[#allocation24_spill] sm:$0xff]  ;;  %v16308_v44 = vld [vmem:[#allocation34_spill] sm:$0xff]  ;;  %v16309_v43 = vld [vmem:[#allocation37_spill] sm:$0xff] }
 0x4a5   : > { %4410 = vmatprep.mubr.f32.mxu0 %v16237_v21  ;;  %5400 = vmatprep.mubr.f32.mxu1 %v16237_v21 }
 0x4a6   : > { %4414 = vmatmul.mubr.f32.gmra.mrb[2].mxu0 %v16305_v13  ;;  %5404 = vmatmul.mubr.f32.gmra.mrb[2].mxu1 %v16305_v13 }
 0x4a7   : > { %8348 = vmatpush1.bf16.msra.mxu0 %v13994_v22  ;;  %8444 = vmatpush1.bf16.msra.mxu1 %v14000_v47  ;;  %v16310_v22 = vld [vmem:[#allocation18_spill] sm:$0xff] }
 0x4a8   : > { %8350 = vmatprep.subr.bf16.mxu0 %v14006_v63  ;;  %8446 = vmatprep.subr.bf16.mxu1 %v14012_v25  ;;  %v5805_v63 = vld [vmem:[#allocation5 + $0x18] sm:$0xff] }
 0x4a9   : > { %4419 = vmatprep.mubr.f32.mxu0 %v16237_v21  ;;  %5409 = vmatprep.mubr.f32.mxu1 %v16237_v21 }
 0x4aa   : > { %4423 = vmatmul.mubr.f32.gmra.mrb[4].mxu0 %v16306_v50  ;;  %5413 = vmatmul.mubr.f32.gmra.mrb[4].mxu1 %v16306_v50 }
 0x4ab   : > { %8352 = vmatpush1.bf16.msra.mxu0 %v14018_v8  ;;  %8448 = vmatpush1.bf16.msra.mxu1 %v14024_v2  ;;  %v5806_v8 = vld [vmem:[#allocation5 + $0x20] sm:$0xff]  ;;  %v5807_v2 = vld [vmem:[#allocation5 + $0x28] sm:$0xff] }
 0x4ac   : > { %8354 = vmatprep.subr.bf16.mxu0 %v14030_v57  ;;  %8450 = vmatprep.subr.bf16.mxu1 %v14036_v51  ;;  %v5808_v51 = vld [vmem:[#allocation5 + $0x30] sm:$0xff]  ;;  %v5855_v54 = vsel %vm3765_vm0, %v5806_v8, 0  ;;  %v5858_v45 = vsel %vm3765_vm0, %v5807_v2, 0 }
 0x4ad   : > { %4428 = vmatprep.mubr.f32.mxu0 %v16237_v21  ;;  %5418 = vmatprep.mubr.f32.mxu1 %v16237_v21  ;;  %v5861_v46 = vsel %vm3765_vm0, %v5808_v51, 0  ;;  %v14338_v4 = vand.u32 4294901760, %v5855_v54 }
 0x4ae   : > { %4432 = vmatmul.mubr.f32.gmra.mrb[6].mxu0 %v16307_v34  ;;  %5422 = vmatmul.mubr.f32.gmra.mrb[6].mxu1 %v16307_v34  ;;  %v14344_v10 = vand.u32 4294901760, %v5861_v46 }
 0x4af   : > { %8356 = vmatpush1.bf16.msra.mxu0 %v14042_v42  ;;  %8452 = vmatpush1.bf16.msra.mxu1 %v14048_v26  ;;  %v5852_v42 = vsel %vm3765_vm0, %v5805_v63, 0  ;;  %16321 = vst [vmem:[#allocation46_spill] sm:$0xff] %v14338_v4 }
 0x4b0   : > { %8358 = vmatprep.subr.bf16.mxu0 %v16282_v59  ;;  %8454 = vmatprep.subr.bf16.mxu1 %v16283_v37  ;;  %v14336_v1 = vand.u32 4294901760, %v5852_v42  ;;  %v14340_v59 = vand.u32 4294901760, %v5858_v45  ;;  %16323 = vst [vmem:[#allocation44_spill] sm:$0xff] %v14344_v10 }
 0x4b1   : > { %4437 = vmatprep.mubr.f32.mxu0 %v16237_v21  ;;  %5427 = vmatprep.mubr.f32.mxu1 %v16237_v21 }
 0x4b2   : > { %4441 = vmatmul.mubr.f32.gmra.mrb[8].mxu0 %v16308_v44  ;;  %5431 = vmatmul.mubr.f32.gmra.mrb[8].mxu1 %v16308_v44  ;;  %16320 = vst [vmem:[#allocation30_spill] sm:$0xff] %v14336_v1  ;;  %16322 = vst [vmem:[#allocation40_spill] sm:$0xff] %v14340_v59  ;;  %v14357_v29 = vsub.f32 %v5858_v45, %v14340_v59 }
 0x4b3   : > { %4446 = vmatprep.mubr.f32.mxu0 %v16237_v21  ;;  %5436 = vmatprep.mubr.f32.mxu1 %v16237_v21 }
 0x4b4   : > { %16326 = vst [vmem:[#allocation57_spill] sm:$0xff] %v14357_v29  ;;  %v14376_v53 = vand.u32 4294901760, %v14357_v29 }
 0x4b6   : > { %4450 = vmatmul.mubr.f32.gmra.mrb[10].mxu0 %v16309_v43  ;;  %5440 = vmatmul.mubr.f32.gmra.mrb[10].mxu1 %v16309_v43  ;;  %16330 = vst [vmem:[#allocation78_spill] sm:$0xff] %v14376_v53 }
 0x4b7   : > { %4455 = vmatprep.mubr.f32.mxu0 %v16237_v21  ;;  %5445 = vmatprep.mubr.f32.mxu1 %v16237_v21 }
 0x4ba   : > { %4459 = vmatmul.mubr.f32.gmra.mrb[12].mxu0 %v16310_v22  ;;  %5449 = vmatmul.mubr.f32.gmra.mrb[12].mxu1 %v16310_v22 }
 0x4bb   : > { %4464 = vmatprep.mubr.f32.mxu0 %v16237_v21  ;;  %5454 = vmatprep.mubr.f32.mxu1 %v16237_v21 }
 0x4be   : > { %4468 = vmatmul.mubr.f32.gmra.mrb[14].mxu0 %v13950_v36  ;;  %5458 = vmatmul.mubr.f32.gmra.mrb[14].mxu1 %v13950_v36 }
 0x4bf   : > { %4586 = vmatprep.mubr.f32.mxu0 %v16237_v21  ;;  %5576 = vmatprep.mubr.f32.mxu1 %v16237_v21 }
 0x4c2   : > { %4588 = vmatmul.mubr.f32.vlgmr.msra.gmra.mrb[0].mxu0 %v13700_v33  ;;  %5578 = vmatmul.mubr.f32.vlgmr.msra.gmra.mrb[0].mxu1 %v13700_v33 }
 0x4c3   : > { %8360 = vmatpush1.bf16.msra.mxu0 %v16284_v17  ;;  %8456 = vmatpush1.bf16.msra.mxu1 %v16285_v20  ;;  %v14351_v17 = vsub.f32 %v5852_v42, %v14336_v1  ;;  %v5809_v20 = vld [vmem:[#allocation5 + $0x38] sm:$0xff] }
 0x4c4   : > { %8362 = vmatprep.subr.bf16.mxu0 %v16286_v58  ;;  %8458 = vmatprep.subr.bf16.mxu1 %v16287_v5  ;;  %v14354_v5 = vsub.f32 %v5855_v54, %v14338_v4  ;;  %v5864_v55 = vsel %vm3765_vm0, %v5809_v20, 0 }
 0x4c5   : > { %4593 = vmatprep.mubr.f32.mxu0 %v16237_v21  ;;  %5583 = vmatprep.mubr.f32.mxu1 %v16237_v21  ;;  %16324 = vst [vmem:[#allocation19_spill] sm:$0xff] %v14351_v17  ;;  %v14370_v24 = vand.u32 4294901760, %v14351_v17  ;;  %v14381_v34 = vand.u32 4294901760, %v5864_v55 }
 0x4c6   : > { %4595 = vmatmul.mubr.f32.gmra.mrb[2].mxu0 %v13749_v11  ;;  %5585 = vmatmul.mubr.f32.gmra.mrb[2].mxu1 %v13749_v11  ;;  %16325 = vst [vmem:[#allocation62_spill] sm:$0xff] %v14354_v5  ;;  %v14373_v48 = vand.u32 4294901760, %v14354_v5 }
 0x4c7   : > { %8364 = vmatpush1.bf16.msra.mxu0 %v16289_v56  ;;  %8460 = vmatpush1.bf16.msra.mxu1 %v16290_v35  ;;  %16328 = vst [vmem:[#allocation79_spill] sm:$0xff] %v14370_v24  ;;  %16332 = vst [vmem:[#allocation93_spill] sm:$0xff] %v14381_v34 }
 0x4c8   : > { %8366 = vmatprep.subr.bf16.mxu0 %v16291_v14  ;;  %8462 = vmatprep.subr.bf16.mxu1 %v16292_v27  ;;  %v14362_v27 = vsub.f32 %v5861_v46, %v14344_v10  ;;  %16329 = vst [vmem:[#allocation72_spill] sm:$0xff] %v14373_v48 }
 0x4c9   : > { %4600 = vmatprep.mubr.f32.mxu0 %v16237_v21  ;;  %5590 = vmatprep.mubr.f32.mxu1 %v16237_v21 }
 0x4ca   : > { %4602 = vmatmul.mubr.f32.gmra.mrb[4].mxu0 %v13794_v18  ;;  %5592 = vmatmul.mubr.f32.gmra.mrb[4].mxu1 %v13794_v18  ;;  %16327 = vst [vmem:[#allocation56_spill] sm:$0xff] %v14362_v27  ;;  %v14379_v50 = vand.u32 4294901760, %v14362_v27 }
 0x4cb   : > { %8368 = vmatpush1.bf16.msra.mxu0 %v16294_v31  ;;  %8464 = vmatpush1.bf16.msra.mxu1 %v16295_v9 }
 0x4cc   : > { %8370 = vmatprep.subr.bf16.mxu0 %v16296_v28  ;;  %8466 = vmatprep.subr.bf16.mxu1 %v16297_v60  ;;  %16331 = vst [vmem:[#allocation64_spill] sm:$0xff] %v14379_v50 }
 0x4cd   : > { %4607 = vmatprep.mubr.f32.mxu0 %v16237_v21  ;;  %5597 = vmatprep.mubr.f32.mxu1 %v16237_v21 }
 0x4ce   : > { %4609 = vmatmul.mubr.f32.gmra.mrb[6].mxu0 %v13848_v3  ;;  %5599 = vmatmul.mubr.f32.gmra.mrb[6].mxu1 %v13848_v3 }
 0x4cf   : > { %8372 = vmatpush1.bf16.msra.mxu0 %v16299_v19  ;;  %8468 = vmatpush1.bf16.msra.mxu1 %v16300_v7 }
 0x4d0   : > { %4614 = vmatprep.mubr.f32.mxu0 %v16237_v21  ;;  %5604 = vmatprep.mubr.f32.mxu1 %v16237_v21 }
 0x4d2   : > { %4616 = vmatmul.mubr.f32.gmra.mrb[8].mxu0 %v13895_v52  ;;  %5606 = vmatmul.mubr.f32.gmra.mrb[8].mxu1 %v13895_v52 }
 0x4d3   : > { %4621 = vmatprep.mubr.f32.mxu0 %v16237_v21  ;;  %5611 = vmatprep.mubr.f32.mxu1 %v16237_v21 }
 0x4d6   : > { %4623 = vmatmul.mubr.f32.gmra.mrb[10].mxu0 %v13897_v49  ;;  %5613 = vmatmul.mubr.f32.gmra.mrb[10].mxu1 %v13897_v49 }
 0x4d7   : > { %4628 = vmatprep.mubr.f32.mxu0 %v16237_v21  ;;  %5618 = vmatprep.mubr.f32.mxu1 %v16237_v21 }
 0x4da   : > { %4630 = vmatmul.mubr.f32.gmra.mrb[12].mxu0 %v13899_v38  ;;  %5620 = vmatmul.mubr.f32.gmra.mrb[12].mxu1 %v13899_v38 }
 0x4db   : > { %4635 = vmatprep.mubr.f32.mxu0 %v16237_v21  ;;  %5625 = vmatprep.mubr.f32.mxu1 %v16237_v21 }
 0x4dc   : > { %v3735_v58 = vpop.permute.xlu1 %3734  ;;  %v3739_v19 = vpop.permute.xlu0 %3738 }
 0x4de   : > { %4637 = vmatmul.mubr.f32.gmra.mrb[14].mxu0 %v13910_v6  ;;  %5627 = vmatmul.mubr.f32.gmra.mrb[14].mxu1 %v13910_v6 }
 0x4df   : > { %4723 = vmatprep.mubr.f32.mxu0 %v16237_v21  ;;  %5713 = vmatprep.mubr.f32.mxu1 %v16237_v21 }
 0x4e0   : > { %v3743_v8 = vpop.permute.xlu1 %3742 }
 0x4e2   : > { %4725 = vmatmul.mubr.f32.vlgmr.msra.gmra.mrb[0].mxu0 %v13700_v33  ;;  %5715 = vmatmul.mubr.f32.vlgmr.msra.gmra.mrb[0].mxu1 %v13700_v33  ;;  %v5803_v33 = vld [vmem:[#allocation5 + $0x8] sm:$0xff] }
 0x4e3   : > { %4730 = vmatprep.mubr.f32.mxu0 %v16237_v21  ;;  %5720 = vmatprep.mubr.f32.mxu1 %v16237_v21 }
 0x4e6   : > { %4732 = vmatmul.mubr.f32.gmra.mrb[2].mxu0 %v13749_v11  ;;  %5722 = vmatmul.mubr.f32.gmra.mrb[2].mxu1 %v13749_v11  ;;  %v5804_v11 = vld [vmem:[#allocation5 + $0x10] sm:$0xff] }
 0x4e7   : > { %4737 = vmatprep.mubr.f32.mxu0 %v16237_v21  ;;  %5727 = vmatprep.mubr.f32.mxu1 %v16237_v21 }
 0x4ea   : > { %4739 = vmatmul.mubr.f32.gmra.mrb[4].mxu0 %v13794_v18  ;;  %5729 = vmatmul.mubr.f32.gmra.mrb[4].mxu1 %v13794_v18  ;;  %v5802_v18 = vld [vmem:[#allocation5] sm:$0xff] }
 0x4eb   : > { %4744 = vmatprep.mubr.f32.mxu0 %v16237_v21  ;;  %5734 = vmatprep.mubr.f32.mxu1 %v16237_v21  ;;  %v5843_v36 = vsel %vm3765_vm0, %v5802_v18, 0 }
 0x4ee   : > { %4746 = vmatmul.mubr.f32.gmra.mrb[6].mxu0 %v13848_v3  ;;  %5736 = vmatmul.mubr.f32.gmra.mrb[6].mxu1 %v13848_v3  ;;  %v5846_v3 = vsel %vm3765_vm0, %v5803_v33, 0 }
 0x4ef   : > { %4751 = vmatprep.mubr.f32.mxu0 %v16237_v21  ;;  %5741 = vmatprep.mubr.f32.mxu1 %v16237_v21 }
 0x4f2   : > { %4753 = vmatmul.mubr.f32.gmra.mrb[8].mxu0 %v13895_v52  ;;  %5743 = vmatmul.mubr.f32.gmra.mrb[8].mxu1 %v13895_v52  ;;  %v5849_v52 = vsel %vm3765_vm0, %v5804_v11, 0 }
 0x4f3   : > { %4758 = vmatprep.mubr.f32.mxu0 %v16237_v21  ;;  %5748 = vmatprep.mubr.f32.mxu1 %v16237_v21  ;;  %v14312_v47 = vand.u32 4294901760, %v5849_v52 }
 0x4f5   : > { %16313 = vst [vmem:[#allocation53_spill] sm:$0xff] %v14312_v47  ;;  %v14321_v57 = vsub.f32 %v5849_v52, %v14312_v47 }
 0x4f6   : > { %4760 = vmatmul.mubr.f32.gmra.mrb[10].mxu0 %v13897_v49  ;;  %5750 = vmatmul.mubr.f32.gmra.mrb[10].mxu1 %v13897_v49  ;;  %v14308_v49 = vand.u32 4294901760, %v5843_v36 }
 0x4f7   : > { %4765 = vmatprep.mubr.f32.mxu0 %v16237_v21  ;;  %5755 = vmatprep.mubr.f32.mxu1 %v16237_v21  ;;  %16316 = vst [vmem:[#allocation71_spill] sm:$0xff] %v14321_v57  ;;  %v14334_v12 = vand.u32 4294901760, %v14321_v57 }
 0x4f8   : > { %16311 = vst [vmem:[#allocation58_spill] sm:$0xff] %v14308_v49 }
 0x4f9   : > { %16319 = vst [vmem:[#allocation25_spill] sm:$0xff] %v14334_v12  ;;  %v5972_v62 = vsub.f32 %v14321_v57, %v14334_v12 }
 0x4fa   : > { %4767 = vmatmul.mubr.f32.gmra.mrb[12].mxu0 %v13899_v38  ;;  %5757 = vmatmul.mubr.f32.gmra.mrb[12].mxu1 %v13899_v38  ;;  %v14310_v38 = vand.u32 4294901760, %v5846_v3 }
 0x4fb   : > { %4772 = vmatprep.mubr.f32.mxu0 %v16237_v21  ;;  %5762 = vmatprep.mubr.f32.mxu1 %v16237_v21  ;;  %v14367_v0 = vand.u32 4294901760, %v5972_v62 }
 0x4fc   : > { %16312 = vst [vmem:[#allocation52_spill] sm:$0xff] %v14310_v38  ;;  %v14318_v25 = vsub.f32 %v5846_v3, %v14310_v38 }
 0x4fe   : > { %4774 = vmatmul.mubr.f32.gmra.mrb[14].mxu0 %v13910_v6  ;;  %5764 = vmatmul.mubr.f32.gmra.mrb[14].mxu1 %v13910_v6  ;;  %v14315_v6 = vsub.f32 %v5843_v36, %v14308_v49  ;;  %16315 = vst [vmem:[#allocation65_spill] sm:$0xff] %v14318_v25  ;;  %v14330_v23 = vand.u32 4294901760, %v14318_v25 }
 0x4ff   : > { %5946 = vmatprep.mubr.f32.mxu0 %v16237_v21  ;;  %6936 = vmatprep.mubr.f32.mxu1 %v16237_v21 }
 0x500   : > { %16314 = vst [vmem:[#allocation74_spill] sm:$0xff] %v14315_v6  ;;  %v14325_v26 = vand.u32 4294901760, %v14315_v6  ;;  %16318 = vst [vmem:[#allocation31_spill] sm:$0xff] %v14330_v23  ;;  %v5961_v16 = vsub.f32 %v14318_v25, %v14330_v23 }
 0x502   : > { %16317 = vst [vmem:[#allocation14_spill] sm:$0xff] %v14325_v26  ;;  %v5950_v37 = vsub.f32 %v14315_v6, %v14325_v26  ;;  %v14364_v60 = vand.u32 4294901760, %v5961_v16 }
 0x504   : > { %v14359_v14 = vand.u32 4294901760, %v5950_v37 }
 0x5b5   : > { %v4726_v56 = vpop.f32.mrb[0].mxu0  ;;  %v5716_v35 = vpop.f32.mrb[0].mxu1 }
 0x5b6   : > { %v8661_v32 = vadd.f32 %v4726_v56, %v3735_v58  ;;  %v8677_v31 = vadd.f32 %v5716_v35, %v3735_v58  ;;  %v4728_v9 = vpop.f32.mrb[1].mxu0  ;;  %v5718_v28 = vpop.f32.mrb[1].mxu1 }
 0x5b7   : > { %v8662_v7 = vadd.f32 %v4728_v9, %v3735_v58  ;;  %v8678_v61 = vadd.f32 %v5718_v28, %v3735_v58 }
 0x5b8   : > { %v5770_v30 = vmax.f32 %v8661_v32, 0.0  ;;  %v5772_v39 = vmax.f32 %v8677_v31, 0.0 }
 0x5b9   : > { %v5771_v40 = vmax.f32 %v8662_v7, 0.0  ;;  %v5773_v15 = vmax.f32 %v8678_v61, 0.0  ;;  %v4733_v41 = vpop.f32.mrb[2].mxu0  ;;  %v5723_v13 = vpop.f32.mrb[2].mxu1 }
 0x5ba   : > { %v5868_v44 = vand.u32 4294901760, %v5770_v30  ;;  %v6858_v43 = vand.u32 4294901760, %v5772_v39  ;;  %v8663_v22 = vadd.f32 %v4733_v41, %v3739_v19  ;;  %v8679_v18 = vadd.f32 %v5723_v13, %v3739_v19  ;;  %v4735_v33 = vpop.f32.mrb[3].mxu0  ;;  %v5725_v11 = vpop.f32.mrb[3].mxu1 }
 0x5bb   : > { %v14383_v36 = vand.u32 4294901760, %v5771_v40  ;;  %v14385_v3 = vand.u32 4294901760, %v5773_v15  ;;  %v8664_v52 = vadd.f32 %v4735_v33, %v3739_v19  ;;  %v8680_v63 = vadd.f32 %v5725_v11, %v3739_v19 }
 0x5bc   : > { %v14387_v2 = vsub.f32 %v5770_v30, %v5868_v44  ;;  %v14389_v51 = vsub.f32 %v5772_v39, %v6858_v43  ;;  %v5774_v42 = vmax.f32 %v8663_v22, 0.0  ;;  %v5776_v54 = vmax.f32 %v8679_v18, 0.0 }
 0x5bd   : > { %v14392_v45 = vsub.f32 %v5771_v40, %v14383_v36  ;;  %v14395_v46 = vsub.f32 %v5773_v15, %v14385_v3  ;;  %v5775_v37 = vmax.f32 %v8664_v52, 0.0  ;;  %v5777_v16 = vmax.f32 %v8680_v63, 0.0  ;;  %v4740_v62 = vpop.f32.mrb[4].mxu0  ;;  %v5730_v20 = vpop.f32.mrb[4].mxu1 }
 0x5be   : > { %v15671_v58 = vand.u32 4294901760, %v14387_v2  ;;  %v15670_v56 = vand.u32 4294901760, %v14389_v51  ;;  %v5872_v35 = vand.u32 4294901760, %v5774_v42  ;;  %v6862_v32 = vand.u32 4294901760, %v5776_v54  ;;  %v4742_v31 = vpop.f32.mrb[5].mxu0  ;;  %v5732_v9 = vpop.f32.mrb[5].mxu1 }
 0x5bf   : > { %v14399_v28 = vand.u32 4294901760, %v5775_v37  ;;  %v14401_v19 = vand.u32 4294901760, %v5777_v16  ;;  %v8681_v33 = vadd.f32 %v5730_v20, %v3743_v8  ;;  %v8666_v11 = vadd.f32 %v4742_v31, %v3743_v8 }
 0x5c0   : > { %v14410_v30 = vsub.f32 %v14387_v2, %v15671_v58  ;;  %v14412_v39 = vpack.c.bf16 %v5872_v35, %v5868_v44  ;;  %v14414_v40 = vsub.f32 %v5774_v42, %v5872_v35  ;;  %v14421_v41 = vsub.f32 %v14389_v51, %v15670_v56 }
 0x5c1   : > { %v14423_v13 = vpack.c.bf16 %v6862_v32, %v6858_v43  ;;  %v4747_v22 = vpop.f32.mrb[6].mxu0  ;;  %v5737_v18 = vpop.f32.mrb[6].mxu1  ;;  %v14428_v44 = vsub.f32 %v5864_v55, %v14381_v34  ;;  %v14432_v63 = vsub.f32 %v5776_v54, %v6862_v32  ;;  %v8665_v42 = vadd.f32 %v4740_v62, %v3743_v8 }
 0x5c2   : > { %16333 = vst [vmem:[#allocation91_spill] sm:$0xff] %v14412_v39  ;;  %v4749_v35 = vpop.f32.mrb[7].mxu0  ;;  %v5739_v15 = vpop.f32.mrb[7].mxu1  ;;  %v14436_v56 = vsub.f32 %v5775_v37, %v14399_v28  ;;  %v14439_v58 = vsub.f32 %v5777_v16, %v14401_v19  ;;  %v8682_v52 = vadd.f32 %v5732_v9, %v3743_v8  ;;  %v5780_v62 = vmax.f32 %v8681_v33, 0.0 }
 0x5c3   : > { %16334 = vst [vmem:[#allocation90_spill] sm:$0xff] %v14423_v13  ;;  %16335 = vst [vmem:[#allocation105_spill] sm:$0xff] %v14428_v44  ;;  %v3747_v55 = vpop.permute.xlu1 %3746  ;;  %v5778_v7 = vmax.f32 %v8665_v42, 0.0  ;;  %v5779_v57 = vmax.f32 %v8666_v11, 0.0  ;;  %v16336_v61 = vand.u32 4294901760, %v14414_v40 }
 0x5c4   : > { %v8667_v32 = vadd.f32 %v4747_v22, %v3747_v55  ;;  %v8683_v12 = vadd.f32 %v5737_v18, %v3747_v55  ;;  %v5781_v16 = vmax.f32 %v8682_v52, 0.0  ;;  %v6866_v8 = vand.u32 4294901760, %v5780_v62 }
 0x5c5   : > { %v4754_v23 = vpop.f32.mrb[8].mxu0  ;;  %v5744_v43 = vpop.f32.mrb[8].mxu1  ;;  %v5876_v26 = vand.u32 4294901760, %v5778_v7  ;;  %v14449_v31 = vsub.f32 %v14414_v40, %v16336_v61  ;;  %v14453_v18 = vand.u32 4294901760, %v5779_v57  ;;  %v8668_v54 = vadd.f32 %v4749_v35, %v3747_v55 }
 0x5c6   : > { %v4756_v25 = vpop.f32.mrb[9].mxu0  ;;  %v14444_v20 = vpop.f32.mrb[9].mxu1  ;;  %v5782_v9 = vmax.f32 %v8667_v32, 0.0  ;;  %v5784_v33 = vmax.f32 %v8683_v12, 0.0  ;;  %v14455_v42 = vand.u32 4294901760, %v5781_v16  ;;  %v14457_v11 = vsub.f32 %v5780_v62, %v6866_v8 }
 0x5c7   : > { %v14451_v22 = vsub.f32 %v5778_v7, %v5876_v26  ;;  %v14459_v6 = vadd.f32 %v5739_v15, %v3747_v55  ;;  %v16339_v61 = vand.u32 4294901760, %v14432_v63  ;;  %v14468_v7 = vsub.f32 %v5779_v57, %v14453_v18 }
 0x5c8   : > { %16338 = vst [vmem:[#allocation103_spill] sm:$0xff] %v14457_v11  ;;  %v5880_v52 = vand.u32 4294901760, %v5782_v9  ;;  %v6870_v37 = vand.u32 4294901760, %v5784_v33  ;;  %v5783_v59 = vmax.f32 %v8668_v54, 0.0  ;;  %v15697_v4 = vand.u32 4294901760, %v14457_v11 }
 0x5c9   : > { %16337 = vst [vmem:[#allocation100_spill] sm:$0xff] %v14451_v22  ;;  %v4761_v34 = vpop.f32.mrb[10].mxu0  ;;  %v5751_v10 = vpop.f32.mrb[10].mxu1  ;;  %v14464_v32 = vsub.f32 %v14432_v63, %v16339_v61  ;;  %v15696_v12 = vand.u32 4294901760, %v14451_v22  ;;  %v14484_v57 = vsub.f32 %v5781_v16, %v14455_v42 }
 0x5ca   : > { %v4763_v35 = vpop.f32.mrb[11].mxu0  ;;  %v5753_v62 = vpop.f32.mrb[11].mxu1  ;;  %v14471_v1 = vpack.c.bf16 %v5880_v52, %v5876_v26  ;;  %v14473_v15 = vsub.f32 %v5782_v9, %v5880_v52  ;;  %v14475_v55 = vpack.c.bf16 %v6870_v37, %v6866_v8  ;;  %v14486_v54 = vsub.f32 %v5784_v33, %v6870_v37 }
 0x5cb   : > { %v14481_v61 = vsub.f32 %v14451_v22, %v15696_v12  ;;  %v14491_v26 = vsub.f32 %v14457_v11, %v15697_v4  ;;  %v14494_v9 = vand.u32 4294901760, %v5783_v59  ;;  %v5785_v52 = vmax.f32 %v14459_v6, 0.0  ;;  %v3751_v6 = vpop.permute.xlu0 %3750 }
 0x5cc   : > { %16340 = vst [vmem:[#allocation28_spill] sm:$0xff] %v14471_v1  ;;  %16341 = vst [vmem:[#allocation50_spill] sm:$0xff] %v14473_v15  ;;  %v14505_v33 = vpack.c.bf16 %v14399_v28, %v14383_v36  ;;  %v14509_v4 = vpack.c.bf16 %v14401_v19, %v14385_v3  ;;  %v16346_v37 = vand.u32 4294901760, %v14473_v15  ;;  %v3755_v28 = vpop.permute.xlu1 %3754  ;;  %v8669_v27 = vadd.f32 %v4754_v23, %v3751_v6 }
 0x5cd   : > { %16342 = vst [vmem:[#allocation83_spill] sm:$0xff] %v14475_v55  ;;  %16343 = vst [vmem:[#allocation70_spill] sm:$0xff] %v14486_v54  ;;  %v14497_v47 = vpop.f32.mrb[12].mxu0  ;;  %v14499_v12 = vpop.f32.mrb[12].mxu1  ;;  %v8685_v49 = vadd.f32 %v5744_v43, %v3751_v6  ;;  %v14529_v16 = vsub.f32 %v5783_v59, %v14494_v9  ;;  %v6868_v44 = vand.u32 4294901760, %v5785_v52  ;;  %v8686_v59 = vadd.f32 %v14444_v20, %v3751_v6 }
 0x5ce   : > { %16344 = vst [vmem:[#allocation108_spill] sm:$0xff] %v14505_v33  ;;  %16345 = vst [vmem:[#allocation110_spill] sm:$0xff] %v14509_v4  ;;  %v14511_v8 = vpop.f32.mrb[13].mxu0  ;;  %v14513_v38 = vpop.f32.mrb[13].mxu1  ;;  %v14521_v36 = vsub.f32 %v14473_v15, %v16346_v37  ;;  %8470 = vmatprep.subr.bf16.mxu0 %v14505_v33  ;;  %8566 = vmatprep.subr.bf16.mxu1 %v14509_v4  ;;  %v8670_v37 = vadd.f32 %v4756_v25, %v3751_v6  ;;  %v16347_v33 = vand.u32 4294901760, %v14486_v54 }
 0x5cf   : > { %8472 = vmatpush1.bf16.msra.mxu0 %v14412_v39  ;;  %8568 = vmatpush1.bf16.msra.mxu1 %v14423_v13  ;;  %v5786_v43 = vmax.f32 %v8669_v27, 0.0  ;;  %v5788_v50 = vmax.f32 %v8685_v49, 0.0  ;;  %v8671_v39 = vadd.f32 %v4761_v34, %v3755_v28  ;;  %v8687_v29 = vadd.f32 %v5751_v10, %v3755_v28 }
 0x5d0   : > { %v14540_v23 = vsub.f32 %v14486_v54, %v16347_v33  ;;  %v5787_v25 = vmax.f32 %v8670_v37, 0.0  ;;  %v5789_v11 = vmax.f32 %v8686_v59, 0.0  ;;  %v8672_v15 = vadd.f32 %v4763_v35, %v3755_v28 }
 0x5d1   : > { %v14533_v3 = vpop.f32.mrb[14].mxu0  ;;  %v14535_v19 = vpop.f32.mrb[14].mxu1  ;;  %v5884_v48 = vand.u32 4294901760, %v5786_v43  ;;  %v6874_v5 = vand.u32 4294901760, %v5788_v50  ;;  %v5790_v33 = vmax.f32 %v8671_v39, 0.0  ;;  %v5792_v27 = vmax.f32 %v8687_v29, 0.0 }
 0x5d2   : > { %v14543_v4 = vpop.f32.mrb[15].mxu0  ;;  %v14545_v53 = vpop.f32.mrb[15].mxu1  ;;  %v14548_v22 = vand.u32 4294901760, %v5787_v25  ;;  %v8688_v49 = vadd.f32 %v5753_v62, %v3755_v28  ;;  %v14554_v6 = vand.u32 4294901760, %v5789_v11  ;;  %v5791_v24 = vmax.f32 %v8672_v15, 0.0 }
 0x5d3   : > { %v14550_v54 = vsub.f32 %v5786_v43, %v5884_v48  ;;  %v14552_v20 = vsub.f32 %v5788_v50, %v6874_v5  ;;  %v14556_v13 = vsub.f32 %v5785_v52, %v6868_v44  ;;  %v5888_v34 = vand.u32 4294901760, %v5790_v33 }
 0x5d4   : > { %v6878_v10 = vand.u32 4294901760, %v5792_v27  ;;  %v5793_v37 = vmax.f32 %v8688_v49, 0.0  ;;  %v14561_v39 = vsub.f32 %v5787_v25, %v14548_v22  ;;  %v14563_v29 = vand.u32 4294901760, %v5791_v24 }
 0x5d5   : > { %16348 = vst [vmem:[#allocation107_spill] sm:$0xff] %v14550_v54  ;;  %16349 = vst [vmem:[#allocation115_spill] sm:$0xff] %v14552_v20  ;;  %v15733_v59 = vand.u32 4294901760, %v14550_v54  ;;  %v15734_v35 = vand.u32 4294901760, %v14552_v20  ;;  %v14566_v50 = vsub.f32 %v5789_v11, %v14554_v6  ;;  %v14568_v62 = vpack.c.bf16 %v5888_v34, %v5884_v48 }
 0x5d6   : > { %v14570_v15 = vsub.f32 %v5790_v33, %v5888_v34  ;;  %v14572_v52 = vpack.c.bf16 %v6878_v10, %v6874_v5  ;;  %v14585_v11 = vsub.f32 %v5792_v27, %v6878_v10  ;;  %v14589_v33 = vsub.f32 %v5791_v24, %v14563_v29  ;;  %v3759_v34 = vpop.permute.xlu0 %3758  ;;  %v3763_v10 = vpop.permute.xlu1 %3762 }
 0x5d7   : > { %16350 = vst [vmem:[#allocation116_spill] sm:$0xff] %v14568_v62  ;;  %v14578_v43 = vsub.f32 %v14550_v54, %v15733_v59  ;;  %v14583_v25 = vsub.f32 %v14552_v20, %v15734_v35  ;;  %v14591_v5 = vand.u32 4294901760, %v5793_v37  ;;  %v14595_v49 = vpack.c.bf16 %v14494_v9, %v14453_v18 }
 0x5d8   : > { %16351 = vst [vmem:[#allocation114_spill] sm:$0xff] %v14570_v15  ;;  %16352 = vst [vmem:[#allocation47_spill] sm:$0xff] %v14572_v52  ;;  %v15747_v35 = vand.u32 4294901760, %v14585_v11  ;;  %v14601_v27 = vpack.c.bf16 %v6868_v44, %v14455_v42  ;;  %v8673_v18 = vadd.f32 %v14497_v47, %v3759_v34  ;;  %v16356_v59 = vand.u32 4294901760, %v14570_v15 }
 0x5d9   : > { %16353 = vst [vmem:[#allocation73_spill] sm:$0xff] %v14585_v11  ;;  %16354 = vst [vmem:[#allocation123_spill] sm:$0xff] %v14595_v49  ;;  %8474 = vmatprep.subr.bf16.mxu0 %v14595_v49  ;;  %v8689_v44 = vadd.f32 %v14499_v12, %v3759_v34  ;;  %v8674_v42 = vadd.f32 %v14511_v8, %v3759_v34  ;;  %v14620_v47 = vsub.f32 %v5793_v37, %v14591_v5 }
 0x5da   : > { %16355 = vst [vmem:[#allocation61_spill] sm:$0xff] %v14601_v27  ;;  %v14612_v28 = vsub.f32 %v14570_v15, %v16356_v59  ;;  %8570 = vmatprep.subr.bf16.mxu1 %v14601_v27  ;;  %8476 = vmatpush1.bf16.msra.mxu0 %v14471_v1  ;;  %v5794_v9 = vmax.f32 %v8673_v18, 0.0  ;;  %v8690_v59 = vadd.f32 %v14513_v38, %v3759_v34 }
 0x5db   : > { %8572 = vmatpush1.bf16.msra.mxu1 %v14475_v55  ;;  %v14627_v24 = vsub.f32 %v14585_v11, %v15747_v35  ;;  %v5796_v1 = vmax.f32 %v8689_v44, 0.0  ;;  %v5795_v12 = vmax.f32 %v8674_v42, 0.0  ;;  %v8675_v8 = vadd.f32 %v14533_v3, %v3763_v10 }
 0x5dc   : > { %v5892_v27 = vand.u32 4294901760, %v5794_v9  ;;  %v5797_v49 = vmax.f32 %v8690_v59, 0.0  ;;  %v8691_v48 = vadd.f32 %v14535_v19, %v3763_v10  ;;  %v8676_v37 = vadd.f32 %v14543_v4, %v3763_v10 }
 0x5dd   : > { %v6882_v20 = vand.u32 4294901760, %v5796_v1  ;;  %v5890_v55 = vand.u32 4294901760, %v5795_v12  ;;  %v5798_v18 = vmax.f32 %v8675_v8, 0.0  ;;  %v8692_v38 = vadd.f32 %v14545_v53, %v3763_v10 }
 0x5de   : > { %v14633_v34 = vsub.f32 %v5794_v9, %v5892_v27  ;;  %v6880_v15 = vand.u32 4294901760, %v5797_v49  ;;  %v5800_v35 = vmax.f32 %v8691_v48, 0.0  ;;  %v5799_v11 = vmax.f32 %v8676_v37, 0.0 }
 0x5df   : > { %v14636_v42 = vsub.f32 %v5796_v1, %v6882_v20  ;;  %v5896_v3 = vand.u32 4294901760, %v5798_v18  ;;  %v5801_v59 = vmax.f32 %v8692_v38, 0.0  ;;  %v14639_v54 = vsub.f32 %v5795_v12, %v5890_v55 }
 0x5e0   : > { %v15754_v19 = vand.u32 4294901760, %v14633_v34  ;;  %v6886_v4 = vand.u32 4294901760, %v5800_v35  ;;  %v5894_v17 = vand.u32 4294901760, %v5799_v11  ;;  %v14642_v53 = vsub.f32 %v5797_v49, %v6880_v15 }
 0x5e1   : > { %v15755_v8 = vand.u32 4294901760, %v14636_v42  ;;  %v14644_v10 = vpack.c.bf16 %v5896_v3, %v5892_v27  ;;  %v14646_v48 = vsub.f32 %v5798_v18, %v5896_v3  ;;  %v6884_v27 = vand.u32 4294901760, %v5801_v59 }
 0x5e2   : > { %v14652_v1 = vsub.f32 %v14633_v34, %v15754_v19  ;;  %v14654_v37 = vpack.c.bf16 %v6886_v4, %v6882_v20  ;;  %v14656_v12 = vsub.f32 %v5800_v35, %v6886_v4  ;;  %v14660_v44 = vsub.f32 %v5799_v11, %v5894_v17 }
 0x5e3   : > { %16357 = vst [vmem:[#allocation84_spill] sm:$0xff] %v14644_v10  ;;  %v15756_v49 = vand.u32 4294901760, %v14646_v48  ;;  %v14666_v9 = vpack.c.bf16 %v14563_v29, %v14548_v22  ;;  %v14670_v20 = vpack.c.bf16 %v14591_v5, %v14554_v6  ;;  %v14675_v35 = vsub.f32 %v14636_v42, %v15755_v8 }
 0x5e4   : > { %v15757_v3 = vand.u32 4294901760, %v14656_v12  ;;  %v14683_v19 = vsub.f32 %v5801_v59, %v6884_v27  ;;  %v14689_v6 = vpack.c.bf16 %v5894_v17, %v5890_v55  ;;  %v14691_v5 = vpack.c.bf16 %v6884_v27, %v6880_v15 }
 0x5e5   : > { %16358 = vst [vmem:[#allocation85_spill] sm:$0xff] %v14670_v20  ;;  %v14681_v4 = vsub.f32 %v14646_v48, %v15756_v49  ;;  %8478 = vmatprep.subr.bf16.mxu0 %v14666_v9  ;;  %8574 = vmatprep.subr.bf16.mxu1 %v14670_v20  ;;  %v16361_v59 = vand.u32 4294901760, %v14392_v45  ;;  %v16362_v17 = vand.u32 4294901760, %v14436_v56  ;;  %v16363_v27 = vand.u32 4294901760, %v14395_v46 }
 0x5e6   : > { %16359 = vst [vmem:[#allocation88_spill] sm:$0xff] %v14689_v6  ;;  %16360 = vst [vmem:[#allocation96_spill] sm:$0xff] %v14691_v5  ;;  %v14697_v49 = vsub.f32 %v14656_v12, %v15757_v3  ;;  %8480 = vmatpush1.bf16.msra.mxu0 %v14568_v62  ;;  %8576 = vmatpush1.bf16.msra.mxu1 %v14572_v52  ;;  %v16364_v8 = vand.u32 4294901760, %v14439_v58  ;;  %v16366_v29 = vand.u32 4294901760, %v14449_v31  ;;  %v16367_v15 = vand.u32 4294901760, %v14421_v41 }
 0x5e7   : > { %v6038_v22 = vsub.f32 %v14392_v45, %v16361_v59  ;;  %v6050_v55 = vsub.f32 %v14436_v56, %v16362_v17  ;;  %8482 = vmatprep.subr.bf16.mxu0 %v14689_v6  ;;  %8578 = vmatprep.subr.bf16.mxu1 %v14691_v5  ;;  %v7028_v3 = vsub.f32 %v14395_v46, %v16363_v27  ;;  %v16365_v59 = vand.u32 4294901760, %v14410_v30 }
 0x5e8   : > { %v7040_v11 = vsub.f32 %v14439_v58, %v16364_v8  ;;  %v16368_v6 = vand.u32 4294901760, %v14464_v32  ;;  %v16369_v52 = vand.u32 4294901760, %v14468_v7  ;;  %v16370_v8 = vand.u32 4294901760, %v14529_v16 }
 0x5e9   : > { %v8487_v18 = vpack.c.bf16 %v16366_v29, %v16365_v59  ;;  %v6039_v17 = vand.u32 4294901760, %v6038_v22  ;;  %v6051_v38 = vand.u32 4294901760, %v6050_v55  ;;  %v7029_v62 = vand.u32 4294901760, %v7028_v3 }
 0x5ea   : > { %v8583_v5 = vpack.c.bf16 %v16368_v6, %v16367_v15  ;;  %v6062_v27 = vsub.f32 %v14468_v7, %v16369_v52  ;;  %v7041_v20 = vand.u32 4294901760, %v7040_v11  ;;  %v6074_v30 = vsub.f32 %v14529_v16, %v16370_v8  ;;  %8484 = vmatpush1.bf16.msra.mxu0 %v14644_v10  ;;  %8580 = vmatpush1.bf16.msra.mxu1 %v14654_v37 }
 0x5eb   : > { %v16371_v31 = vand.u32 4294901760, %v14484_v57  ;;  %v8485_v41 = vpack.c.bf16 %v6051_v38, %v6039_v17  ;;  %v16372_v29 = vand.u32 4294901760, %v14556_v13  ;;  %v16373_v3 = vand.u32 4294901760, %v14481_v61 }
 0x5ec   : > { %v6063_v32 = vand.u32 4294901760, %v6062_v27  ;;  %v16374_v11 = vand.u32 4294901760, %v14521_v36  ;;  %v8581_v55 = vpack.c.bf16 %v7041_v20, %v7029_v62  ;;  %v6075_v15 = vand.u32 4294901760, %v6074_v30 }
 0x5ed   : > { %v7052_v22 = vsub.f32 %v14484_v57, %v16371_v31  ;;  %v7064_v52 = vsub.f32 %v14556_v13, %v16372_v29  ;;  %v16375_v8 = vand.u32 4294901760, %v14491_v26  ;;  %v16376_v31 = vand.u32 4294901760, %v14540_v23  ;;  %8486 = vmatprep.subr.bf16.mxu0 %v8485_v41  ;;  %5952 = vmatmul.mubr.f32.vlgmr.msra.gmra.mrb[16].mxu0 %v14359_v14 }
 0x5ee   : > { %v8491_v6 = vpack.c.bf16 %v16374_v11, %v16373_v3  ;;  %v16377_v17 = vand.u32 4294901760, %v14561_v39  ;;  %v16378_v29 = vand.u32 4294901760, %v14589_v33  ;;  %v16379_v36 = vand.u32 4294901760, %v14566_v50  ;;  %8582 = vmatprep.subr.bf16.mxu1 %v8581_v55  ;;  %6942 = vmatmul.mubr.f32.vlgmr.msra.gmra.mrb[16].mxu1 %v14359_v14 }
 0x5ef   : > { %v7053_v59 = vand.u32 4294901760, %v7052_v22  ;;  %v8587_v10 = vpack.c.bf16 %v16376_v31, %v16375_v8  ;;  %v7065_v38 = vand.u32 4294901760, %v7064_v52  ;;  %v7119_v20 = vand.u32 4294901760, %v14697_v49  ;;  %8488 = vmatpush1.bf16.msra.mxu0 %v8487_v18  ;;  %8584 = vmatpush1.bf16.msra.mxu1 %v8583_v5 }
 0x5f0   : > { %v6086_v27 = vsub.f32 %v14561_v39, %v16377_v17  ;;  %v6098_v61 = vsub.f32 %v14589_v33, %v16378_v29  ;;  %v7076_v62 = vsub.f32 %v14566_v50, %v16379_v36  ;;  %v8489_v26 = vpack.c.bf16 %v6075_v15, %v6063_v32  ;;  %5957 = vmatprep.mubr.f32.mxu0 %v16237_v21 }
 0x5f1   : > { %v16380_v23 = vand.u32 4294901760, %v14620_v47  ;;  %v16381_v22 = vand.u32 4294901760, %v14578_v43  ;;  %v16382_v41 = vand.u32 4294901760, %v14612_v28  ;;  %v8585_v3 = vpack.c.bf16 %v7065_v38, %v7053_v59  ;;  %6947 = vmatprep.mubr.f32.mxu1 %v16237_v21  ;;  %5963 = vmatmul.mubr.f32.gmra.mrb[18].mxu0 %v14364_v60 }
 0x5f2   : > { %v6087_v11 = vand.u32 4294901760, %v6086_v27  ;;  %v6099_v8 = vand.u32 4294901760, %v6098_v61  ;;  %v7077_v49 = vand.u32 4294901760, %v7076_v62  ;;  %8490 = vmatprep.subr.bf16.mxu0 %v8489_v26  ;;  %v16383_v32 = vand.u32 4294901760, %v14583_v25  ;;  %6953 = vmatmul.mubr.f32.gmra.mrb[18].mxu1 %v14364_v60 }
 0x5f3   : > { %v7088_v30 = vsub.f32 %v14620_v47, %v16380_v23  ;;  %v8495_v52 = vpack.c.bf16 %v16382_v41, %v16381_v22  ;;  %v16384_v15 = vand.u32 4294901760, %v14627_v24  ;;  %v16385_v43 = vand.u32 4294901760, %v14639_v54  ;;  %8586 = vmatprep.subr.bf16.mxu1 %v8585_v3  ;;  %8492 = vmatpush1.bf16.msra.mxu0 %v8491_v6 }
 0x5f4   : > { %v16386_v17 = vand.u32 4294901760, %v14660_v44  ;;  %v7107_v18 = vand.u32 4294901760, %v14675_v35  ;;  %v8493_v5 = vpack.c.bf16 %v6099_v8, %v6087_v11  ;;  %v16387_v59 = vand.u32 4294901760, %v14642_v53  ;;  %8588 = vmatpush1.bf16.msra.mxu1 %v8587_v10  ;;  %5968 = vmatprep.mubr.f32.mxu0 %v16237_v21  ;;  %v16391_v10 = vld [vmem:[#allocation19_spill] sm:$0xff] }
 0x5f5   : > { %v7089_v55 = vand.u32 4294901760, %v7088_v30  ;;  %v8591_v31 = vpack.c.bf16 %v16384_v15, %v16383_v32  ;;  %v6110_v28 = vsub.f32 %v14639_v54, %v16385_v43  ;;  %v16388_v24 = vand.u32 4294901760, %v14683_v19  ;;  %6958 = vmatprep.mubr.f32.mxu1 %v16237_v21  ;;  %5974 = vmatmul.mubr.f32.gmra.mrb[20].mxu0 %v14367_v0  ;;  %v16395_v32 = vld [vmem:[#allocation50_spill] sm:$0xff]  ;;  %v16396_v43 = vld [vmem:[#allocation103_spill] sm:$0xff] }
 0x5f6   : > { %v6122_v14 = vsub.f32 %v14660_v44, %v16386_v17  ;;  %v7100_v25 = vsub.f32 %v14642_v53, %v16387_v59  ;;  %v16389_v35 = vand.u32 4294901760, %v14652_v1  ;;  %v16390_v36 = vand.u32 4294901760, %v14681_v4  ;;  %8494 = vmatprep.subr.bf16.mxu0 %v8493_v5  ;;  %6964 = vmatmul.mubr.f32.gmra.mrb[20].mxu1 %v14367_v0  ;;  %v16398_v5 = vld [vmem:[#allocation107_spill] sm:$0xff]  ;;  %v16399_v59 = vld [vmem:[#allocation114_spill] sm:$0xff] }
 0x5f7   : > { %v7112_v38 = vsub.f32 %v14683_v19, %v16388_v24  ;;  %v8589_v27 = vpack.c.bf16 %v7089_v55, %v7077_v49  ;;  %v6111_v29 = vand.u32 4294901760, %v6110_v28  ;;  %v8595_v30 = vpack.c.bf16 %v7119_v20, %v7107_v18  ;;  %v16392_v20 = vld [vmem:[#allocation79_spill] sm:$0xff]  ;;  %v16394_v55 = vld [vmem:[#allocation100_spill] sm:$0xff]  ;;  %v16397_v28 = vld [vmem:[#allocation70_spill] sm:$0xff]  ;;  %8496 = vmatpush1.bf16.msra.mxu0 %v8495_v52  ;;  %5979 = vmatprep.mubr.f32.mxu0 %v16237_v21 }
 0x5f8   : > { %v6123_v61 = vand.u32 4294901760, %v6122_v14  ;;  %v8499_v62 = vpack.c.bf16 %v16390_v36, %v16389_v35  ;;  %v7101_v26 = vand.u32 4294901760, %v7100_v25  ;;  %v8501_v22 = vpack.c.bf16 %v14436_v56, %v14392_v45  ;;  %v16400_v24 = vld [vmem:[#allocation115_spill] sm:$0xff]  ;;  %6969 = vmatprep.mubr.f32.mxu1 %v16237_v21 }
 0x5f9   : > { %v7113_v23 = vand.u32 4294901760, %v7112_v38  ;;  %v8597_v3 = vpack.c.bf16 %v14439_v58, %v14395_v46  ;;  %8590 = vmatprep.subr.bf16.mxu1 %v8589_v27  ;;  %v16393_v11 = vsub.f32 %v16391_v10, %v16392_v20  ;;  %v16401_v38 = vld [vmem:[#allocation73_spill] sm:$0xff]  ;;  %v16403_v35 = vand.u32 4294901760, %v14436_v56 }
 0x5fa   : > { %v8497_v41 = vpack.c.bf16 %v6123_v61, %v6111_v29  ;;  %8592 = vmatpush1.bf16.msra.mxu1 %v8591_v31  ;;  %v16402_v31 = vand.u32 4294901760, %v14392_v45  ;;  %v16408_v52 = vand.u32 4294901760, %v14439_v58  ;;  %v16409_v61 = vand.u32 4294901760, %v14387_v2 }
 0x5fb   : > { %v8593_v60 = vpack.c.bf16 %v7113_v23, %v7101_v26  ;;  %v5984_v8 = vand.u32 4294901760, %v16393_v11  ;;  %v16404_v26 = vld [vmem:[#allocation62_spill] sm:$0xff]  ;;  %v16405_v23 = vld [vmem:[#allocation72_spill] sm:$0xff]  ;;  %v16407_v11 = vand.u32 4294901760, %v14395_v46  ;;  %v16410_v45 = vand.u32 4294901760, %v14414_v40 }
 0x5fc   : > { %8498 = vmatprep.subr.bf16.mxu0 %v8497_v41  ;;  %v14834_v36 = vpack.c.bf16 %v16403_v35, %v16402_v31  ;;  %v16406_v41 = vsub.f32 %v16404_v26, %v16405_v23  ;;  %v16411_v31 = vand.u32 4294901760, %v14389_v51  ;;  %v16412_v35 = vand.u32 4294901760, %v14432_v63 }
 0x5fd   : > { %8594 = vmatprep.subr.bf16.mxu1 %v8593_v60  ;;  %5985 = vmatmul.mubr.f32.gmra.mrb[22].mxu0 %v5984_v8  ;;  %v14844_v0 = vpack.c.bf16 %v16408_v52, %v16407_v11  ;;  %v14850_v56 = vpack.c.bf16 %v16410_v45, %v16409_v61  ;;  %v16413_v46 = vand.u32 4294901760, %v14468_v7  ;;  %v16414_v58 = vand.u32 4294901760, %v14529_v16 }
 0x5fe   : > { %v5995_v60 = vand.u32 4294901760, %v16406_v41  ;;  %v14856_v29 = vpack.c.bf16 %v16412_v35, %v16411_v31  ;;  %6975 = vmatmul.mubr.f32.gmra.mrb[22].mxu1 %v5984_v8  ;;  %8500 = vmatpush1.bf16.msra.mxu0 %v8499_v62  ;;  %v16415_v41 = vand.u32 4294901760, %v14484_v57  ;;  %v16416_v11 = vand.u32 4294901760, %v14556_v13 }
 0x5ff   : > { %v14862_v52 = vpack.c.bf16 %v16414_v58, %v16413_v46  ;;  %v16417_v45 = vand.u32 4294901760, %v16394_v55  ;;  %v16418_v27 = vand.u32 4294901760, %v16395_v32  ;;  %8596 = vmatpush1.bf16.msra.mxu1 %v8595_v30  ;;  %8502 = vmatprep.subr.bf16.mxu0 %v8501_v22  ;;  %v16419_v62 = vand.u32 4294901760, %v16396_v43  ;;  %v16425_v30 = vld [vmem:[#allocation57_spill] sm:$0xff]  ;;  %v16426_v22 = vld [vmem:[#allocation78_spill] sm:$0xff] }
 0x600   : > { %v14868_v61 = vpack.c.bf16 %v16416_v11, %v16415_v41  ;;  %v16420_v8 = vand.u32 4294901760, %v16397_v28  ;;  %v16421_v46 = vand.u32 4294901760, %v14561_v39  ;;  %v16422_v58 = vand.u32 4294901760, %v14589_v33  ;;  %8598 = vmatprep.subr.bf16.mxu1 %v8597_v3  ;;  %5990 = vmatprep.mubr.f32.mxu0 %v16237_v21 }
 0x601   : > { %v14874_v31 = vpack.c.bf16 %v16418_v27, %v16417_v45  ;;  %v16423_v11 = vand.u32 4294901760, %v14566_v50  ;;  %v16424_v25 = vand.u32 4294901760, %v14620_v47  ;;  %v16427_v45 = vsub.f32 %v16425_v30, %v16426_v22  ;;  %6980 = vmatprep.mubr.f32.mxu1 %v16237_v21  ;;  %5996 = vmatmul.mubr.f32.gmra.mrb[24].mxu0 %v5995_v60 }
 0x602   : > { %v14880_v35 = vpack.c.bf16 %v16420_v8, %v16419_v62  ;;  %v14886_v41 = vpack.c.bf16 %v16422_v58, %v16421_v46  ;;  %v16428_v8 = vand.u32 4294901760, %v16398_v5  ;;  %v16429_v18 = vand.u32 4294901760, %v16399_v59  ;;  %6986 = vmatmul.mubr.f32.gmra.mrb[24].mxu1 %v5995_v60  ;;  %6001 = vmatprep.mubr.f32.mxu0 %v16237_v21 }
 0x603   : > { %v14892_v27 = vpack.c.bf16 %v16424_v25, %v16423_v11  ;;  %v6006_v62 = vand.u32 4294901760, %v16427_v45  ;;  %v16430_v46 = vand.u32 4294901760, %v16400_v24  ;;  %v16431_v58 = vand.u32 4294901760, %v16401_v38  ;;  %v16434_v45 = vld [vmem:[#allocation105_spill] sm:$0xff]  ;;  %6991 = vmatprep.mubr.f32.mxu1 %v16237_v21 }
 0x604   : > { %v14902_v14 = vpack.c.bf16 %v16429_v18, %v16428_v8  ;;  %v16432_v3 = vand.u32 4294901760, %v14639_v54  ;;  %v16433_v25 = vand.u32 4294901760, %v14660_v44  ;;  %v14918_v15 = vand.u32 4294901760, %v16434_v45 }
 0x605   : > { %v14908_v17 = vpack.c.bf16 %v16431_v58, %v16430_v46  ;;  %v16435_v18 = vand.u32 4294901760, %v14642_v53  ;;  %v16436_v8 = vand.u32 4294901760, %v14683_v19  ;;  %v16437_v46 = vand.u32 4294901760, %v14633_v34  ;;  %6007 = vmatmul.mubr.f32.gmra.mrb[26].mxu0 %v6006_v62 }
 0x606   : > { %v14914_v11 = vpack.c.bf16 %v16433_v25, %v16432_v3  ;;  %v16438_v58 = vand.u32 4294901760, %v14646_v48  ;;  %v16439_v3 = vand.u32 4294901760, %v14636_v42  ;;  %v16440_v25 = vand.u32 4294901760, %v14656_v12  ;;  %6997 = vmatmul.mubr.f32.gmra.mrb[26].mxu1 %v6006_v62  ;;  %6012 = vmatprep.mubr.f32.mxu0 %v16237_v21 }
 0x607   : > { %v14924_v49 = vpack.c.bf16 %v16436_v8, %v16435_v18  ;;  %v16441_v18 = vld [vmem:[#allocation56_spill] sm:$0xff]  ;;  %7002 = vmatprep.mubr.f32.mxu1 %v16237_v21  ;;  %v16445_v60 = vpack.c.bf16 %v14414_v40, %v14387_v2  ;;  %v16447_v62 = vpack.c.bf16 %v14529_v16, %v14468_v7  ;;  %v16450_v40 = vpack.c.bf16 %v16395_v32, %v16394_v55  ;;  %v16454_v7 = vld [vmem:[#allocation53_spill] sm:$0xff]  ;;  %v9405_v55 = vld [vmem:[%s15323_s1 + $0x8] sm:$0xff] }
 0x608   : > { %v14930_v6 = vpack.c.bf16 %v16438_v58, %v16437_v46  ;;  %v14936_v4 = vpack.c.bf16 %v16440_v25, %v16439_v3  ;;  %v16442_v8 = vld [vmem:[#allocation64_spill] sm:$0xff]  ;;  %v6027_v46 = vsub.f32 %v16434_v45, %v14918_v15  ;;  %v16448_v3 = vpack.c.bf16 %v14556_v13, %v14484_v57 }
 0x609   : > { %v16443_v1 = vsub.f32 %v16441_v18, %v16442_v8  ;;  %v16449_v2 = vld [vmem:[#allocation52_spill] sm:$0xff]  ;;  %v16452_v13 = vpack.c.bf16 %v14589_v33, %v14561_v39  ;;  %v16455_v57 = vpack.c.bf16 %v16399_v59, %v16398_v5  ;;  %v16456_v16 = vpack.c.bf16 %v16401_v38, %v16400_v24  ;;  %v16459_v33 = vld [vmem:[#allocation30_spill] sm:$0xff]  ;;  %v16471_v59 = vld [vmem:[#allocation123_spill] sm:$0xff] }
 0x60a   : > { %v6028_v58 = vand.u32 4294901760, %v6027_v46  ;;  %v16457_v39 = vpack.c.bf16 %v14660_v44, %v14639_v54  ;;  %v16461_v54 = vpack.c.bf16 %v14656_v12, %v14636_v42  ;;  %v16462_v44 = vld [vmem:[#allocation108_spill] sm:$0xff]  ;;  %v9557_v12 = vmov 3   ;;  %v16470_v5 = vld [vmem:[#allocation90_spill] sm:$0xff]  ;;  %v16472_v24 = vld [vmem:[#allocation61_spill] sm:$0xff] }
 0x60b   : > { %v6017_v22 = vand.u32 4294901760, %v16443_v1  ;;  %v16444_v1 = vld [vmem:[#allocation58_spill] sm:$0xff]  ;;  %v16466_v42 = vld [vmem:[#allocation44_spill] sm:$0xff]  ;;  %9259 = vset.pattern.permute.xlu1 %v9557_v12  ;;  %v9558_v32 = vmov 4   ;;  %v16473_v38 = vld [vmem:[#allocation65_spill] sm:$0xff] }
 0x60c   : > { %5815 = vperm.xlu1 %9259, %v9405_v55   ;;  %9261 = vset.pattern.permute.xlu0 %v9558_v32  ;;  %v16474_v25 = vld [vmem:[#allocation28_spill] sm:$0xff]  ;;  %v16475_v46 = vld [vmem:[#allocation83_spill] sm:$0xff] }
 0x60d   : > { %6018 = vmatmul.mubr.f32.gmra.mrb[28].mxu0 %v6017_v22  ;;  %7008 = vmatmul.mubr.f32.gmra.mrb[28].mxu1 %v6017_v22  ;;  %v16446_v22 = vpack.c.bf16 %v14432_v63, %v14389_v51  ;;  %v16451_v51 = vpack.c.bf16 %v16397_v28, %v16396_v43  ;;  %v16453_v63 = vpack.c.bf16 %v14620_v47, %v14566_v50  ;;  %v16468_v43 = vld [vmem:[#allocation74_spill] sm:$0xff]  ;;  %v16469_v28 = vld [vmem:[#allocation91_spill] sm:$0xff] }
 0x60e   : > { %6023 = vmatprep.mubr.f32.mxu0 %v16237_v21  ;;  %7013 = vmatprep.mubr.f32.mxu1 %v16237_v21  ;;  %v16458_v50 = vpack.c.bf16 %v14683_v19, %v14642_v53  ;;  %v16460_v47 = vpack.c.bf16 %v14646_v48, %v14633_v34  ;;  %v16463_v19 = vld [vmem:[#allocation110_spill] sm:$0xff]  ;;  %v16465_v34 = vld [vmem:[#allocation40_spill] sm:$0xff]  ;;  %v16467_v48 = vld [vmem:[#allocation93_spill] sm:$0xff] }
 0x60f   : > { %v16464_v53 = vld [vmem:[#allocation46_spill] sm:$0xff]  ;;  %7883 = vperm.xlu0 %9261, %v9405_v55  }
 0x611   : > { %6029 = vmatmul.mubr.f32.gmra.mrb[30].mxu0 %v6028_v58  ;;  %7019 = vmatmul.mubr.f32.gmra.mrb[30].mxu1 %v6028_v58  ;;  %v16476_v58 = vld [vmem:[#allocation85_spill] sm:$0xff] }
 0x612   : > { %6179 = vmatprep.mubr.f32.mxu0 %v16237_v21  ;;  %7169 = vmatprep.mubr.f32.mxu1 %v16237_v21 }
 0x613   : > { %9262 = vset.pattern.permute.xlu0 %v9557_v12 }
 0x615   : > { %6181 = vmatmul.mubr.f32.vlgmr.msra.gmra.mrb[16].mxu0 %v16444_v1  ;;  %7171 = vmatmul.mubr.f32.vlgmr.msra.gmra.mrb[16].mxu1 %v16444_v1 }
 0x616   : > { %8504 = vmatpush1.bf16.msra.mxu0 %v16445_v60  ;;  %8600 = vmatpush1.bf16.msra.mxu1 %v16446_v22  ;;  %v16477_v60 = vld [vmem:[#allocation71_spill] sm:$0xff]  ;;  %v16478_v22 = vld [vmem:[#allocation116_spill] sm:$0xff] }
 0x617   : > { %8506 = vmatprep.subr.bf16.mxu0 %v16447_v62  ;;  %8602 = vmatprep.subr.bf16.mxu1 %v16448_v3  ;;  %v16479_v62 = vld [vmem:[#allocation47_spill] sm:$0xff]  ;;  %v16480_v3 = vld [vmem:[#allocation88_spill] sm:$0xff] }
 0x618   : > { %6186 = vmatprep.mubr.f32.mxu0 %v16237_v21  ;;  %7176 = vmatprep.mubr.f32.mxu1 %v16237_v21 }
 0x619   : > { %6188 = vmatmul.mubr.f32.gmra.mrb[18].mxu0 %v16449_v2  ;;  %7178 = vmatmul.mubr.f32.gmra.mrb[18].mxu1 %v16449_v2 }
 0x61a   : > { %8508 = vmatpush1.bf16.msra.mxu0 %v16450_v40  ;;  %8604 = vmatpush1.bf16.msra.mxu1 %v16451_v51  ;;  %v16481_v40 = vld [vmem:[#allocation96_spill] sm:$0xff] }
 0x61b   : > { %8510 = vmatprep.subr.bf16.mxu0 %v16452_v13  ;;  %8606 = vmatprep.subr.bf16.mxu1 %v16453_v63  ;;  %v16482_v51 = vld [vmem:[#allocation84_spill] sm:$0xff] }
 0x61c   : > { %6193 = vmatprep.mubr.f32.mxu0 %v16237_v21  ;;  %7183 = vmatprep.mubr.f32.mxu1 %v16237_v21 }
 0x61d   : > { %6195 = vmatmul.mubr.f32.gmra.mrb[20].mxu0 %v16454_v7  ;;  %7185 = vmatmul.mubr.f32.gmra.mrb[20].mxu1 %v16454_v7 }
 0x61e   : > { %8512 = vmatpush1.bf16.msra.mxu0 %v16455_v57  ;;  %8608 = vmatpush1.bf16.msra.mxu1 %v16456_v16 }
 0x61f   : > { %8514 = vmatprep.subr.bf16.mxu0 %v16457_v39  ;;  %8610 = vmatprep.subr.bf16.mxu1 %v16458_v50 }
 0x620   : > { %6200 = vmatprep.mubr.f32.mxu0 %v16237_v21  ;;  %7190 = vmatprep.mubr.f32.mxu1 %v16237_v21 }
 0x621   : > { %6202 = vmatmul.mubr.f32.gmra.mrb[22].mxu0 %v16459_v33  ;;  %7192 = vmatmul.mubr.f32.gmra.mrb[22].mxu1 %v16459_v33 }
 0x622   : > { %8516 = vmatpush1.bf16.msra.mxu0 %v16460_v47  ;;  %8612 = vmatpush1.bf16.msra.mxu1 %v16461_v54 }
 0x623   : > { %8518 = vmatprep.subr.bf16.mxu0 %v16462_v44  ;;  %8614 = vmatprep.subr.bf16.mxu1 %v16463_v19 }
 0x624   : > { %6207 = vmatprep.mubr.f32.mxu0 %v16237_v21  ;;  %7197 = vmatprep.mubr.f32.mxu1 %v16237_v21 }
 0x625   : > { %6209 = vmatmul.mubr.f32.gmra.mrb[24].mxu0 %v16464_v53  ;;  %7199 = vmatmul.mubr.f32.gmra.mrb[24].mxu1 %v16464_v53 }
 0x626   : > { %6214 = vmatprep.mubr.f32.mxu0 %v16237_v21  ;;  %7204 = vmatprep.mubr.f32.mxu1 %v16237_v21 }
 0x629   : > { %6216 = vmatmul.mubr.f32.gmra.mrb[26].mxu0 %v16465_v34  ;;  %7206 = vmatmul.mubr.f32.gmra.mrb[26].mxu1 %v16465_v34 }
 0x62a   : > { %6221 = vmatprep.mubr.f32.mxu0 %v16237_v21  ;;  %7211 = vmatprep.mubr.f32.mxu1 %v16237_v21 }
 0x62d   : > { %6223 = vmatmul.mubr.f32.gmra.mrb[28].mxu0 %v16466_v42  ;;  %7213 = vmatmul.mubr.f32.gmra.mrb[28].mxu1 %v16466_v42 }
 0x62e   : > { %6228 = vmatprep.mubr.f32.mxu0 %v16237_v21  ;;  %7218 = vmatprep.mubr.f32.mxu1 %v16237_v21 }
 0x631   : > { %6230 = vmatmul.mubr.f32.gmra.mrb[30].mxu0 %v16467_v48  ;;  %7220 = vmatmul.mubr.f32.gmra.mrb[30].mxu1 %v16467_v48 }
 0x632   : > { %6332 = vmatprep.mubr.f32.mxu0 %v16237_v21  ;;  %7322 = vmatprep.mubr.f32.mxu1 %v16237_v21 }
 0x635   : > { %6335 = vmatmul.mubr.f32.vlgmr.msra.gmra.mrb[16].mxu0 %v16468_v43  ;;  %7325 = vmatmul.mubr.f32.vlgmr.msra.gmra.mrb[16].mxu1 %v16468_v43 }
 0x636   : > { %8520 = vmatpush1.bf16.msra.mxu0 %v16469_v28  ;;  %8616 = vmatpush1.bf16.msra.mxu1 %v16470_v5 }
 0x637   : > { %8522 = vmatprep.subr.bf16.mxu0 %v16471_v59  ;;  %8618 = vmatprep.subr.bf16.mxu1 %v16472_v24 }
 0x638   : > { %6340 = vmatprep.mubr.f32.mxu0 %v16237_v21  ;;  %7330 = vmatprep.mubr.f32.mxu1 %v16237_v21 }
 0x639   : > { %6343 = vmatmul.mubr.f32.gmra.mrb[18].mxu0 %v16473_v38  ;;  %7333 = vmatmul.mubr.f32.gmra.mrb[18].mxu1 %v16473_v38 }
 0x63a   : > { %8524 = vmatpush1.bf16.msra.mxu0 %v16474_v25  ;;  %8620 = vmatpush1.bf16.msra.mxu1 %v16475_v46 }
 0x63b   : > { %8526 = vmatprep.subr.bf16.mxu0 %v14666_v9  ;;  %8622 = vmatprep.subr.bf16.mxu1 %v16476_v58 }
 0x63c   : > { %6348 = vmatprep.mubr.f32.mxu0 %v16237_v21  ;;  %7338 = vmatprep.mubr.f32.mxu1 %v16237_v21 }
 0x63d   : > { %6351 = vmatmul.mubr.f32.gmra.mrb[20].mxu0 %v16477_v60  ;;  %7341 = vmatmul.mubr.f32.gmra.mrb[20].mxu1 %v16477_v60 }
 0x63e   : > { %8528 = vmatpush1.bf16.msra.mxu0 %v16478_v22  ;;  %8624 = vmatpush1.bf16.msra.mxu1 %v16479_v62 }
 0x63f   : > { %8530 = vmatprep.subr.bf16.mxu0 %v16480_v3  ;;  %8626 = vmatprep.subr.bf16.mxu1 %v16481_v40 }
 0x640   : > { %6356 = vmatprep.mubr.f32.mxu0 %v16237_v21  ;;  %7346 = vmatprep.mubr.f32.mxu1 %v16237_v21 }
 0x641   : > { %6359 = vmatmul.mubr.f32.gmra.mrb[22].mxu0 %v16391_v10  ;;  %7349 = vmatmul.mubr.f32.gmra.mrb[22].mxu1 %v16391_v10  ;;  %v9406_v10 = vld [vmem:[%s15323_s1 + $0x10] sm:$0xff] }
 0x642   : > { %8532 = vmatpush1.bf16.msra.mxu0 %v16482_v51  ;;  %8628 = vmatpush1.bf16.msra.mxu1 %v14654_v37 }
 0x643   : > { %8534 = vmatprep.subr.bf16.mxu0 %v14834_v36  ;;  %8630 = vmatprep.subr.bf16.mxu1 %v14844_v0  ;;  %v15076_v0 = vld [vmem:[%s15323_s1] sm:$0xff]  ;;  %v9408_v36 = vld [vmem:[%s15323_s1 + $0x18] sm:$0xff] }
 0x644   : > { %6364 = vmatprep.mubr.f32.mxu0 %v16237_v21  ;;  %7354 = vmatprep.mubr.f32.mxu1 %v16237_v21 }
 0x645   : > { %6367 = vmatmul.mubr.f32.gmra.mrb[24].mxu0 %v16404_v26  ;;  %7357 = vmatmul.mubr.f32.gmra.mrb[24].mxu1 %v16404_v26  ;;  %v9409_v26 = vld [vmem:[%s15323_s1 + $0x20] sm:$0xff] }
 0x646   : > { %6372 = vmatprep.mubr.f32.mxu0 %v16237_v21  ;;  %7362 = vmatprep.mubr.f32.mxu1 %v16237_v21 }
 0x647   : > { %5819 = vperm.xlu1 %9259, %v9406_v10   ;;  %5811 = vperm.xlu0 %9262, %v15076_v0  }
 0x649   : > { %6375 = vmatmul.mubr.f32.gmra.mrb[26].mxu0 %v16425_v30  ;;  %7365 = vmatmul.mubr.f32.gmra.mrb[26].mxu1 %v16425_v30  ;;  %v15102_v30 = vld [vmem:[%s15323_s1 + $0x28] sm:$0xff] }
 0x64a   : > { %6380 = vmatprep.mubr.f32.mxu0 %v16237_v21  ;;  %7370 = vmatprep.mubr.f32.mxu1 %v16237_v21 }
 0x64b   : > { %9260 = vset.pattern.permute.xlu1 %v9558_v32  ;;  %5823 = vperm.xlu0 %9262, %v9408_v36  }
 0x64c   : > { %7879 = vperm.xlu1 %9260, %v15076_v0  }
 0x64d   : > { %6383 = vmatmul.mubr.f32.gmra.mrb[28].mxu0 %v16441_v18  ;;  %7373 = vmatmul.mubr.f32.gmra.mrb[28].mxu1 %v16441_v18  ;;  %v16483_v18 = vld [vmem:[#allocation14_spill] sm:$0xff] }
 0x64e   : > { %6388 = vmatprep.mubr.f32.mxu0 %v16237_v21  ;;  %7378 = vmatprep.mubr.f32.mxu1 %v16237_v21 }
 0x64f   : > { %5831 = vperm.xlu0 %9262, %v15102_v30  }
 0x650   : > { %9263 = vset.pattern.permute.xlu1 %v9557_v12 }
 0x651   : > { %6391 = vmatmul.mubr.f32.gmra.mrb[30].mxu0 %v16434_v45  ;;  %5827 = vperm.xlu1 %9263, %v9409_v26  }
 0x652   : > { %7381 = vmatmul.mubr.f32.gmra.mrb[30].mxu1 %v16434_v45  ;;  %6477 = vmatprep.mubr.f32.mxu0 %v16237_v21  ;;  %v16484_v45 = vld [vmem:[#allocation31_spill] sm:$0xff] }
 0x653   : > { %7467 = vmatprep.mubr.f32.mxu1 %v16237_v21  ;;  %9266 = vset.pattern.permute.xlu0 %v9558_v32 }
 0x654   : > { %7895 = vperm.xlu0 %9266, %v9409_v26  }
 0x655   : > { %6481 = vmatmul.mubr.f32.vlgmr.msra.gmra.mrb[16].mxu0 %v16483_v18  ;;  %9264 = vset.pattern.permute.xlu1 %v9558_v32 }
 0x656   : > { %8536 = vmatpush1.bf16.msra.mxu0 %v14850_v56  ;;  %7471 = vmatmul.mubr.f32.vlgmr.msra.gmra.mrb[16].mxu1 %v16483_v18 }
 0x657   : > { %8632 = vmatpush1.bf16.msra.mxu1 %v14856_v29  ;;  %8538 = vmatprep.subr.bf16.mxu0 %v14862_v52  ;;  %v16485_v29 = vld [vmem:[#allocation25_spill] sm:$0xff] }
 0x658   : > { %8634 = vmatprep.subr.bf16.mxu1 %v14868_v61  ;;  %6486 = vmatprep.mubr.f32.mxu0 %v16237_v21 }
 0x659   : > { %7476 = vmatprep.mubr.f32.mxu1 %v16237_v21  ;;  %6490 = vmatmul.mubr.f32.gmra.mrb[18].mxu0 %v16484_v45 }
 0x65a   : > { %8540 = vmatpush1.bf16.msra.mxu0 %v14874_v31  ;;  %7480 = vmatmul.mubr.f32.gmra.mrb[18].mxu1 %v16484_v45 }
 0x65b   : > { %8636 = vmatpush1.bf16.msra.mxu1 %v14880_v35  ;;  %8542 = vmatprep.subr.bf16.mxu0 %v14886_v41 }
 0x65c   : > { %8638 = vmatprep.subr.bf16.mxu1 %v14892_v27  ;;  %6495 = vmatprep.mubr.f32.mxu0 %v16237_v21 }
 0x65d   : > { %7485 = vmatprep.mubr.f32.mxu1 %v16237_v21  ;;  %6499 = vmatmul.mubr.f32.gmra.mrb[20].mxu0 %v16485_v29 }
 0x65e   : > { %8544 = vmatpush1.bf16.msra.mxu0 %v14902_v14  ;;  %7489 = vmatmul.mubr.f32.gmra.mrb[20].mxu1 %v16485_v29 }
 0x65f   : > { %8640 = vmatpush1.bf16.msra.mxu1 %v14908_v17  ;;  %8546 = vmatprep.subr.bf16.mxu0 %v14914_v11 }
 0x660   : > { %8642 = vmatprep.subr.bf16.mxu1 %v14924_v49  ;;  %6504 = vmatprep.mubr.f32.mxu0 %v16237_v21  ;;  %v9412_v49 = vld [vmem:[%s15323_s1 + $0x38] sm:$0xff] }
 0x661   : > { %7494 = vmatprep.mubr.f32.mxu1 %v16237_v21  ;;  %6508 = vmatmul.mubr.f32.gmra.mrb[22].mxu0 %v16392_v20 }
 0x662   : > { %8548 = vmatpush1.bf16.msra.mxu0 %v14930_v6  ;;  %7498 = vmatmul.mubr.f32.gmra.mrb[22].mxu1 %v16392_v20  ;;  %v9411_v6 = vld [vmem:[%s15323_s1 + $0x30] sm:$0xff]  ;;  %v9559_v20 = vmov 5  }
 0x663   : > { %8644 = vmatpush1.bf16.msra.mxu1 %v14936_v4  ;;  %8550 = vmatprep.subr.bf16.mxu0 %v16462_v44  ;;  %v16486_v4 = vld [vmem:[#allocation78_spill] sm:$0xff] }
 0x664   : > { %8646 = vmatprep.subr.bf16.mxu1 %v16463_v19  ;;  %6513 = vmatprep.mubr.f32.mxu0 %v16237_v21 }
 0x665   : > { %7503 = vmatprep.mubr.f32.mxu1 %v16237_v21  ;;  %6517 = vmatmul.mubr.f32.gmra.mrb[24].mxu0 %v16405_v23 }
 0x666   : > { %7507 = vmatmul.mubr.f32.gmra.mrb[24].mxu1 %v16405_v23  ;;  %6522 = vmatprep.mubr.f32.mxu0 %v16237_v21 }
 0x667   : > { %7512 = vmatprep.mubr.f32.mxu1 %v16237_v21  ;;  %7887 = vperm.xlu1 %9264, %v9406_v10  }
 0x668   : > { %7903 = vperm.xlu0 %9266, %v9411_v6  }
 0x669   : > { %6526 = vmatmul.mubr.f32.gmra.mrb[26].mxu0 %v16486_v4 }
 0x66a   : > { %7516 = vmatmul.mubr.f32.gmra.mrb[26].mxu1 %v16486_v4  ;;  %6531 = vmatprep.mubr.f32.mxu0 %v16237_v21 }
 0x66b   : > { %7521 = vmatprep.mubr.f32.mxu1 %v16237_v21  ;;  %7891 = vperm.xlu1 %9264, %v9408_v36  }
 0x66c   : > { %9268 = vset.pattern.permute.xlu0 %v9559_v20 }
 0x66d   : > { %6535 = vmatmul.mubr.f32.gmra.mrb[28].mxu0 %v16442_v8  ;;  %7995 = vperm.xlu0 %9268, %v15076_v0  }
 0x66e   : > { %7525 = vmatmul.mubr.f32.gmra.mrb[28].mxu1 %v16442_v8  ;;  %6540 = vmatprep.mubr.f32.mxu0 %v16237_v21 }
 0x66f   : > { %7530 = vmatprep.mubr.f32.mxu1 %v16237_v21  ;;  %9265 = vset.pattern.permute.xlu1 %v9557_v12 }
 0x670   : > { %5835 = vperm.xlu1 %9265, %v9411_v6  }
 0x671   : > { %6544 = vmatmul.mubr.f32.gmra.mrb[30].mxu0 %v14918_v15 }
 0x672   : > { %7534 = vmatmul.mubr.f32.gmra.mrb[30].mxu1 %v14918_v15  ;;  %6662 = vmatprep.mubr.f32.mxu0 %v16237_v21 }
 0x673   : > { %7652 = vmatprep.mubr.f32.mxu1 %v16237_v21 }
 0x674   : > { %5839 = vperm.xlu1 %9265, %v9412_v49  }
 0x675   : > { %6664 = vmatmul.mubr.f32.vlgmr.msra.gmra.mrb[16].mxu0 %v16444_v1 }
 0x676   : > { %8552 = vmatpush1.bf16.msra.mxu0 %v16469_v28  ;;  %7654 = vmatmul.mubr.f32.vlgmr.msra.gmra.mrb[16].mxu1 %v16444_v1 }
 0x677   : > { %8648 = vmatpush1.bf16.msra.mxu1 %v16470_v5  ;;  %8554 = vmatprep.subr.bf16.mxu0 %v16471_v59 }
 0x678   : > { %8650 = vmatprep.subr.bf16.mxu1 %v16472_v24  ;;  %6669 = vmatprep.mubr.f32.mxu0 %v16237_v21 }
 0x679   : > { %7659 = vmatprep.mubr.f32.mxu1 %v16237_v21  ;;  %6671 = vmatmul.mubr.f32.gmra.mrb[18].mxu0 %v16449_v2 }
 0x67a   : > { %8556 = vmatpush1.bf16.msra.mxu0 %v16474_v25  ;;  %7661 = vmatmul.mubr.f32.gmra.mrb[18].mxu1 %v16449_v2 }
 0x67b   : > { %8652 = vmatpush1.bf16.msra.mxu1 %v16475_v46  ;;  %8558 = vmatprep.subr.bf16.mxu0 %v14666_v9 }
 0x67c   : > { %8654 = vmatprep.subr.bf16.mxu1 %v16476_v58  ;;  %6676 = vmatprep.mubr.f32.mxu0 %v16237_v21 }
 0x67d   : > { %7666 = vmatprep.mubr.f32.mxu1 %v16237_v21  ;;  %6678 = vmatmul.mubr.f32.gmra.mrb[20].mxu0 %v16454_v7 }
 0x67e   : > { %8560 = vmatpush1.bf16.msra.mxu0 %v16478_v22  ;;  %7668 = vmatmul.mubr.f32.gmra.mrb[20].mxu1 %v16454_v7 }
 0x67f   : > { %8656 = vmatpush1.bf16.msra.mxu1 %v16479_v62  ;;  %8562 = vmatprep.subr.bf16.mxu0 %v16480_v3 }
 0x680   : > { %8658 = vmatprep.subr.bf16.mxu1 %v16481_v40  ;;  %6683 = vmatprep.mubr.f32.mxu0 %v16237_v21 }
 0x681   : > { %7673 = vmatprep.mubr.f32.mxu1 %v16237_v21  ;;  %6685 = vmatmul.mubr.f32.gmra.mrb[22].mxu0 %v16459_v33 }
 0x682   : > { %8564 = vmatpush1.bf16.msra.mxu0 %v16482_v51  ;;  %7675 = vmatmul.mubr.f32.gmra.mrb[22].mxu1 %v16459_v33 }
 0x683   : > { %8660 = vmatpush1.bf16.msra.mxu1 %v14654_v37  ;;  %6690 = vmatprep.mubr.f32.mxu0 %v16237_v21 }
 0x684   : > { %7680 = vmatprep.mubr.f32.mxu1 %v16237_v21  ;;  %9267 = vset.pattern.permute.xlu1 %v9558_v32 }
 0x685   : > { %6692 = vmatmul.mubr.f32.gmra.mrb[24].mxu0 %v16464_v53  ;;  %7899 = vperm.xlu1 %9267, %v15102_v30  }
 0x686   : > { %7682 = vmatmul.mubr.f32.gmra.mrb[24].mxu1 %v16464_v53  ;;  %6697 = vmatprep.mubr.f32.mxu0 %v16237_v21 }
 0x687   : > { %7687 = vmatprep.mubr.f32.mxu1 %v16237_v21 }
 0x689   : > { %6699 = vmatmul.mubr.f32.gmra.mrb[26].mxu0 %v16465_v34  ;;  %7907 = vperm.xlu1 %9267, %v9412_v49  }
 0x68a   : > { %7689 = vmatmul.mubr.f32.gmra.mrb[26].mxu1 %v16465_v34  ;;  %6704 = vmatprep.mubr.f32.mxu0 %v16237_v21 }
 0x68b   : > { %7694 = vmatprep.mubr.f32.mxu1 %v16237_v21  ;;  %v5816_v9 = vpop.permute.xlu1 %5815 }
 0x68d   : > { %6706 = vmatmul.mubr.f32.gmra.mrb[28].mxu0 %v16466_v42 }
 0x68e   : > { %7696 = vmatmul.mubr.f32.gmra.mrb[28].mxu1 %v16466_v42  ;;  %6711 = vmatprep.mubr.f32.mxu0 %v16237_v21  ;;  %v7884_v17 = vpop.permute.xlu0 %7883 }
 0x68f   : > { %7701 = vmatprep.mubr.f32.mxu1 %v16237_v21 }
 0x691   : > { %6713 = vmatmul.mubr.f32.gmra.mrb[30].mxu0 %v16467_v48 }
 0x692   : > { %7703 = vmatmul.mubr.f32.gmra.mrb[30].mxu1 %v16467_v48  ;;  %6799 = vmatprep.mubr.f32.mxu0 %v16237_v21 }
 0x693   : > { %7789 = vmatprep.mubr.f32.mxu1 %v16237_v21 }
 0x695   : > { %6801 = vmatmul.mubr.f32.vlgmr.msra.gmra.mrb[16].mxu0 %v16444_v1 }
 0x696   : > { %7791 = vmatmul.mubr.f32.vlgmr.msra.gmra.mrb[16].mxu1 %v16444_v1  ;;  %6806 = vmatprep.mubr.f32.mxu0 %v16237_v21 }
 0x697   : > { %7796 = vmatprep.mubr.f32.mxu1 %v16237_v21 }
 0x699   : > { %6808 = vmatmul.mubr.f32.gmra.mrb[18].mxu0 %v16449_v2 }
 0x69a   : > { %7798 = vmatmul.mubr.f32.gmra.mrb[18].mxu1 %v16449_v2  ;;  %6813 = vmatprep.mubr.f32.mxu0 %v16237_v21 }
 0x69b   : > { %7803 = vmatprep.mubr.f32.mxu1 %v16237_v21 }
 0x69d   : > { %6815 = vmatmul.mubr.f32.gmra.mrb[20].mxu0 %v16454_v7 }
 0x69e   : > { %7805 = vmatmul.mubr.f32.gmra.mrb[20].mxu1 %v16454_v7  ;;  %6820 = vmatprep.mubr.f32.mxu0 %v16237_v21 }
 0x69f   : > { %7810 = vmatprep.mubr.f32.mxu1 %v16237_v21 }
 0x6a1   : > { %6822 = vmatmul.mubr.f32.gmra.mrb[22].mxu0 %v16459_v33 }
 0x6a2   : > { %7812 = vmatmul.mubr.f32.gmra.mrb[22].mxu1 %v16459_v33  ;;  %6827 = vmatprep.mubr.f32.mxu0 %v16237_v21 }
 0x6a3   : > { %7817 = vmatprep.mubr.f32.mxu1 %v16237_v21 }
 0x6a5   : > { %6829 = vmatmul.mubr.f32.gmra.mrb[24].mxu0 %v16464_v53 }
 0x6a6   : > { %7819 = vmatmul.mubr.f32.gmra.mrb[24].mxu1 %v16464_v53  ;;  %6834 = vmatprep.mubr.f32.mxu0 %v16237_v21 }
 0x6a7   : > { %7824 = vmatprep.mubr.f32.mxu1 %v16237_v21 }
 0x6a9   : > { %6836 = vmatmul.mubr.f32.gmra.mrb[26].mxu0 %v16465_v34 }
 0x6aa   : > { %7826 = vmatmul.mubr.f32.gmra.mrb[26].mxu1 %v16465_v34  ;;  %6841 = vmatprep.mubr.f32.mxu0 %v16237_v21 }
 0x6ab   : > { %7831 = vmatprep.mubr.f32.mxu1 %v16237_v21 }
 0x6ad   : > { %6843 = vmatmul.mubr.f32.gmra.mrb[28].mxu0 %v16466_v42 }
 0x6ae   : > { %7833 = vmatmul.mubr.f32.gmra.mrb[28].mxu1 %v16466_v42  ;;  %6848 = vmatprep.mubr.f32.mxu0 %v16237_v21 }
 0x6af   : > { %7838 = vmatprep.mubr.f32.mxu1 %v16237_v21 }
 0x6b1   : > { %6850 = vmatmul.mubr.f32.gmra.mrb[30].mxu0 %v16467_v48 }
 0x6b2   : > { %7840 = vmatmul.mubr.f32.gmra.mrb[30].mxu1 %v16467_v48 }
 0x6c6   : > { %v5820_v37 = vpop.permute.xlu1 %5819  ;;  %v5812_v23 = vpop.permute.xlu0 %5811 }
 0x6ca   : > { %v5824_v55 = vpop.permute.xlu0 %5823 }
 0x6cb   : > { %v7880_v15 = vpop.permute.xlu1 %7879 }
 0x6d0   : > { %v15241_v14 = vpop.permute.xlu1 %5827 }
 0x6e6   : > { %v15243_v56 = vpop.permute.xlu1 %7887 }
 0x6ea   : > { %v15245_v63 = vpop.permute.xlu1 %7891 }
 0x6ef   : > { %v15247_v22 = vpop.permute.xlu1 %5835 }
 0x768   : > { %v6802_v52 = vpop.f32.mrb[16].mxu0 }
 0x769   : > { %v8693_v61 = vadd.f32 %v6802_v52, %v5812_v23  ;;  %v7792_v31 = vpop.f32.mrb[16].mxu1  ;;  %v6804_v35 = vpop.f32.mrb[17].mxu0 }
 0x76a   : > { %v8709_v41 = vadd.f32 %v7792_v31, %v5812_v23  ;;  %v8694_v27 = vadd.f32 %v6804_v35, %v5812_v23  ;;  %v7794_v21 = vpop.f32.mrb[17].mxu1 }
 0x76b   : > { %v7846_v11 = vmax.f32 %v8693_v61, 0.0  ;;  %v8710_v8 = vadd.f32 %v7794_v21, %v5812_v23 }
 0x76c   : > { %v7848_v1 = vmax.f32 %v8709_v41, 0.0  ;;  %v7847_v2 = vmax.f32 %v8694_v27, 0.0  ;;  %v6809_v13 = vpop.f32.mrb[18].mxu0 }
 0x76d   : > { %v7849_v7 = vmax.f32 %v8710_v8, 0.0  ;;  %v8695_v57 = vadd.f32 %v6809_v13, %v5816_v9  ;;  %v7799_v16 = vpop.f32.mrb[18].mxu1  ;;  %v6811_v39 = vpop.f32.mrb[19].mxu0  ;;  %v7910_v54 = vmul.f32 %v7880_v15, %v7846_v11 }
 0x76e   : > { %v8711_v50 = vadd.f32 %v7799_v16, %v5816_v9  ;;  %v8696_v33 = vadd.f32 %v6811_v39, %v5816_v9  ;;  %v7801_v47 = vpop.f32.mrb[19].mxu1  ;;  %v7912_v53 = vmul.f32 %v7880_v15, %v7848_v1  ;;  %v7911_v34 = vmul.f32 %v7880_v15, %v7847_v2  ;;  %v15253_v1 = vpop.permute.xlu1 %5839 }
 0x76f   : > { %v7850_v44 = vmax.f32 %v8695_v57, 0.0  ;;  %v8712_v19 = vadd.f32 %v7801_v47, %v5816_v9  ;;  %v7913_v32 = vmul.f32 %v7880_v15, %v7849_v7 }
 0x770   : > { %v7852_v42 = vmax.f32 %v8711_v50, 0.0  ;;  %v7851_v48 = vmax.f32 %v8696_v33, 0.0  ;;  %v6816_v12 = vpop.f32.mrb[20].mxu0 }
 0x771   : > { %v7914_v43 = vmul.f32 %v7884_v17, %v7850_v44  ;;  %v7853_v28 = vmax.f32 %v8712_v19, 0.0  ;;  %v8697_v5 = vadd.f32 %v6816_v12, %v5820_v37  ;;  %v7806_v59 = vpop.f32.mrb[20].mxu1  ;;  %v6818_v24 = vpop.f32.mrb[21].mxu0 }
 0x772   : > { %v7916_v38 = vmul.f32 %v7884_v17, %v7852_v42  ;;  %v7915_v25 = vmul.f32 %v7884_v17, %v7851_v48  ;;  %v8713_v46 = vadd.f32 %v7806_v59, %v5820_v37  ;;  %v8698_v58 = vadd.f32 %v6818_v24, %v5820_v37  ;;  %v7808_v60 = vpop.f32.mrb[21].mxu1 }
 0x773   : > { %v7942_v62 = vadd.f32 %v7914_v43, %v7910_v54  ;;  %v7917_v3 = vmul.f32 %v7884_v17, %v7853_v28  ;;  %v7854_v40 = vmax.f32 %v8697_v5, 0.0  ;;  %v8714_v51 = vadd.f32 %v7808_v60, %v5820_v37  ;;  %v5832_v37 = vpop.permute.xlu0 %5831 }
 0x774   : > { %v7968_v10 = vadd.f32 %v7916_v38, %v7912_v53  ;;  %v7955_v0 = vadd.f32 %v7915_v25, %v7911_v34  ;;  %v7856_v36 = vmax.f32 %v8713_v46, 0.0  ;;  %v7855_v26 = vmax.f32 %v8698_v58, 0.0  ;;  %v6823_v30 = vpop.f32.mrb[22].mxu0 }
 0x775   : > { %v7981_v18 = vadd.f32 %v7917_v3, %v7913_v32  ;;  %v7918_v45 = vmul.f32 %v15243_v56, %v7854_v40  ;;  %v7857_v29 = vmax.f32 %v8714_v51, 0.0  ;;  %v8699_v4 = vadd.f32 %v6823_v30, %v5824_v55  ;;  %v7813_v6 = vpop.f32.mrb[22].mxu1  ;;  %v6825_v20 = vpop.f32.mrb[23].mxu0 }
 0x776   : > { %v7920_v49 = vmul.f32 %v15243_v56, %v7856_v36  ;;  %v7919_v9 = vmul.f32 %v15243_v56, %v7855_v26  ;;  %v8715_v15 = vadd.f32 %v7813_v6, %v5824_v55  ;;  %v8700_v17 = vadd.f32 %v6825_v20, %v5824_v55  ;;  %v7815_v23 = vpop.f32.mrb[23].mxu1 }
 0x777   : > { %v7943_v52 = vadd.f32 %v7942_v62, %v7918_v45  ;;  %v7921_v61 = vmul.f32 %v15243_v56, %v7857_v29  ;;  %v7858_v31 = vmax.f32 %v8699_v4, 0.0  ;;  %v8716_v35 = vadd.f32 %v7815_v23, %v5824_v55  ;;  %v7896_v44 = vpop.permute.xlu0 %7895 }
 0x778   : > { %v7969_v41 = vadd.f32 %v7968_v10, %v7920_v49  ;;  %v7956_v27 = vadd.f32 %v7955_v0, %v7919_v9  ;;  %v7860_v21 = vmax.f32 %v8715_v15, 0.0  ;;  %v7859_v11 = vmax.f32 %v8700_v17, 0.0  ;;  %v6830_v8 = vpop.f32.mrb[24].mxu0 }
 0x779   : > { %v7982_v2 = vadd.f32 %v7981_v18, %v7921_v61  ;;  %v7922_v13 = vmul.f32 %v15245_v63, %v7858_v31  ;;  %v7861_v7 = vmax.f32 %v8716_v35, 0.0  ;;  %v8701_v57 = vadd.f32 %v6830_v8, %v15241_v14  ;;  %v7820_v16 = vpop.f32.mrb[24].mxu1  ;;  %v6832_v39 = vpop.f32.mrb[25].mxu0 }
 0x77a   : > { %v7924_v50 = vmul.f32 %v15245_v63, %v7860_v21  ;;  %v7923_v56 = vmul.f32 %v15245_v63, %v7859_v11  ;;  %v8717_v33 = vadd.f32 %v7820_v16, %v15241_v14  ;;  %v8702_v47 = vadd.f32 %v6832_v39, %v15241_v14  ;;  %v7822_v54 = vpop.f32.mrb[25].mxu1 }
 0x77b   : > { %v7944_v19 = vadd.f32 %v7943_v52, %v7922_v13  ;;  %v7925_v53 = vmul.f32 %v15245_v63, %v7861_v7  ;;  %v7862_v34 = vmax.f32 %v8701_v57, 0.0  ;;  %v8718_v42 = vadd.f32 %v7822_v54, %v15241_v14  ;;  %v7900_v63 = vpop.permute.xlu1 %7899 }
 0x77c   : > { %v7970_v48 = vadd.f32 %v7969_v41, %v7924_v50  ;;  %v7957_v12 = vadd.f32 %v7956_v27, %v7923_v56  ;;  %v7864_v55 = vmax.f32 %v8717_v33, 0.0  ;;  %v7863_v32 = vmax.f32 %v8702_v47, 0.0  ;;  %v6837_v43 = vpop.f32.mrb[26].mxu0 }
 0x77d   : > { %v7983_v28 = vadd.f32 %v7982_v2, %v7925_v53  ;;  %v7865_v5 = vmax.f32 %v8718_v42, 0.0  ;;  %v7926_v59 = vmul.f32 %v7896_v44, %v7862_v34  ;;  %v8703_v24 = vadd.f32 %v6837_v43, %v5832_v37  ;;  %v7827_v38 = vpop.f32.mrb[26].mxu1  ;;  %v6839_v25 = vpop.f32.mrb[27].mxu0 }
 0x77e   : > { %v7927_v46 = vmul.f32 %v7896_v44, %v7863_v32  ;;  %v7928_v58 = vmul.f32 %v7896_v44, %v7864_v55  ;;  %v8719_v60 = vadd.f32 %v7827_v38, %v5832_v37  ;;  %v8704_v62 = vadd.f32 %v6839_v25, %v5832_v37  ;;  %v7829_v3 = vpop.f32.mrb[27].mxu1 }
 0x77f   : > { %v7929_v40 = vmul.f32 %v7896_v44, %v7865_v5  ;;  %v7945_v51 = vadd.f32 %v7944_v19, %v7926_v59  ;;  %v7866_v14 = vmax.f32 %v8703_v24, 0.0  ;;  %v8720_v10 = vadd.f32 %v7829_v3, %v5832_v37  ;;  %v7904_v37 = vpop.permute.xlu0 %7903 }
 0x780   : > { %v7958_v0 = vadd.f32 %v7957_v12, %v7927_v46  ;;  %v7971_v36 = vadd.f32 %v7970_v48, %v7928_v58  ;;  %v7868_v26 = vmax.f32 %v8719_v60, 0.0  ;;  %v7867_v30 = vmax.f32 %v8704_v62, 0.0  ;;  %v6844_v18 = vpop.f32.mrb[28].mxu0  ;;  %v7908_v12 = vpop.permute.xlu1 %7907 }
 0x781   : > { %v7984_v45 = vadd.f32 %v7983_v28, %v7929_v40  ;;  %v7869_v29 = vmax.f32 %v8720_v10, 0.0  ;;  %v7930_v4 = vmul.f32 %v7900_v63, %v7866_v14  ;;  %v8705_v6 = vadd.f32 %v6844_v18, %v15247_v22  ;;  %v7834_v20 = vpop.f32.mrb[28].mxu1  ;;  %v6846_v49 = vpop.f32.mrb[29].mxu0 }
 0x782   : > { %v7931_v9 = vmul.f32 %v7900_v63, %v7867_v30  ;;  %v7932_v15 = vmul.f32 %v7900_v63, %v7868_v26  ;;  %v8721_v17 = vadd.f32 %v7834_v20, %v15247_v22  ;;  %v8706_v23 = vadd.f32 %v6846_v49, %v15247_v22  ;;  %v7836_v52 = vpop.f32.mrb[29].mxu1 }
 0x783   : > { %v7933_v61 = vmul.f32 %v7900_v63, %v7869_v29  ;;  %v7946_v31 = vadd.f32 %v7945_v51, %v7930_v4  ;;  %v7870_v35 = vmax.f32 %v8705_v6, 0.0  ;;  %v8722_v41 = vadd.f32 %v7836_v52, %v15247_v22 }
 0x784   : > { %v7959_v27 = vadd.f32 %v7958_v0, %v7931_v9  ;;  %v7972_v21 = vadd.f32 %v7971_v36, %v7932_v15  ;;  %v7872_v11 = vmax.f32 %v8721_v17, 0.0  ;;  %v7871_v8 = vmax.f32 %v8706_v23, 0.0  ;;  %v6851_v2 = vpop.f32.mrb[30].mxu0  ;;  %v7996_v15 = vpop.permute.xlu0 %7995 }
 0x785   : > { %v7985_v13 = vadd.f32 %v7984_v45, %v7933_v61  ;;  %v7873_v7 = vmax.f32 %v8722_v41, 0.0  ;;  %v7934_v57 = vmul.f32 %v7904_v37, %v7870_v35  ;;  %v8707_v16 = vadd.f32 %v6851_v2, %v15253_v1  ;;  %v7841_v39 = vpop.f32.mrb[30].mxu1  ;;  %v6853_v50 = vpop.f32.mrb[31].mxu0 }
 0x786   : > { %v7935_v56 = vmul.f32 %v7904_v37, %v7871_v8  ;;  %v7936_v33 = vmul.f32 %v7904_v37, %v7872_v11  ;;  %v8723_v47 = vadd.f32 %v7841_v39, %v15253_v1  ;;  %v8708_v54 = vadd.f32 %v6853_v50, %v15253_v1  ;;  %v7843_v44 = vpop.f32.mrb[31].mxu1 }
 0x787   : > { %v7937_v22 = vmul.f32 %v7904_v37, %v7873_v7  ;;  %v7874_v19 = vmax.f32 %v8707_v16, 0.0  ;;  %v8724_v53 = vadd.f32 %v7843_v44, %v15253_v1  ;;  %v7947_v34 = vadd.f32 %v7946_v31, %v7934_v57 }
 0x788   : > { %v7876_v42 = vmax.f32 %v8723_v47, 0.0  ;;  %v7875_v48 = vmax.f32 %v8708_v54, 0.0  ;;  %v7960_v55 = vadd.f32 %v7959_v27, %v7935_v56  ;;  %v7973_v32 = vadd.f32 %v7972_v21, %v7936_v33  ;;  %v16487_v27 = vld [vmem:[#allocation11_spill] sm:$0xff] }
 0x789   : > { %v7877_v43 = vmax.f32 %v8724_v53, 0.0  ;;  %v7938_v28 = vmul.f32 %v7908_v12, %v7874_v19  ;;  %v7986_v5 = vadd.f32 %v7985_v13, %v7937_v22  ;;  %v9560_v36 = vmov 1966171168  }
 0x78a   : > { %v7939_v59 = vmul.f32 %v7908_v12, %v7875_v48  ;;  %v7940_v24 = vmul.f32 %v7908_v12, %v7876_v42  ;;  %v8009_v26 = vunpack.c.l.s4 %v9560_v36  ;;  %v16488_v50 = vlaneseq }
 0x78b   : > { %v7941_v38 = vmul.f32 %v7908_v12, %v7877_v43  ;;  %v7948_v25 = vadd.f32 %v7947_v34, %v7938_v28 }
 0x78c   : > { %v7961_v46 = vadd.f32 %v7960_v55, %v7939_v59  ;;  %v7974_v58 = vadd.f32 %v7973_v32, %v7940_v24  ;;  %v8010_v9 = vunpack.c.0.s8 %v8009_v26  ;;  %vm8033_vm13 = vcmp.lt.s32.totalorder %v16488_v50, 512 }
 0x78d   : > { %v7949_v60 = vrot.slane %v7948_v25, 4  ;;  %v7987_v62 = vadd.f32 %v7986_v5, %v7941_v38 }
 0x78e   : > { %v7962_v3 = vrot.slane %v7961_v46, 4  ;;  %v7975_v63 = vrot.slane %v7974_v58, 4  ;;  %v8013_v21 = vsub.s32 %v8010_v9, %v16487_v27 }
 0x78f   : > { %v7950_v1 = vadd.f32 %v7949_v60, %v7948_v25  ;;  %v7988_v40 = vrot.slane %v7987_v62, 4 }
 0x790   : > { %v7963_v51 = vadd.f32 %v7962_v3, %v7961_v46  ;;  %v7976_v14 = vadd.f32 %v7975_v63, %v7974_v58 }
 0x791   : > { %v7989_v10 = vadd.f32 %v7988_v40, %v7987_v62  ;;  %v7951_v0 = vrot.slane %v7950_v1, 2 }
 0x792   : > { %v7964_v30 = vrot.slane %v7963_v51, 2  ;;  %v7977_v18 = vrot.slane %v7976_v14, 2 }
 0x793   : > { %v7952_v45 = vadd.f32 %v7951_v0, %v7950_v1  ;;  %v7990_v29 = vrot.slane %v7989_v10, 2 }
 0x794   : > { %v7965_v4 = vadd.f32 %v7964_v30, %v7963_v51  ;;  %v7978_v6 = vadd.f32 %v7977_v18, %v7976_v14 }
 0x795   : > { %v7953_v20 = vrot.slane %v7952_v45, 1  ;;  %v7991_v49 = vadd.f32 %v7990_v29, %v7989_v10 }
 0x796   : > { %v7966_v17 = vrot.slane %v7965_v4, 1  ;;  %v7979_v23 = vrot.slane %v7978_v6, 1 }
 0x797   : > { %v7954_v52 = vadd.f32 %v7953_v20, %v7952_v45  ;;  %v7992_v37 = vrot.slane %v7991_v49, 1 }
 0x798   : > { %v7967_v61 = vadd.f32 %v7966_v17, %v7965_v4  ;;  %v7980_v31 = vadd.f32 %v7979_v23, %v7978_v6 }
 0x799   : > { %v7993_v35 = vadd.f32 %v7992_v37, %v7991_v49  ;;  %v7998_v41 = vadd.f32 %v7996_v15, %v7954_v52 }
 0x79a   : > { %v7999_v11 = vadd.f32 %v7996_v15, %v7967_v61  ;;  %v8000_v8 = vadd.f32 %v7996_v15, %v7980_v31 }
 0x79b   : > { %v8001_v2 = vadd.f32 %v7996_v15, %v7993_v35 }
 0x79c   : > { %v8006_v13 = vcombine.low %v7998_v41, %v7999_v11 }
 0x79d   : > { %v8007_v7 = vcombine.low %v8000_v8, %v8001_v2 }
 0x79e   : > { %v8014_v57 = vrot.slane %v8006_v13, %v8013_v21 }
 0x79f   : > { %v8021_v16 = vrot.slane %v8007_v7, %v8013_v21 }
 0x7a1   : > { %v8022_v39 = vcombine.low %v8014_v57, %v8021_v16 }
 0x7a3   : > { %v8029_v56 = vrot.slane %v8022_v39, %v8013_v21 }
 0x7a5   : > { %8035 = vst.msk [vmem:[%s228_s10] sm:$0xf] %vm8033_vm13, %v8029_v56 }
 0x7a6   : > { %9484 = shalt.err (!%p9481_p7)
}
 0x7a7   : > { %s9485_s25 = scalar_lea.hbm %s15279_s5, 64  ;;  %s9489_s9 = scalar_lea.hbm %s15326_s4, 256 }
 0x7a8   : > { %p9486_p9 = scmp.ne.s32.totalorder %s15279_s5, %s9485_s25  ;;  %p9490_p0 = scmp.lt.u32.totalorder %s15279_s5, %s15326_s4 }
 0x7a9   : > { %p9491_p10 = scmp.lt.u32.totalorder %s9489_s9, %s9485_s25  ;;  %p9493_p1 = scmp.lt.u32.totalorder %s9485_s25, %s15279_s5 }
 0x7aa   : > { %p9487_p11 = pnand %p9486_p9, %p9670_p12 }
 0x7ab   : > { %p9492_p2 = por %p9491_p10, %p9490_p0 }
 0x7ac   : > { %p9488_p5 = pneg %p9487_p11 }
 0x7ad   : > { %p9494_p4 = por %p9493_p1, %p9492_p2 }
 0x7af   : > { %p9495_p6 = pnand %p9494_p4, %p9488_p5 }
 0x7b1   : > { %9498 = shalt.err (!%p9495_p6)
}
 0x7b2   : > { %9179 = dma.vmem_to_hbm [thread:$0]  (%p9670_p12), %s15281_s14, 64, %s15279_s5, %s8037_s7  }
 0x7b3 PF: > { %p9196_p8 = scmp.ge.s32.totalorder %s9541_s18, 2  ;;  %s8063_s29 = sand.u32 1, %s9529_s15  }
 0x7b4   : > { %p16489_p13 = scmp.ne.s32.totalorder %s15771_s22, 0  ;;  %s8064_s21 = scalar_lea.sflag [#allocation4], %s8063_s29 }
 0x7b6   : > { %p9190_p3 = pnand %p9196_p8, %p16489_p13 }
 0x7b8   : > { %9524 = dma.done.wait (!%p9190_p3), %s8064_s21, 64  }
 0x7b9   : > { %9526 = vsyncadd (!%p9190_p3), %s8064_s21, 4294967232  ;;  %p18_p7 = scmp.ge.s32.totalorder %s9640_s27, 6   ;;  %s16490_s15 = smov %s9533_s16 }
 0x7ba   : > { %s16491_s16 = smov %s9537_s17  ;;  %s16492_s17 = smov %s9666_s24 }
 0x7bb   : > { %s16493_s18 = smov %s9640_s27  ;;  %20 = sbr.rel (!%p18_p7) target bundleno = 6 (0x6), region = 85 }
 0x7c2   :  { %8069 = vsyncpa [#allocation3], 1 }
 0x7c3   :  { %8071 = vsyncpa [#allocation3 + $0x1], 1 }
 0x7c4   :  { %8072 = vsyncpa [#allocation6], 1 }
 0x7c5   :  { %8073 = vsyncpa [#allocation4], 1 }
 0x7c6   :  { %8075 = vsyncpa [#allocation4 + $0x1], 1 }

</bundles_post_ra>
